<compile_context>
chip_gen: v6e
topology: v6e:2x2x1
jax: 0.10.0
libtpu: 0.0.40
codegen_flags: <defaults>
</compile_context>

<pallas_src>
import jax
import jax.numpy as jnp
from jax import lax
from jax.experimental import pallas as pl
from jax.experimental.pallas import tpu as pltpu

EPS = 1e-5
_TAPS = tuple((ky, kx) for ky in range(3) for kx in range(3))


def _vmem_limit_bytes():
    """Generation-aware VMEM budget: 75% of this chip's per-core capacity."""
    try:
        cap = getattr(pltpu.get_tpu_info(), "vmem_capacity_bytes", None)
    except Exception:  # pragma: no cover (interpret mode / query unavailable)
        cap = None
    if not cap:
        return 32 * 1024 * 1024
    return int(cap) * 3 // 4


def _make_conv_bnstats_kernel(pre_relu):
    """conv3x3(pre_affine(x)) for one batch tile + per-tile BN partial stats.

    Refs (one grid step == `block_n` samples):
      x_ref     : (bn, H, W, Cin)      f32   input tile
      scale_ref : (1, Cin)             f32   pre-conv per-channel scale
      shift_ref : (1, Cin)             f32   pre-conv per-channel shift
      w_ref     : (9, Cin, Cout)       bf16  conv taps, tap index = ky*3 + kx
      y_ref     : (bn, H, W, Cout)     f32   raw conv output tile
      stats_ref : (1, 2, Cout)         f32   per-tile [sum, sum_sq] of conv out
      pad_ref   : (bn, H+2, W+2, Cin)  bf16  zero-halo scratch (rebuilt per tile)
      acc_ref   : (bn*H*W, Cout)       f32   matmul accumulator scratch
    """

    def kernel(x_ref, scale_ref, shift_ref, w_ref, y_ref, stats_ref,
               pad_ref, acc_ref):
        bn, H, W, cin = x_ref.shape
        cout = w_ref.shape[-1]
        n_pix = bn * H * W

        # ---- pre-conv per-channel affine (+ optional ReLU), cast to bf16 ----
        x = x_ref[...] * scale_ref[...] + shift_ref[...]
        if pre_relu:
            x = jnp.maximum(x, 0.0)
        xb = x.astype(pad_ref.dtype)

        # ---- rebuild the zero-halo padded tile with three dense band stores -
        zrow = jnp.zeros((bn, 1, W + 2, cin), pad_ref.dtype)
        zcol = jnp.zeros((bn, H, 1, cin), pad_ref.dtype)
        pad_ref[:, 0:1, :, :] = zrow
        pad_ref[:, H + 1:H + 2, :, :] = zrow
        pad_ref[:, 1:H + 1, :, :] = jnp.concatenate([zcol, xb, zcol], axis=2)

        # ---- 3x3 conv: 9 per-tap MXU matmuls (K = Cin) into f32 scratch -----
        for t, (ky, kx) in enumerate(_TAPS):
            win = pad_ref[:, ky:ky + H, kx:kx + W, :].reshape(n_pix, cin)
            tap = jnp.dot(win, w_ref[t], preferred_element_type=jnp.float32)
            if t == 0:
                acc_ref[...] = tap
            else:
                acc_ref[...] += tap

        acc = acc_ref[...]

        # ---- per-tile partial BN statistics (finalized in the wrapper) ------
        s = jnp.sum(acc, axis=0, keepdims=True)           # (1, Cout)
        sq = jnp.sum(acc * acc, axis=0, keepdims=True)    # (1, Cout)
        stats_ref[...] = jnp.concatenate([s, sq], axis=0)[None]

        y_ref[...] = acc.reshape(bn, H, W, cout)

    return kernel


def _bn_residual_relu_kernel(y_ref, x_ref, scale_ref, shift_ref, o_ref):
    """out = relu(scale * y + shift + x), per batch tile."""
    o_ref[...] = jnp.maximum(
        y_ref[...] * scale_ref[...] + shift_ref[...] + x_ref[...], 0.0)


def _conv_bnstats(x, scale, shift, w, *, pre_relu, block_n, compiler_params):
    N, H, W, cin = x.shape
    cout = w.shape[-1]
    n_tiles = N // block_n

    x_spec = pl.BlockSpec((block_n, H, W, cin), lambda i: (i, 0, 0, 0))
    vec_spec = pl.BlockSpec((1, cin), lambda i: (0, 0))      # resident
    w_spec = pl.BlockSpec((9, cin, cout), lambda i: (0, 0, 0))  # resident
    y_spec = pl.BlockSpec((block_n, H, W, cout), lambda i: (i, 0, 0, 0))
    stats_spec = pl.BlockSpec((1, 2, cout), lambda i: (i, 0, 0))

    return pl.pallas_call(
        _make_conv_bnstats_kernel(pre_relu),
        grid=(n_tiles,),
        in_specs=[x_spec, vec_spec, vec_spec, w_spec],
        out_specs=[y_spec, stats_spec],
        out_shape=(
            jax.ShapeDtypeStruct((N, H, W, cout), jnp.float32),
            jax.ShapeDtypeStruct((n_tiles, 2, cout), jnp.float32),
        ),
        scratch_shapes=[
            pltpu.VMEM((block_n, H + 2, W + 2, cin), jnp.bfloat16),
            pltpu.VMEM((block_n * H * W, cout), jnp.float32),
        ],
        compiler_params=compiler_params,
    )(x, scale, shift, w)


def _bn_residual_relu(y, x, scale, shift, *, block_n, compiler_params):
    N, H, W, cout = y.shape
    cin = x.shape[-1]
    n_tiles = N // block_n
    y_spec = pl.BlockSpec((block_n, H, W, cout), lambda i: (i, 0, 0, 0))
    x_spec = pl.BlockSpec((block_n, H, W, cin), lambda i: (i, 0, 0, 0))
    vec_spec = pl.BlockSpec((1, cout), lambda i: (0, 0))
    return pl.pallas_call(
        _bn_residual_relu_kernel,
        grid=(n_tiles,),
        in_specs=[y_spec, x_spec, vec_spec, vec_spec],
        out_specs=y_spec,
        out_shape=jax.ShapeDtypeStruct((N, H, W, cout), jnp.float32),
        compiler_params=compiler_params,
    )(y, x, scale, shift)


def _bn_scale_shift(stats, count, gamma, beta):
    """Finalize BatchNorm from per-tile partial sums (tiny, pure JAX)."""
    total = jnp.sum(stats, axis=0)                         # (2, Cout)
    mean = total[0] / count
    var = jnp.maximum(total[1] / count - mean * mean, 0.0)  # clamp cancellation
    scale = gamma * lax.rsqrt(var + EPS)
    shift = beta - mean * scale
    return scale.reshape(1, -1), shift.reshape(1, -1)


def sto_basic_block(x_nchw, w1, g1, b1, w2, g2, b2, *, block_n=1):
    """x_nchw: (N, C, H, W) f32 (PyTorch layout); w1: (3,3,C,P), w2: (3,3,P,P)
    in HWIO; g*/b*: (P,).  Returns (N, P, H, W) f32."""
    x = jnp.transpose(x_nchw, (0, 2, 3, 1))                # NCHW -> NHWC
    N, H, W, C = x.shape
    P = w1.shape[-1]
    assert C == P, "identity shortcut requires inplanes == planes"
    assert N % block_n == 0
    assert W % 8 == 0, "W should be a multiple of 8 for cheap in-kernel reshapes"

    # HWIO -> (tap, Cin, Cout); tap index = ky*3 + kx (matches _TAPS order).
    w1r = w1.reshape(9, C, P).astype(jnp.bfloat16)
    w2r = w2.reshape(9, P, P).astype(jnp.bfloat16)

    cp = pltpu.CompilerParams(
        dimension_semantics=("parallel",),      # megacore splits batch tiles on v7x
        vmem_limit_bytes=_vmem_limit_bytes())

    count = float(N * H * W)
    ident = jnp.ones((1, C), jnp.float32)
    zero = jnp.zeros((1, C), jnp.float32)

    # Phase 1: conv1 + BN1 partial statistics.
    conv1, stats1 = _conv_bnstats(x, ident, zero, w1r, pre_relu=False,
                                  block_n=block_n, compiler_params=cp)
    s1, t1 = _bn_scale_shift(stats1, count, g1, b1)

    # Phase 2: apply BN1 + ReLU, conv2 + BN2 partial statistics.
    conv2, stats2 = _conv_bnstats(conv1, s1, t1, w2r, pre_relu=True,
                                  block_n=block_n, compiler_params=cp)
    s2, t2 = _bn_scale_shift(stats2, count, g2, b2)

    # Phase 3: apply BN2, add identity residual, ReLU.
    out = _bn_residual_relu(conv2, x, s2, t2, block_n=block_n, compiler_params=cp)
    return jnp.transpose(out, (0, 3, 1, 2))                # back to NCHW


def _reference(x_nchw, w1, g1, b1, w2, g2, b2):
    """Pure-JAX reference with the same mixed-precision policy as the kernel
    (bf16 conv operands, f32 accumulation and BatchNorm)."""
    x = jnp.transpose(x_nchw, (0, 2, 3, 1))

    def conv3x3(a, w):
        return lax.conv_general_dilated(
            a.astype(jnp.bfloat16), w.astype(jnp.bfloat16),
            window_strides=(1, 1), padding="SAME",
            dimension_numbers=("NHWC", "HWIO", "NHWC"),
            preferred_element_type=jnp.float32)

    def bn(a, g, b):
        m = a.mean(axis=(0, 1, 2), keepdims=True)
        v = ((a - m) ** 2).mean(axis=(0, 1, 2), keepdims=True)
        return (a - m) * lax.rsqrt(v + EPS) * g + b

    out = jnp.maximum(bn(conv3x3(x, w1), g1, b1), 0.0)
    out = bn(conv3x3(out, w2), g2, b2)
    out = jnp.maximum(out + x, 0.0)
    return jnp.transpose(out, (0, 3, 1, 2))


if __name__ == "__main__":
    # Small shapes: batch=2, inplanes=planes=4, spatial 16x16, stride=1.
    N, C, H, W = 2, 4, 16, 16
    P = C  # planes == inplanes -> identity shortcut, downsample=None

    key = jax.random.PRNGKey(0)
    kx_, k1, k2 = jax.random.split(key, 3)

    x = jax.random.normal(kx_, (N, C, H, W), jnp.float32)      # NCHW like PyTorch
    w1 = 0.1 * jax.random.normal(k1, (3, 3, C, P), jnp.float32)
    w2 = 0.1 * jax.random.normal(k2, (3, 3, P, P), jnp.float32)
    g1 = 1.0 + 0.1 * jnp.arange(P, dtype=jnp.float32)
    b1 = 0.05 * jnp.arange(P, dtype=jnp.float32)
    g2 = 1.0 - 0.05 * jnp.arange(P, dtype=jnp.float32)
    b2 = -0.02 * jnp.arange(P, dtype=jnp.float32)

    fn = jax.jit(sto_basic_block)
    out = jax.block_until_ready(fn(x, w1, g1, b1, w2, g2, b2))
    ref = jax.block_until_ready(_reference(x, w1, g1, b1, w2, g2, b2))

    assert out.shape == (N, P, H, W)
    # Tolerance accounts for bf16 conv operands / accumulation-order differences.
    err = float(jnp.max(jnp.abs(out - ref)))
    assert jnp.allclose(out, ref, rtol=2e-2, atol=2e-2), err

    print("KERNEL_OK")
</pallas_src>

<mosaic_0001>
module attributes {stable_mosaic.version = 11 : i64} {
  func.func @kernel(%arg0: i32, %arg1: memref<1x16x16x4xf32, #tpu.memory_space<vmem>>, %arg2: memref<1x4xf32, #tpu.memory_space<vmem>>, %arg3: memref<1x4xf32, #tpu.memory_space<vmem>>, %arg4: memref<9x4x4xbf16, #tpu.memory_space<vmem>>, %arg5: memref<1x16x16x4xf32, #tpu.memory_space<vmem>>, %arg6: memref<1x2x4xf32, #tpu.memory_space<vmem>>, %arg7: memref<1x18x18x4xbf16, #tpu.memory_space<vmem>>, %arg8: memref<256x4xf32, #tpu.memory_space<vmem>>) attributes {dimension_semantics = [#tpu.dimension_semantics<parallel>], iteration_bounds = array<i64: 2>, scalar_prefetch = 0 : i64, scratch_operands = 2 : i64, tpu.core_type = #tpu.core_type<tc>, window_params = [{transform_indices = @transform_0, window_bounds = array<i64: 1, 16, 16, 4>}, {pipeline_mode = #tpu.pipeline_mode<synchronous>, transform_indices = @transform_1, window_bounds = array<i64: 1, 4>}, {pipeline_mode = #tpu.pipeline_mode<synchronous>, transform_indices = @transform_2, window_bounds = array<i64: 1, 4>}, {pipeline_mode = #tpu.pipeline_mode<synchronous>, transform_indices = @transform_3, window_bounds = array<i64: 9, 4, 4>}, {transform_indices = @transform_4, window_bounds = array<i64: 1, 16, 16, 4>}, {transform_indices = @transform_5, window_bounds = array<i64: 1, 2, 4>}]} {
    %c0 = arith.constant 0 : index
    %c0_0 = arith.constant 0 : index
    %c0_1 = arith.constant 0 : index
    %c0_2 = arith.constant 0 : index
    %0 = vector.load %arg1[%c0, %c0_0, %c0_1, %c0_2] : memref<1x16x16x4xf32, #tpu.memory_space<vmem>>, vector<1x16x16x4xf32>
    %c0_3 = arith.constant 0 : index
    %c0_4 = arith.constant 0 : index
    %1 = vector.load %arg2[%c0_3, %c0_4] : memref<1x4xf32, #tpu.memory_space<vmem>>, vector<1x4xf32>
    %2 = vector.shape_cast %1 : vector<1x4xf32> to vector<1x1x1x4xf32>
    %3 = vector.broadcast %2 : vector<1x1x1x4xf32> to vector<1x16x16x4xf32>
    %4 = arith.mulf %0, %3 : vector<1x16x16x4xf32>
    %c0_5 = arith.constant 0 : index
    %c0_6 = arith.constant 0 : index
    %5 = vector.load %arg3[%c0_5, %c0_6] : memref<1x4xf32, #tpu.memory_space<vmem>>, vector<1x4xf32>
    %6 = vector.shape_cast %5 : vector<1x4xf32> to vector<1x1x1x4xf32>
    %7 = vector.broadcast %6 : vector<1x1x1x4xf32> to vector<1x16x16x4xf32>
    %8 = arith.addf %4, %7 : vector<1x16x16x4xf32>
    %9 = arith.truncf %8 : vector<1x16x16x4xf32> to vector<1x16x16x4xbf16>
    %cst = arith.constant 0.000000e+00 : bf16
    %10 = vector.broadcast %cst : bf16 to vector<1x1x18x4xbf16>
    %cst_7 = arith.constant 0.000000e+00 : bf16
    %11 = vector.broadcast %cst_7 : bf16 to vector<1x16x1x4xbf16>
    %c0_8 = arith.constant 0 : index
    %c0_9 = arith.constant 0 : index
    %c0_10 = arith.constant 0 : index
    %c0_11 = arith.constant 0 : index
    %12 = vector.load %arg7[%c0_8, %c0_9, %c0_10, %c0_11] : memref<1x18x18x4xbf16, #tpu.memory_space<vmem>>, vector<1x1x18x4xbf16>
    tpu.vector_store %arg7[%c0_8, %c0_9, %c0_10, %c0_11], %10 {strides = array<i32>} : memref<1x18x18x4xbf16, #tpu.memory_space<vmem>>, vector<1x1x18x4xbf16>,
    %c0_12 = arith.constant 0 : index
    %c17 = arith.constant 17 : index
    %c0_13 = arith.constant 0 : index
    %c0_14 = arith.constant 0 : index
    %13 = vector.load %arg7[%c0_12, %c17, %c0_13, %c0_14] : memref<1x18x18x4xbf16, #tpu.memory_space<vmem>>, vector<1x1x18x4xbf16>
    tpu.vector_store %arg7[%c0_12, %c17, %c0_13, %c0_14], %10 {strides = array<i32>} : memref<1x18x18x4xbf16, #tpu.memory_space<vmem>>, vector<1x1x18x4xbf16>,
    %14 = tpu.concatenate %11, %9, %11 in 2 : vector<1x16x1x4xbf16>, vector<1x16x16x4xbf16>, vector<1x16x1x4xbf16> -> vector<1x16x18x4xbf16>
    %c0_15 = arith.constant 0 : index
    %c1 = arith.constant 1 : index
    %c0_16 = arith.constant 0 : index
    %c0_17 = arith.constant 0 : index
    %15 = vector.load %arg7[%c0_15, %c1, %c0_16, %c0_17] : memref<1x18x18x4xbf16, #tpu.memory_space<vmem>>, vector<1x16x18x4xbf16>
    tpu.vector_store %arg7[%c0_15, %c1, %c0_16, %c0_17], %14 {strides = array<i32>} : memref<1x18x18x4xbf16, #tpu.memory_space<vmem>>, vector<1x16x18x4xbf16>,
    %c0_18 = arith.constant 0 : index
    %c0_19 = arith.constant 0 : index
    %c0_20 = arith.constant 0 : index
    %c0_21 = arith.constant 0 : index
    %16 = vector.load %arg7[%c0_18, %c0_19, %c0_20, %c0_21] : memref<1x18x18x4xbf16, #tpu.memory_space<vmem>>, vector<1x16x16x4xbf16>
    %17 = vector.shape_cast %16 : vector<1x16x16x4xbf16> to vector<256x4xbf16>
    %c0_22 = arith.constant 0 : index
    %c0_23 = arith.constant 0 : index
    %c0_24 = arith.constant 0 : index
    %18 = vector.load %arg4[%c0_22, %c0_23, %c0_24] : memref<9x4x4xbf16, #tpu.memory_space<vmem>>, vector<1x4x4xbf16>
    %19 = vector.shape_cast %18 : vector<1x4x4xbf16> to vector<4x4xbf16>
    %cst_25 = arith.constant dense<0.000000e+00> : vector<256x4xf32>
    %20 = tpu.matmul %17, %19, %cst_25 {dimension_numbers = #tpu.dot_dimension_numbers<[1], [0], [0], [1], [0, 0, 1, 1], [], []>} : vector<256x4xbf16>, vector<4x4xbf16>, vector<256x4xf32> -> vector<256x4xf32>
    %c0_26 = arith.constant 0 : index
    %c0_27 = arith.constant 0 : index
    %21 = vector.load %arg8[%c0_26, %c0_27] : memref<256x4xf32, #tpu.memory_space<vmem>>, vector<256x4xf32>
    tpu.vector_store %arg8[%c0_26, %c0_27], %20 {strides = array<i32>} : memref<256x4xf32, #tpu.memory_space<vmem>>, vector<256x4xf32>,
    %c0_28 = arith.constant 0 : index
    %c0_29 = arith.constant 0 : index
    %c1_30 = arith.constant 1 : index
    %c0_31 = arith.constant 0 : index
    %22 = vector.load %arg7[%c0_28, %c0_29, %c1_30, %c0_31] : memref<1x18x18x4xbf16, #tpu.memory_space<vmem>>, vector<1x16x16x4xbf16>
    %23 = vector.shape_cast %22 : vector<1x16x16x4xbf16> to vector<256x4xbf16>
    %c1_32 = arith.constant 1 : index
    %c0_33 = arith.constant 0 : index
    %c0_34 = arith.constant 0 : index
    %24 = vector.load %arg4[%c1_32, %c0_33, %c0_34] : memref<9x4x4xbf16, #tpu.memory_space<vmem>>, vector<1x4x4xbf16>
    %25 = vector.shape_cast %24 : vector<1x4x4xbf16> to vector<4x4xbf16>
    %cst_35 = arith.constant dense<0.000000e+00> : vector<256x4xf32>
    %26 = tpu.matmul %23, %25, %cst_35 {dimension_numbers = #tpu.dot_dimension_numbers<[1], [0], [0], [1], [0, 0, 1, 1], [], []>} : vector<256x4xbf16>, vector<4x4xbf16>, vector<256x4xf32> -> vector<256x4xf32>
    %c0_36 = arith.constant 0 : index
    %c0_37 = arith.constant 0 : index
    %27 = vector.load %arg8[%c0_36, %c0_37] : memref<256x4xf32, #tpu.memory_space<vmem>>, vector<256x4xf32>
    %28 = arith.addf %27, %26 : vector<256x4xf32>
    %c0_38 = arith.constant 0 : index
    %c0_39 = arith.constant 0 : index
    %29 = vector.load %arg8[%c0_38, %c0_39] : memref<256x4xf32, #tpu.memory_space<vmem>>, vector<256x4xf32>
    tpu.vector_store %arg8[%c0_38, %c0_39], %28 {strides = array<i32>} : memref<256x4xf32, #tpu.memory_space<vmem>>, vector<256x4xf32>,
    %c0_40 = arith.constant 0 : index
    %c0_41 = arith.constant 0 : index
    %c2 = arith.constant 2 : index
    %c0_42 = arith.constant 0 : index
    %30 = vector.load %arg7[%c0_40, %c0_41, %c2, %c0_42] : memref<1x18x18x4xbf16, #tpu.memory_space<vmem>>, vector<1x16x16x4xbf16>
    %31 = vector.shape_cast %30 : vector<1x16x16x4xbf16> to vector<256x4xbf16>
    %c2_43 = arith.constant 2 : index
    %c0_44 = arith.constant 0 : index
    %c0_45 = arith.constant 0 : index
    %32 = vector.load %arg4[%c2_43, %c0_44, %c0_45] : memref<9x4x4xbf16, #tpu.memory_space<vmem>>, vector<1x4x4xbf16>
    %33 = vector.shape_cast %32 : vector<1x4x4xbf16> to vector<4x4xbf16>
    %cst_46 = arith.constant dense<0.000000e+00> : vector<256x4xf32>
    %34 = tpu.matmul %31, %33, %cst_46 {dimension_numbers = #tpu.dot_dimension_numbers<[1], [0], [0], [1], [0, 0, 1, 1], [], []>} : vector<256x4xbf16>, vector<4x4xbf16>, vector<256x4xf32> -> vector<256x4xf32>
    %c0_47 = arith.constant 0 : index
    %c0_48 = arith.constant 0 : index
    %35 = vector.load %arg8[%c0_47, %c0_48] : memref<256x4xf32, #tpu.memory_space<vmem>>, vector<256x4xf32>
    %36 = arith.addf %35, %34 : vector<256x4xf32>
    %c0_49 = arith.constant 0 : index
    %c0_50 = arith.constant 0 : index
    %37 = vector.load %arg8[%c0_49, %c0_50] : memref<256x4xf32, #tpu.memory_space<vmem>>, vector<256x4xf32>
    tpu.vector_store %arg8[%c0_49, %c0_50], %36 {strides = array<i32>} : memref<256x4xf32, #tpu.memory_space<vmem>>, vector<256x4xf32>,
    %c0_51 = arith.constant 0 : index
    %c1_52 = arith.constant 1 : index
    %c0_53 = arith.constant 0 : index
    %c0_54 = arith.constant 0 : index
    %38 = vector.load %arg7[%c0_51, %c1_52, %c0_53, %c0_54] : memref<1x18x18x4xbf16, #tpu.memory_space<vmem>>, vector<1x16x16x4xbf16>
    %39 = vector.shape_cast %38 : vector<1x16x16x4xbf16> to vector<256x4xbf16>
    %c3 = arith.constant 3 : index
    %c0_55 = arith.constant 0 : index
    %c0_56 = arith.constant 0 : index
    %40 = vector.load %arg4[%c3, %c0_55, %c0_56] : memref<9x4x4xbf16, #tpu.memory_space<vmem>>, vector<1x4x4xbf16>
    %41 = vector.shape_cast %40 : vector<1x4x4xbf16> to vector<4x4xbf16>
    %cst_57 = arith.constant dense<0.000000e+00> : vector<256x4xf32>
    %42 = tpu.matmul %39, %41, %cst_57 {dimension_numbers = #tpu.dot_dimension_numbers<[1], [0], [0], [1], [0, 0, 1, 1], [], []>} : vector<256x4xbf16>, vector<4x4xbf16>, vector<256x4xf32> -> vector<256x4xf32>
    %c0_58 = arith.constant 0 : index
    %c0_59 = arith.constant 0 : index
    %43 = vector.load %arg8[%c0_58, %c0_59] : memref<256x4xf32, #tpu.memory_space<vmem>>, vector<256x4xf32>
    %44 = arith.addf %43, %42 : vector<256x4xf32>
    %c0_60 = arith.constant 0 : index
    %c0_61 = arith.constant 0 : index
    %45 = vector.load %arg8[%c0_60, %c0_61] : memref<256x4xf32, #tpu.memory_space<vmem>>, vector<256x4xf32>
    tpu.vector_store %arg8[%c0_60, %c0_61], %44 {strides = array<i32>} : memref<256x4xf32, #tpu.memory_space<vmem>>, vector<256x4xf32>,
    %c0_62 = arith.constant 0 : index
    %c1_63 = arith.constant 1 : index
    %c1_64 = arith.constant 1 : index
    %c0_65 = arith.constant 0 : index
    %46 = vector.load %arg7[%c0_62, %c1_63, %c1_64, %c0_65] : memref<1x18x18x4xbf16, #tpu.memory_space<vmem>>, vector<1x16x16x4xbf16>
    %47 = vector.shape_cast %46 : vector<1x16x16x4xbf16> to vector<256x4xbf16>
    %c4 = arith.constant 4 : index
    %c0_66 = arith.constant 0 : index
    %c0_67 = arith.constant 0 : index
    %48 = vector.load %arg4[%c4, %c0_66, %c0_67] : memref<9x4x4xbf16, #tpu.memory_space<vmem>>, vector<1x4x4xbf16>
    %49 = vector.shape_cast %48 : vector<1x4x4xbf16> to vector<4x4xbf16>
    %cst_68 = arith.constant dense<0.000000e+00> : vector<256x4xf32>
    %50 = tpu.matmul %47, %49, %cst_68 {dimension_numbers = #tpu.dot_dimension_numbers<[1], [0], [0], [1], [0, 0, 1, 1], [], []>} : vector<256x4xbf16>, vector<4x4xbf16>, vector<256x4xf32> -> vector<256x4xf32>
    %c0_69 = arith.constant 0 : index
    %c0_70 = arith.constant 0 : index
    %51 = vector.load %arg8[%c0_69, %c0_70] : memref<256x4xf32, #tpu.memory_space<vmem>>, vector<256x4xf32>
    %52 = arith.addf %51, %50 : vector<256x4xf32>
    %c0_71 = arith.constant 0 : index
    %c0_72 = arith.constant 0 : index
    %53 = vector.load %arg8[%c0_71, %c0_72] : memref<256x4xf32, #tpu.memory_space<vmem>>, vector<256x4xf32>
    tpu.vector_store %arg8[%c0_71, %c0_72], %52 {strides = array<i32>} : memref<256x4xf32, #tpu.memory_space<vmem>>, vector<256x4xf32>,
    %c0_73 = arith.constant 0 : index
    %c1_74 = arith.constant 1 : index
    %c2_75 = arith.constant 2 : index
    %c0_76 = arith.constant 0 : index
    %54 = vector.load %arg7[%c0_73, %c1_74, %c2_75, %c0_76] : memref<1x18x18x4xbf16, #tpu.memory_space<vmem>>, vector<1x16x16x4xbf16>
    %55 = vector.shape_cast %54 : vector<1x16x16x4xbf16> to vector<256x4xbf16>
    %c5 = arith.constant 5 : index
    %c0_77 = arith.constant 0 : index
    %c0_78 = arith.constant 0 : index
    %56 = vector.load %arg4[%c5, %c0_77, %c0_78] : memref<9x4x4xbf16, #tpu.memory_space<vmem>>, vector<1x4x4xbf16>
    %57 = vector.shape_cast %56 : vector<1x4x4xbf16> to vector<4x4xbf16>
    %cst_79 = arith.constant dense<0.000000e+00> : vector<256x4xf32>
    %58 = tpu.matmul %55, %57, %cst_79 {dimension_numbers = #tpu.dot_dimension_numbers<[1], [0], [0], [1], [0, 0, 1, 1], [], []>} : vector<256x4xbf16>, vector<4x4xbf16>, vector<256x4xf32> -> vector<256x4xf32>
    %c0_80 = arith.constant 0 : index
    %c0_81 = arith.constant 0 : index
    %59 = vector.load %arg8[%c0_80, %c0_81] : memref<256x4xf32, #tpu.memory_space<vmem>>, vector<256x4xf32>
    %60 = arith.addf %59, %58 : vector<256x4xf32>
    %c0_82 = arith.constant 0 : index
    %c0_83 = arith.constant 0 : index
    %61 = vector.load %arg8[%c0_82, %c0_83] : memref<256x4xf32, #tpu.memory_space<vmem>>, vector<256x4xf32>
    tpu.vector_store %arg8[%c0_82, %c0_83], %60 {strides = array<i32>} : memref<256x4xf32, #tpu.memory_space<vmem>>, vector<256x4xf32>,
    %c0_84 = arith.constant 0 : index
    %c2_85 = arith.constant 2 : index
    %c0_86 = arith.constant 0 : index
    %c0_87 = arith.constant 0 : index
    %62 = vector.load %arg7[%c0_84, %c2_85, %c0_86, %c0_87] : memref<1x18x18x4xbf16, #tpu.memory_space<vmem>>, vector<1x16x16x4xbf16>
    %63 = vector.shape_cast %62 : vector<1x16x16x4xbf16> to vector<256x4xbf16>
    %c6 = arith.constant 6 : index
    %c0_88 = arith.constant 0 : index
    %c0_89 = arith.constant 0 : index
    %64 = vector.load %arg4[%c6, %c0_88, %c0_89] : memref<9x4x4xbf16, #tpu.memory_space<vmem>>, vector<1x4x4xbf16>
    %65 = vector.shape_cast %64 : vector<1x4x4xbf16> to vector<4x4xbf16>
    %cst_90 = arith.constant dense<0.000000e+00> : vector<256x4xf32>
    %66 = tpu.matmul %63, %65, %cst_90 {dimension_numbers = #tpu.dot_dimension_numbers<[1], [0], [0], [1], [0, 0, 1, 1], [], []>} : vector<256x4xbf16>, vector<4x4xbf16>, vector<256x4xf32> -> vector<256x4xf32>
    %c0_91 = arith.constant 0 : index
    %c0_92 = arith.constant 0 : index
    %67 = vector.load %arg8[%c0_91, %c0_92] : memref<256x4xf32, #tpu.memory_space<vmem>>, vector<256x4xf32>
    %68 = arith.addf %67, %66 : vector<256x4xf32>
    %c0_93 = arith.constant 0 : index
    %c0_94 = arith.constant 0 : index
    %69 = vector.load %arg8[%c0_93, %c0_94] : memref<256x4xf32, #tpu.memory_space<vmem>>, vector<256x4xf32>
    tpu.vector_store %arg8[%c0_93, %c0_94], %68 {strides = array<i32>} : memref<256x4xf32, #tpu.memory_space<vmem>>, vector<256x4xf32>,
    %c0_95 = arith.constant 0 : index
    %c2_96 = arith.constant 2 : index
    %c1_97 = arith.constant 1 : index
    %c0_98 = arith.constant 0 : index
    %70 = vector.load %arg7[%c0_95, %c2_96, %c1_97, %c0_98] : memref<1x18x18x4xbf16, #tpu.memory_space<vmem>>, vector<1x16x16x4xbf16>
    %71 = vector.shape_cast %70 : vector<1x16x16x4xbf16> to vector<256x4xbf16>
    %c7 = arith.constant 7 : index
    %c0_99 = arith.constant 0 : index
    %c0_100 = arith.constant 0 : index
    %72 = vector.load %arg4[%c7, %c0_99, %c0_100] : memref<9x4x4xbf16, #tpu.memory_space<vmem>>, vector<1x4x4xbf16>
    %73 = vector.shape_cast %72 : vector<1x4x4xbf16> to vector<4x4xbf16>
    %cst_101 = arith.constant dense<0.000000e+00> : vector<256x4xf32>
    %74 = tpu.matmul %71, %73, %cst_101 {dimension_numbers = #tpu.dot_dimension_numbers<[1], [0], [0], [1], [0, 0, 1, 1], [], []>} : vector<256x4xbf16>, vector<4x4xbf16>, vector<256x4xf32> -> vector<256x4xf32>
    %c0_102 = arith.constant 0 : index
    %c0_103 = arith.constant 0 : index
    %75 = vector.load %arg8[%c0_102, %c0_103] : memref<256x4xf32, #tpu.memory_space<vmem>>, vector<256x4xf32>
    %76 = arith.addf %75, %74 : vector<256x4xf32>
    %c0_104 = arith.constant 0 : index
    %c0_105 = arith.constant 0 : index
    %77 = vector.load %arg8[%c0_104, %c0_105] : memref<256x4xf32, #tpu.memory_space<vmem>>, vector<256x4xf32>
    tpu.vector_store %arg8[%c0_104, %c0_105], %76 {strides = array<i32>} : memref<256x4xf32, #tpu.memory_space<vmem>>, vector<256x4xf32>,
    %c0_106 = arith.constant 0 : index
    %c2_107 = arith.constant 2 : index
    %c2_108 = arith.constant 2 : index
    %c0_109 = arith.constant 0 : index
    %78 = vector.load %arg7[%c0_106, %c2_107, %c2_108, %c0_109] : memref<1x18x18x4xbf16, #tpu.memory_space<vmem>>, vector<1x16x16x4xbf16>
    %79 = vector.shape_cast %78 : vector<1x16x16x4xbf16> to vector<256x4xbf16>
    %c8 = arith.constant 8 : index
    %c0_110 = arith.constant 0 : index
    %c0_111 = arith.constant 0 : index
    %80 = vector.load %arg4[%c8, %c0_110, %c0_111] : memref<9x4x4xbf16, #tpu.memory_space<vmem>>, vector<1x4x4xbf16>
    %81 = vector.shape_cast %80 : vector<1x4x4xbf16> to vector<4x4xbf16>
    %cst_112 = arith.constant dense<0.000000e+00> : vector<256x4xf32>
    %82 = tpu.matmul %79, %81, %cst_112 {dimension_numbers = #tpu.dot_dimension_numbers<[1], [0], [0], [1], [0, 0, 1, 1], [], []>} : vector<256x4xbf16>, vector<4x4xbf16>, vector<256x4xf32> -> vector<256x4xf32>
    %c0_113 = arith.constant 0 : index
    %c0_114 = arith.constant 0 : index
    %83 = vector.load %arg8[%c0_113, %c0_114] : memref<256x4xf32, #tpu.memory_space<vmem>>, vector<256x4xf32>
    %84 = arith.addf %83, %82 : vector<256x4xf32>
    %c0_115 = arith.constant 0 : index
    %c0_116 = arith.constant 0 : index
    %85 = vector.load %arg8[%c0_115, %c0_116] : memref<256x4xf32, #tpu.memory_space<vmem>>, vector<256x4xf32>
    tpu.vector_store %arg8[%c0_115, %c0_116], %84 {strides = array<i32>} : memref<256x4xf32, #tpu.memory_space<vmem>>, vector<256x4xf32>,
    %c0_117 = arith.constant 0 : index
    %c0_118 = arith.constant 0 : index
    %86 = vector.load %arg8[%c0_117, %c0_118] : memref<256x4xf32, #tpu.memory_space<vmem>>, vector<256x4xf32>
    %cst_119 = arith.constant dense<0.000000e+00> : vector<4xf32>
    %87 = vector.multi_reduction <add>, %86, %cst_119 [0] : vector<256x4xf32> to vector<4xf32>
    %88 = vector.shape_cast %87 : vector<4xf32> to vector<1x4xf32>
    %89 = arith.mulf %86, %86 : vector<256x4xf32>
    %cst_120 = arith.constant dense<0.000000e+00> : vector<4xf32>
    %90 = vector.multi_reduction <add>, %89, %cst_120 [0] : vector<256x4xf32> to vector<4xf32>
    %91 = vector.shape_cast %90 : vector<4xf32> to vector<1x4xf32>
    %92 = tpu.concatenate %88, %91 in 0 : vector<1x4xf32>, vector<1x4xf32> -> vector<2x4xf32>
    %93 = vector.shape_cast %92 : vector<2x4xf32> to vector<1x2x4xf32>
    %c0_121 = arith.constant 0 : index
    %c0_122 = arith.constant 0 : index
    %c0_123 = arith.constant 0 : index
    %94 = vector.load %arg6[%c0_121, %c0_122, %c0_123] : memref<1x2x4xf32, #tpu.memory_space<vmem>>, vector<1x2x4xf32>
    tpu.vector_store %arg6[%c0_121, %c0_122, %c0_123], %93 {strides = array<i32>} : memref<1x2x4xf32, #tpu.memory_space<vmem>>, vector<1x2x4xf32>,
    %95 = vector.shape_cast %86 : vector<256x4xf32> to vector<1x16x16x4xf32>
    %c0_124 = arith.constant 0 : index
    %c0_125 = arith.constant 0 : index
    %c0_126 = arith.constant 0 : index
    %c0_127 = arith.constant 0 : index
    %96 = vector.load %arg5[%c0_124, %c0_125, %c0_126, %c0_127] : memref<1x16x16x4xf32, #tpu.memory_space<vmem>>, vector<1x16x16x4xf32>
    tpu.vector_store %arg5[%c0_124, %c0_125, %c0_126, %c0_127], %95 {strides = array<i32>} : memref<1x16x16x4xf32, #tpu.memory_space<vmem>>, vector<1x16x16x4xf32>,
    return
  }
  func.func @transform_0(%arg0: i32) -> (i32, i32, i32, i32) {
    %c0_i32 = arith.constant 0 : i32
    %c0_i32_0 = arith.constant 0 : i32
    %c0_i32_1 = arith.constant 0 : i32
    %c0_i32_2 = arith.constant 0 : i32
    return %arg0, %c0_i32, %c0_i32_0, %c0_i32_1 : i32, i32, i32, i32
  }
  func.func @transform_1(%arg0: i32) -> (i32, i32) {
    %c0_i32 = arith.constant 0 : i32
    %c0_i32_0 = arith.constant 0 : i32
    %c0_i32_1 = arith.constant 0 : i32
    return %c0_i32, %c0_i32_0 : i32, i32
  }
  func.func @transform_2(%arg0: i32) -> (i32, i32) {
    %c0_i32 = arith.constant 0 : i32
    %c0_i32_0 = arith.constant 0 : i32
    %c0_i32_1 = arith.constant 0 : i32
    return %c0_i32, %c0_i32_0 : i32, i32
  }
  func.func @transform_3(%arg0: i32) -> (i32, i32, i32) {
    %c0_i32 = arith.constant 0 : i32
    %c0_i32_0 = arith.constant 0 : i32
    %c0_i32_1 = arith.constant 0 : i32
    %c0_i32_2 = arith.constant 0 : i32
    return %c0_i32, %c0_i32_0, %c0_i32_1 : i32, i32, i32
  }
  func.func @transform_4(%arg0: i32) -> (i32, i32, i32, i32) {
    %c0_i32 = arith.constant 0 : i32
    %c0_i32_0 = arith.constant 0 : i32
    %c0_i32_1 = arith.constant 0 : i32
    %c0_i32_2 = arith.constant 0 : i32
    return %arg0, %c0_i32, %c0_i32_0, %c0_i32_1 : i32, i32, i32, i32
  }
  func.func @transform_5(%arg0: i32) -> (i32, i32, i32) {
    %c0_i32 = arith.constant 0 : i32
    %c0_i32_0 = arith.constant 0 : i32
    %c0_i32_1 = arith.constant 0 : i32
    return %arg0, %c0_i32, %c0_i32_0 : i32, i32, i32
  }
}

module attributes {stable_mosaic.version = 11 : i64} {
  func.func @kernel(%arg0: i32, %arg1: memref<1x16x16x4xf32, #tpu.memory_space<vmem>>, %arg2: memref<1x4xf32, #tpu.memory_space<vmem>>, %arg3: memref<1x4xf32, #tpu.memory_space<vmem>>, %arg4: memref<9x4x4xbf16, #tpu.memory_space<vmem>>, %arg5: memref<1x16x16x4xf32, #tpu.memory_space<vmem>>, %arg6: memref<1x2x4xf32, #tpu.memory_space<vmem>>, %arg7: memref<1x18x18x4xbf16, #tpu.memory_space<vmem>>, %arg8: memref<256x4xf32, #tpu.memory_space<vmem>>) attributes {dimension_semantics = [#tpu.dimension_semantics<parallel>], iteration_bounds = array<i64: 2>, scalar_prefetch = 0 : i64, scratch_operands = 2 : i64, tpu.core_type = #tpu.core_type<tc>, window_params = [{transform_indices = @transform_0, window_bounds = array<i64: 1, 16, 16, 4>}, {pipeline_mode = #tpu.pipeline_mode<synchronous>, transform_indices = @transform_1, window_bounds = array<i64: 1, 4>}, {pipeline_mode = #tpu.pipeline_mode<synchronous>, transform_indices = @transform_2, window_bounds = array<i64: 1, 4>}, {pipeline_mode = #tpu.pipeline_mode<synchronous>, transform_indices = @transform_3, window_bounds = array<i64: 9, 4, 4>}, {transform_indices = @transform_4, window_bounds = array<i64: 1, 16, 16, 4>}, {transform_indices = @transform_5, window_bounds = array<i64: 1, 2, 4>}]} {
    %c0 = arith.constant 0 : index
    %c0_0 = arith.constant 0 : index
    %c0_1 = arith.constant 0 : index
    %c0_2 = arith.constant 0 : index
    %0 = vector.load %arg1[%c0, %c0_0, %c0_1, %c0_2] : memref<1x16x16x4xf32, #tpu.memory_space<vmem>>, vector<1x16x16x4xf32>
    %c0_3 = arith.constant 0 : index
    %c0_4 = arith.constant 0 : index
    %1 = vector.load %arg2[%c0_3, %c0_4] : memref<1x4xf32, #tpu.memory_space<vmem>>, vector<1x4xf32>
    %2 = vector.shape_cast %1 : vector<1x4xf32> to vector<1x1x1x4xf32>
    %3 = vector.broadcast %2 : vector<1x1x1x4xf32> to vector<1x16x16x4xf32>
    %4 = arith.mulf %0, %3 : vector<1x16x16x4xf32>
    %c0_5 = arith.constant 0 : index
    %c0_6 = arith.constant 0 : index
    %5 = vector.load %arg3[%c0_5, %c0_6] : memref<1x4xf32, #tpu.memory_space<vmem>>, vector<1x4xf32>
    %6 = vector.shape_cast %5 : vector<1x4xf32> to vector<1x1x1x4xf32>
    %7 = vector.broadcast %6 : vector<1x1x1x4xf32> to vector<1x16x16x4xf32>
    %8 = arith.addf %4, %7 : vector<1x16x16x4xf32>
    %cst = arith.constant 0.000000e+00 : f32
    %9 = vector.broadcast %cst : f32 to vector<1x16x16x4xf32>
    %10 = arith.maximumf %8, %9 : vector<1x16x16x4xf32>
    %11 = arith.truncf %10 : vector<1x16x16x4xf32> to vector<1x16x16x4xbf16>
    %cst_7 = arith.constant 0.000000e+00 : bf16
    %12 = vector.broadcast %cst_7 : bf16 to vector<1x1x18x4xbf16>
    %cst_8 = arith.constant 0.000000e+00 : bf16
    %13 = vector.broadcast %cst_8 : bf16 to vector<1x16x1x4xbf16>
    %c0_9 = arith.constant 0 : index
    %c0_10 = arith.constant 0 : index
    %c0_11 = arith.constant 0 : index
    %c0_12 = arith.constant 0 : index
    %14 = vector.load %arg7[%c0_9, %c0_10, %c0_11, %c0_12] : memref<1x18x18x4xbf16, #tpu.memory_space<vmem>>, vector<1x1x18x4xbf16>
    tpu.vector_store %arg7[%c0_9, %c0_10, %c0_11, %c0_12], %12 {strides = array<i32>} : memref<1x18x18x4xbf16, #tpu.memory_space<vmem>>, vector<1x1x18x4xbf16>,
    %c0_13 = arith.constant 0 : index
    %c17 = arith.constant 17 : index
    %c0_14 = arith.constant 0 : index
    %c0_15 = arith.constant 0 : index
    %15 = vector.load %arg7[%c0_13, %c17, %c0_14, %c0_15] : memref<1x18x18x4xbf16, #tpu.memory_space<vmem>>, vector<1x1x18x4xbf16>
    tpu.vector_store %arg7[%c0_13, %c17, %c0_14, %c0_15], %12 {strides = array<i32>} : memref<1x18x18x4xbf16, #tpu.memory_space<vmem>>, vector<1x1x18x4xbf16>,
    %16 = tpu.concatenate %13, %11, %13 in 2 : vector<1x16x1x4xbf16>, vector<1x16x16x4xbf16>, vector<1x16x1x4xbf16> -> vector<1x16x18x4xbf16>
    %c0_16 = arith.constant 0 : index
    %c1 = arith.constant 1 : index
    %c0_17 = arith.constant 0 : index
    %c0_18 = arith.constant 0 : index
    %17 = vector.load %arg7[%c0_16, %c1, %c0_17, %c0_18] : memref<1x18x18x4xbf16, #tpu.memory_space<vmem>>, vector<1x16x18x4xbf16>
    tpu.vector_store %arg7[%c0_16, %c1, %c0_17, %c0_18], %16 {strides = array<i32>} : memref<1x18x18x4xbf16, #tpu.memory_space<vmem>>, vector<1x16x18x4xbf16>,
    %c0_19 = arith.constant 0 : index
    %c0_20 = arith.constant 0 : index
    %c0_21 = arith.constant 0 : index
    %c0_22 = arith.constant 0 : index
    %18 = vector.load %arg7[%c0_19, %c0_20, %c0_21, %c0_22] : memref<1x18x18x4xbf16, #tpu.memory_space<vmem>>, vector<1x16x16x4xbf16>
    %19 = vector.shape_cast %18 : vector<1x16x16x4xbf16> to vector<256x4xbf16>
    %c0_23 = arith.constant 0 : index
    %c0_24 = arith.constant 0 : index
    %c0_25 = arith.constant 0 : index
    %20 = vector.load %arg4[%c0_23, %c0_24, %c0_25] : memref<9x4x4xbf16, #tpu.memory_space<vmem>>, vector<1x4x4xbf16>
    %21 = vector.shape_cast %20 : vector<1x4x4xbf16> to vector<4x4xbf16>
    %cst_26 = arith.constant dense<0.000000e+00> : vector<256x4xf32>
    %22 = tpu.matmul %19, %21, %cst_26 {dimension_numbers = #tpu.dot_dimension_numbers<[1], [0], [0], [1], [0, 0, 1, 1], [], []>} : vector<256x4xbf16>, vector<4x4xbf16>, vector<256x4xf32> -> vector<256x4xf32>
    %c0_27 = arith.constant 0 : index
    %c0_28 = arith.constant 0 : index
    %23 = vector.load %arg8[%c0_27, %c0_28] : memref<256x4xf32, #tpu.memory_space<vmem>>, vector<256x4xf32>
    tpu.vector_store %arg8[%c0_27, %c0_28], %22 {strides = array<i32>} : memref<256x4xf32, #tpu.memory_space<vmem>>, vector<256x4xf32>,
    %c0_29 = arith.constant 0 : index
    %c0_30 = arith.constant 0 : index
    %c1_31 = arith.constant 1 : index
    %c0_32 = arith.constant 0 : index
    %24 = vector.load %arg7[%c0_29, %c0_30, %c1_31, %c0_32] : memref<1x18x18x4xbf16, #tpu.memory_space<vmem>>, vector<1x16x16x4xbf16>
    %25 = vector.shape_cast %24 : vector<1x16x16x4xbf16> to vector<256x4xbf16>
    %c1_33 = arith.constant 1 : index
    %c0_34 = arith.constant 0 : index
    %c0_35 = arith.constant 0 : index
    %26 = vector.load %arg4[%c1_33, %c0_34, %c0_35] : memref<9x4x4xbf16, #tpu.memory_space<vmem>>, vector<1x4x4xbf16>
    %27 = vector.shape_cast %26 : vector<1x4x4xbf16> to vector<4x4xbf16>
    %cst_36 = arith.constant dense<0.000000e+00> : vector<256x4xf32>
    %28 = tpu.matmul %25, %27, %cst_36 {dimension_numbers = #tpu.dot_dimension_numbers<[1], [0], [0], [1], [0, 0, 1, 1], [], []>} : vector<256x4xbf16>, vector<4x4xbf16>, vector<256x4xf32> -> vector<256x4xf32>
    %c0_37 = arith.constant 0 : index
    %c0_38 = arith.constant 0 : index
    %29 = vector.load %arg8[%c0_37, %c0_38] : memref<256x4xf32, #tpu.memory_space<vmem>>, vector<256x4xf32>
    %30 = arith.addf %29, %28 : vector<256x4xf32>
    %c0_39 = arith.constant 0 : index
    %c0_40 = arith.constant 0 : index
    %31 = vector.load %arg8[%c0_39, %c0_40] : memref<256x4xf32, #tpu.memory_space<vmem>>, vector<256x4xf32>
    tpu.vector_store %arg8[%c0_39, %c0_40], %30 {strides = array<i32>} : memref<256x4xf32, #tpu.memory_space<vmem>>, vector<256x4xf32>,
    %c0_41 = arith.constant 0 : index
    %c0_42 = arith.constant 0 : index
    %c2 = arith.constant 2 : index
    %c0_43 = arith.constant 0 : index
    %32 = vector.load %arg7[%c0_41, %c0_42, %c2, %c0_43] : memref<1x18x18x4xbf16, #tpu.memory_space<vmem>>, vector<1x16x16x4xbf16>
    %33 = vector.shape_cast %32 : vector<1x16x16x4xbf16> to vector<256x4xbf16>
    %c2_44 = arith.constant 2 : index
    %c0_45 = arith.constant 0 : index
    %c0_46 = arith.constant 0 : index
    %34 = vector.load %arg4[%c2_44, %c0_45, %c0_46] : memref<9x4x4xbf16, #tpu.memory_space<vmem>>, vector<1x4x4xbf16>
    %35 = vector.shape_cast %34 : vector<1x4x4xbf16> to vector<4x4xbf16>
    %cst_47 = arith.constant dense<0.000000e+00> : vector<256x4xf32>
    %36 = tpu.matmul %33, %35, %cst_47 {dimension_numbers = #tpu.dot_dimension_numbers<[1], [0], [0], [1], [0, 0, 1, 1], [], []>} : vector<256x4xbf16>, vector<4x4xbf16>, vector<256x4xf32> -> vector<256x4xf32>
    %c0_48 = arith.constant 0 : index
    %c0_49 = arith.constant 0 : index
    %37 = vector.load %arg8[%c0_48, %c0_49] : memref<256x4xf32, #tpu.memory_space<vmem>>, vector<256x4xf32>
    %38 = arith.addf %37, %36 : vector<256x4xf32>
    %c0_50 = arith.constant 0 : index
    %c0_51 = arith.constant 0 : index
    %39 = vector.load %arg8[%c0_50, %c0_51] : memref<256x4xf32, #tpu.memory_space<vmem>>, vector<256x4xf32>
    tpu.vector_store %arg8[%c0_50, %c0_51], %38 {strides = array<i32>} : memref<256x4xf32, #tpu.memory_space<vmem>>, vector<256x4xf32>,
    %c0_52 = arith.constant 0 : index
    %c1_53 = arith.constant 1 : index
    %c0_54 = arith.constant 0 : index
    %c0_55 = arith.constant 0 : index
    %40 = vector.load %arg7[%c0_52, %c1_53, %c0_54, %c0_55] : memref<1x18x18x4xbf16, #tpu.memory_space<vmem>>, vector<1x16x16x4xbf16>
    %41 = vector.shape_cast %40 : vector<1x16x16x4xbf16> to vector<256x4xbf16>
    %c3 = arith.constant 3 : index
    %c0_56 = arith.constant 0 : index
    %c0_57 = arith.constant 0 : index
    %42 = vector.load %arg4[%c3, %c0_56, %c0_57] : memref<9x4x4xbf16, #tpu.memory_space<vmem>>, vector<1x4x4xbf16>
    %43 = vector.shape_cast %42 : vector<1x4x4xbf16> to vector<4x4xbf16>
    %cst_58 = arith.constant dense<0.000000e+00> : vector<256x4xf32>
    %44 = tpu.matmul %41, %43, %cst_58 {dimension_numbers = #tpu.dot_dimension_numbers<[1], [0], [0], [1], [0, 0, 1, 1], [], []>} : vector<256x4xbf16>, vector<4x4xbf16>, vector<256x4xf32> -> vector<256x4xf32>
    %c0_59 = arith.constant 0 : index
    %c0_60 = arith.constant 0 : index
    %45 = vector.load %arg8[%c0_59, %c0_60] : memref<256x4xf32, #tpu.memory_space<vmem>>, vector<256x4xf32>
    %46 = arith.addf %45, %44 : vector<256x4xf32>
    %c0_61 = arith.constant 0 : index
    %c0_62 = arith.constant 0 : index
    %47 = vector.load %arg8[%c0_61, %c0_62] : memref<256x4xf32, #tpu.memory_space<vmem>>, vector<256x4xf32>
    tpu.vector_store %arg8[%c0_61, %c0_62], %46 {strides = array<i32>} : memref<256x4xf32, #tpu.memory_space<vmem>>, vector<256x4xf32>,
    %c0_63 = arith.constant 0 : index
    %c1_64 = arith.constant 1 : index
    %c1_65 = arith.constant 1 : index
    %c0_66 = arith.constant 0 : index
    %48 = vector.load %arg7[%c0_63, %c1_64, %c1_65, %c0_66] : memref<1x18x18x4xbf16, #tpu.memory_space<vmem>>, vector<1x16x16x4xbf16>
    %49 = vector.shape_cast %48 : vector<1x16x16x4xbf16> to vector<256x4xbf16>
    %c4 = arith.constant 4 : index
    %c0_67 = arith.constant 0 : index
    %c0_68 = arith.constant 0 : index
    %50 = vector.load %arg4[%c4, %c0_67, %c0_68] : memref<9x4x4xbf16, #tpu.memory_space<vmem>>, vector<1x4x4xbf16>
    %51 = vector.shape_cast %50 : vector<1x4x4xbf16> to vector<4x4xbf16>
    %cst_69 = arith.constant dense<0.000000e+00> : vector<256x4xf32>
    %52 = tpu.matmul %49, %51, %cst_69 {dimension_numbers = #tpu.dot_dimension_numbers<[1], [0], [0], [1], [0, 0, 1, 1], [], []>} : vector<256x4xbf16>, vector<4x4xbf16>, vector<256x4xf32> -> vector<256x4xf32>
    %c0_70 = arith.constant 0 : index
    %c0_71 = arith.constant 0 : index
    %53 = vector.load %arg8[%c0_70, %c0_71] : memref<256x4xf32, #tpu.memory_space<vmem>>, vector<256x4xf32>
    %54 = arith.addf %53, %52 : vector<256x4xf32>
    %c0_72 = arith.constant 0 : index
    %c0_73 = arith.constant 0 : index
    %55 = vector.load %arg8[%c0_72, %c0_73] : memref<256x4xf32, #tpu.memory_space<vmem>>, vector<256x4xf32>
    tpu.vector_store %arg8[%c0_72, %c0_73], %54 {strides = array<i32>} : memref<256x4xf32, #tpu.memory_space<vmem>>, vector<256x4xf32>,
    %c0_74 = arith.constant 0 : index
    %c1_75 = arith.constant 1 : index
    %c2_76 = arith.constant 2 : index
    %c0_77 = arith.constant 0 : index
    %56 = vector.load %arg7[%c0_74, %c1_75, %c2_76, %c0_77] : memref<1x18x18x4xbf16, #tpu.memory_space<vmem>>, vector<1x16x16x4xbf16>
    %57 = vector.shape_cast %56 : vector<1x16x16x4xbf16> to vector<256x4xbf16>
    %c5 = arith.constant 5 : index
    %c0_78 = arith.constant 0 : index
    %c0_79 = arith.constant 0 : index
    %58 = vector.load %arg4[%c5, %c0_78, %c0_79] : memref<9x4x4xbf16, #tpu.memory_space<vmem>>, vector<1x4x4xbf16>
    %59 = vector.shape_cast %58 : vector<1x4x4xbf16> to vector<4x4xbf16>
    %cst_80 = arith.constant dense<0.000000e+00> : vector<256x4xf32>
    %60 = tpu.matmul %57, %59, %cst_80 {dimension_numbers = #tpu.dot_dimension_numbers<[1], [0], [0], [1], [0, 0, 1, 1], [], []>} : vector<256x4xbf16>, vector<4x4xbf16>, vector<256x4xf32> -> vector<256x4xf32>
    %c0_81 = arith.constant 0 : index
    %c0_82 = arith.constant 0 : index
    %61 = vector.load %arg8[%c0_81, %c0_82] : memref<256x4xf32, #tpu.memory_space<vmem>>, vector<256x4xf32>
    %62 = arith.addf %61, %60 : vector<256x4xf32>
    %c0_83 = arith.constant 0 : index
    %c0_84 = arith.constant 0 : index
    %63 = vector.load %arg8[%c0_83, %c0_84] : memref<256x4xf32, #tpu.memory_space<vmem>>, vector<256x4xf32>
    tpu.vector_store %arg8[%c0_83, %c0_84], %62 {strides = array<i32>} : memref<256x4xf32, #tpu.memory_space<vmem>>, vector<256x4xf32>,
    %c0_85 = arith.constant 0 : index
    %c2_86 = arith.constant 2 : index
    %c0_87 = arith.constant 0 : index
    %c0_88 = arith.constant 0 : index
    %64 = vector.load %arg7[%c0_85, %c2_86, %c0_87, %c0_88] : memref<1x18x18x4xbf16, #tpu.memory_space<vmem>>, vector<1x16x16x4xbf16>
    %65 = vector.shape_cast %64 : vector<1x16x16x4xbf16> to vector<256x4xbf16>
    %c6 = arith.constant 6 : index
    %c0_89 = arith.constant 0 : index
    %c0_90 = arith.constant 0 : index
    %66 = vector.load %arg4[%c6, %c0_89, %c0_90] : memref<9x4x4xbf16, #tpu.memory_space<vmem>>, vector<1x4x4xbf16>
    %67 = vector.shape_cast %66 : vector<1x4x4xbf16> to vector<4x4xbf16>
    %cst_91 = arith.constant dense<0.000000e+00> : vector<256x4xf32>
    %68 = tpu.matmul %65, %67, %cst_91 {dimension_numbers = #tpu.dot_dimension_numbers<[1], [0], [0], [1], [0, 0, 1, 1], [], []>} : vector<256x4xbf16>, vector<4x4xbf16>, vector<256x4xf32> -> vector<256x4xf32>
    %c0_92 = arith.constant 0 : index
    %c0_93 = arith.constant 0 : index
    %69 = vector.load %arg8[%c0_92, %c0_93] : memref<256x4xf32, #tpu.memory_space<vmem>>, vector<256x4xf32>
    %70 = arith.addf %69, %68 : vector<256x4xf32>
    %c0_94 = arith.constant 0 : index
    %c0_95 = arith.constant 0 : index
    %71 = vector.load %arg8[%c0_94, %c0_95] : memref<256x4xf32, #tpu.memory_space<vmem>>, vector<256x4xf32>
    tpu.vector_store %arg8[%c0_94, %c0_95], %70 {strides = array<i32>} : memref<256x4xf32, #tpu.memory_space<vmem>>, vector<256x4xf32>,
    %c0_96 = arith.constant 0 : index
    %c2_97 = arith.constant 2 : index
    %c1_98 = arith.constant 1 : index
    %c0_99 = arith.constant 0 : index
    %72 = vector.load %arg7[%c0_96, %c2_97, %c1_98, %c0_99] : memref<1x18x18x4xbf16, #tpu.memory_space<vmem>>, vector<1x16x16x4xbf16>
    %73 = vector.shape_cast %72 : vector<1x16x16x4xbf16> to vector<256x4xbf16>
    %c7 = arith.constant 7 : index
    %c0_100 = arith.constant 0 : index
    %c0_101 = arith.constant 0 : index
    %74 = vector.load %arg4[%c7, %c0_100, %c0_101] : memref<9x4x4xbf16, #tpu.memory_space<vmem>>, vector<1x4x4xbf16>
    %75 = vector.shape_cast %74 : vector<1x4x4xbf16> to vector<4x4xbf16>
    %cst_102 = arith.constant dense<0.000000e+00> : vector<256x4xf32>
    %76 = tpu.matmul %73, %75, %cst_102 {dimension_numbers = #tpu.dot_dimension_numbers<[1], [0], [0], [1], [0, 0, 1, 1], [], []>} : vector<256x4xbf16>, vector<4x4xbf16>, vector<256x4xf32> -> vector<256x4xf32>
    %c0_103 = arith.constant 0 : index
    %c0_104 = arith.constant 0 : index
    %77 = vector.load %arg8[%c0_103, %c0_104] : memref<256x4xf32, #tpu.memory_space<vmem>>, vector<256x4xf32>
    %78 = arith.addf %77, %76 : vector<256x4xf32>
    %c0_105 = arith.constant 0 : index
    %c0_106 = arith.constant 0 : index
    %79 = vector.load %arg8[%c0_105, %c0_106] : memref<256x4xf32, #tpu.memory_space<vmem>>, vector<256x4xf32>
    tpu.vector_store %arg8[%c0_105, %c0_106], %78 {strides = array<i32>} : memref<256x4xf32, #tpu.memory_space<vmem>>, vector<256x4xf32>,
    %c0_107 = arith.constant 0 : index
    %c2_108 = arith.constant 2 : index
    %c2_109 = arith.constant 2 : index
    %c0_110 = arith.constant 0 : index
    %80 = vector.load %arg7[%c0_107, %c2_108, %c2_109, %c0_110] : memref<1x18x18x4xbf16, #tpu.memory_space<vmem>>, vector<1x16x16x4xbf16>
    %81 = vector.shape_cast %80 : vector<1x16x16x4xbf16> to vector<256x4xbf16>
    %c8 = arith.constant 8 : index
    %c0_111 = arith.constant 0 : index
    %c0_112 = arith.constant 0 : index
    %82 = vector.load %arg4[%c8, %c0_111, %c0_112] : memref<9x4x4xbf16, #tpu.memory_space<vmem>>, vector<1x4x4xbf16>
    %83 = vector.shape_cast %82 : vector<1x4x4xbf16> to vector<4x4xbf16>
    %cst_113 = arith.constant dense<0.000000e+00> : vector<256x4xf32>
    %84 = tpu.matmul %81, %83, %cst_113 {dimension_numbers = #tpu.dot_dimension_numbers<[1], [0], [0], [1], [0, 0, 1, 1], [], []>} : vector<256x4xbf16>, vector<4x4xbf16>, vector<256x4xf32> -> vector<256x4xf32>
    %c0_114 = arith.constant 0 : index
    %c0_115 = arith.constant 0 : index
    %85 = vector.load %arg8[%c0_114, %c0_115] : memref<256x4xf32, #tpu.memory_space<vmem>>, vector<256x4xf32>
    %86 = arith.addf %85, %84 : vector<256x4xf32>
    %c0_116 = arith.constant 0 : index
    %c0_117 = arith.constant 0 : index
    %87 = vector.load %arg8[%c0_116, %c0_117] : memref<256x4xf32, #tpu.memory_space<vmem>>, vector<256x4xf32>
    tpu.vector_store %arg8[%c0_116, %c0_117], %86 {strides = array<i32>} : memref<256x4xf32, #tpu.memory_space<vmem>>, vector<256x4xf32>,
    %c0_118 = arith.constant 0 : index
    %c0_119 = arith.constant 0 : index
    %88 = vector.load %arg8[%c0_118, %c0_119] : memref<256x4xf32, #tpu.memory_space<vmem>>, vector<256x4xf32>
    %cst_120 = arith.constant dense<0.000000e+00> : vector<4xf32>
    %89 = vector.multi_reduction <add>, %88, %cst_120 [0] : vector<256x4xf32> to vector<4xf32>
    %90 = vector.shape_cast %89 : vector<4xf32> to vector<1x4xf32>
    %91 = arith.mulf %88, %88 : vector<256x4xf32>
    %cst_121 = arith.constant dense<0.000000e+00> : vector<4xf32>
    %92 = vector.multi_reduction <add>, %91, %cst_121 [0] : vector<256x4xf32> to vector<4xf32>
    %93 = vector.shape_cast %92 : vector<4xf32> to vector<1x4xf32>
    %94 = tpu.concatenate %90, %93 in 0 : vector<1x4xf32>, vector<1x4xf32> -> vector<2x4xf32>
    %95 = vector.shape_cast %94 : vector<2x4xf32> to vector<1x2x4xf32>
    %c0_122 = arith.constant 0 : index
    %c0_123 = arith.constant 0 : index
    %c0_124 = arith.constant 0 : index
    %96 = vector.load %arg6[%c0_122, %c0_123, %c0_124] : memref<1x2x4xf32, #tpu.memory_space<vmem>>, vector<1x2x4xf32>
    tpu.vector_store %arg6[%c0_122, %c0_123, %c0_124], %95 {strides = array<i32>} : memref<1x2x4xf32, #tpu.memory_space<vmem>>, vector<1x2x4xf32>,
    %97 = vector.shape_cast %88 : vector<256x4xf32> to vector<1x16x16x4xf32>
    %c0_125 = arith.constant 0 : index
    %c0_126 = arith.constant 0 : index
    %c0_127 = arith.constant 0 : index
    %c0_128 = arith.constant 0 : index
    %98 = vector.load %arg5[%c0_125, %c0_126, %c0_127, %c0_128] : memref<1x16x16x4xf32, #tpu.memory_space<vmem>>, vector<1x16x16x4xf32>
    tpu.vector_store %arg5[%c0_125, %c0_126, %c0_127, %c0_128], %97 {strides = array<i32>} : memref<1x16x16x4xf32, #tpu.memory_space<vmem>>, vector<1x16x16x4xf32>,
    return
  }
  func.func @transform_0(%arg0: i32) -> (i32, i32, i32, i32) {
    %c0_i32 = arith.constant 0 : i32
    %c0_i32_0 = arith.constant 0 : i32
    %c0_i32_1 = arith.constant 0 : i32
    %c0_i32_2 = arith.constant 0 : i32
    return %arg0, %c0_i32, %c0_i32_0, %c0_i32_1 : i32, i32, i32, i32
  }
  func.func @transform_1(%arg0: i32) -> (i32, i32) {
    %c0_i32 = arith.constant 0 : i32
    %c0_i32_0 = arith.constant 0 : i32
    %c0_i32_1 = arith.constant 0 : i32
    return %c0_i32, %c0_i32_0 : i32, i32
  }
  func.func @transform_2(%arg0: i32) -> (i32, i32) {
    %c0_i32 = arith.constant 0 : i32
    %c0_i32_0 = arith.constant 0 : i32
    %c0_i32_1 = arith.constant 0 : i32
    return %c0_i32, %c0_i32_0 : i32, i32
  }
  func.func @transform_3(%arg0: i32) -> (i32, i32, i32) {
    %c0_i32 = arith.constant 0 : i32
    %c0_i32_0 = arith.constant 0 : i32
    %c0_i32_1 = arith.constant 0 : i32
    %c0_i32_2 = arith.constant 0 : i32
    return %c0_i32, %c0_i32_0, %c0_i32_1 : i32, i32, i32
  }
  func.func @transform_4(%arg0: i32) -> (i32, i32, i32, i32) {
    %c0_i32 = arith.constant 0 : i32
    %c0_i32_0 = arith.constant 0 : i32
    %c0_i32_1 = arith.constant 0 : i32
    %c0_i32_2 = arith.constant 0 : i32
    return %arg0, %c0_i32, %c0_i32_0, %c0_i32_1 : i32, i32, i32, i32
  }
  func.func @transform_5(%arg0: i32) -> (i32, i32, i32) {
    %c0_i32 = arith.constant 0 : i32
    %c0_i32_0 = arith.constant 0 : i32
    %c0_i32_1 = arith.constant 0 : i32
    return %arg0, %c0_i32, %c0_i32_0 : i32, i32, i32
  }
}

module attributes {stable_mosaic.version = 11 : i64} {
  func.func @_bn_residual_relu_kernel(%arg0: i32, %arg1: memref<1x16x16x4xf32, #tpu.memory_space<vmem>>, %arg2: memref<1x16x16x4xf32, #tpu.memory_space<vmem>>, %arg3: memref<1x4xf32, #tpu.memory_space<vmem>>, %arg4: memref<1x4xf32, #tpu.memory_space<vmem>>, %arg5: memref<1x16x16x4xf32, #tpu.memory_space<vmem>>) attributes {dimension_semantics = [#tpu.dimension_semantics<parallel>], iteration_bounds = array<i64: 2>, scalar_prefetch = 0 : i64, scratch_operands = 0 : i64, tpu.core_type = #tpu.core_type<tc>, window_params = [{transform_indices = @transform_0, window_bounds = array<i64: 1, 16, 16, 4>}, {transform_indices = @transform_1, window_bounds = array<i64: 1, 16, 16, 4>}, {pipeline_mode = #tpu.pipeline_mode<synchronous>, transform_indices = @transform_2, window_bounds = array<i64: 1, 4>}, {pipeline_mode = #tpu.pipeline_mode<synchronous>, transform_indices = @transform_3, window_bounds = array<i64: 1, 4>}, {transform_indices = @transform_4, window_bounds = array<i64: 1, 16, 16, 4>}]} {
    %c0 = arith.constant 0 : index
    %c0_0 = arith.constant 0 : index
    %c0_1 = arith.constant 0 : index
    %c0_2 = arith.constant 0 : index
    %0 = vector.load %arg1[%c0, %c0_0, %c0_1, %c0_2] : memref<1x16x16x4xf32, #tpu.memory_space<vmem>>, vector<1x16x16x4xf32>
    %c0_3 = arith.constant 0 : index
    %c0_4 = arith.constant 0 : index
    %1 = vector.load %arg3[%c0_3, %c0_4] : memref<1x4xf32, #tpu.memory_space<vmem>>, vector<1x4xf32>
    %2 = vector.shape_cast %1 : vector<1x4xf32> to vector<1x1x1x4xf32>
    %3 = vector.broadcast %2 : vector<1x1x1x4xf32> to vector<1x16x16x4xf32>
    %4 = arith.mulf %0, %3 : vector<1x16x16x4xf32>
    %c0_5 = arith.constant 0 : index
    %c0_6 = arith.constant 0 : index
    %5 = vector.load %arg4[%c0_5, %c0_6] : memref<1x4xf32, #tpu.memory_space<vmem>>, vector<1x4xf32>
    %6 = vector.shape_cast %5 : vector<1x4xf32> to vector<1x1x1x4xf32>
    %7 = vector.broadcast %6 : vector<1x1x1x4xf32> to vector<1x16x16x4xf32>
    %8 = arith.addf %4, %7 : vector<1x16x16x4xf32>
    %c0_7 = arith.constant 0 : index
    %c0_8 = arith.constant 0 : index
    %c0_9 = arith.constant 0 : index
    %c0_10 = arith.constant 0 : index
    %9 = vector.load %arg2[%c0_7, %c0_8, %c0_9, %c0_10] : memref<1x16x16x4xf32, #tpu.memory_space<vmem>>, vector<1x16x16x4xf32>
    %10 = arith.addf %8, %9 : vector<1x16x16x4xf32>
    %cst = arith.constant 0.000000e+00 : f32
    %11 = vector.broadcast %cst : f32 to vector<1x16x16x4xf32>
    %12 = arith.maximumf %10, %11 : vector<1x16x16x4xf32>
    %c0_11 = arith.constant 0 : index
    %c0_12 = arith.constant 0 : index
    %c0_13 = arith.constant 0 : index
    %c0_14 = arith.constant 0 : index
    %13 = vector.load %arg5[%c0_11, %c0_12, %c0_13, %c0_14] : memref<1x16x16x4xf32, #tpu.memory_space<vmem>>, vector<1x16x16x4xf32>
    tpu.vector_store %arg5[%c0_11, %c0_12, %c0_13, %c0_14], %12 {strides = array<i32>} : memref<1x16x16x4xf32, #tpu.memory_space<vmem>>, vector<1x16x16x4xf32>,
    return
  }
  func.func @transform_0(%arg0: i32) -> (i32, i32, i32, i32) {
    %c0_i32 = arith.constant 0 : i32
    %c0_i32_0 = arith.constant 0 : i32
    %c0_i32_1 = arith.constant 0 : i32
    %c0_i32_2 = arith.constant 0 : i32
    return %arg0, %c0_i32, %c0_i32_0, %c0_i32_1 : i32, i32, i32, i32
  }
  func.func @transform_1(%arg0: i32) -> (i32, i32, i32, i32) {
    %c0_i32 = arith.constant 0 : i32
    %c0_i32_0 = arith.constant 0 : i32
    %c0_i32_1 = arith.constant 0 : i32
    %c0_i32_2 = arith.constant 0 : i32
    return %arg0, %c0_i32, %c0_i32_0, %c0_i32_1 : i32, i32, i32, i32
  }
  func.func @transform_2(%arg0: i32) -> (i32, i32) {
    %c0_i32 = arith.constant 0 : i32
    %c0_i32_0 = arith.constant 0 : i32
    %c0_i32_1 = arith.constant 0 : i32
    return %c0_i32, %c0_i32_0 : i32, i32
  }
  func.func @transform_3(%arg0: i32) -> (i32, i32) {
    %c0_i32 = arith.constant 0 : i32
    %c0_i32_0 = arith.constant 0 : i32
    %c0_i32_1 = arith.constant 0 : i32
    return %c0_i32, %c0_i32_0 : i32, i32
  }
  func.func @transform_4(%arg0: i32) -> (i32, i32, i32, i32) {
    %c0_i32 = arith.constant 0 : i32
    %c0_i32_0 = arith.constant 0 : i32
    %c0_i32_1 = arith.constant 0 : i32
    %c0_i32_2 = arith.constant 0 : i32
    return %arg0, %c0_i32, %c0_i32_0, %c0_i32_1 : i32, i32, i32, i32
  }
}

</mosaic_0001>

<bundles_post_ra>
// kernel: sto_basic_block.5
= control target key start
LH: loop header
LB: loop body
LE: loop exit
PB: predicated region body
PF: predicated region fallthrough
CT: control target
= control target key end

     0   :  { %s583_s15 = smov 0   ;;  %s816_s0 = inlined_call_operand.vmem [shape: f32[2,16,16,4], index: 0, kind: input, shape index: {}]   ;;  %s817_s1 = inlined_call_operand.vmem [shape: f32[2,16,16,4], index: 1, kind: input, shape index: {}]   ;;  %s818_s2 = inlined_call_operand.vmem [shape: f32[1,4], index: 2, kind: input, shape index: {}]   ;;  %s819_s3 = inlined_call_operand.vmem [shape: f32[1,4], index: 3, kind: input, shape index: {}]   ;;  %s820_s4 = inlined_call_operand.vmem [shape: f32[2,16,16,4], index: 4, kind: output, shape index: {}]  }
   0x1 LB: > { %s524_s16 = sadd.s32 4294967295, %s556_s15   ;;  %p528_p0 = scmp.ge.s32.totalorder %s556_s15, 1  ;;  %s556_s15 = sphi %s583_s15, %s14_s15  }
   0x2   : > { %p172_p1 = scmp.lt.s32.totalorder %s556_s15, 3 }
   0x4   : > { %p173_p2 = pnand %p528_p0, %p172_p1 }
   0x5   : > { %p203_p3 = scmp.lt.s32.totalorder (!%p173_p2), %s524_s16, 1 }
   0x6   : > { %176 = sbr.rel (%p173_p2) target bundleno = 53 (0x35), region = 36 }
   0xb   : > { %s822_s16 = smov (!%p203_p3, %s524_s16), 1  ;;  %v596_v0 = vld [vmem:[%s818_s2] ss:$0 sm:$0xff]  ;;  %vm424_vm0 = vcmask 31744  }
   0xc   : > { %s591_s17 = sshll.u32 %s822_s16, 8  ;;  %v614_v2 = vld [vmem:[%s819_s3] ss:$0 sm:$0xff] }
   0xd   : > { %s602_s22 = scalar_lea.vmem %s816_s0, %s591_s17  ;;  %s608_s25 = scalar_lea.vmem %s817_s1, %s591_s17 }
   0xe   : > { %v218_v1 = vld [vmem:[%s602_s22] sm:$0xff]  ;;  %v219_v3 = vld [vmem:[%s602_s22 + $0x8] sm:$0xff]  ;;  %v220_v7 = vld [vmem:[%s602_s22 + $0x10] sm:$0xff]  ;;  %s644_s30 = scalar_lea.vmem %s820_s4, %s591_s17 }
   0xf   : > { %v257_v4 = vmul.f32 %v596_v0, %v218_v1  ;;  %v328_v5 = vld [vmem:[%s608_s25] sm:$0xff]  ;;  %v258_v6 = vmul.f32 %v596_v0, %v219_v3  ;;  %v329_v8 = vld [vmem:[%s608_s25 + $0x8] sm:$0xff]  ;;  %v259_v9 = vmul.f32 %v596_v0, %v220_v7  ;;  %v221_v10 = vld [vmem:[%s602_s22 + $0x18] sm:$0xff] }
  0x10   : > { %v222_v11 = vld [vmem:[%s602_s22 + $0x20] sm:$0xff]  ;;  %v330_v14 = vld [vmem:[%s608_s25 + $0x10] sm:$0xff]  ;;  %v260_v15 = vmul.f32 %v596_v0, %v221_v10  ;;  %v331_v16 = vld [vmem:[%s608_s25 + $0x18] sm:$0xff] }
  0x11   : > { %v296_v12 = vadd.f32 %v614_v2, %v257_v4  ;;  %v297_v13 = vadd.f32 %v614_v2, %v258_v6  ;;  %v261_v17 = vmul.f32 %v596_v0, %v222_v11  ;;  %v223_v18 = vld [vmem:[%s602_s22 + $0x28] sm:$0xff]  ;;  %v298_v19 = vadd.f32 %v614_v2, %v259_v9  ;;  %v332_v20 = vld [vmem:[%s608_s25 + $0x20] sm:$0xff]  ;;  %v224_v22 = vld [vmem:[%s602_s22 + $0x30] sm:$0xff] }
  0x12   : > { %v262_v21 = vmul.f32 %v596_v0, %v223_v18  ;;  %v225_v23 = vld [vmem:[%s602_s22 + $0x38] sm:$0xff]  ;;  %v299_v26 = vadd.f32 %v614_v2, %v260_v15  ;;  %v333_v28 = vld [vmem:[%s608_s25 + $0x28] sm:$0xff]  ;;  %v263_v31 = vmul.f32 %v596_v0, %v224_v22  ;;  %v226_v33 = vld [vmem:[%s602_s22 + $0x40] sm:$0xff] }
  0x13   : > { %v360_v24 = vadd.f32 %v328_v5, %v296_v12  ;;  %v361_v25 = vadd.f32 %v329_v8, %v297_v13  ;;  %v300_v27 = vadd.f32 %v614_v2, %v261_v17  ;;  %v362_v29 = vadd.f32 %v330_v14, %v298_v19  ;;  %v227_v34 = vld [vmem:[%s602_s22 + $0x48] sm:$0xff]  ;;  %v334_v39 = vld [vmem:[%s608_s25 + $0x30] sm:$0xff]  ;;  %v335_v40 = vld [vmem:[%s608_s25 + $0x38] sm:$0xff] }
  0x14   : > { %v301_v30 = vadd.f32 %v614_v2, %v262_v21  ;;  %v264_v32 = vmul.f32 %v596_v0, %v225_v23  ;;  %v363_v37 = vadd.f32 %v331_v16, %v299_v26  ;;  %v228_v41 = vld [vmem:[%s602_s22 + $0x50] sm:$0xff]  ;;  %v302_v44 = vadd.f32 %v614_v2, %v263_v31  ;;  %v229_v46 = vld [vmem:[%s602_s22 + $0x58] sm:$0xff]  ;;  %v230_v47 = vld [vmem:[%s602_s22 + $0x60] sm:$0xff] }
  0x15   : > { %v392_v35 = vmax.f32 %v360_v24, 0.0  ;;  %v393_v36 = vmax.f32 %v361_v25, 0.0  ;;  %v364_v38 = vadd.f32 %v332_v20, %v300_v27  ;;  %v394_v42 = vmax.f32 %v362_v29, 0.0  ;;  %v231_v52 = vld [vmem:[%s602_s22 + $0x68] sm:$0xff]  ;;  %v336_v56 = vld [vmem:[%s608_s25 + $0x40] sm:$0xff]  ;;  %v338_v61 = vld [vmem:[%s608_s25 + $0x50] sm:$0xff] }
  0x16   : > { %v365_v43 = vadd.f32 %v333_v28, %v301_v30  ;;  %v303_v45 = vadd.f32 %v614_v2, %v264_v32  ;;  %v395_v48 = vmax.f32 %v363_v37, 0.0  ;;  %v265_v50 = vmul.f32 %v596_v0, %v226_v33  ;;  %v337_v57 = vld [vmem:[%s608_s25 + $0x48] sm:$0xff]  ;;  %v232_v1 = vld [vmem:[%s602_s22 + $0x70] sm:$0xff]  ;;  %v233_v3 = vld [vmem:[%s602_s22 + $0x78] sm:$0xff] }
  0x17   : > { %425 = vst.msk [vmem:[%s644_s30] sm:$0xff] %vm424_vm0, %v392_v35  ;;  %426 = vst.msk [vmem:[%s644_s30 + $0x8] sm:$0xff] %vm424_vm0, %v393_v36  ;;  %v396_v49 = vmax.f32 %v364_v38, 0.0  ;;  %v266_v51 = vmul.f32 %v596_v0, %v227_v34  ;;  %v366_v54 = vadd.f32 %v334_v39, %v302_v44  ;;  %v267_v58 = vmul.f32 %v596_v0, %v228_v41  ;;  %v339_v7 = vld [vmem:[%s608_s25 + $0x58] sm:$0xff]  ;;  %v340_v8 = vld [vmem:[%s608_s25 + $0x60] sm:$0xff] }
  0x18   : > { %427 = vst.msk [vmem:[%s644_s30 + $0x10] sm:$0xff] %vm424_vm0, %v394_v42  ;;  %v397_v53 = vmax.f32 %v365_v43, 0.0  ;;  %v367_v55 = vadd.f32 %v335_v40, %v303_v45  ;;  %428 = vst.msk [vmem:[%s644_s30 + $0x18] sm:$0xff] %vm424_vm0, %v395_v48  ;;  %v304_v59 = vadd.f32 %v614_v2, %v265_v50  ;;  %v268_v62 = vmul.f32 %v596_v0, %v229_v46  ;;  %v341_v14 = vld [vmem:[%s608_s25 + $0x68] sm:$0xff]  ;;  %v234_v19 = vld [vmem:[%s602_s22 + $0x80] sm:$0xff] }
  0x19   : > { %429 = vst.msk [vmem:[%s644_s30 + $0x20] sm:$0xff] %vm424_vm0, %v396_v49  ;;  %v305_v60 = vadd.f32 %v614_v2, %v266_v51  ;;  %v269_v63 = vmul.f32 %v596_v0, %v230_v47  ;;  %v398_v4 = vmax.f32 %v366_v54, 0.0  ;;  %v306_v6 = vadd.f32 %v614_v2, %v267_v58  ;;  %v235_v20 = vld [vmem:[%s602_s22 + $0x88] sm:$0xff]  ;;  %v342_v25 = vld [vmem:[%s608_s25 + $0x70] sm:$0xff]  ;;  %v343_v26 = vld [vmem:[%s608_s25 + $0x78] sm:$0xff] }
  0x1a   : > { %430 = vst.msk [vmem:[%s644_s30 + $0x28] sm:$0xff] %vm424_vm0, %v397_v53  ;;  %v399_v5 = vmax.f32 %v367_v55, 0.0  ;;  %v270_v9 = vmul.f32 %v596_v0, %v231_v52  ;;  %v368_v10 = vadd.f32 %v336_v56, %v304_v59  ;;  %v307_v12 = vadd.f32 %v614_v2, %v268_v62  ;;  %v236_v27 = vld [vmem:[%s602_s22 + $0x90] sm:$0xff]  ;;  %v237_v32 = vld [vmem:[%s602_s22 + $0x98] sm:$0xff]  ;;  %v238_v33 = vld [vmem:[%s602_s22 + $0xa0] sm:$0xff] }
  0x1b   : > { %v369_v11 = vadd.f32 %v337_v57, %v305_v60  ;;  %v308_v13 = vadd.f32 %v614_v2, %v269_v63  ;;  %431 = vst.msk [vmem:[%s644_s30 + $0x30] sm:$0xff] %vm424_vm0, %v398_v4  ;;  %v370_v15 = vadd.f32 %v338_v61, %v306_v6  ;;  %v271_v17 = vmul.f32 %v596_v0, %v232_v1  ;;  %v239_v38 = vld [vmem:[%s602_s22 + $0xa8] sm:$0xff]  ;;  %v344_v42 = vld [vmem:[%s608_s25 + $0x80] sm:$0xff]  ;;  %v346_v47 = vld [vmem:[%s608_s25 + $0x90] sm:$0xff] }
  0x1c   : > { %432 = vst.msk [vmem:[%s644_s30 + $0x38] sm:$0xff] %vm424_vm0, %v399_v5  ;;  %v309_v16 = vadd.f32 %v614_v2, %v270_v9  ;;  %v272_v18 = vmul.f32 %v596_v0, %v233_v3  ;;  %v400_v21 = vmax.f32 %v368_v10, 0.0  ;;  %v371_v23 = vadd.f32 %v339_v7, %v307_v12  ;;  %v345_v43 = vld [vmem:[%s608_s25 + $0x88] sm:$0xff]  ;;  %v240_v50 = vld [vmem:[%s602_s22 + $0xb0] sm:$0xff]  ;;  %v241_v51 = vld [vmem:[%s602_s22 + $0xb8] sm:$0xff] }
  0x1d   : > { %v401_v22 = vmax.f32 %v369_v11, 0.0  ;;  %v372_v24 = vadd.f32 %v340_v8, %v308_v13  ;;  %v402_v28 = vmax.f32 %v370_v15, 0.0  ;;  %v310_v30 = vadd.f32 %v614_v2, %v271_v17  ;;  %v347_v55 = vld [vmem:[%s608_s25 + $0x98] sm:$0xff]  ;;  %v348_v56 = vld [vmem:[%s608_s25 + $0xa0] sm:$0xff]  ;;  %v349_v62 = vld [vmem:[%s608_s25 + $0xa8] sm:$0xff] }
  0x1e   : > { %v373_v29 = vadd.f32 %v341_v14, %v309_v16  ;;  %v311_v31 = vadd.f32 %v614_v2, %v272_v18  ;;  %433 = vst.msk [vmem:[%s644_s30 + $0x40] sm:$0xff] %vm424_vm0, %v400_v21  ;;  %v403_v34 = vmax.f32 %v371_v23, 0.0  ;;  %v273_v36 = vmul.f32 %v596_v0, %v234_v19  ;;  %v242_v5 = vld [vmem:[%s602_s22 + $0xc0] sm:$0xff]  ;;  %v243_v6 = vld [vmem:[%s602_s22 + $0xc8] sm:$0xff]  ;;  %v350_v11 = vld [vmem:[%s608_s25 + $0xb0] sm:$0xff] }
  0x1f   : > { %434 = vst.msk [vmem:[%s644_s30 + $0x48] sm:$0xff] %vm424_vm0, %v401_v22  ;;  %v404_v35 = vmax.f32 %v372_v24, 0.0  ;;  %v274_v37 = vmul.f32 %v596_v0, %v235_v20  ;;  %435 = vst.msk [vmem:[%s644_s30 + $0x50] sm:$0xff] %vm424_vm0, %v402_v28  ;;  %v374_v40 = vadd.f32 %v342_v25, %v310_v30  ;;  %v275_v44 = vmul.f32 %v596_v0, %v236_v27  ;;  %v351_v12 = vld [vmem:[%s608_s25 + $0xb8] sm:$0xff]  ;;  %v244_v13 = vld [vmem:[%s602_s22 + $0xd0] sm:$0xff] }
  0x20   : > { %v405_v39 = vmax.f32 %v373_v29, 0.0  ;;  %v375_v41 = vadd.f32 %v343_v26, %v311_v31  ;;  %436 = vst.msk [vmem:[%s644_s30 + $0x58] sm:$0xff] %vm424_vm0, %v403_v34  ;;  %v312_v45 = vadd.f32 %v614_v2, %v273_v36  ;;  %v276_v48 = vmul.f32 %v596_v0, %v237_v32  ;;  %v245_v18 = vld [vmem:[%s602_s22 + $0xd8] sm:$0xff]  ;;  %v246_v19 = vld [vmem:[%s602_s22 + $0xe0] sm:$0xff]  ;;  %v247_v24 = vld [vmem:[%s602_s22 + $0xe8] sm:$0xff] }
  0x21   : > { %437 = vst.msk [vmem:[%s644_s30 + $0x60] sm:$0xff] %vm424_vm0, %v404_v35  ;;  %v313_v46 = vadd.f32 %v614_v2, %v274_v37  ;;  %v277_v49 = vmul.f32 %v596_v0, %v238_v33  ;;  %v406_v52 = vmax.f32 %v374_v40, 0.0  ;;  %v314_v54 = vadd.f32 %v614_v2, %v275_v44  ;;  %v352_v28 = vld [vmem:[%s608_s25 + $0xc0] sm:$0xff]  ;;  %v353_v29 = vld [vmem:[%s608_s25 + $0xc8] sm:$0xff]  ;;  %v354_v33 = vld [vmem:[%s608_s25 + $0xd0] sm:$0xff] }
  0x22   : > { %438 = vst.msk [vmem:[%s644_s30 + $0x68] sm:$0xff] %vm424_vm0, %v405_v39  ;;  %v407_v53 = vmax.f32 %v375_v41, 0.0  ;;  %v278_v57 = vmul.f32 %v596_v0, %v239_v38  ;;  %v376_v58 = vadd.f32 %v344_v42, %v312_v45  ;;  %v315_v60 = vadd.f32 %v614_v2, %v276_v48  ;;  %v248_v36 = vld [vmem:[%s602_s22 + $0xf0] sm:$0xff]  ;;  %v249_v37 = vld [vmem:[%s602_s22 + $0xf8] sm:$0xff]  ;;  %v356_v42 = vld [vmem:[%s608_s25 + $0xe0] sm:$0xff] }
  0x23   : > { %v377_v59 = vadd.f32 %v345_v43, %v313_v46  ;;  %v316_v61 = vadd.f32 %v614_v2, %v277_v49  ;;  %439 = vst.msk [vmem:[%s644_s30 + $0x70] sm:$0xff] %vm424_vm0, %v406_v52  ;;  %v378_v63 = vadd.f32 %v346_v47, %v314_v54  ;;  %v279_v3 = vmul.f32 %v596_v0, %v240_v50  ;;  %v355_v41 = vld [vmem:[%s608_s25 + $0xd8] sm:$0xff]  ;;  %v357_v48 = vld [vmem:[%s608_s25 + $0xe8] sm:$0xff] }
  0x24   : > { %440 = vst.msk [vmem:[%s644_s30 + $0x78] sm:$0xff] %vm424_vm0, %v407_v53  ;;  %v317_v1 = vadd.f32 %v614_v2, %v278_v57  ;;  %v280_v4 = vmul.f32 %v596_v0, %v241_v51  ;;  %v408_v7 = vmax.f32 %v376_v58, 0.0  ;;  %v379_v9 = vadd.f32 %v347_v55, %v315_v60  ;;  %v358_v57 = vld [vmem:[%s608_s25 + $0xf0] sm:$0xff]  ;;  %v359_v58 = vld [vmem:[%s608_s25 + $0xf8] sm:$0xff] }
  0x25   : > { %v409_v8 = vmax.f32 %v377_v59, 0.0  ;;  %v380_v10 = vadd.f32 %v348_v56, %v316_v61  ;;  %v410_v14 = vmax.f32 %v378_v63, 0.0  ;;  %v318_v16 = vadd.f32 %v614_v2, %v279_v3 }
  0x26   : > { %v381_v15 = vadd.f32 %v349_v62, %v317_v1  ;;  %v319_v17 = vadd.f32 %v614_v2, %v280_v4  ;;  %441 = vst.msk [vmem:[%s644_s30 + $0x80] sm:$0xff] %vm424_vm0, %v408_v7  ;;  %v411_v20 = vmax.f32 %v379_v9, 0.0  ;;  %v281_v22 = vmul.f32 %v596_v0, %v242_v5 }
  0x27   : > { %442 = vst.msk [vmem:[%s644_s30 + $0x88] sm:$0xff] %vm424_vm0, %v409_v8  ;;  %v412_v21 = vmax.f32 %v380_v10, 0.0  ;;  %v282_v23 = vmul.f32 %v596_v0, %v243_v6  ;;  %443 = vst.msk [vmem:[%s644_s30 + $0x90] sm:$0xff] %vm424_vm0, %v410_v14  ;;  %v382_v26 = vadd.f32 %v350_v11, %v318_v16  ;;  %v283_v30 = vmul.f32 %v596_v0, %v244_v13 }
  0x28   : > { %v413_v25 = vmax.f32 %v381_v15, 0.0  ;;  %v383_v27 = vadd.f32 %v351_v12, %v319_v17  ;;  %444 = vst.msk [vmem:[%s644_s30 + $0x98] sm:$0xff] %vm424_vm0, %v411_v20  ;;  %v320_v31 = vadd.f32 %v614_v2, %v281_v22  ;;  %v284_v34 = vmul.f32 %v596_v0, %v245_v18 }
  0x29   : > { %445 = vst.msk [vmem:[%s644_s30 + $0xa0] sm:$0xff] %vm424_vm0, %v412_v21  ;;  %v321_v32 = vadd.f32 %v614_v2, %v282_v23  ;;  %v285_v35 = vmul.f32 %v596_v0, %v246_v19  ;;  %v414_v38 = vmax.f32 %v382_v26, 0.0  ;;  %v322_v40 = vadd.f32 %v614_v2, %v283_v30 }
  0x2a   : > { %446 = vst.msk [vmem:[%s644_s30 + $0xa8] sm:$0xff] %vm424_vm0, %v413_v25  ;;  %v415_v39 = vmax.f32 %v383_v27, 0.0  ;;  %v286_v43 = vmul.f32 %v596_v0, %v247_v24  ;;  %v384_v44 = vadd.f32 %v352_v28, %v320_v31  ;;  %v323_v46 = vadd.f32 %v614_v2, %v284_v34 }
  0x2b   : > { %v385_v45 = vadd.f32 %v353_v29, %v321_v32  ;;  %v324_v47 = vadd.f32 %v614_v2, %v285_v35  ;;  %447 = vst.msk [vmem:[%s644_s30 + $0xb0] sm:$0xff] %vm424_vm0, %v414_v38  ;;  %v386_v49 = vadd.f32 %v354_v33, %v322_v40  ;;  %v287_v51 = vmul.f32 %v596_v0, %v248_v36 }
  0x2c   : > { %448 = vst.msk [vmem:[%s644_s30 + $0xb8] sm:$0xff] %vm424_vm0, %v415_v39  ;;  %v325_v50 = vadd.f32 %v614_v2, %v286_v43  ;;  %v288_v52 = vmul.f32 %v596_v0, %v249_v37  ;;  %v416_v53 = vmax.f32 %v384_v44, 0.0  ;;  %v387_v55 = vadd.f32 %v355_v41, %v323_v46 }
  0x2d   : > { %v417_v54 = vmax.f32 %v385_v45, 0.0  ;;  %v388_v56 = vadd.f32 %v356_v42, %v324_v47  ;;  %v418_v59 = vmax.f32 %v386_v49, 0.0  ;;  %v326_v61 = vadd.f32 %v614_v2, %v287_v51 }
  0x2e   : > { %v389_v60 = vadd.f32 %v357_v48, %v325_v50  ;;  %v327_v62 = vadd.f32 %v614_v2, %v288_v52  ;;  %449 = vst.msk [vmem:[%s644_s30 + $0xc0] sm:$0xff] %vm424_vm0, %v416_v53  ;;  %v419_v0 = vmax.f32 %v387_v55, 0.0 }
  0x2f   : > { %450 = vst.msk [vmem:[%s644_s30 + $0xc8] sm:$0xff] %vm424_vm0, %v417_v54  ;;  %v420_v63 = vmax.f32 %v388_v56, 0.0  ;;  %451 = vst.msk [vmem:[%s644_s30 + $0xd0] sm:$0xff] %vm424_vm0, %v418_v59  ;;  %v390_v3 = vadd.f32 %v358_v57, %v326_v61 }
  0x30   : > { %v421_v1 = vmax.f32 %v389_v60, 0.0  ;;  %v391_v4 = vadd.f32 %v359_v58, %v327_v62  ;;  %452 = vst.msk [vmem:[%s644_s30 + $0xd8] sm:$0xff] %vm424_vm0, %v419_v0 }
  0x31   : > { %453 = vst.msk [vmem:[%s644_s30 + $0xe0] sm:$0xff] %vm424_vm0, %v420_v63  ;;  %v422_v5 = vmax.f32 %v390_v3, 0.0 }
  0x32   : > { %454 = vst.msk [vmem:[%s644_s30 + $0xe8] sm:$0xff] %vm424_vm0, %v421_v1  ;;  %v423_v6 = vmax.f32 %v391_v4, 0.0 }
  0x33   : > { %455 = vst.msk [vmem:[%s644_s30 + $0xf0] sm:$0xff] %vm424_vm0, %v422_v5 }
  0x34   : > { %456 = vst.msk [vmem:[%s644_s30 + $0xf8] sm:$0xff] %vm424_vm0, %v423_v6 }
  0x35 PF: > { %s14_s15 = sadd.s32 1, %s556_s15  }
  0x36   : > { %p11_p4 = scmp.ge.s32.totalorder %s14_s15, 4  }
  0x38   :  { %13 = sbr.rel (!%p11_p4) target bundleno = 1 (0x1), region = 69 }

// kernel: sto_basic_block.3
= control target key start
LH: loop header
LB: loop body
LE: loop exit
PB: predicated region body
PF: predicated region fallthrough
CT: control target
= control target key end

     0   :  { %s7355_s18 = smov 0   ;;  %s9190_s0 = inlined_call_operand.vmem [shape: f32[2,16,16,4], index: 0, kind: input, shape index: {}]   ;;  %s9191_s1 = inlined_call_operand.vmem [shape: f32[1,4], index: 1, kind: input, shape index: {}]   ;;  %s9192_s2 = inlined_call_operand.vmem [shape: f32[1,4], index: 2, kind: input, shape index: {}]   ;;  %s9193_s3 = inlined_call_operand.vmem [shape: bf16[9,4,4], index: 3, kind: input, shape index: {}]   ;;  %s9194_s4 = inlined_call_operand.vmem [shape: f32[2,16,16,4], index: 4, kind: output, shape index: {0}]   ;;  %s9195_s5 = inlined_call_operand.vmem [shape: f32[2,2,4], index: 5, kind: output, shape index: {1}]  }
   0x1 LB: > { %s6378_s19 = sadd.s32 4294967295, %s7322_s18   ;;  %p6382_p0 = scmp.ge.s32.totalorder %s7322_s18, 1  ;;  %s7322_s18 = sphi %s7355_s18, %s16_s18  }
   0x2   : > { %p190_p1 = scmp.lt.s32.totalorder %s7322_s18, 3 }
   0x4   : > { %p191_p2 = pnand %p6382_p0, %p190_p1 }
   0x5   : > { %p222_p3 = scmp.lt.s32.totalorder (!%p191_p2), %s6378_s19, 1 }
   0x6   : > { %194 = sbr.rel (%p191_p2) target bundleno = 627 (0x273), region = 36 }
   0xb   : > { %v808_v0 = vld [vmem:[%s9193_s3] sm:$0x3]  ;;  %vm938_vm0 = vcmask 1041408   ;;  %s9203_s19 = smov (!%p222_p3, %s6378_s19), 1  ;;  %vm363_vm1 = vcmask 27648   ;;  %v7324_v4 = vmov 0  }
   0xc   : > { %7248 = vmatprep.subr.msk.bf16.mxu1 %vm938_vm0, %v808_v0  ;;  %v940_v1 = vsel %vm938_vm0, %v808_v0, 0  ;;  %7247 = vmatprep.subr.msk.bf16.mxu0 %vm938_vm0, %v808_v0  ;;  %v6470_v2 = vld [vmem:[%s9193_s3 + $0x2] sm:$0x3]  ;;  %v7377_v3 = vld [vmem:[%s9191_s1] ss:$0 sm:$0xff]  ;;  %vm366_vm2 = vcmask 24576  }
   0xd   : > { %7246 = vmatpush3.bf16.msra.mxu1 %v940_v1  ;;  %6940 = vmatpush3.bf16.msra.mxu0 %v940_v1  ;;  %364 = vst.msk [vmem:[#allocation2] sm:$0xf] %vm363_vm1, %v7324_v4  ;;  %365 = vst.msk [vmem:[#allocation2 + $0x4] sm:$0xf] %vm363_vm1, %v7324_v4  ;;  %v6519_v5 = vld [vmem:[%s9193_s3 + $0x4] sm:$0x3] }
   0xe   : > { %7249 = vmatprep.subr.msk.bf16.mxu1 %vm938_vm0, %v6470_v2  ;;  %369 = vst.msk [vmem:[#allocation2 + $0xcc] sm:$0xf] %vm363_vm1, %v7324_v4  ;;  %370 = vst.msk [vmem:[#allocation2 + $0xd0] sm:$0xf] %vm363_vm1, %v7324_v4  ;;  %s6784_s28 = sshll.u32 %s9203_s19, 8  ;;  %7250 = vmatprep.subr.msk.bf16.mxu0 %vm938_vm0, %v6519_v5  ;;  %vm516_vm3 = vcmask 1040384  }
   0xf   : > { %v7391_v6 = vld [vmem:[%s9192_s2] ss:$0 sm:$0xff]  ;;  %367 = vst.msk [vmem:[#allocation2 + $0x8] sm:$0x1] %vm366_vm2, %v7324_v4  ;;  %371 = vst.msk [vmem:[#allocation2 + $0xd4] sm:$0x1] %vm366_vm2, %v7324_v4  ;;  %s7406_s10 = scalar_lea.vmem %s9190_s0, %s6784_s28  ;;  %s8981_s30 = scalar_lea.vmem %s9194_s4, %s6784_s28 }
  0x10   : > { %v7399_v7 = vld [vmem:[%s9193_s3 + $0x6] sm:$0x3]  ;;  %vm517_vm4 = vsmask.f32 256  ;;  %v7411_v8 = vld [vmem:[%s9193_s3 + $0x8] sm:$0x3] }
  0x11   : > { %v251_v9 = vld [vmem:[%s7406_s10 + $0x70] sm:$0xff]  ;;  %v252_v10 = vld [vmem:[%s7406_s10 + $0x78] sm:$0xff]  ;;  %vm889_vm5 = vcmask 31744   ;;  %v253_v11 = vld [vmem:[%s7406_s10 + $0x80] sm:$0xff]  ;;  %v7417_v12 = vsel %vm938_vm0, %v6470_v2, 0  ;;  %v7420_v13 = vsel %vm938_vm0, %v6519_v5, 0 }
  0x12   : > { %v290_v14 = vmul.f32 %v7377_v3, %v251_v9  ;;  %v291_v15 = vmul.f32 %v7377_v3, %v252_v10  ;;  %v254_v16 = vld [vmem:[%s7406_s10 + $0x88] sm:$0xff]  ;;  %v292_v17 = vmul.f32 %v7377_v3, %v253_v11  ;;  %v237_v18 = vld [vmem:[%s7406_s10] sm:$0xff]  ;;  %v7430_v20 = vsel %vm938_vm0, %v7399_v7, 0  ;;  %v255_v24 = vld [vmem:[%s7406_s10 + $0x90] sm:$0xff]  ;;  %s6387_s28 = sshll.u32 %s9203_s19, 1 }
  0x13   : > { %v238_v19 = vld [vmem:[%s7406_s10 + $0x8] sm:$0xff]  ;;  %v293_v21 = vmul.f32 %v7377_v3, %v254_v16  ;;  %v276_v22 = vmul.f32 %v7377_v3, %v237_v18  ;;  %v256_v25 = vld [vmem:[%s7406_s10 + $0x98] sm:$0xff]  ;;  %v257_v26 = vld [vmem:[%s7406_s10 + $0xa0] sm:$0xff]  ;;  %v7440_v27 = vsel %vm938_vm0, %v7411_v8, 0  ;;  %v294_v31 = vmul.f32 %v7377_v3, %v255_v24  ;;  %s235_s8 = scalar_lea.vmem %s9195_s5, %s6387_s28 }
  0x14   : > { %v277_v23 = vmul.f32 %v7377_v3, %v238_v19  ;;  %v329_v28 = vadd.f32 %v7391_v6, %v290_v14  ;;  %v330_v29 = vadd.f32 %v7391_v6, %v291_v15  ;;  %v331_v30 = vadd.f32 %v7391_v6, %v292_v17  ;;  %v258_v32 = vld [vmem:[%s7406_s10 + $0xa8] sm:$0xff]  ;;  %v239_v33 = vld [vmem:[%s7406_s10 + $0x10] sm:$0xff]  ;;  %v7268_v35 = vld [vmem:[#allocation2] sm:$0xff]  }
  0x15   : > { %v332_v34 = vadd.f32 %v7391_v6, %v293_v21  ;;  %v315_v36 = vadd.f32 %v7391_v6, %v276_v22  ;;  %v295_v38 = vmul.f32 %v7377_v3, %v256_v25  ;;  %v333_v40 = vadd.f32 %v7391_v6, %v294_v31  ;;  %6941 = vmatprep.mubr.msk.bf16.mxu0 %vm889_vm5, %v7268_v35  ;;  %v240_v46 = vld [vmem:[%s7406_s10 + $0x18] sm:$0xff]  ;;  %v241_v52 = vld [vmem:[%s7406_s10 + $0x20] sm:$0xff]  ;;  %vm7465_vm6 = vmand %vm516_vm3, %vm517_vm4 }
  0x16   : > { %v316_v37 = vadd.f32 %v7391_v6, %v277_v23  ;;  %v354_v39 = vpack.c.bf16 %v330_v29, %v329_v28  ;;  %v296_v41 = vmul.f32 %v7377_v3, %v257_v26  ;;  %v297_v42 = vmul.f32 %v7377_v3, %v258_v32  ;;  %v242_v25 = vld [vmem:[%s7406_s10 + $0x28] sm:$0xff]  ;;  %v259_v26 = vld [vmem:[%s7406_s10 + $0xb0] sm:$0xff]  ;;  %v260_v28 = vld [vmem:[%s7406_s10 + $0xb8] sm:$0xff] }
  0x17   : > { %v355_v43 = vpack.c.bf16 %v332_v34, %v331_v30  ;;  %v334_v45 = vadd.f32 %v7391_v6, %v295_v38  ;;  %v278_v47 = vmul.f32 %v7377_v3, %v239_v33  ;;  %v279_v60 = vmul.f32 %v7377_v3, %v240_v46  ;;  %v261_v33 = vld [vmem:[%s7406_s10 + $0xc0] sm:$0xff] }
  0x18   : > { %v347_v44 = vpack.c.bf16 %v316_v37, %v315_v36  ;;  %v422_v48 = vshrl.u32 %v354_v39, 16  ;;  %v425_v49 = vshll.u32 %v354_v39, 16  ;;  %v335_v50 = vadd.f32 %v7391_v6, %v296_v41 }
  0x19   : > { %v336_v51 = vadd.f32 %v7391_v6, %v297_v42  ;;  %v429_v53 = vshrl.u32 %v355_v43, 16  ;;  %v432_v54 = vshll.u32 %v355_v43, 16  ;;  %v356_v58 = vpack.c.bf16 %v334_v45, %v333_v40  ;;  %v262_v45 = vld [vmem:[%s7406_s10 + $0xc8] sm:$0xff] }
  0x1a   : > { %v373_v55 = vshrl.u32 %v347_v44, 16  ;;  %v376_v56 = vshll.u32 %v347_v44, 16  ;;  %v424_v57 = vrot.slane %v422_v48, 7  ;;  %v317_v0 = vadd.f32 %v7391_v6, %v278_v47 }
  0x1b   : > { %v357_v59 = vpack.c.bf16 %v336_v51, %v335_v50  ;;  %v7469_v62 = vrot.slane %v429_v53, 7  ;;  %v280_v1 = vmul.f32 %v7377_v3, %v241_v52  ;;  %v436_v5 = vshrl.u32 %v356_v58, 16  ;;  %v243_v51 = vld [vmem:[%s7406_s10 + $0x30] sm:$0xff] }
  0x1c   : > { %v375_v63 = vrot.slane %v373_v55, 7  ;;  %v427_v2 = vor.u32 %v425_v49, %v424_v57  ;;  %v542_v4 = vsel %vm7465_vm6, %v424_v57, 0  ;;  %v439_v9 = vshll.u32 %v356_v58, 16  ;;  %v245_v57 = vld [vmem:[%s7406_s10 + $0x40] sm:$0xff] }
  0x1d   : > { %v6413_v10 = vcombine.low %v542_v4, %v542_v4  ;;  %v434_v11 = vor.u32 %v432_v54, %v7469_v62  ;;  %v7480_v18 = vrot.slane %v436_v5, 7  ;;  %v443_v19 = vshrl.u32 %v357_v59, 16 }
  0x1e   : > { %v378_v14 = vor.u32 %v376_v56, %v375_v63  ;;  %v535_v15 = vsel %vm7465_vm6, %v375_v63, 0  ;;  %v526_v16 = vsel %vm7465_vm6, 0, %v427_v2  ;;  %v446_v36 = vshll.u32 %v357_v59, 16  ;;  %v244_v56 = vld [vmem:[%s7406_s10 + $0x38] sm:$0xff] }
  0x1f   : > { %v6392_v17 = vcombine.low %v535_v15, %v535_v15  ;;  %v6411_v21 = vcombine.low %v526_v16, %v526_v16  ;;  %v6412_v22 = vcombine.high %v526_v16, %v526_v16  ;;  %v527_v23 = vsel %vm7465_vm6, 0, %v434_v11  ;;  %751 = vst.msk [vmem:[#allocation2 + $0x68] sm:$0x1] %vm366_vm2, %v6413_v10  ;;  %v263_v16 = vld [vmem:[%s7406_s10 + $0xd0] sm:$0xff] }
  0x20   : > { %v519_v24 = vsel %vm7465_vm6, 0, %v378_v14  ;;  %v6414_v29 = vcombine.low %v527_v23, %v527_v23  ;;  %v6415_v30 = vcombine.high %v527_v23, %v527_v23  ;;  %v441_v34 = vor.u32 %v439_v9, %v7480_v18 }
  0x21   : > { %v6390_v31 = vcombine.low %v519_v24, %v519_v24  ;;  %v6391_v32 = vcombine.high %v519_v24, %v519_v24  ;;  %730 = vst.msk [vmem:[#allocation2 + $0x14] sm:$0x1] %vm366_vm2, %v6392_v17  ;;  %v7495_v35 = vrot.slane %v443_v19, 7  ;;  %v318_v37 = vadd.f32 %v7391_v6, %v279_v60 }
  0x22   : > { %749 = vst.msk [vmem:[#allocation2 + $0x60] sm:$0xf] %vm363_vm1, %v6411_v21  ;;  %750 = vst.msk [vmem:[#allocation2 + $0x64] sm:$0xf] %vm363_vm1, %v6412_v22  ;;  %v281_v38 = vmul.f32 %v7377_v3, %v242_v25  ;;  %v319_v39 = vadd.f32 %v7391_v6, %v280_v1  ;;  %v298_v40 = vmul.f32 %v7377_v3, %v259_v26  ;;  %v528_v42 = vsel %vm7465_vm6, 0, %v441_v34  ;;  %v264_v34 = vld [vmem:[%s7406_s10 + $0xd8] sm:$0xff] }
  0x23   : > { %752 = vst.msk [vmem:[#allocation2 + $0x6c] sm:$0xf] %vm363_vm1, %v6414_v29  ;;  %753 = vst.msk [vmem:[#allocation2 + $0x70] sm:$0xf] %vm363_vm1, %v6415_v30  ;;  %v299_v41 = vmul.f32 %v7377_v3, %v260_v28  ;;  %v448_v43 = vor.u32 %v446_v36, %v7495_v35  ;;  %v348_v44 = vpack.c.bf16 %v318_v37, %v317_v0  ;;  %v246_v0 = vld [vmem:[%s7406_s10 + $0x48] sm:$0xff]  ;;  %vm2024_vm9 = vcmask 1042432  }
  0x24   : > { %728 = vst.msk [vmem:[#allocation2 + $0xc] sm:$0xf] %vm363_vm1, %v6390_v31  ;;  %729 = vst.msk [vmem:[#allocation2 + $0x10] sm:$0xf] %vm363_vm1, %v6391_v32  ;;  %v300_v46 = vmul.f32 %v7377_v3, %v261_v33  ;;  %v6417_v47 = vcombine.low %v528_v42, %v528_v42  ;;  %v6418_v48 = vcombine.high %v528_v42, %v528_v42  ;;  %vm1183_vm7 = vsmask.f32 3328 }
  0x25   : > { %v320_v49 = vadd.f32 %v7391_v6, %v281_v38  ;;  %v337_v50 = vadd.f32 %v7391_v6, %v298_v40  ;;  %v529_v52 = vsel %vm7465_vm6, 0, %v448_v43  ;;  %v380_v53 = vshrl.u32 %v348_v44, 16 }
  0x26   : > { %v383_v54 = vshll.u32 %v348_v44, 16  ;;  %v338_v55 = vadd.f32 %v7391_v6, %v299_v41  ;;  %755 = vst.msk [vmem:[#allocation2 + $0x78] sm:$0xf] %vm363_vm1, %v6417_v47  ;;  %756 = vst.msk [vmem:[#allocation2 + $0x7c] sm:$0xf] %vm363_vm1, %v6418_v48  ;;  %v6420_v58 = vcombine.low %v529_v52, %v529_v52  ;;  %v6421_v59 = vcombine.high %v529_v52, %v529_v52 }
  0x27   : > { %v349_v60 = vpack.c.bf16 %v320_v49, %v319_v39  ;;  %v301_v63 = vmul.f32 %v7377_v3, %v262_v45  ;;  %v7523_v1 = vrot.slane %v380_v53, 7  ;;  %v339_v4 = vadd.f32 %v7391_v6, %v300_v46 }
  0x28   : > { %v358_v2 = vpack.c.bf16 %v338_v55, %v337_v50  ;;  %v282_v5 = vmul.f32 %v7377_v3, %v243_v51  ;;  %758 = vst.msk [vmem:[#allocation2 + $0x84] sm:$0xf] %vm363_vm1, %v6420_v58  ;;  %759 = vst.msk [vmem:[#allocation2 + $0x88] sm:$0xf] %vm363_vm1, %v6421_v59  ;;  %v283_v14 = vmul.f32 %v7377_v3, %v244_v56  ;;  %v265_v58 = vld [vmem:[%s7406_s10 + $0xe0] sm:$0xff]  ;;  %v266_v59 = vld [vmem:[%s7406_s10 + $0xe8] sm:$0xff] }
  0x29   : > { %v7266_v9 = vld [vmem:[#allocation2 + $0x60] sm:$0xff]   ;;  %v387_v10 = vshrl.u32 %v349_v60, 16  ;;  %v340_v11 = vadd.f32 %v7391_v6, %v301_v63  ;;  %v284_v15 = vmul.f32 %v7377_v3, %v245_v57  ;;  %v385_v19 = vor.u32 %v383_v54, %v7523_v1 }
  0x2a   : > { %v7267_v17 = vld [vmem:[#allocation2 + $0x6c] sm:$0xff]   ;;  %v390_v21 = vshll.u32 %v349_v60, 16  ;;  %v321_v22 = vadd.f32 %v7391_v6, %v282_v5  ;;  %v285_v23 = vmul.f32 %v7377_v3, %v246_v0  ;;  %6957 = vmatprep.mubr.msk.bf16.mxu1 %vm889_vm5, %v7266_v9  ;;  %v322_v28 = vadd.f32 %v7391_v6, %v283_v14  ;;  %v248_v5 = vld [vmem:[%s7406_s10 + $0x58] sm:$0xff]  ;;  %v249_v9 = vld [vmem:[%s7406_s10 + $0x60] sm:$0xff] }
  0x2b   : > { %v7269_v24 = vld [vmem:[#allocation2 + $0xc] sm:$0xff]   ;;  %v7537_v25 = vrot.slane %v387_v10, 7  ;;  %v359_v26 = vpack.c.bf16 %v340_v11, %v339_v4  ;;  %v323_v29 = vadd.f32 %v7391_v6, %v284_v15  ;;  %6958 = vmatmul.mubr.msk.bf16.vlgmr.msra.gmra.mxu1 %vm889_vm5, %v7267_v17  ;;  %v520_v30 = vsel %vm7465_vm6, 0, %v385_v19 }
  0x2c   : > { %v450_v31 = vshrl.u32 %v358_v2, 16  ;;  %v453_v32 = vshll.u32 %v358_v2, 16  ;;  %v324_v33 = vadd.f32 %v7391_v6, %v285_v23  ;;  %6974 = vmatpush3.bf16.msra.mxu1 %v7417_v12  ;;  %6942 = vmatmul.mubr.msk.bf16.vlgmr.msra.gmra.mxu0 %vm889_vm5, %v7269_v24  ;;  %v6393_v36 = vcombine.low %v520_v30, %v520_v30  ;;  %v247_v60 = vld [vmem:[%s7406_s10 + $0x50] sm:$0xff]  ;;  %v250_v10 = vld [vmem:[%s7406_s10 + $0x68] sm:$0xff] }
  0x2d   : > { %v6394_v37 = vcombine.high %v520_v30, %v520_v30  ;;  %v392_v38 = vor.u32 %v390_v21, %v7537_v25  ;;  %v457_v39 = vshrl.u32 %v359_v26, 16  ;;  %v7270_v40 = vld [vmem:[#allocation2 + $0x78] sm:$0xff]   ;;  %7008 = vmatpush3.bf16.msra.mxu0 %v7420_v13  ;;  %v350_v42 = vpack.c.bf16 %v322_v28, %v321_v22  ;;  %7251 = vmatprep.subr.msk.bf16.mxu1 %vm938_vm0, %v7399_v7 }
  0x2e   : > { %v7550_v41 = vrot.slane %v450_v31, 7  ;;  %v351_v43 = vpack.c.bf16 %v324_v33, %v323_v29  ;;  %v302_v44 = vmul.f32 %v7377_v3, %v263_v16  ;;  %731 = vst.msk [vmem:[#allocation2 + $0x18] sm:$0xf] %vm363_vm1, %v6393_v36  ;;  %v460_v46 = vshll.u32 %v359_v26, 16  ;;  %7252 = vmatprep.subr.msk.bf16.mxu0 %vm938_vm0, %v7411_v8  ;;  %6961 = vmatprep.mubr.msk.bf16.mxu1 %vm889_vm5, %v7270_v40  ;;  %v7604_v40 = vld [vmem:[#allocation2 + $0x4] sm:$0xf] }
  0x2f   : > { %732 = vst.msk [vmem:[#allocation2 + $0x1c] sm:$0xf] %vm363_vm1, %v6394_v37  ;;  %v521_v12 = vsel %vm7465_vm6, 0, %v392_v38  ;;  %v7559_v45 = vrot.slane %v457_v39, 7  ;;  %v303_v13 = vmul.f32 %v7377_v3, %v264_v34  ;;  %v7271_v47 = vld [vmem:[#allocation2 + $0x84] sm:$0xff]   ;;  %v394_v50 = vshrl.u32 %v350_v42, 16 }
  0x30   : > { %v6396_v7 = vcombine.low %v521_v12, %v521_v12  ;;  %v6397_v48 = vcombine.high %v521_v12, %v521_v12  ;;  %v455_v49 = vor.u32 %v453_v32, %v7550_v41  ;;  %v397_v52 = vshll.u32 %v350_v42, 16  ;;  %v1135_v34 = vld [vmem:[#allocation2] sm:$0xf] }
  0x31   : > { %v462_v51 = vor.u32 %v460_v46, %v7559_v45  ;;  %v401_v53 = vshrl.u32 %v351_v43, 16  ;;  %v404_v54 = vshll.u32 %v351_v43, 16  ;;  %v7571_v55 = vrot.slane %v394_v50, 7 }
  0x32   : > { %734 = vst.msk [vmem:[#allocation2 + $0x24] sm:$0xf] %vm363_vm1, %v6396_v7  ;;  %735 = vst.msk [vmem:[#allocation2 + $0x28] sm:$0xf] %vm363_vm1, %v6397_v48  ;;  %v530_v8 = vsel %vm7465_vm6, 0, %v455_v49  ;;  %v341_v56 = vadd.f32 %v7391_v6, %v302_v44  ;;  %v342_v57 = vadd.f32 %v7391_v6, %v303_v13  ;;  %v304_v19 = vmul.f32 %v7377_v3, %v265_v58 }
  0x33   : > { %v6423_v63 = vcombine.low %v530_v8, %v530_v8  ;;  %v6424_v0 = vcombine.high %v530_v8, %v530_v8  ;;  %v531_v2 = vsel %vm7465_vm6, 0, %v462_v51  ;;  %v7580_v4 = vrot.slane %v401_v53, 7  ;;  %6962 = vmatmul.mubr.msk.bf16.gmra.mxu1 %vm889_vm5, %v7271_v47 }
  0x34   : > { %v6426_v11 = vcombine.low %v531_v2, %v531_v2  ;;  %v6427_v14 = vcombine.high %v531_v2, %v531_v2  ;;  %v399_v15 = vor.u32 %v397_v52, %v7571_v55  ;;  %v360_v16 = vpack.c.bf16 %v342_v57, %v341_v56 }
  0x35   : > { %761 = vst.msk [vmem:[#allocation2 + $0x90] sm:$0xf] %vm363_vm1, %v6423_v63  ;;  %762 = vst.msk [vmem:[#allocation2 + $0x94] sm:$0xf] %vm363_vm1, %v6424_v0  ;;  %v406_v17 = vor.u32 %v404_v54, %v7580_v4  ;;  %v305_v21 = vmul.f32 %v7377_v3, %v266_v59  ;;  %v286_v22 = vmul.f32 %v7377_v3, %v247_v60  ;;  %vm1184_vm8 = vsmask.f32 7440 }
  0x36   : > { %v7272_v23 = vld [vmem:[#allocation2 + $0x18] sm:$0xff]   ;;  %764 = vst.msk [vmem:[#allocation2 + $0x9c] sm:$0xf] %vm363_vm1, %v6426_v11  ;;  %765 = vst.msk [vmem:[#allocation2 + $0xa0] sm:$0xf] %vm363_vm1, %v6427_v14  ;;  %v522_v24 = vsel %vm7465_vm6, 0, %v399_v15  ;;  %v287_v26 = vmul.f32 %v7377_v3, %v248_v5  ;;  %v288_v28 = vmul.f32 %v7377_v3, %v249_v9  ;;  %v289_v29 = vmul.f32 %v7377_v3, %v250_v10 }
  0x37   : > { %v6399_v30 = vcombine.low %v522_v24, %v522_v24  ;;  %v6400_v31 = vcombine.high %v522_v24, %v522_v24  ;;  %v523_v32 = vsel %vm7465_vm6, 0, %v406_v17  ;;  %v464_v33 = vshrl.u32 %v360_v16, 16  ;;  %6945 = vmatprep.mubr.msk.bf16.mxu0 %vm889_vm5, %v7272_v23  ;;  %v1137_v60 = vld [vmem:[#allocation2 + $0x8] sm:$0x1]  ;;  %v1138_v9 = vld [vmem:[#allocation2 + $0xc] sm:$0xf]  ;;  %vm7644_vm11 = vmor %vm1183_vm7, %vm1184_vm8 }
  0x38   : > { %v6402_v36 = vcombine.low %v523_v32, %v523_v32  ;;  %v6403_v37 = vcombine.high %v523_v32, %v523_v32  ;;  %v467_v38 = vshll.u32 %v360_v16, 16  ;;  %v343_v39 = vadd.f32 %v7391_v6, %v304_v19  ;;  %v1928_v32 = vld [vmem:[#allocation2] sm:$0xe] }
  0x39   : > { %v7273_v42 = vld [vmem:[#allocation2 + $0x24] sm:$0xff]   ;;  %737 = vst.msk [vmem:[#allocation2 + $0x30] sm:$0xf] %vm363_vm1, %v6399_v30  ;;  %738 = vst.msk [vmem:[#allocation2 + $0x34] sm:$0xf] %vm363_vm1, %v6400_v31  ;;  %v7608_v3 = vrot.slane %v464_v33, 7  ;;  %v344_v43 = vadd.f32 %v7391_v6, %v305_v21  ;;  %v325_v44 = vadd.f32 %v7391_v6, %v286_v22  ;;  %v326_v12 = vadd.f32 %v7391_v6, %v287_v26 }
  0x3a   : > { %740 = vst.msk [vmem:[#allocation2 + $0x3c] sm:$0xf] %vm363_vm1, %v6402_v36  ;;  %741 = vst.msk [vmem:[#allocation2 + $0x40] sm:$0xf] %vm363_vm1, %v6403_v37  ;;  %v327_v46 = vadd.f32 %v7391_v6, %v288_v28  ;;  %v328_v13 = vadd.f32 %v7391_v6, %v289_v29  ;;  %v1187_v47 = vshrl.u32 %v1135_v34, 16  ;;  %v1190_v7 = vshll.u32 %v1135_v34, 16  ;;  %6946 = vmatmul.mubr.msk.bf16.gmra.mxu0 %vm889_vm5, %v7273_v42 }
  0x3b   : > { %v469_v48 = vor.u32 %v467_v38, %v7608_v3  ;;  %v361_v49 = vpack.c.bf16 %v344_v43, %v343_v39  ;;  %v352_v50 = vpack.c.bf16 %v326_v12, %v325_v44  ;;  %v1196_v51 = vshll.u32 %v7604_v40, 16  ;;  %v1139_v39 = vld [vmem:[#allocation2 + $0x10] sm:$0xf] }
  0x3c   : > { %v7274_v52 = vld [vmem:[#allocation2 + $0x90] sm:$0xff]   ;;  %v353_v53 = vpack.c.bf16 %v328_v13, %v327_v46  ;;  %v1189_v54 = vrot.slane %v1187_v47, 4  ;;  %vm2025_vm10 = vcmask 1046532   ;;  %v1192_v19 = vrot.slane %v1190_v7, 5  ;;  %v1930_v13 = vld [vmem:[#allocation2 + $0x8] sm:$0x1] }
  0x3d   : > { %v7275_v8 = vld [vmem:[#allocation2 + $0x9c] sm:$0xff]   ;;  %v532_v56 = vsel %vm7465_vm6, 0, %v469_v48  ;;  %6965 = vmatprep.mubr.msk.bf16.mxu1 %vm889_vm5, %v7274_v52  ;;  %v471_v58 = vshrl.u32 %v361_v49, 16  ;;  %v474_v59 = vshll.u32 %v361_v49, 16  ;;  %v408_v63 = vshrl.u32 %v352_v50, 16  ;;  %vm7661_vm12 = vmor %vm2024_vm9, %vm2025_vm10 }
  0x3e   : > { %v6429_v6 = vcombine.low %v532_v56, %v532_v56  ;;  %v6430_v57 = vcombine.high %v532_v56, %v532_v56  ;;  %6966 = vmatmul.mubr.msk.bf16.gmra.mxu1 %vm889_vm5, %v7275_v8  ;;  %v411_v0 = vshll.u32 %v352_v50, 16  ;;  %v415_v2 = vshrl.u32 %v353_v53, 16  ;;  %v1140_v46 = vld [vmem:[#allocation2 + $0x14] sm:$0x1]  ;;  %v1931_v8 = vld [vmem:[#allocation2 + $0xc] sm:$0xe] }
  0x3f   : > { %v418_v5 = vshll.u32 %v353_v53, 16  ;;  %v7626_v11 = vrot.slane %v471_v58, 7  ;;  %v7628_v15 = vrot.slane %v408_v63, 7  ;;  %v1198_v21 = vrot.slane %v1196_v51, 5 }
  0x40   : > { %v7276_v10 = vld [vmem:[#allocation2 + $0x30] sm:$0xff]   ;;  %767 = vst.msk [vmem:[#allocation2 + $0xa8] sm:$0xf] %vm363_vm1, %v6429_v6  ;;  %768 = vst.msk [vmem:[#allocation2 + $0xac] sm:$0xf] %vm363_vm1, %v6430_v57  ;;  %v7632_v17 = vrot.slane %v415_v2, 7  ;;  %v1193_v30 = vor.u32 %v1192_v19, %v1189_v54 }
  0x41   : > { %v7277_v14 = vld [vmem:[#allocation2 + $0x3c] sm:$0xff]   ;;  %6949 = vmatprep.mubr.msk.bf16.mxu0 %vm889_vm5, %v7276_v10  ;;  %v476_v16 = vor.u32 %v474_v59, %v7626_v11  ;;  %v413_v22 = vor.u32 %v411_v0, %v7628_v15  ;;  %v1200_v23 = vshrl.u32 %v7604_v40, 16  ;;  %v1206_v24 = vshll.u32 %v1137_v60, 16  ;;  %v1929_v40 = vld [vmem:[#allocation2 + $0x4] sm:$0xf] }
  0x42   : > { %6950 = vmatmul.mubr.msk.bf16.gmra.mxu0 %vm889_vm5, %v7277_v14  ;;  %v1211_v26 = vshrl.u32 %v1138_v9, 16  ;;  %v420_v29 = vor.u32 %v418_v5, %v7632_v17  ;;  %v1214_v31 = vshll.u32 %v1138_v9, 16  ;;  %v1194_v12 = vrot.slane %v1193_v30, 4  ;;  %v1933_v60 = vld [vmem:[#allocation2 + $0x14] sm:$0x1] }
  0x43   : > { %v533_v28 = vsel %vm7465_vm6, 0, %v476_v16  ;;  %v524_v36 = vsel %vm7465_vm6, 0, %v413_v22  ;;  %v1202_v38 = vrot.slane %v1200_v23, 4  ;;  %v1208_v50 = vrot.slane %v1206_v24, 5  ;;  %v1932_v9 = vld [vmem:[#allocation2 + $0x10] sm:$0xf] }
  0x44   : > { %v6432_v33 = vcombine.low %v533_v28, %v533_v28  ;;  %v6433_v34 = vcombine.high %v533_v28, %v533_v28  ;;  %v6405_v42 = vcombine.low %v524_v36, %v524_v36  ;;  %v6406_v43 = vcombine.high %v524_v36, %v524_v36 }
  0x45   : > { %v525_v44 = vsel %vm7465_vm6, 0, %v420_v29  ;;  %v1203_v49 = vor.u32 %v1202_v38, %v1198_v21  ;;  %v1199_v51 = vsel %vm7644_vm11, %v1194_v12, %v1198_v21  ;;  %v1213_v52 = vrot.slane %v1211_v26, 4  ;;  %v1141_v21 = vld [vmem:[#allocation2 + $0x18] sm:$0xf] }
  0x46   : > { %770 = vst.msk [vmem:[#allocation2 + $0xb4] sm:$0xf] %vm363_vm1, %v6432_v33  ;;  %771 = vst.msk [vmem:[#allocation2 + $0xb8] sm:$0xf] %vm363_vm1, %v6433_v34  ;;  %v6408_v7 = vcombine.low %v525_v44, %v525_v44  ;;  %v6409_v48 = vcombine.high %v525_v44, %v525_v44  ;;  %v1216_v53 = vrot.slane %v1214_v31, 5  ;;  %v1220_v54 = vshll.u32 %v1139_v39, 16 }
  0x47   : > { %v7278_v47 = vld [vmem:[#allocation2 + $0xa8] sm:$0xff]   ;;  %743 = vst.msk [vmem:[#allocation2 + $0x48] sm:$0xf] %vm363_vm1, %v6405_v42  ;;  %744 = vst.msk [vmem:[#allocation2 + $0x4c] sm:$0xf] %vm363_vm1, %v6406_v43  ;;  %v1204_v56 = vrot.slane %v1203_v49, 4 }
  0x48   : > { %6969 = vmatprep.mubr.msk.bf16.mxu1 %vm889_vm5, %v7278_v47  ;;  %746 = vst.msk [vmem:[#allocation2 + $0x54] sm:$0xf] %vm363_vm1, %v6408_v7  ;;  %747 = vst.msk [vmem:[#allocation2 + $0x58] sm:$0xf] %vm363_vm1, %v6409_v48  ;;  %v1224_v6 = vshrl.u32 %v1139_v39, 16  ;;  %v1230_v57 = vshll.u32 %v1140_v46, 16  ;;  %v1217_v63 = vor.u32 %v1216_v53, %v1213_v52 }
  0x49   : > { %v6503_v59 = vrot.slane %v1928_v32, 9  ;;  %v1222_v0 = vrot.slane %v1220_v54, 5  ;;  %v2029_v2 = vrot.slane %v1929_v40, 5  ;;  %v2032_v5 = vrot.slane %v1930_v13, 5  ;;  %v1142_v32 = vld [vmem:[#allocation2 + $0x1c] sm:$0xf] }
  0x4a   : > { %v1209_v10 = vsel %vm7644_vm11, %v1204_v56, %v1208_v50  ;;  %v1226_v14 = vrot.slane %v1224_v6, 4  ;;  %v1232_v16 = vrot.slane %v1230_v57, 5  ;;  %v6504_v19 = vrot.slane %v1931_v8, 9  ;;  %v1144_v44 = vld [vmem:[#allocation2 + $0x24] sm:$0xf] }
  0x4b   : > { %v6471_v22 = vcombine.low %v1199_v51, %v1209_v10  ;;  %v1218_v23 = vrot.slane %v1217_v63, 4  ;;  %v2030_v24 = vsel %vm7661_vm12, %v6503_v59, %v2029_v2  ;;  %v2031_v26 = vrot.slane %v2029_v2, 4  ;;  %v1145_v49 = vld [vmem:[#allocation2 + $0x28] sm:$0xf]  ;;  %v1934_v54 = vld [vmem:[#allocation2 + $0x18] sm:$0xe] }
  0x4c   : > { %v1227_v28 = vor.u32 %v1226_v14, %v1222_v0  ;;  %v2036_v29 = vrot.slane %v1932_v9, 5  ;;  %v2039_v30 = vrot.slane %v1933_v60, 5  ;;  %v536_v31 = vsel %vm7465_vm6, %v7523_v1, 0  ;;  %v1935_v8 = vld [vmem:[#allocation2 + $0x1c] sm:$0xf] }
  0x4d   : > { %v7279_v33 = vld [vmem:[#allocation2 + $0xb4] sm:$0xff]   ;;  %v2033_v34 = vsel %vm7661_vm12, %v2031_v26, %v2032_v5  ;;  %v6395_v36 = vcombine.low %v536_v31, %v536_v31  ;;  %v1235_v38 = vshrl.u32 %v1141_v21, 16  ;;  %v1223_v40 = vsel %vm7644_vm11, %v1218_v23, %v1222_v0  ;;  %v1938_v23 = vld [vmem:[#allocation2 + $0x28] sm:$0xf] }
  0x4e   : > { %v7280_v39 = vld [vmem:[#allocation2 + $0x48] sm:$0xff]   ;;  %v1228_v42 = vrot.slane %v1227_v28, 4  ;;  %v6520_v43 = vcombine.low %v2030_v24, %v2033_v34  ;;  %6970 = vmatmul.mubr.msk.bf16.gmra.mxu1 %vm889_vm5, %v7279_v33  ;;  %v2037_v1 = vsel %vm7661_vm12, %v6504_v19, %v2036_v29  ;;  %v2038_v46 = vrot.slane %v2036_v29, 4 }
  0x4f   : > { %v7281_v12 = vld [vmem:[#allocation2 + $0x54] sm:$0xff]   ;;  %733 = vst.msk [vmem:[#allocation2 + $0x20] sm:$0x1] %vm366_vm2, %v6395_v36  ;;  %6953 = vmatprep.mubr.msk.bf16.mxu0 %vm889_vm5, %v7280_v39  ;;  %6975 = vmatprep.mubr.msk.bf16.mxu1 %vm889_vm5, %v6471_v22  ;;  %v1237_v47 = vrot.slane %v1235_v38, 4  ;;  %v1238_v7 = vshll.u32 %v1141_v21, 16  ;;  %v1244_v48 = vshll.u32 %v1142_v32, 16 }
  0x50   : > { %v1233_v13 = vsel %vm7644_vm11, %v1228_v42, %v1232_v16  ;;  %6954 = vmatmul.mubr.msk.bf16.gmra.mxu0 %vm889_vm5, %v7281_v12  ;;  %v2040_v51 = vsel %vm7661_vm12, %v2038_v46, %v2039_v30  ;;  %v1248_v52 = vshrl.u32 %v1142_v32, 16  ;;  %v537_v53 = vsel %vm7465_vm6, %v7537_v25, 0  ;;  %v1937_v16 = vld [vmem:[#allocation2 + $0x24] sm:$0xe]  ;;  %v1147_v36 = vld [vmem:[#allocation2 + $0x30] sm:$0xf] }
  0x51   : > { %v6472_v50 = vcombine.low %v1223_v40, %v1233_v13  ;;  %7009 = vmatprep.mubr.msk.bf16.mxu0 %vm889_vm5, %v6520_v43  ;;  %v6521_v56 = vcombine.low %v2037_v1, %v2040_v51  ;;  %v1240_v6 = vrot.slane %v1238_v7, 5  ;;  %v1246_v57 = vrot.slane %v1244_v48, 5 }
  0x52   : > { %v6398_v59 = vcombine.low %v537_v53, %v537_v53  ;;  %v1250_v60 = vrot.slane %v1248_v52, 4  ;;  %v1259_v63 = vshrl.u32 %v1144_v44, 16  ;;  %v1262_v0 = vshll.u32 %v1144_v44, 16 }
  0x53   : > { %v1268_v2 = vshll.u32 %v1145_v49, 16  ;;  %v1241_v5 = vor.u32 %v1240_v6, %v1237_v47  ;;  %v1272_v9 = vshrl.u32 %v1145_v49, 16  ;;  %v6505_v10 = vrot.slane %v1934_v54, 9  ;;  %v1148_v47 = vld [vmem:[#allocation2 + $0x34] sm:$0xf] }
  0x54   : > { %736 = vst.msk [vmem:[#allocation2 + $0x2c] sm:$0x1] %vm366_vm2, %v6398_v59  ;;  %v2043_v14 = vrot.slane %v1935_v8, 5  ;;  %v1251_v25 = vor.u32 %v1250_v60, %v1246_v57  ;;  %v1261_v19 = vrot.slane %v1259_v63, 4  ;;  %v1264_v21 = vrot.slane %v1262_v0, 5 }
  0x55   : > { %v7692_v22 = vrot.slane %v1268_v2, 5  ;;  %v1242_v26 = vrot.slane %v1241_v5, 4  ;;  %v1274_v28 = vrot.slane %v1272_v9, 4  ;;  %v6506_v42 = vrot.slane %v1937_v16, 9  ;;  %v1151_v6 = vld [vmem:[#allocation2 + $0x40] sm:$0xf] }
  0x56   : > { %v1143_v24 = vld [vmem:[#allocation2 + $0x20] sm:$0x1]  ;;  %v2044_v30 = vsel %vm7661_vm12, %v6505_v10, %v2043_v14  ;;  %6976 = vmatmul.mubr.msk.bf16.vlgmr.msra.gmra.mxu1 %vm889_vm5, %v6472_v50  ;;  %v1252_v31 = vrot.slane %v1251_v25, 4  ;;  %v1265_v33 = vor.u32 %v1264_v21, %v1261_v19  ;;  %v2045_v34 = vrot.slane %v2043_v14, 4  ;;  %v1940_v0 = vld [vmem:[#allocation2 + $0x30] sm:$0xe] }
  0x57   : > { %v1936_v29 = vld [vmem:[#allocation2 + $0x20] sm:$0x1]  ;;  %v1254_v32 = vshll.u32 %v1143_v24, 16  ;;  %7042 = vmatpush3.bf16.msra.mxu1 %v7430_v20  ;;  %v1247_v38 = vsel %vm7644_vm11, %v1242_v26, %v1246_v57  ;;  %v1275_v39 = vor.u32 %v1274_v28, %v7692_v22  ;;  %v2050_v12 = vrot.slane %v1938_v23, 5  ;;  %v1941_v14 = vld [vmem:[#allocation2 + $0x34] sm:$0xf] }
  0x58   : > { %v2046_v40 = vrot.slane %v1936_v29, 5  ;;  %7010 = vmatmul.mubr.msk.bf16.vlgmr.msra.gmra.mxu0 %vm889_vm5, %v6521_v56  ;;  %v1266_v44 = vrot.slane %v1265_v33, 4  ;;  %v538_v1 = vsel %vm7465_vm6, %v7571_v55, 0  ;;  %v1283_v7 = vshrl.u32 %v1147_v36, 16  ;;  %v1944_v29 = vld [vmem:[#allocation2 + $0x40] sm:$0xf] }
  0x59   : > { %v1256_v43 = vrot.slane %v1254_v32, 5  ;;  %v1276_v46 = vrot.slane %v1275_v39, 4  ;;  %7076 = vmatpush3.bf16.msra.mxu0 %v7440_v27  ;;  %v6401_v13 = vcombine.low %v538_v1, %v538_v1  ;;  %v2051_v55 = vsel %vm7661_vm12, %v6506_v42, %v2050_v12  ;;  %v1150_v27 = vld [vmem:[#allocation2 + $0x3c] sm:$0xf]  ;;  %v7729_v33 = vld [vmem:[%s9193_s3 + $0xa] sm:$0x3] }
  0x5a   : > { %v2047_v20 = vsel %vm7661_vm12, %v2045_v34, %v2046_v40  ;;  %v1271_v50 = vsel %vm7644_vm11, %v1266_v44, %v7692_v22  ;;  %v2052_v8 = vrot.slane %v2050_v12, 4  ;;  %v1285_v57 = vrot.slane %v1283_v7, 4  ;;  %v1943_v22 = vld [vmem:[#allocation2 + $0x3c] sm:$0xe]  ;;  %7253 = vmatprep.subr.msk.bf16.mxu1 %vm938_vm0, %v7729_v33 }
  0x5b   : > { %v1257_v48 = vsel %vm7644_vm11, %v1252_v31, %v1256_v43  ;;  %v1146_v49 = vld [vmem:[#allocation2 + $0x2c] sm:$0x1]  ;;  %v6522_v51 = vcombine.low %v2044_v30, %v2047_v20  ;;  %739 = vst.msk [vmem:[#allocation2 + $0x38] sm:$0x1] %vm366_vm2, %v6401_v13  ;;  %v1286_v59 = vshll.u32 %v1147_v36, 16  ;;  %v1292_v60 = vshll.u32 %v1148_v47, 16 }
  0x5c   : > { %v1939_v52 = vld [vmem:[#allocation2 + $0x2c] sm:$0x1]  ;;  %v6473_v53 = vcombine.low %v1247_v38, %v1257_v48  ;;  %v1278_v54 = vshll.u32 %v1146_v49, 16  ;;  %v1296_v63 = vshrl.u32 %v1148_v47, 16  ;;  %v539_v9 = vsel %vm7465_vm6, %v7580_v4, 0 }
  0x5d   : > { %v2053_v56 = vrot.slane %v1939_v52, 5  ;;  %7013 = vmatprep.mubr.msk.bf16.mxu0 %vm889_vm5, %v6522_v51  ;;  %v1307_v10 = vshrl.u32 %v1150_v27, 16  ;;  %v1288_v25 = vrot.slane %v1286_v59, 5  ;;  %v1294_v19 = vrot.slane %v1292_v60, 5  ;;  %v1154_v59 = vld [vmem:[#allocation2 + $0x4c] sm:$0xf] }
  0x5e   : > { %6979 = vmatprep.mubr.msk.bf16.mxu1 %vm889_vm5, %v6473_v53  ;;  %v1280_v2 = vrot.slane %v1278_v54, 5  ;;  %v1298_v21 = vrot.slane %v1296_v63, 4  ;;  %v6404_v24 = vcombine.low %v539_v9, %v539_v9  ;;  %v1310_v28 = vshll.u32 %v1150_v27, 16  ;;  %v1153_v53 = vld [vmem:[#allocation2 + $0x48] sm:$0xf]  ;;  %v267_v54 = vld [vmem:[%s7406_s10 + $0xf0] sm:$0xff] }
  0x5f   : > { %v2054_v5 = vsel %vm7661_vm12, %v2052_v8, %v2053_v56  ;;  %v1309_v26 = vrot.slane %v1307_v10, 4  ;;  %v1289_v31 = vor.u32 %v1288_v25, %v1285_v57  ;;  %v1316_v4 = vshll.u32 %v1151_v6, 16  ;;  %v1157_v25 = vld [vmem:[#allocation2 + $0x58] sm:$0xf] }
  0x60   : > { %v6523_v16 = vcombine.low %v2051_v55, %v2054_v5  ;;  %v1281_v23 = vsel %vm7644_vm11, %v1276_v46, %v1280_v2  ;;  %v1299_v32 = vor.u32 %v1298_v21, %v1294_v19  ;;  %742 = vst.msk [vmem:[#allocation2 + $0x44] sm:$0x1] %vm366_vm2, %v6404_v24  ;;  %v1312_v34 = vrot.slane %v1310_v28, 5  ;;  %v1156_v2 = vld [vmem:[#allocation2 + $0x54] sm:$0xf] }
  0x61   : > { %v6474_v30 = vcombine.low %v1271_v50, %v1281_v23  ;;  %v1320_v36 = vshrl.u32 %v1151_v6, 16  ;;  %v6507_v38 = vrot.slane %v1940_v0, 9  ;;  %v2057_v39 = vrot.slane %v1941_v14, 5  ;;  %v1946_v28 = vld [vmem:[#allocation2 + $0x48] sm:$0xe] }
  0x62   : > { %7014 = vmatmul.mubr.msk.bf16.gmra.mxu0 %vm889_vm5, %v6523_v16  ;;  %v1149_v40 = vld [vmem:[#allocation2 + $0x38] sm:$0x1]  ;;  %v1290_v42 = vrot.slane %v1289_v31, 4  ;;  %v1300_v43 = vrot.slane %v1299_v32, 4  ;;  %v7735_v44 = vrot.slane %v1316_v4, 5  ;;  %v6508_v12 = vrot.slane %v1943_v22, 9 }
  0x63   : > { %6980 = vmatmul.mubr.msk.bf16.gmra.mxu1 %vm889_vm5, %v6474_v30  ;;  %v1302_v1 = vshll.u32 %v1149_v40, 16  ;;  %v1313_v46 = vor.u32 %v1312_v34, %v1309_v26  ;;  %v1322_v20 = vrot.slane %v1320_v36, 4  ;;  %v1942_v13 = vld [vmem:[#allocation2 + $0x38] sm:$0x1]  ;;  %v2058_v47 = vsel %vm7661_vm12, %v6507_v38, %v2057_v39 }
  0x64   : > { %v1295_v7 = vsel %vm7644_vm11, %v1290_v42, %v1294_v19  ;;  %v2059_v48 = vrot.slane %v2057_v39, 4  ;;  %v2060_v49 = vrot.slane %v1942_v13, 5  ;;  %v2064_v50 = vrot.slane %v1944_v29, 5  ;;  %v7759_v19 = vld [vmem:[%s9191_s1] ss:$0 sm:$0xff] }
  0x65   : > { %v1304_v51 = vrot.slane %v1302_v1, 5  ;;  %v1314_v52 = vrot.slane %v1313_v46, 4  ;;  %v1323_v55 = vor.u32 %v1322_v20, %v7735_v44  ;;  %v540_v27 = vsel %vm7465_vm6, %v7628_v15, 0  ;;  %v1949_v13 = vld [vmem:[#allocation2 + $0x54] sm:$0xe] }
  0x66   : > { %v2061_v8 = vsel %vm7661_vm12, %v2059_v48, %v2060_v49  ;;  %v2065_v56 = vsel %vm7661_vm12, %v6508_v12, %v2064_v50  ;;  %v2066_v6 = vrot.slane %v2064_v50, 4  ;;  %v6407_v57 = vcombine.low %v540_v27, %v540_v27  ;;  %v7774_v12 = vld [vmem:[%s9193_s3 + $0xc] sm:$0x3] }
  0x67   : > { %v1305_v60 = vsel %vm7644_vm11, %v1300_v43, %v1304_v51  ;;  %v1319_v63 = vsel %vm7644_vm11, %v1314_v52, %v7735_v44  ;;  %v1324_v0 = vrot.slane %v1323_v55, 4  ;;  %v6524_v15 = vcombine.low %v2058_v47, %v2061_v8  ;;  %v1152_v9 = vld [vmem:[#allocation2 + $0x44] sm:$0x1]  ;;  %v1947_v44 = vld [vmem:[#allocation2 + $0x4c] sm:$0xf]  ;;  %7254 = vmatprep.subr.msk.bf16.mxu0 %vm938_vm0, %v7774_v12 }
  0x68   : > { %v6475_v5 = vcombine.low %v1295_v7, %v1305_v60  ;;  %v1945_v10 = vld [vmem:[#allocation2 + $0x44] sm:$0x1]  ;;  %745 = vst.msk [vmem:[#allocation2 + $0x50] sm:$0x1] %vm366_vm2, %v6407_v57  ;;  %v1331_v14 = vshrl.u32 %v1153_v53, 16  ;;  %v1334_v16 = vshll.u32 %v1153_v53, 16  ;;  %v7762_v21 = vmul.f32 %v7759_v19, %v267_v54 }
  0x69   : > { %v1326_v22 = vshll.u32 %v1152_v9, 16  ;;  %7017 = vmatprep.mubr.msk.bf16.mxu0 %vm889_vm5, %v6524_v15  ;;  %v2067_v23 = vrot.slane %v1945_v10, 5  ;;  %v1340_v24 = vshll.u32 %v1154_v59, 16  ;;  %v1344_v26 = vshrl.u32 %v1154_v59, 16  ;;  %v1159_v47 = vld [vmem:[#allocation2 + $0x60] sm:$0xf] }
  0x6a   : > { %6983 = vmatprep.mubr.msk.bf16.mxu1 %vm889_vm5, %v6475_v5  ;;  %v1333_v29 = vrot.slane %v1331_v14, 4  ;;  %v1336_v30 = vrot.slane %v1334_v16, 5  ;;  %v541_v31 = vsel %vm7465_vm6, %v7632_v17, 0  ;;  %v1355_v32 = vshrl.u32 %v1156_v2, 16  ;;  %v1950_v51 = vld [vmem:[#allocation2 + $0x58] sm:$0xf] }
  0x6b   : > { %v1328_v4 = vrot.slane %v1326_v22, 5  ;;  %v2068_v34 = vsel %vm7661_vm12, %v2066_v6, %v2067_v23  ;;  %v1342_v36 = vrot.slane %v1340_v24, 5  ;;  %v1346_v38 = vrot.slane %v1344_v26, 4  ;;  %v1160_v52 = vld [vmem:[#allocation2 + $0x64] sm:$0xf] }
  0x6c   : > { %v6525_v39 = vcombine.low %v2065_v56, %v2068_v34  ;;  %v1337_v40 = vor.u32 %v1336_v30, %v1333_v29  ;;  %v6410_v42 = vcombine.low %v541_v31, %v541_v31  ;;  %v1357_v43 = vrot.slane %v1355_v32, 4  ;;  %v1161_v14 = vld [vmem:[#allocation2 + $0x68] sm:$0x1] }
  0x6d   : > { %v1329_v17 = vsel %vm7644_vm11, %v1324_v0, %v1328_v4  ;;  %v1347_v1 = vor.u32 %v1346_v38, %v1342_v36  ;;  %v1358_v46 = vshll.u32 %v1156_v2, 16  ;;  %v1364_v20 = vshll.u32 %v1157_v25, 16 }
  0x6e   : > { %v6476_v7 = vcombine.low %v1319_v63, %v1329_v17  ;;  %7018 = vmatmul.mubr.msk.bf16.gmra.mxu0 %vm889_vm5, %v6525_v39  ;;  %v1338_v48 = vrot.slane %v1337_v40, 4  ;;  %748 = vst.msk [vmem:[#allocation2 + $0x5c] sm:$0x1] %vm366_vm2, %v6410_v42  ;;  %v1368_v49 = vshrl.u32 %v1157_v25, 16  ;;  %v6509_v50 = vrot.slane %v1946_v28, 9 }
  0x6f   : > { %v1155_v55 = vld [vmem:[#allocation2 + $0x50] sm:$0x1]  ;;  %v1348_v27 = vrot.slane %v1347_v1, 4  ;;  %v1360_v53 = vrot.slane %v1358_v46, 5  ;;  %v7782_v54 = vrot.slane %v1364_v20, 5  ;;  %v2071_v8 = vrot.slane %v1947_v44, 5 }
  0x70   : > { %6984 = vmatmul.mubr.msk.bf16.gmra.mxu1 %vm889_vm5, %v6476_v7  ;;  %v1343_v56 = vsel %vm7644_vm11, %v1338_v48, %v1342_v36  ;;  %v1350_v6 = vshll.u32 %v1155_v55, 16  ;;  %v1370_v57 = vrot.slane %v1368_v49, 4  ;;  %v1948_v59 = vld [vmem:[#allocation2 + $0x50] sm:$0x1]  ;;  %v6510_v60 = vrot.slane %v1949_v13, 9 }
  0x71   : > { %v1361_v63 = vor.u32 %v1360_v53, %v1357_v43  ;;  %v2072_v0 = vsel %vm7661_vm12, %v6509_v50, %v2071_v8  ;;  %v2073_v15 = vrot.slane %v2071_v8, 4  ;;  %v2074_v2 = vrot.slane %v1948_v59, 5  ;;  %v1162_v25 = vld [vmem:[#allocation2 + $0x6c] sm:$0xf]  ;;  %v1163_v17 = vld [vmem:[#allocation2 + $0x70] sm:$0xf] }
  0x72   : > { %v1352_v5 = vrot.slane %v1350_v6, 5  ;;  %v1371_v9 = vor.u32 %v1370_v57, %v7782_v54  ;;  %v2078_v10 = vrot.slane %v1950_v51, 5  ;;  %v1379_v16 = vshrl.u32 %v1159_v47, 16  ;;  %v1953_v51 = vld [vmem:[#allocation2 + $0x64] sm:$0xf] }
  0x73   : > { %v1362_v22 = vrot.slane %v1361_v63, 4  ;;  %v2075_v23 = vsel %vm7661_vm12, %v2073_v15, %v2074_v2  ;;  %v1382_v24 = vshll.u32 %v1159_v47, 16  ;;  %v1388_v26 = vshll.u32 %v1160_v52, 16  ;;  %v1952_v47 = vld [vmem:[#allocation2 + $0x60] sm:$0xe] }
  0x74   : > { %v1353_v28 = vsel %vm7644_vm11, %v1348_v27, %v1352_v5  ;;  %v1372_v29 = vrot.slane %v1371_v9, 4  ;;  %v6526_v30 = vcombine.low %v2072_v0, %v2075_v23  ;;  %v2079_v31 = vsel %vm7661_vm12, %v6510_v60, %v2078_v10  ;;  %v1954_v55 = vld [vmem:[#allocation2 + $0x68] sm:$0x1]  ;;  %v1955_v27 = vld [vmem:[#allocation2 + $0x6c] sm:$0xe] }
  0x75   : > { %v6477_v32 = vcombine.low %v1343_v56, %v1353_v28  ;;  %v1158_v4 = vld [vmem:[#allocation2 + $0x5c] sm:$0x1]  ;;  %v1367_v34 = vsel %vm7644_vm11, %v1362_v22, %v7782_v54  ;;  %v2080_v38 = vrot.slane %v2078_v10, 4  ;;  %v1381_v39 = vrot.slane %v1379_v16, 4  ;;  %v1956_v56 = vld [vmem:[#allocation2 + $0x70] sm:$0xf] }
  0x76   : > { %v1951_v36 = vld [vmem:[#allocation2 + $0x5c] sm:$0x1]  ;;  %v1374_v40 = vshll.u32 %v1158_v4, 16  ;;  %7021 = vmatprep.mubr.msk.bf16.mxu0 %vm889_vm5, %v6526_v30  ;;  %v1384_v43 = vrot.slane %v1382_v24, 5  ;;  %v1390_v44 = vrot.slane %v1388_v26, 5  ;;  %v1392_v1 = vshrl.u32 %v1160_v52, 16 }
  0x77   : > { %v2081_v42 = vrot.slane %v1951_v36, 5  ;;  %6987 = vmatprep.mubr.msk.bf16.mxu1 %vm889_vm5, %v6477_v32  ;;  %v1398_v46 = vshll.u32 %v1161_v14, 16  ;;  %v543_v20 = vsel %vm7465_vm6, %v7469_v62, 0  ;;  %v1403_v13 = vshrl.u32 %v1162_v25, 16  ;;  %v1165_v60 = vld [vmem:[#allocation2 + $0x78] sm:$0xf] }
  0x78   : > { %v1376_v7 = vrot.slane %v1374_v40, 5  ;;  %v1385_v49 = vor.u32 %v1384_v43, %v1381_v39  ;;  %v6416_v50 = vcombine.low %v543_v20, %v543_v20  ;;  %v1394_v54 = vrot.slane %v1392_v1, 4  ;;  %v1166_v40 = vld [vmem:[#allocation2 + $0x7c] sm:$0xf] }
  0x79   : > { %v2082_v48 = vsel %vm7661_vm12, %v2080_v38, %v2081_v42  ;;  %v1400_v8 = vrot.slane %v1398_v46, 5  ;;  %v1405_v52 = vrot.slane %v1403_v13, 4  ;;  %v1406_v57 = vshll.u32 %v1162_v25, 16  ;;  %v1168_v42 = vld [vmem:[#allocation2 + $0x84] sm:$0xf] }
  0x7a   : > { %v6527_v53 = vcombine.low %v2079_v31, %v2082_v48  ;;  %v1377_v6 = vsel %vm7644_vm11, %v1372_v29, %v1376_v7  ;;  %v1386_v62 = vrot.slane %v1385_v49, 4  ;;  %754 = vst.msk [vmem:[#allocation2 + $0x74] sm:$0x1] %vm366_vm2, %v6416_v50  ;;  %v1412_v59 = vshll.u32 %v1163_v17, 16  ;;  %v1169_v13 = vld [vmem:[#allocation2 + $0x88] sm:$0xf] }
  0x7b   : > { %v6478_v63 = vcombine.low %v1367_v34, %v1377_v6  ;;  %v1395_v0 = vor.u32 %v1394_v54, %v1390_v44  ;;  %v1416_v15 = vshrl.u32 %v1163_v17, 16  ;;  %v6511_v2 = vrot.slane %v1952_v47, 9 }
  0x7c   : > { %7022 = vmatmul.mubr.msk.bf16.gmra.mxu0 %vm889_vm5, %v6527_v53  ;;  %v1391_v5 = vsel %vm7644_vm11, %v1386_v62, %v1390_v44  ;;  %v1408_v9 = vrot.slane %v1406_v57, 5  ;;  %v1414_v10 = vrot.slane %v1412_v59, 5  ;;  %v2085_v14 = vrot.slane %v1953_v51, 5  ;;  %v1959_v59 = vld [vmem:[#allocation2 + $0x7c] sm:$0xf] }
  0x7d   : > { %6988 = vmatmul.mubr.msk.bf16.gmra.mxu1 %vm889_vm5, %v6478_v63  ;;  %v1396_v16 = vrot.slane %v1395_v0, 4  ;;  %v1418_v22 = vrot.slane %v1416_v15, 4  ;;  %v2088_v23 = vrot.slane %v1954_v55, 5  ;;  %v6512_v25 = vrot.slane %v1955_v27, 9  ;;  %v1958_v27 = vld [vmem:[#allocation2 + $0x78] sm:$0xe] }
  0x7e   : > { %v1409_v24 = vor.u32 %v1408_v9, %v1405_v52  ;;  %v2086_v26 = vsel %vm7661_vm12, %v6511_v2, %v2085_v14  ;;  %v2087_v28 = vrot.slane %v2085_v14, 4  ;;  %v2092_v29 = vrot.slane %v1956_v56, 5  ;;  %v1961_v15 = vld [vmem:[#allocation2 + $0x84] sm:$0xe]  ;;  %v1962_v14 = vld [vmem:[#allocation2 + $0x88] sm:$0xf] }
  0x7f   : > { %v1401_v30 = vsel %vm7644_vm11, %v1396_v16, %v1400_v8  ;;  %v1419_v31 = vor.u32 %v1418_v22, %v1414_v10  ;;  %v544_v32 = vsel %vm7465_vm6, %v7480_v18, 0  ;;  %v1427_v4 = vshrl.u32 %v1165_v60, 16 }
  0x80   : > { %v6479_v34 = vcombine.low %v1391_v5, %v1401_v30  ;;  %v1410_v36 = vrot.slane %v1409_v24, 4  ;;  %v2089_v38 = vsel %vm7661_vm12, %v2087_v28, %v2088_v23  ;;  %v2093_v39 = vsel %vm7661_vm12, %v6512_v25, %v2092_v29 }
  0x81   : > { %v1164_v43 = vld [vmem:[#allocation2 + $0x74] sm:$0x1]  ;;  %v1420_v44 = vrot.slane %v1419_v31, 4  ;;  %v6528_v17 = vcombine.low %v2086_v26, %v2089_v38  ;;  %v2094_v46 = vrot.slane %v2092_v29, 4  ;;  %v6419_v20 = vcombine.low %v544_v32, %v544_v32  ;;  %v1171_v38 = vld [vmem:[#allocation2 + $0x90] sm:$0xf] }
  0x82   : > { %v1957_v1 = vld [vmem:[#allocation2 + $0x74] sm:$0x1]  ;;  %6991 = vmatprep.mubr.msk.bf16.mxu1 %vm889_vm5, %v6479_v34  ;;  %v1415_v18 = vsel %vm7644_vm11, %v1410_v36, %v1414_v10  ;;  %v1422_v47 = vshll.u32 %v1164_v43, 16  ;;  %v1429_v48 = vrot.slane %v1427_v4, 4  ;;  %v1430_v49 = vshll.u32 %v1165_v60, 16 }
  0x83   : > { %v2095_v7 = vrot.slane %v1957_v1, 5  ;;  %7025 = vmatprep.mubr.msk.bf16.mxu0 %vm889_vm5, %v6528_v17  ;;  %757 = vst.msk [vmem:[#allocation2 + $0x80] sm:$0x1] %vm366_vm2, %v6419_v20  ;;  %v1436_v50 = vshll.u32 %v1166_v40, 16  ;;  %v1440_v51 = vshrl.u32 %v1166_v40, 16  ;;  %v545_v55 = vsel %vm7465_vm6, %v7495_v35, 0 }
  0x84   : > { %v1424_v53 = vrot.slane %v1422_v47, 5  ;;  %v6422_v8 = vcombine.low %v545_v55, %v545_v55  ;;  %v1451_v52 = vshrl.u32 %v1168_v42, 16  ;;  %v1432_v6 = vrot.slane %v1430_v49, 5 }
  0x85   : > { %v2096_v54 = vsel %vm7661_vm12, %v2094_v46, %v2095_v7  ;;  %v1438_v62 = vrot.slane %v1436_v50, 5  ;;  %v1442_v57 = vrot.slane %v1440_v51, 4  ;;  %v1454_v0 = vshll.u32 %v1168_v42, 16 }
  0x86   : > { %v6529_v56 = vcombine.low %v2093_v39, %v2096_v54  ;;  %v1425_v60 = vsel %vm7644_vm11, %v1420_v44, %v1424_v53  ;;  %760 = vst.msk [vmem:[#allocation2 + $0x8c] sm:$0x1] %vm366_vm2, %v6422_v8  ;;  %v1453_v63 = vrot.slane %v1451_v52, 4  ;;  %v1460_v35 = vshll.u32 %v1169_v13, 16  ;;  %v1172_v44 = vld [vmem:[#allocation2 + $0x94] sm:$0xf] }
  0x87   : > { %v6480_v2 = vcombine.low %v1415_v18, %v1425_v60  ;;  %v1433_v5 = vor.u32 %v1432_v6, %v1429_v48  ;;  %v1443_v9 = vor.u32 %v1442_v57, %v1438_v62  ;;  %v1464_v10 = vshrl.u32 %v1169_v13, 16  ;;  %v1174_v53 = vld [vmem:[#allocation2 + $0x9c] sm:$0xf]  ;;  %v1964_v60 = vld [vmem:[#allocation2 + $0x90] sm:$0xe] }
  0x88   : > { %7026 = vmatmul.mubr.msk.bf16.gmra.mxu0 %vm889_vm5, %v6529_v56  ;;  %v1456_v16 = vrot.slane %v1454_v0, 5  ;;  %v1462_v22 = vrot.slane %v1460_v35, 5  ;;  %v6513_v23 = vrot.slane %v1958_v27, 9  ;;  %v2099_v25 = vrot.slane %v1959_v59, 5  ;;  %v1175_v56 = vld [vmem:[#allocation2 + $0xa0] sm:$0xf] }
  0x89   : > { %6992 = vmatmul.mubr.msk.bf16.gmra.mxu1 %vm889_vm5, %v6480_v2  ;;  %v1434_v24 = vrot.slane %v1433_v5, 4  ;;  %v1444_v26 = vrot.slane %v1443_v9, 4  ;;  %v1466_v28 = vrot.slane %v1464_v10, 4  ;;  %v6514_v29 = vrot.slane %v1961_v15, 9  ;;  %v1967_v5 = vld [vmem:[#allocation2 + $0x9c] sm:$0xe] }
  0x8a   : > { %v1167_v30 = vld [vmem:[#allocation2 + $0x80] sm:$0x1]  ;;  %v1457_v31 = vor.u32 %v1456_v16, %v1453_v63  ;;  %v2100_v4 = vsel %vm7661_vm12, %v6513_v23, %v2099_v25  ;;  %v2101_v34 = vrot.slane %v2099_v25, 4  ;;  %v2106_v36 = vrot.slane %v1962_v14, 5  ;;  %v1965_v63 = vld [vmem:[#allocation2 + $0x94] sm:$0xf] }
  0x8b   : > { %v1960_v32 = vld [vmem:[#allocation2 + $0x80] sm:$0x1]  ;;  %v1439_v39 = vsel %vm7644_vm11, %v1434_v24, %v1438_v62  ;;  %v1446_v40 = vshll.u32 %v1167_v30, 16  ;;  %v1467_v42 = vor.u32 %v1466_v28, %v1462_v22  ;;  %v546_v20 = vsel %vm7465_vm6, %v7550_v41, 0 }
  0x8c   : > { %v2102_v43 = vrot.slane %v1960_v32, 5  ;;  %v1458_v17 = vrot.slane %v1457_v31, 4  ;;  %v2107_v1 = vsel %vm7661_vm12, %v6514_v29, %v2106_v36  ;;  %v2108_v46 = vrot.slane %v2106_v36, 4  ;;  %v1177_v36 = vld [vmem:[#allocation2 + $0xa8] sm:$0xf] }
  0x8d   : > { %v1448_v13 = vrot.slane %v1446_v40, 5  ;;  %v1170_v18 = vld [vmem:[#allocation2 + $0x8c] sm:$0x1]  ;;  %v1468_v47 = vrot.slane %v1467_v42, 4  ;;  %v6425_v49 = vcombine.low %v546_v20, %v546_v20  ;;  %v1475_v41 = vshrl.u32 %v1171_v38, 16 }
  0x8e   : > { %v2103_v7 = vsel %vm7661_vm12, %v2101_v34, %v2102_v43  ;;  %v1963_v48 = vld [vmem:[#allocation2 + $0x8c] sm:$0x1]  ;;  %v1463_v50 = vsel %vm7644_vm11, %v1458_v17, %v1462_v22  ;;  %v1470_v51 = vshll.u32 %v1170_v18, 16  ;;  %v1478_v8 = vshll.u32 %v1171_v38, 16 }
  0x8f   : > { %v6530_v55 = vcombine.low %v2100_v4, %v2103_v7  ;;  %v2109_v27 = vrot.slane %v1963_v48, 5  ;;  %v1449_v54 = vsel %vm7644_vm11, %v1444_v26, %v1448_v13  ;;  %763 = vst.msk [vmem:[#allocation2 + $0x98] sm:$0x1] %vm366_vm2, %v6425_v49  ;;  %v1484_v52 = vshll.u32 %v1172_v44, 16  ;;  %v1968_v26 = vld [vmem:[#allocation2 + $0xa0] sm:$0xf] }
  0x90   : > { %v6481_v6 = vcombine.low %v1439_v39, %v1449_v54  ;;  %v1472_v62 = vrot.slane %v1470_v51, 5  ;;  %v1488_v59 = vshrl.u32 %v1172_v44, 16  ;;  %v1477_v35 = vrot.slane %v1475_v41, 4 }
  0x91   : > { %7029 = vmatprep.mubr.msk.bf16.mxu0 %vm889_vm5, %v6530_v55  ;;  %v2110_v57 = vsel %vm7661_vm12, %v2108_v46, %v2109_v27  ;;  %v1480_v15 = vrot.slane %v1478_v8, 5  ;;  %v1486_v2 = vrot.slane %v1484_v52, 5  ;;  %v547_v14 = vsel %vm7465_vm6, %v7559_v45, 0  ;;  %v268_v55 = vld [vmem:[%s7406_s10 + $0xf8] sm:$0xff]  ;;  %v1178_v8 = vld [vmem:[#allocation2 + $0xac] sm:$0xf] }
  0x92   : > { %v6531_v0 = vcombine.low %v2107_v1, %v2110_v57  ;;  %6995 = vmatprep.mubr.msk.bf16.mxu1 %vm889_vm5, %v6481_v6  ;;  %v1473_v9 = vsel %vm7644_vm11, %v1468_v47, %v1472_v62  ;;  %v1490_v10 = vrot.slane %v1488_v59, 4  ;;  %v1499_v16 = vshrl.u32 %v1174_v53, 16 }
  0x93   : > { %v6482_v22 = vcombine.low %v1463_v50, %v1473_v9  ;;  %v1481_v23 = vor.u32 %v1480_v15, %v1477_v35  ;;  %v6428_v25 = vcombine.low %v547_v14, %v547_v14  ;;  %v1502_v24 = vshll.u32 %v1174_v53, 16 }
  0x94   : > { %7030 = vmatmul.mubr.msk.bf16.gmra.mxu0 %vm889_vm5, %v6531_v0  ;;  %v1491_v28 = vor.u32 %v1490_v10, %v1486_v2  ;;  %v1501_v29 = vrot.slane %v1499_v16, 4  ;;  %v1508_v30 = vshll.u32 %v1175_v56, 16  ;;  %v1512_v31 = vshrl.u32 %v1175_v56, 16  ;;  %v1181_v16 = vld [vmem:[#allocation2 + $0xb8] sm:$0xf] }
  0x95   : > { %6996 = vmatmul.mubr.msk.bf16.gmra.mxu1 %vm889_vm5, %v6482_v22  ;;  %v1482_v32 = vrot.slane %v1481_v23, 4  ;;  %766 = vst.msk [vmem:[#allocation2 + $0xa4] sm:$0x1] %vm366_vm2, %v6428_v25  ;;  %v1504_v4 = vrot.slane %v1502_v24, 5  ;;  %v6515_v34 = vrot.slane %v1964_v60, 9  ;;  %v2113_v45 = vrot.slane %v1965_v63, 5 }
  0x96   : > { %v1173_v38 = vld [vmem:[#allocation2 + $0x98] sm:$0x1]  ;;  %v1492_v39 = vrot.slane %v1491_v28, 4  ;;  %v1510_v40 = vrot.slane %v1508_v30, 5  ;;  %v1514_v42 = vrot.slane %v1512_v31, 4  ;;  %v6516_v43 = vrot.slane %v1967_v5, 9 }
  0x97   : > { %v1487_v44 = vsel %vm7644_vm11, %v1482_v32, %v1486_v2  ;;  %v1494_v17 = vshll.u32 %v1173_v38, 16  ;;  %v1505_v1 = vor.u32 %v1504_v4, %v1501_v29  ;;  %v1966_v46 = vld [vmem:[#allocation2 + $0x98] sm:$0x1]  ;;  %v2114_v20 = vsel %vm7661_vm12, %v6515_v34, %v2113_v45  ;;  %v1970_v28 = vld [vmem:[#allocation2 + $0xa8] sm:$0xe] }
  0x98   : > { %v1515_v13 = vor.u32 %v1514_v42, %v1510_v40  ;;  %v2115_v18 = vrot.slane %v2113_v45, 4  ;;  %v2116_v47 = vrot.slane %v1966_v46, 5  ;;  %v2120_v7 = vrot.slane %v1968_v26, 5  ;;  %v1971_v4 = vld [vmem:[#allocation2 + $0xac] sm:$0xf] }
  0x99   : > { %v1496_v48 = vrot.slane %v1494_v17, 5  ;;  %v1506_v49 = vrot.slane %v1505_v1, 4  ;;  %v548_v50 = vsel %vm7465_vm6, %v7608_v3, 0  ;;  %v1523_v51 = vshrl.u32 %v1177_v36, 16  ;;  %v1180_v3 = vld [vmem:[#allocation2 + $0xb4] sm:$0xf] }
  0x9a   : > { %v1516_v27 = vrot.slane %v1515_v13, 4  ;;  %v2117_v53 = vsel %vm7661_vm12, %v2115_v18, %v2116_v47  ;;  %v2121_v54 = vsel %vm7661_vm12, %v6516_v43, %v2120_v7  ;;  %v2122_v41 = vrot.slane %v2120_v7, 4  ;;  %v1973_v38 = vld [vmem:[#allocation2 + $0xb4] sm:$0xe]  ;;  %v2919_v17 = vld [vmem:[#allocation2 + $0xc] sm:$0xf] }
  0x9b   : > { %v1497_v52 = vsel %vm7644_vm11, %v1492_v39, %v1496_v48  ;;  %v1511_v56 = vsel %vm7644_vm11, %v1506_v49, %v1510_v40  ;;  %v6532_v6 = vcombine.low %v2114_v20, %v2117_v53  ;;  %v6431_v62 = vcombine.low %v548_v50, %v548_v50  ;;  %v1974_v39 = vld [vmem:[#allocation2 + $0xb8] sm:$0xf]  ;;  %v7904_v50 = vld [vmem:[%s9192_s2] ss:$0 sm:$0xff] }
  0x9c   : > { %v6483_v57 = vcombine.low %v1487_v44, %v1497_v52  ;;  %v1176_v59 = vld [vmem:[#allocation2 + $0xa4] sm:$0x1]  ;;  %v1525_v63 = vrot.slane %v1523_v51, 4  ;;  %v1526_v0 = vshll.u32 %v1177_v36, 16  ;;  %v7884_v35 = vmul.f32 %v7759_v19, %v268_v55 }
  0x9d   : > { %v1969_v60 = vld [vmem:[#allocation2 + $0xa4] sm:$0x1]  ;;  %v1518_v15 = vshll.u32 %v1176_v59, 16  ;;  %7033 = vmatprep.mubr.msk.bf16.mxu0 %vm889_vm5, %v6532_v6  ;;  %769 = vst.msk [vmem:[#allocation2 + $0xb0] sm:$0x1] %vm366_vm2, %v6431_v62  ;;  %v1532_v5 = vshll.u32 %v1178_v8, 16  ;;  %v7908_v51 = vadd.f32 %v7904_v50, %v7762_v21 }
  0x9e   : > { %v2123_v2 = vrot.slane %v1969_v60, 5  ;;  %v1536_v9 = vshrl.u32 %v1178_v8, 16  ;;  %6999 = vmatprep.mubr.msk.bf16.mxu1 %vm889_vm5, %v6483_v57  ;;  %v1528_v10 = vrot.slane %v1526_v0, 5  ;;  %v549_v14 = vsel %vm7465_vm6, %v7626_v11, 0  ;;  %v2921_v62 = vld [vmem:[#allocation2 + $0x14] sm:$0x1] }
  0x9f   : > { %v1547_v22 = vshrl.u32 %v1180_v3, 16  ;;  %v1550_v23 = vshll.u32 %v1180_v3, 16  ;;  %v1520_v19 = vrot.slane %v1518_v15, 5  ;;  %v1534_v24 = vrot.slane %v1532_v5, 5 }
  0xa0   : > { %v2124_v25 = vsel %vm7661_vm12, %v2122_v41, %v2123_v2  ;;  %v1538_v26 = vrot.slane %v1536_v9, 4  ;;  %v1529_v30 = vor.u32 %v1528_v10, %v1525_v63  ;;  %v6434_v31 = vcombine.low %v549_v14, %v549_v14  ;;  %v2920_v41 = vld [vmem:[#allocation2 + $0x10] sm:$0xf]  ;;  %v2922_v2 = vld [vmem:[#allocation2 + $0x18] sm:$0xf] }
  0xa1   : > { %v6533_v29 = vcombine.low %v2121_v54, %v2124_v25  ;;  %v1549_v32 = vrot.slane %v1547_v22, 4  ;;  %v1521_v34 = vsel %vm7644_vm11, %v1516_v27, %v1520_v19  ;;  %v1552_v11 = vrot.slane %v1550_v23, 5 }
  0xa2   : > { %v1539_v45 = vor.u32 %v1538_v26, %v1534_v24  ;;  %v1556_v36 = vshll.u32 %v1181_v16, 16  ;;  %v6484_v40 = vcombine.low %v1511_v56, %v1521_v34  ;;  %v1530_v42 = vrot.slane %v1529_v30, 4  ;;  %772 = vst.msk [vmem:[#allocation2 + $0xbc] sm:$0x1] %vm366_vm2, %v6434_v31 }
  0xa3   : > { %7034 = vmatmul.mubr.msk.bf16.gmra.mxu0 %vm889_vm5, %v6533_v29  ;;  %v1560_v43 = vshrl.u32 %v1181_v16, 16  ;;  %v6517_v44 = vrot.slane %v1970_v28, 9  ;;  %v1553_v46 = vor.u32 %v1552_v11, %v1549_v32  ;;  %v2127_v13 = vrot.slane %v1971_v4, 5  ;;  %v2923_v29 = vld [vmem:[#allocation2 + $0x1c] sm:$0xf] }
  0xa4   : > { %v1540_v1 = vrot.slane %v1539_v45, 4  ;;  %v1558_v20 = vrot.slane %v1556_v36, 5  ;;  %7000 = vmatmul.mubr.msk.bf16.gmra.mxu1 %vm889_vm5, %v6484_v40  ;;  %v1179_v18 = vld [vmem:[#allocation2 + $0xb0] sm:$0x1]  ;;  %v1535_v47 = vsel %vm7644_vm11, %v1530_v42, %v1534_v24  ;;  %v6518_v49 = vrot.slane %v1973_v38, 9 }
  0xa5   : > { %v1562_v7 = vrot.slane %v1560_v43, 4  ;;  %v1972_v48 = vld [vmem:[#allocation2 + $0xb0] sm:$0x1]  ;;  %v1542_v55 = vshll.u32 %v1179_v18, 16  ;;  %v1554_v27 = vrot.slane %v1553_v46, 4  ;;  %v2128_v53 = vsel %vm7661_vm12, %v6517_v44, %v2127_v13 }
  0xa6   : > { %v2129_v54 = vrot.slane %v2127_v13, 4  ;;  %v2130_v52 = vrot.slane %v1972_v48, 5  ;;  %v2134_v56 = vrot.slane %v1974_v39, 5  ;;  %v7914_v6 = vsel %vm938_vm0, %v7729_v33, 0  ;;  %v2924_v39 = vld [vmem:[#allocation2 + $0x20] sm:$0x1] }
  0xa7   : > { %v1563_v8 = vor.u32 %v1562_v7, %v1558_v20  ;;  %v1544_v3 = vrot.slane %v1542_v55, 5  ;;  %v1559_v21 = vsel %vm7644_vm11, %v1554_v27, %v1558_v20  ;;  %v2968_v57 = vshrl.u32 %v2919_v17, 16  ;;  %v7282_v42 = vld [vmem:[#allocation2 + $0xc] sm:$0xff]  }
  0xa8   : > { %v2971_v59 = vshll.u32 %v2919_v17, 16  ;;  %v2131_v63 = vsel %vm7661_vm12, %v2129_v54, %v2130_v52  ;;  %v2135_v0 = vsel %vm7661_vm12, %v6518_v49, %v2134_v56  ;;  %v2136_v15 = vrot.slane %v2134_v56, 4  ;;  %v2927_v27 = vld [vmem:[#allocation2 + $0x2c] sm:$0x1] }
  0xa9   : > { %v1564_v60 = vrot.slane %v1563_v8, 4  ;;  %v1545_v33 = vsel %vm7644_vm11, %v1540_v1, %v1544_v3  ;;  %v1182_v5 = vld [vmem:[#allocation2 + $0xbc] sm:$0x1]  ;;  %v6534_v9 = vcombine.low %v2128_v53, %v2131_v63  ;;  %v2970_v14 = vrot.slane %v2968_v57, 4  ;;  %v2925_v1 = vld [vmem:[#allocation2 + $0x24] sm:$0xf] }
  0xaa   : > { %v1975_v10 = vld [vmem:[#allocation2 + $0xbc] sm:$0x1]  ;;  %v2973_v16 = vrot.slane %v2971_v59, 5  ;;  %v6485_v22 = vcombine.low %v1535_v47, %v1545_v33  ;;  %v1566_v23 = vshll.u32 %v1182_v5, 16  ;;  %v2977_v25 = vshll.u32 %v2920_v41, 16 }
  0xab   : > { %v2137_v19 = vrot.slane %v1975_v10, 5  ;;  %7037 = vmatprep.mubr.msk.bf16.mxu0 %vm889_vm5, %v6534_v9  ;;  %v2981_v26 = vshrl.u32 %v2920_v41, 16  ;;  %v2987_v28 = vshll.u32 %v2921_v62, 16  ;;  %v2992_v30 = vshrl.u32 %v2922_v2, 16  ;;  %v2926_v47 = vld [vmem:[#allocation2 + $0x28] sm:$0xf] }
  0xac   : > { %v2974_v24 = vor.u32 %v2973_v16, %v2970_v14  ;;  %7003 = vmatprep.mubr.msk.bf16.mxu1 %vm889_vm5, %v6485_v22  ;;  %v1568_v31 = vrot.slane %v1566_v23, 5  ;;  %v2979_v4 = vrot.slane %v2977_v25, 5  ;;  %v2995_v34 = vshll.u32 %v2922_v2, 16  ;;  %v2928_v53 = vld [vmem:[#allocation2 + $0x30] sm:$0xf]  ;;  %v7283_v9 = vld [vmem:[#allocation2 + $0x18] sm:$0xff]  }
  0xad   : > { %v2138_v32 = vsel %vm7661_vm12, %v2136_v15, %v2137_v19  ;;  %v2983_v36 = vrot.slane %v2981_v26, 4  ;;  %v2989_v38 = vrot.slane %v2987_v28, 5  ;;  %v2994_v43 = vrot.slane %v2992_v30, 4  ;;  %v2929_v63 = vld [vmem:[#allocation2 + $0x34] sm:$0xf]  ;;  %v7284_v30 = vld [vmem:[#allocation2 + $0x24] sm:$0xff]  }
  0xae   : > { %v6535_v45 = vcombine.low %v2135_v0, %v2138_v32  ;;  %v2975_v11 = vrot.slane %v2974_v24, 4  ;;  %v1569_v40 = vsel %vm7644_vm11, %v1564_v60, %v1568_v31  ;;  %v2997_v44 = vrot.slane %v2995_v34, 5  ;;  %v2930_v5 = vld [vmem:[#allocation2 + $0x38] sm:$0x1]  ;;  %v2931_v23 = vld [vmem:[#allocation2 + $0x3c] sm:$0xf] }
  0xaf   : > { %v3001_v17 = vshll.u32 %v2923_v29, 16  ;;  %v6486_v46 = vcombine.low %v1559_v21, %v1569_v40  ;;  %v2984_v13 = vor.u32 %v2983_v36, %v2979_v4  ;;  %v3005_v18 = vshrl.u32 %v2923_v29, 16  ;;  %v2932_v28 = vld [vmem:[#allocation2 + $0x40] sm:$0xf]  ;;  %v7947_v34 = vld [vmem:[%s9193_s3 + $0xe] sm:$0x3] }
  0xb0   : > { %7038 = vmatmul.mubr.msk.bf16.gmra.mxu0 %vm889_vm5, %v6535_v45  ;;  %v2980_v20 = vsel %vm7644_vm11, %v2975_v11, %v2979_v4  ;;  %v2998_v7 = vor.u32 %v2997_v44, %v2994_v43  ;;  %v3011_v49 = vshll.u32 %v2924_v39, 16  ;;  %v4439_v55 = vsel %vm938_vm0, %v7774_v12, 0  ;;  %v7952_v45 = vld [vmem:[%s9193_s3 + $0x10] sm:$0x3]  ;;  %v2933_v40 = vld [vmem:[#allocation2 + $0x44] sm:$0x1] }
  0xb1   : > { %v3003_v48 = vrot.slane %v3001_v17, 5  ;;  %7004 = vmatmul.mubr.msk.bf16.gmra.mxu1 %vm889_vm5, %v6486_v46  ;;  %v2985_v54 = vrot.slane %v2984_v13, 4  ;;  %v3007_v41 = vrot.slane %v3005_v18, 4  ;;  %v3016_v8 = vshrl.u32 %v2925_v1, 16 }
  0xb2   : > { %v3019_v52 = vshll.u32 %v2925_v1, 16  ;;  %7043 = vmatprep.mubr.msk.bf16.mxu1 %vm889_vm5, %v7282_v42  ;;  %v2999_v56 = vrot.slane %v2998_v7, 4  ;;  %v3013_v62 = vrot.slane %v3011_v49, 5  ;;  %v3025_v3 = vshll.u32 %v2926_v47, 16  ;;  %v2934_v42 = vld [vmem:[#allocation2 + $0x48] sm:$0xf] }
  0xb3   : > { %v3029_v21 = vshrl.u32 %v2926_v47, 16  ;;  %v2990_v57 = vsel %vm7644_vm11, %v2985_v54, %v2989_v38  ;;  %v3008_v59 = vor.u32 %v3007_v41, %v3003_v48  ;;  %v3018_v60 = vrot.slane %v3016_v8, 4  ;;  %v7286_v41 = vld [vmem:[#allocation2 + $0x3c] sm:$0xff]  }
  0xb4   : > { %v3021_v12 = vrot.slane %v3019_v52, 5  ;;  %v6586_v0 = vcombine.low %v2980_v20, %v2990_v57  ;;  %v3004_v15 = vsel %vm7644_vm11, %v2999_v56, %v3003_v48  ;;  %v3027_v2 = vrot.slane %v3025_v3, 5 }
  0xb5   : > { %v3031_v33 = vrot.slane %v3029_v21, 4  ;;  %v3009_v10 = vrot.slane %v3008_v59, 4  ;;  %v3035_v16 = vshll.u32 %v2927_v27, 16  ;;  %v3040_v22 = vshrl.u32 %v2928_v53, 16  ;;  %v2935_v27 = vld [vmem:[#allocation2 + $0x4c] sm:$0xf] }
  0xb6   : > { %v3022_v14 = vor.u32 %v3021_v12, %v3018_v60  ;;  %7077 = vmatprep.mubr.msk.bf16.mxu0 %vm889_vm5, %v6586_v0  ;;  %v3043_v25 = vshll.u32 %v2928_v53, 16  ;;  %v3049_v24 = vshll.u32 %v2929_v63, 16  ;;  %v3053_v26 = vshrl.u32 %v2929_v63, 16  ;;  %v7285_v53 = vld [vmem:[#allocation2 + $0x30] sm:$0xff]   ;;  %v2938_v0 = vld [vmem:[#allocation2 + $0x58] sm:$0xf] }
  0xb7   : > { %v3032_v19 = vor.u32 %v3031_v33, %v3027_v2  ;;  %v3014_v29 = vsel %vm7644_vm11, %v3009_v10, %v3013_v62  ;;  %v3037_v32 = vrot.slane %v3035_v16, 5  ;;  %v3042_v4 = vrot.slane %v3040_v22, 4  ;;  %v2936_v62 = vld [vmem:[#allocation2 + $0x50] sm:$0x1]  ;;  %v2937_v63 = vld [vmem:[#allocation2 + $0x54] sm:$0xf] }
  0xb8   : > { %v3023_v31 = vrot.slane %v3022_v14, 4  ;;  %v6587_v11 = vcombine.low %v3004_v15, %v3014_v29  ;;  %v3045_v38 = vrot.slane %v3043_v25, 5  ;;  %v3051_v39 = vrot.slane %v3049_v24, 5 }
  0xb9   : > { %v3033_v36 = vrot.slane %v3032_v19, 4  ;;  %7044 = vmatmul.mubr.msk.bf16.vlgmr.msra.gmra.mxu1 %vm889_vm5, %v7283_v9  ;;  %v3055_v44 = vrot.slane %v3053_v26, 4  ;;  %v3059_v17 = vshll.u32 %v2930_v5, 16  ;;  %v3064_v1 = vshrl.u32 %v2931_v23, 16 }
  0xba   : > { %v3028_v43 = vsel %vm7644_vm11, %v3023_v31, %v3027_v2  ;;  %7110 = vmatpush3.bf16.msra.mxu1 %v7914_v6  ;;  %7078 = vmatmul.mubr.msk.bf16.vlgmr.msra.gmra.mxu0 %vm889_vm5, %v6587_v11  ;;  %v3046_v20 = vor.u32 %v3045_v38, %v3042_v4  ;;  %v3067_v13 = vshll.u32 %v2931_v23, 16  ;;  %v3073_v18 = vshll.u32 %v2932_v28, 16 }
  0xbb   : > { %v3038_v46 = vsel %vm7644_vm11, %v3033_v36, %v3037_v32  ;;  %7047 = vmatprep.mubr.msk.bf16.mxu1 %vm889_vm5, %v7284_v30  ;;  %7144 = vmatpush3.bf16.msra.mxu0 %v4439_v55  ;;  %v3056_v7 = vor.u32 %v3055_v44, %v3051_v39  ;;  %v3061_v48 = vrot.slane %v3059_v17, 5  ;;  %v3066_v49 = vrot.slane %v3064_v1, 4  ;;  %v2940_v36 = vld [vmem:[#allocation2 + $0x60] sm:$0xf]  ;;  %v7287_v44 = vld [vmem:[#allocation2 + $0x48] sm:$0xff]  }
  0xbc   : > { %v6588_v47 = vcombine.low %v3028_v43, %v3038_v46  ;;  %v3047_v54 = vrot.slane %v3046_v20, 4  ;;  %v3069_v6 = vrot.slane %v3067_v13, 5  ;;  %v3075_v8 = vrot.slane %v3073_v18, 5  ;;  %7255 = vmatprep.subr.msk.bf16.mxu1 %vm938_vm0, %v7947_v34  ;;  %7256 = vmatprep.subr.msk.bf16.mxu0 %vm938_vm0, %v7952_v45  ;;  %v2941_v43 = vld [vmem:[#allocation2 + $0x64] sm:$0xf]  ;;  %v7288_v18 = vld [vmem:[#allocation2 + $0x54] sm:$0xff]  }
  0xbd   : > { %v3077_v52 = vshrl.u32 %v2932_v28, 16  ;;  %v3057_v55 = vrot.slane %v3056_v7, 4  ;;  %v3083_v56 = vshll.u32 %v2933_v40, 16  ;;  %v3088_v3 = vshrl.u32 %v2934_v42, 16  ;;  %v2939_v28 = vld [vmem:[#allocation2 + $0x5c] sm:$0x1] }
  0xbe   : > { %7081 = vmatprep.mubr.msk.bf16.mxu0 %vm889_vm5, %v6588_v47  ;;  %v3091_v21 = vshll.u32 %v2934_v42, 16  ;;  %v3052_v57 = vsel %vm7644_vm11, %v3047_v54, %v3051_v39  ;;  %v3070_v59 = vor.u32 %v3069_v6, %v3066_v49  ;;  %v3097_v12 = vshll.u32 %v2935_v27, 16  ;;  %v2942_v13 = vld [vmem:[#allocation2 + $0x68] sm:$0x1] }
  0xbf   : > { %v3079_v60 = vrot.slane %v3077_v52, 4  ;;  %v3062_v15 = vsel %vm7644_vm11, %v3057_v55, %v3061_v48  ;;  %v3085_v2 = vrot.slane %v3083_v56, 5  ;;  %v3090_v33 = vrot.slane %v3088_v3, 4 }
  0xc0   : > { %v3093_v5 = vrot.slane %v3091_v21, 5  ;;  %v6589_v9 = vcombine.low %v3052_v57, %v3062_v15  ;;  %v3071_v10 = vrot.slane %v3070_v59, 4  ;;  %v3099_v16 = vrot.slane %v3097_v12, 5  ;;  %v2945_v15 = vld [vmem:[#allocation2 + $0x74] sm:$0x1] }
  0xc1   : > { %v3080_v14 = vor.u32 %v3079_v60, %v3075_v8  ;;  %7048 = vmatmul.mubr.msk.bf16.gmra.mxu1 %vm889_vm5, %v7285_v53  ;;  %v3101_v23 = vshrl.u32 %v2935_v27, 16  ;;  %v3107_v19 = vshll.u32 %v2936_v62, 16  ;;  %v3112_v25 = vshrl.u32 %v2937_v63, 16  ;;  %v2943_v27 = vld [vmem:[#allocation2 + $0x6c] sm:$0xf] }
  0xc2   : > { %v3094_v22 = vor.u32 %v3093_v5, %v3090_v33  ;;  %7082 = vmatmul.mubr.msk.bf16.gmra.mxu0 %vm889_vm5, %v6589_v9  ;;  %7051 = vmatprep.mubr.msk.bf16.mxu1 %vm889_vm5, %v7286_v41  ;;  %v3076_v24 = vsel %vm7644_vm11, %v3071_v10, %v3075_v8  ;;  %v3115_v29 = vshll.u32 %v2937_v63, 16  ;;  %v3121_v30 = vshll.u32 %v2938_v0, 16  ;;  %v2944_v8 = vld [vmem:[#allocation2 + $0x70] sm:$0xf]  ;;  %v2946_v10 = vld [vmem:[#allocation2 + $0x78] sm:$0xf] }
  0xc3   : > { %v3081_v26 = vrot.slane %v3080_v14, 4  ;;  %v3103_v32 = vrot.slane %v3101_v23, 4  ;;  %v3109_v4 = vrot.slane %v3107_v19, 5  ;;  %v3114_v11 = vrot.slane %v3112_v25, 4  ;;  %v2947_v19 = vld [vmem:[#allocation2 + $0x7c] sm:$0xf] }
  0xc4   : > { %v3095_v31 = vrot.slane %v3094_v22, 4  ;;  %v3117_v39 = vrot.slane %v3115_v29, 5  ;;  %v3123_v40 = vrot.slane %v3121_v30, 5  ;;  %v3125_v42 = vshrl.u32 %v2938_v0, 16  ;;  %v7289_v25 = vld [vmem:[#allocation2 + $0x60] sm:$0xff]  }
  0xc5   : > { %v3086_v38 = vsel %vm7644_vm11, %v3081_v26, %v3085_v2  ;;  %v3104_v46 = vor.u32 %v3103_v32, %v3099_v16  ;;  %v3131_v20 = vshll.u32 %v2939_v28, 16  ;;  %v3136_v48 = vshrl.u32 %v2940_v36, 16  ;;  %v2948_v30 = vld [vmem:[#allocation2 + $0x80] sm:$0x1]  ;;  %v7290_v32 = vld [vmem:[#allocation2 + $0x6c] sm:$0xff]  }
  0xc6   : > { %v6590_v17 = vcombine.low %v3076_v24, %v3086_v38  ;;  %v3100_v1 = vsel %vm7644_vm11, %v3095_v31, %v3099_v16  ;;  %v3118_v47 = vor.u32 %v3117_v39, %v3114_v11  ;;  %v3127_v7 = vrot.slane %v3125_v42, 4  ;;  %v2949_v38 = vld [vmem:[#allocation2 + $0x84] sm:$0xf] }
  0xc7   : > { %v3139_v49 = vshll.u32 %v2940_v36, 16  ;;  %v3105_v53 = vrot.slane %v3104_v46, 4  ;;  %v3133_v54 = vrot.slane %v3131_v20, 5  ;;  %v3145_v41 = vshll.u32 %v2941_v43, 16 }
  0xc8   : > { %7085 = vmatprep.mubr.msk.bf16.mxu0 %vm889_vm5, %v6590_v17  ;;  %v3149_v6 = vshrl.u32 %v2941_v43, 16  ;;  %v3119_v52 = vrot.slane %v3118_v47, 4  ;;  %v3128_v55 = vor.u32 %v3127_v7, %v3123_v40  ;;  %v3138_v56 = vrot.slane %v3136_v48, 4 }
  0xc9   : > { %v3141_v62 = vrot.slane %v3139_v49, 5  ;;  %7052 = vmatmul.mubr.msk.bf16.gmra.mxu1 %vm889_vm5, %v7287_v44  ;;  %v3110_v3 = vsel %vm7644_vm11, %v3105_v53, %v3109_v4  ;;  %v3147_v21 = vrot.slane %v3145_v41, 5  ;;  %v3155_v59 = vshll.u32 %v2942_v13, 16  ;;  %v2950_v44 = vld [vmem:[#allocation2 + $0x88] sm:$0xf] }
  0xca   : > { %v3151_v57 = vrot.slane %v3149_v6, 4  ;;  %v6591_v60 = vcombine.low %v3100_v1, %v3110_v3  ;;  %7055 = vmatprep.mubr.msk.bf16.mxu1 %vm889_vm5, %v7288_v18  ;;  %v3124_v12 = vsel %vm7644_vm11, %v3119_v52, %v3123_v40  ;;  %v3129_v63 = vrot.slane %v3128_v55, 4  ;;  %v2952_v55 = vld [vmem:[#allocation2 + $0x90] sm:$0xf] }
  0xcb   : > { %v3142_v0 = vor.u32 %v3141_v62, %v3138_v56  ;;  %v3157_v33 = vrot.slane %v3155_v59, 5  ;;  %v3160_v5 = vshrl.u32 %v2943_v27, 16  ;;  %v3163_v9 = vshll.u32 %v2943_v27, 16  ;;  %v7291_v56 = vld [vmem:[#allocation2 + $0x78] sm:$0xff]  }
  0xcc   : > { %v3152_v2 = vor.u32 %v3151_v57, %v3147_v21  ;;  %7086 = vmatmul.mubr.msk.bf16.gmra.mxu0 %vm889_vm5, %v6591_v60  ;;  %v3134_v14 = vsel %vm7644_vm11, %v3129_v63, %v3133_v54  ;;  %v3169_v22 = vshll.u32 %v2944_v8, 16  ;;  %v3173_v23 = vshrl.u32 %v2944_v8, 16  ;;  %v2951_v8 = vld [vmem:[#allocation2 + $0x8c] sm:$0x1] }
  0xcd   : > { %v3143_v16 = vrot.slane %v3142_v0, 4  ;;  %v6592_v24 = vcombine.low %v3124_v12, %v3134_v14  ;;  %v3162_v28 = vrot.slane %v3160_v5, 4  ;;  %v3165_v29 = vrot.slane %v3163_v9, 5  ;;  %v2955_v14 = vld [vmem:[#allocation2 + $0x9c] sm:$0xf] }
  0xce   : > { %v3153_v26 = vrot.slane %v3152_v2, 4  ;;  %v3171_v4 = vrot.slane %v3169_v22, 5  ;;  %v3175_v11 = vrot.slane %v3173_v23, 4  ;;  %v3179_v36 = vshll.u32 %v2945_v15, 16  ;;  %v2953_v15 = vld [vmem:[#allocation2 + $0x94] sm:$0xf] }
  0xcf   : > { %v3148_v31 = vsel %vm7644_vm11, %v3143_v16, %v3147_v21  ;;  %7089 = vmatprep.mubr.msk.bf16.mxu0 %vm889_vm5, %v6592_v24  ;;  %v3166_v40 = vor.u32 %v3165_v29, %v3162_v28  ;;  %v3184_v42 = vshrl.u32 %v2946_v10, 16  ;;  %v3187_v43 = vshll.u32 %v2946_v10, 16  ;;  %v7292_v21 = vld [vmem:[#allocation2 + $0x84] sm:$0xff]   ;;  %v2954_v2 = vld [vmem:[#allocation2 + $0x98] sm:$0x1] }
  0xd0   : > { %v3158_v39 = vsel %vm7644_vm11, %v3153_v26, %v3157_v33  ;;  %v3176_v1 = vor.u32 %v3175_v11, %v3171_v4  ;;  %v3181_v46 = vrot.slane %v3179_v36, 5  ;;  %v3193_v20 = vshll.u32 %v2947_v19, 16 }
  0xd1   : > { %v6593_v17 = vcombine.low %v3148_v31, %v3158_v39  ;;  %7056 = vmatmul.mubr.msk.bf16.gmra.mxu1 %vm889_vm5, %v7289_v25  ;;  %v3167_v13 = vrot.slane %v3166_v40, 4  ;;  %v3186_v18 = vrot.slane %v3184_v42, 4  ;;  %v3189_v47 = vrot.slane %v3187_v43, 5 }
  0xd2   : > { %v3197_v7 = vshrl.u32 %v2947_v19, 16  ;;  %7059 = vmatprep.mubr.msk.bf16.mxu1 %vm889_vm5, %v7290_v32  ;;  %v3177_v48 = vrot.slane %v3176_v1, 4  ;;  %v3195_v49 = vrot.slane %v3193_v20, 5  ;;  %v3203_v27 = vshll.u32 %v2948_v30, 16 }
  0xd3   : > { %v3208_v53 = vshrl.u32 %v2949_v38, 16  ;;  %v3172_v54 = vsel %vm7644_vm11, %v3167_v13, %v3171_v4  ;;  %v3190_v41 = vor.u32 %v3189_v47, %v3186_v18  ;;  %v3211_v52 = vshll.u32 %v2949_v38, 16  ;;  %v2956_v4 = vld [vmem:[#allocation2 + $0xa0] sm:$0xf]  ;;  %v7293_v18 = vld [vmem:[#allocation2 + $0x90] sm:$0xff]  }
  0xd4   : > { %v3199_v6 = vrot.slane %v3197_v7, 4  ;;  %7090 = vmatmul.mubr.msk.bf16.gmra.mxu0 %vm889_vm5, %v6593_v17  ;;  %v3182_v62 = vsel %vm7644_vm11, %v3177_v48, %v3181_v46  ;;  %v3205_v3 = vrot.slane %v3203_v27, 5  ;;  %v3217_v59 = vshll.u32 %v2950_v44, 16  ;;  %v2958_v27 = vld [vmem:[#allocation2 + $0xa8] sm:$0xf] }
  0xd5   : > { %v3210_v57 = vrot.slane %v3208_v53, 4  ;;  %v6594_v60 = vcombine.low %v3172_v54, %v3182_v62  ;;  %v3191_v12 = vrot.slane %v3190_v41, 4  ;;  %v3213_v0 = vrot.slane %v3211_v52, 5  ;;  %v7294_v54 = vld [vmem:[#allocation2 + $0x9c] sm:$0xff]   ;;  %v2959_v52 = vld [vmem:[#allocation2 + $0xac] sm:$0xf] }
  0xd6   : > { %v3200_v63 = vor.u32 %v3199_v6, %v3195_v49  ;;  %v3219_v33 = vrot.slane %v3217_v59, 5  ;;  %v3221_v5 = vshrl.u32 %v2950_v44, 16  ;;  %v3227_v9 = vshll.u32 %v2951_v8, 16  ;;  %v2957_v44 = vld [vmem:[#allocation2 + $0xa4] sm:$0x1] }
  0xd7   : > { %v3232_v10 = vshrl.u32 %v2952_v55, 16  ;;  %7093 = vmatprep.mubr.msk.bf16.mxu0 %vm889_vm5, %v6594_v60  ;;  %v3196_v16 = vsel %vm7644_vm11, %v3191_v12, %v3195_v49  ;;  %v3214_v23 = vor.u32 %v3213_v0, %v3210_v57  ;;  %v3235_v19 = vshll.u32 %v2952_v55, 16  ;;  %v2960_v59 = vld [vmem:[#allocation2 + $0xb0] sm:$0x1] }
  0xd8   : > { %v3201_v22 = vrot.slane %v3200_v63, 4  ;;  %v3223_v25 = vrot.slane %v3221_v5, 4  ;;  %v3229_v24 = vrot.slane %v3227_v9, 5  ;;  %v3241_v28 = vshll.u32 %v2953_v15, 16 }
  0xd9   : > { %v3234_v26 = vrot.slane %v3232_v10, 4  ;;  %7060 = vmatmul.mubr.msk.bf16.gmra.mxu1 %vm889_vm5, %v7291_v56  ;;  %v3215_v30 = vrot.slane %v3214_v23, 4  ;;  %v3237_v31 = vrot.slane %v3235_v19, 5  ;;  %v3245_v32 = vshrl.u32 %v2953_v15, 16 }
  0xda   : > { %v3206_v29 = vsel %vm7644_vm11, %v3201_v22, %v3205_v3  ;;  %7063 = vmatprep.mubr.msk.bf16.mxu1 %vm889_vm5, %v7292_v21  ;;  %v3224_v36 = vor.u32 %v3223_v25, %v3219_v33  ;;  %v3243_v38 = vrot.slane %v3241_v28, 5  ;;  %v3251_v39 = vshll.u32 %v2954_v2, 16  ;;  %v2962_v28 = vld [vmem:[#allocation2 + $0xb8] sm:$0xf] }
  0xdb   : > { %v6595_v11 = vcombine.low %v3196_v16, %v3206_v29  ;;  %v3220_v40 = vsel %vm7644_vm11, %v3215_v30, %v3219_v33  ;;  %v3238_v42 = vor.u32 %v3237_v31, %v3234_v26  ;;  %v3247_v43 = vrot.slane %v3245_v32, 4  ;;  %v2961_v33 = vld [vmem:[#allocation2 + $0xb4] sm:$0xf]  ;;  %v7295_v30 = vld [vmem:[#allocation2 + $0xa8] sm:$0xff]  }
  0xdc   : > { %v3256_v17 = vshrl.u32 %v2955_v14, 16  ;;  %v3225_v1 = vrot.slane %v3224_v36, 4  ;;  %v3253_v46 = vrot.slane %v3251_v39, 5  ;;  %v3259_v20 = vshll.u32 %v2955_v14, 16 }
  0xdd   : > { %7094 = vmatmul.mubr.msk.bf16.gmra.mxu0 %vm889_vm5, %v6595_v11  ;;  %v3265_v13 = vshll.u32 %v2956_v4, 16  ;;  %v3239_v47 = vrot.slane %v3238_v42, 4  ;;  %v3248_v7 = vor.u32 %v3247_v43, %v3243_v38  ;;  %v3269_v49 = vshrl.u32 %v2956_v4, 16  ;;  %v2963_v11 = vld [vmem:[#allocation2 + $0xbc] sm:$0x1] }
  0xde   : > { %v3258_v48 = vrot.slane %v3256_v17, 4  ;;  %v3230_v53 = vsel %vm7644_vm11, %v3225_v1, %v3229_v24  ;;  %v3261_v41 = vrot.slane %v3259_v20, 5  ;;  %v3275_v8 = vshll.u32 %v2957_v44, 16 }
  0xdf   : > { %v3267_v6 = vrot.slane %v3265_v13, 5  ;;  %v6596_v55 = vcombine.low %v3220_v40, %v3230_v53  ;;  %v3244_v56 = vsel %vm7644_vm11, %v3239_v47, %v3243_v38  ;;  %v3249_v62 = vrot.slane %v3248_v7, 4  ;;  %v7296_v40 = vld [vmem:[#allocation2 + $0xb4] sm:$0xff]   ;;  %v3710_v47 = vld [vmem:[#allocation2 + $0x10] sm:$0xf] }
  0xe0   : > { %v3271_v3 = vrot.slane %v3269_v49, 4  ;;  %v3262_v21 = vor.u32 %v3261_v41, %v3258_v48  ;;  %v3277_v57 = vrot.slane %v3275_v8, 5  ;;  %v3280_v60 = vshrl.u32 %v2958_v27, 16  ;;  %v3713_v53 = vld [vmem:[#allocation2 + $0x1c] sm:$0xf] }
  0xe1   : > { %v3283_v12 = vshll.u32 %v2958_v27, 16  ;;  %7064 = vmatmul.mubr.msk.bf16.gmra.mxu1 %vm889_vm5, %v7293_v18  ;;  %7097 = vmatprep.mubr.msk.bf16.mxu0 %vm889_vm5, %v6596_v55  ;;  %v3254_v63 = vsel %vm7644_vm11, %v3249_v62, %v3253_v46  ;;  %v3289_v15 = vshll.u32 %v2959_v52, 16  ;;  %v3293_v2 = vshrl.u32 %v2959_v52, 16  ;;  %v3711_v27 = vld [vmem:[#allocation2 + $0x14] sm:$0x1] }
  0xe2   : > { %v3272_v0 = vor.u32 %v3271_v3, %v3267_v6  ;;  %v6597_v5 = vcombine.low %v3244_v56, %v3254_v63  ;;  %7067 = vmatprep.mubr.msk.bf16.mxu1 %vm889_vm5, %v7294_v54  ;;  %v3263_v9 = vrot.slane %v3262_v21, 4  ;;  %v3282_v10 = vrot.slane %v3280_v60, 4  ;;  %v3712_v8 = vld [vmem:[#allocation2 + $0x18] sm:$0xe]  ;;  %v8036_v52 = vld [vmem:[#allocation2 + $0x20] sm:$0x1] }
  0xe3   : > { %v3285_v14 = vrot.slane %v3283_v12, 5  ;;  %v3291_v22 = vrot.slane %v3289_v15, 5  ;;  %v3295_v23 = vrot.slane %v3293_v2, 4  ;;  %v3299_v19 = vshll.u32 %v2960_v59, 16  ;;  %v3716_v15 = vld [vmem:[#allocation2 + $0x28] sm:$0xf] }
  0xe4   : > { %v3273_v16 = vrot.slane %v3272_v0, 4  ;;  %v3268_v25 = vsel %vm7644_vm11, %v3263_v9, %v3267_v6  ;;  %v346_v26 = vadd.f32 %v7904_v50, %v7884_v35  ;;  %v3304_v29 = vshrl.u32 %v2961_v33, 16  ;;  %v3709_v50 = vld [vmem:[#allocation2 + $0xc] sm:$0xe]  ;;  %v8044_v2 = vld [vmem:[#allocation2 + $0x2c] sm:$0x1] }
  0xe5   : > { %7098 = vmatmul.mubr.msk.bf16.gmra.mxu0 %vm889_vm5, %v6597_v5  ;;  %v3286_v24 = vor.u32 %v3285_v14, %v3282_v10  ;;  %v3296_v32 = vor.u32 %v3295_v23, %v3291_v22  ;;  %v3301_v4 = vrot.slane %v3299_v19, 5  ;;  %v3307_v36 = vshll.u32 %v2961_v33, 16 }
  0xe6   : > { %v3278_v31 = vsel %vm7644_vm11, %v3273_v16, %v3277_v57  ;;  %v362_v42 = vpack.c.bf16 %v346_v26, %v7908_v51  ;;  %v3306_v43 = vrot.slane %v3304_v29, 4  ;;  %v3313_v1 = vshll.u32 %v2962_v28, 16  ;;  %v8038_v57 = vld [vmem:[#allocation2 + $0x24] sm:$0xe]  ;;  %v3718_v16 = vld [vmem:[#allocation2 + $0x30] sm:$0xe] }
  0xe7   : > { %v6598_v38 = vcombine.low %v3268_v25, %v3278_v31  ;;  %v3287_v39 = vrot.slane %v3286_v24, 4  ;;  %v3297_v44 = vrot.slane %v3296_v32, 4  ;;  %v3309_v17 = vrot.slane %v3307_v36, 5 }
  0xe8   : > { %v3317_v35 = vshrl.u32 %v2962_v28, 16  ;;  %v478_v20 = vshrl.u32 %v362_v42, 16  ;;  %v481_v13 = vshll.u32 %v362_v42, 16  ;;  %v3323_v18 = vshll.u32 %v2963_v11, 16  ;;  %v3720_v28 = vld [vmem:[#allocation2 + $0x38] sm:$0x1] }
  0xe9   : > { %7101 = vmatprep.mubr.msk.bf16.mxu0 %vm889_vm5, %v6598_v38  ;;  %v3292_v46 = vsel %vm7644_vm11, %v3287_v39, %v3291_v22  ;;  %7068 = vmatmul.mubr.msk.bf16.gmra.mxu1 %vm889_vm5, %v7295_v30  ;;  %v3302_v51 = vsel %vm7644_vm11, %v3297_v44, %v3301_v4  ;;  %v3310_v7 = vor.u32 %v3309_v17, %v3306_v43  ;;  %v3315_v48 = vrot.slane %v3313_v1, 5  ;;  %v3719_v22 = vld [vmem:[#allocation2 + $0x34] sm:$0xf]  ;;  %v3721_v4 = vld [vmem:[#allocation2 + $0x3c] sm:$0xe] }
  0xea   : > { %v3319_v49 = vrot.slane %v3317_v35, 4  ;;  %v6599_v54 = vcombine.low %v3292_v46, %v3302_v51  ;;  %7071 = vmatprep.mubr.msk.bf16.mxu1 %vm889_vm5, %v7296_v40  ;;  %v480_v41 = vrot.slane %v478_v20, 7  ;;  %v6618_v6 = vrot.slane %v3709_v50, 9  ;;  %v3722_v11 = vld [vmem:[#allocation2 + $0x40] sm:$0xf] }
  0xeb   : > { %v6959_v55 = vpop.f32.mrf.mxu1  ;;  %v3311_v56 = vrot.slane %v3310_v7, 4  ;;  %v3325_v3 = vrot.slane %v3323_v18, 5  ;;  %v3807_v21 = vrot.slane %v3710_v47, 5  ;;  %v3810_v63 = vrot.slane %v3711_v27, 5  ;;  %v3723_v42 = vld [vmem:[#allocation2 + $0x44] sm:$0x1] }
  0xec   : > { %v3320_v62 = vor.u32 %v3319_v49, %v3315_v48  ;;  %1121 = vst.msk [vmem:[#allocation3 + $0x90] sm:$0xff] %vm889_vm5, %v6959_v55  ;;  %v6943_v59 = vpop.f32.mrf.mxu0  ;;  %v483_v60 = vor.u32 %v481_v13, %v480_v41  ;;  %v550_v12 = vsel %vm7465_vm6, %v480_v41, 0  ;;  %v3814_v0 = vrot.slane %v3713_v53, 5  ;;  %v3724_v43 = vld [vmem:[#allocation2 + $0x48] sm:$0xe] }
  0xed   : > { %7102 = vmatmul.mubr.msk.bf16.gmra.mxu0 %vm889_vm5, %v6599_v54  ;;  %v1040_v33 = vpop.f32.mrf.mxu1  ;;  %1105 = vst.msk [vmem:[#allocation3 + $0x10] sm:$0xff] %vm889_vm5, %v6943_v59  ;;  %v3316_v5 = vsel %vm7644_vm11, %v3311_v56, %v3315_v48  ;;  %v6437_v10 = vcombine.low %v550_v12, %v550_v12  ;;  %v6619_v14 = vrot.slane %v3712_v8, 9  ;;  %v8054_v25 = vsel %vm7661_vm12, %v6618_v6, %v3807_v21  ;;  %v3725_v46 = vld [vmem:[#allocation2 + $0x4c] sm:$0xf]  ;;  %v3726_v7 = vld [vmem:[#allocation2 + $0x50] sm:$0x1] }
  0xee   : > { %v3321_v9 = vrot.slane %v3320_v62, 4  ;;  %1119 = vst.msk [vmem:[#allocation3 + $0x80] sm:$0xff] %vm889_vm5, %v1040_v33  ;;  %v976_v23 = vpop.f32.mrf.mxu0  ;;  %v534_v19 = vsel %vm7465_vm6, 0, %v483_v60  ;;  %v3809_v24 = vrot.slane %v3807_v21, 4  ;;  %v3816_v26 = vrot.slane %v3814_v0, 4 }
  0xef   : > { %v6960_v29 = vpop.f32.mrf.mxu1  ;;  %1103 = vst.msk [vmem:[#allocation3] sm:$0xff] %vm889_vm5, %v976_v23  ;;  %v6435_v30 = vcombine.low %v534_v19, %v534_v19  ;;  %v6436_v31 = vcombine.high %v534_v19, %v534_v19  ;;  %v3817_v61 = vrot.slane %v8036_v52, 5  ;;  %v6620_v40 = vrot.slane %v8038_v57, 9  ;;  %v3727_v21 = vld [vmem:[#allocation2 + $0x54] sm:$0xe] }
  0xf0   : > { %v3326_v32 = vsel %vm7644_vm11, %v3321_v9, %v3325_v3  ;;  %775 = vst.msk [vmem:[#allocation2 + $0xc8] sm:$0x1] %vm366_vm2, %v6437_v10  ;;  %v6944_v36 = vpop.f32.mrf.mxu0  ;;  %v8064_v39 = vsel %vm7661_vm12, %v3809_v24, %v3810_v63  ;;  %v8072_v17 = vsel %vm7661_vm12, %v6619_v14, %v3814_v0  ;;  %v8076_v1 = vsel %vm938_vm0, %v7947_v34, 0  ;;  %v3728_v0 = vld [vmem:[#allocation2 + $0x58] sm:$0xf] }
  0xf1   : > { %1122 = vst.msk [vmem:[#allocation3 + $0x98] sm:$0xff] %vm889_vm5, %v6960_v29  ;;  %v6600_v38 = vcombine.low %v3316_v5, %v3326_v32  ;;  %v1043_v44 = vpop.f32.mrf.mxu1  ;;  %1106 = vst.msk [vmem:[#allocation3 + $0x18] sm:$0xff] %vm889_vm5, %v6944_v36  ;;  %v3821_v35 = vrot.slane %v3716_v15, 5  ;;  %v3824_v50 = vrot.slane %v8044_v2, 5  ;;  %v6635_v13 = vcombine.low %v8054_v25, %v8064_v39  ;;  %v3729_v10 = vld [vmem:[#allocation2 + $0x5c] sm:$0x1] }
  0xf2   : > { %773 = vst.msk [vmem:[#allocation2 + $0xc0] sm:$0xf] %vm363_vm1, %v6435_v30  ;;  %774 = vst.msk [vmem:[#allocation2 + $0xc4] sm:$0xf] %vm363_vm1, %v6436_v31  ;;  %v979_v20 = vpop.f32.mrf.mxu0  ;;  %v6621_v18 = vrot.slane %v3718_v16, 9  ;;  %v3828_v47 = vrot.slane %v3719_v22, 5  ;;  %v8086_v34 = vsel %vm7661_vm12, %v3816_v26, %v3817_v61 }
  0xf3   : > { %1120 = vst.msk [vmem:[#allocation3 + $0x88] sm:$0xff] %vm889_vm5, %v1043_v44  ;;  %7105 = vmatprep.mubr.msk.bf16.mxu0 %vm889_vm5, %v6600_v38  ;;  %v3831_v51 = vrot.slane %v3720_v28, 5  ;;  %v6963_v48 = vpop.f32.mrf.mxu1  ;;  %1104 = vst.msk [vmem:[#allocation3 + $0x8] sm:$0xff] %vm889_vm5, %v979_v20  ;;  %v8090_v49 = vsel %vm7661_vm12, %v6620_v40, %v3821_v35  ;;  %v3823_v27 = vrot.slane %v3821_v35, 4  ;;  %v6622_v53 = vrot.slane %v3721_v4, 9 }
  0xf4   : > { %1125 = vst.msk [vmem:[#allocation3 + $0xb0] sm:$0xff] %vm889_vm5, %v6963_v48  ;;  %v8095_v54 = vsel %vm7661_vm12, %v6621_v18, %v3828_v47  ;;  %v3830_v41 = vrot.slane %v3828_v47, 4  ;;  %v3835_v6 = vrot.slane %v3722_v11, 5  ;;  %v3838_v8 = vrot.slane %v3723_v42, 5  ;;  %v3730_v25 = vld [vmem:[#allocation2 + $0x60] sm:$0xe] }
  0xf5   : > { %v1056_v52 = vpop.f32.mrf.mxu1  ;;  %v8099_v55 = vsel %vm7661_vm12, %v3823_v27, %v3824_v50  ;;  %v6623_v56 = vrot.slane %v3724_v43, 9  ;;  %v3842_v62 = vrot.slane %v3725_v46, 5  ;;  %v3845_v3 = vrot.slane %v3726_v7, 5  ;;  %v8129_v24 = vld [vmem:[#allocation2 + $0x68] sm:$0x1] }
  0xf6   : > { %1123 = vst.msk [vmem:[#allocation3 + $0xa0] sm:$0xff] %vm889_vm5, %v1056_v52  ;;  %v6636_v59 = vcombine.low %v8072_v17, %v8086_v34  ;;  %v8106_v60 = vsel %vm7661_vm12, %v3830_v41, %v3831_v51  ;;  %v8110_v12 = vsel %vm7661_vm12, %v6622_v53, %v3835_v6  ;;  %v3837_v63 = vrot.slane %v3835_v6, 4  ;;  %v3733_v4 = vld [vmem:[#allocation2 + $0x6c] sm:$0xe]  ;;  %v3734_v42 = vld [vmem:[#allocation2 + $0x70] sm:$0xf] }
  0xf7   : > { %v2966_v57 = vld [vmem:[#allocation2 + $0xc8] sm:$0x1]  ;;  %v6964_v15 = vpop.f32.mrf.mxu1  ;;  %v6637_v33 = vcombine.low %v8090_v49, %v8099_v55  ;;  %v8116_v5 = vsel %vm938_vm0, %v7952_v45, 0  ;;  %v3844_v9 = vrot.slane %v3842_v62, 4  ;;  %v6638_v16 = vcombine.low %v8095_v54, %v8106_v60  ;;  %v3731_v45 = vld [vmem:[#allocation2 + $0x64] sm:$0xf] }
  0xf8   : > { %v3347_v2 = vshll.u32 %v2966_v57, 16  ;;  %1126 = vst.msk [vmem:[#allocation3 + $0xb8] sm:$0xff] %vm889_vm5, %v6964_v15  ;;  %v8123_v22 = vsel %vm7661_vm12, %v3837_v63, %v3838_v8  ;;  %v8127_v23 = vsel %vm7661_vm12, %v6623_v56, %v3842_v62  ;;  %v6624_v19 = vrot.slane %v3727_v21, 9  ;;  %v8141_v43 = vld [vmem:[#allocation2 + $0x74] sm:$0x1] }
  0xf9   : > { %v7297_v14 = vld [vmem:[#allocation2 + $0xc0] sm:$0xff]   ;;  %v1059_v26 = vpop.f32.mrf.mxu1  ;;  %v6639_v31 = vcombine.low %v8110_v12, %v8123_v22  ;;  %v8137_v32 = vsel %vm7661_vm12, %v3844_v9, %v3845_v3  ;;  %v3849_v61 = vrot.slane %v3728_v0, 5  ;;  %v3852_v46 = vrot.slane %v3729_v10, 5  ;;  %v3736_v20 = vld [vmem:[#allocation2 + $0x78] sm:$0xe] }
  0xfa   : > { %v2964_v28 = vld [vmem:[#allocation2 + $0xc0] sm:$0xf]  ;;  %v2965_v29 = vld [vmem:[#allocation2 + $0xc4] sm:$0xf]  ;;  %v8131_v30 = vrot.slane %v3347_v2, 5  ;;  %v6947_v11 = vpop.f32.mrf.mxu0  ;;  %1124 = vst.msk [vmem:[#allocation3 + $0xa8] sm:$0xff] %vm889_vm5, %v1059_v26  ;;  %7072 = vmatmul.mubr.msk.bf16.gmra.mxu1 %vm889_vm5, %v7297_v14  ;;  %v6640_v44 = vcombine.low %v8127_v23, %v8137_v32 }
  0xfb   : > { %v3328_v36 = vshrl.u32 %v2964_v28, 16  ;;  %v3331_v38 = vshll.u32 %v2964_v28, 16  ;;  %v3337_v39 = vshll.u32 %v2965_v29, 16  ;;  %v3341_v40 = vshrl.u32 %v2965_v29, 16  ;;  %1109 = vst.msk [vmem:[#allocation3 + $0x30] sm:$0xff] %vm889_vm5, %v6947_v11  ;;  %7111 = vmatprep.mubr.msk.bf16.mxu1 %vm889_vm5, %v6635_v13 }
  0xfc   : > { %v8149_v35 = vsel %vm7661_vm12, %v6624_v19, %v3849_v61  ;;  %v3851_v50 = vrot.slane %v3849_v61, 4  ;;  %v992_v18 = vpop.f32.mrf.mxu0  ;;  %v6625_v27 = vrot.slane %v3730_v25, 9  ;;  %v3856_v53 = vrot.slane %v3731_v45, 5  ;;  %v3737_v6 = vld [vmem:[#allocation2 + $0x7c] sm:$0xf] }
  0xfd   : > { %v3330_v47 = vrot.slane %v3328_v36, 4  ;;  %v3333_v51 = vrot.slane %v3331_v38, 5  ;;  %v3339_v7 = vrot.slane %v3337_v39, 5  ;;  %v3343_v48 = vrot.slane %v3341_v40, 4  ;;  %1107 = vst.msk [vmem:[#allocation3 + $0x20] sm:$0xff] %vm889_vm5, %v992_v18 }
  0xfe   : > { %v8154_v13 = vsel %vm7661_vm12, %v3851_v50, %v3852_v46  ;;  %v3859_v41 = vrot.slane %v8129_v24, 5  ;;  %v6948_v8 = vpop.f32.mrf.mxu0  ;;  %v6967_v52 = vpop.f32.mrf.mxu1  ;;  %v6626_v21 = vrot.slane %v3733_v4, 9  ;;  %v3738_v57 = vld [vmem:[#allocation2 + $0x80] sm:$0x1]  ;;  %v8159_v63 = vld [vmem:[#allocation2 + $0x84] sm:$0xe]  ;;  %v8165_v0 = vsel %vm7661_vm12, %v6625_v27, %v3856_v53 }
  0xff   : > { %v3334_v56 = vor.u32 %v3333_v51, %v3330_v47  ;;  %v3344_v62 = vor.u32 %v3343_v48, %v3339_v7  ;;  %v6641_v3 = vcombine.low %v8149_v35, %v8154_v13  ;;  %1110 = vst.msk [vmem:[#allocation3 + $0x38] sm:$0xff] %vm889_vm5, %v6948_v8  ;;  %1129 = vst.msk [vmem:[#allocation3 + $0xd0] sm:$0xff] %vm889_vm5, %v6967_v52  ;;  %v3858_v15 = vrot.slane %v3856_v53, 4  ;;  %v3740_v10 = vld [vmem:[#allocation2 + $0x88] sm:$0xf]  ;;  %v7298_v24 = vld [vmem:[#allocation2 + $0x18] sm:$0xff]  }
 0x100   : > { %v3863_v2 = vrot.slane %v3734_v42, 5  ;;  %v3866_v9 = vrot.slane %v8141_v43, 5  ;;  %v995_v14 = vpop.f32.mrf.mxu0  ;;  %v1072_v19 = vpop.f32.mrf.mxu1  ;;  %v6627_v26 = vrot.slane %v3736_v20, 9  ;;  %v3870_v28 = vrot.slane %v3737_v6, 5  ;;  %v3741_v29 = vld [vmem:[#allocation2 + $0x8c] sm:$0x1] }
 0x101   : > { %v3335_v25 = vrot.slane %v3334_v56, 4  ;;  %v3345_v45 = vrot.slane %v3344_v62, 4  ;;  %1108 = vst.msk [vmem:[#allocation3 + $0x28] sm:$0xff] %vm889_vm5, %v995_v14  ;;  %1127 = vst.msk [vmem:[#allocation3 + $0xc0] sm:$0xff] %vm889_vm5, %v1072_v19  ;;  %v8172_v61 = vsel %vm7661_vm12, %v3858_v15, %v3859_v41  ;;  %v3873_v36 = vrot.slane %v3738_v57, 5  ;;  %v7299_v14 = vld [vmem:[#allocation2 + $0x24] sm:$0xff]  }
 0x102   : > { %v8176_v4 = vsel %vm7661_vm12, %v6626_v21, %v3863_v2  ;;  %v3865_v11 = vrot.slane %v3863_v2, 4  ;;  %v3742_v38 = vld [vmem:[#allocation2 + $0x90] sm:$0xe]  ;;  %v3743_v39 = vld [vmem:[#allocation2 + $0x94] sm:$0xf]  ;;  %v6951_v40 = vpop.f32.mrf.mxu0  ;;  %v6968_v42 = vpop.f32.mrf.mxu1  ;;  %7112 = vmatmul.mubr.msk.bf16.vlgmr.msra.gmra.mxu1 %vm889_vm5, %v6636_v59  ;;  %v6642_v46 = vcombine.low %v8165_v0, %v8172_v61  ;;  %v8191_v20 = vsel %vm7661_vm12, %v6627_v26, %v3870_v28 }
 0x103   : > { %v3340_v43 = vsel %vm7644_vm11, %v3335_v25, %v3339_v7  ;;  %v3350_v50 = vsel %vm7644_vm11, %v3345_v45, %v8131_v30  ;;  %v3744_v18 = vld [vmem:[#allocation2 + $0x98] sm:$0x1]  ;;  %v3745_v47 = vld [vmem:[#allocation2 + $0x9c] sm:$0xe]  ;;  %v3746_v51 = vld [vmem:[#allocation2 + $0xa0] sm:$0xf]  ;;  %7178 = vmatpush3.bf16.msra.mxu1 %v8076_v1  ;;  %7115 = vmatprep.mubr.msk.bf16.mxu1 %vm889_vm5, %v6637_v33 }
 0x104   : > { %1113 = vst.msk [vmem:[#allocation3 + $0x50] sm:$0xff] %vm889_vm5, %v6951_v40  ;;  %1130 = vst.msk [vmem:[#allocation3 + $0xd8] sm:$0xff] %vm889_vm5, %v6968_v42  ;;  %v6601_v30 = vcombine.low %v3340_v43, %v3350_v50  ;;  %v8202_v17 = vsel %vm7661_vm12, %v3865_v11, %v3866_v9  ;;  %v3872_v34 = vrot.slane %v3870_v28, 4  ;;  %v6628_v59 = vrot.slane %v8159_v63, 9  ;;  %v3747_v7 = vld [vmem:[#allocation2 + $0xa4] sm:$0x1]  ;;  %v1008_v27 = vpop.f32.mrf.mxu0  ;;  %v1075_v53 = vpop.f32.mrf.mxu1 }
 0x105   : > { %v3748_v48 = vld [vmem:[#allocation2 + $0xa8] sm:$0xe]  ;;  %v6643_v41 = vcombine.low %v8176_v4, %v8202_v17  ;;  %v3877_v1 = vrot.slane %v3740_v10, 5  ;;  %v3880_v6 = vrot.slane %v3741_v29, 5  ;;  %v6629_v8 = vrot.slane %v3742_v38, 9  ;;  %1111 = vst.msk [vmem:[#allocation3 + $0x40] sm:$0xff] %vm889_vm5, %v1008_v27 }
 0x106   : > { %v3749_v49 = vld [vmem:[#allocation2 + $0xac] sm:$0xf]  ;;  %1128 = vst.msk [vmem:[#allocation3 + $0xc8] sm:$0xff] %vm889_vm5, %v1075_v53  ;;  %7106 = vmatmul.mubr.msk.bf16.gmra.mxu0 %vm889_vm5, %v6601_v30  ;;  %v8212_v55 = vsel %vm7661_vm12, %v3872_v34, %v3873_v36  ;;  %v3884_v33 = vrot.slane %v3743_v39, 5  ;;  %v3887_v52 = vrot.slane %v3744_v18, 5  ;;  %v6630_v56 = vrot.slane %v3745_v47, 9  ;;  %v6952_v21 = vpop.f32.mrf.mxu0 }
 0x107   : > { %v3750_v62 = vld [vmem:[#allocation2 + $0xb0] sm:$0x1]  ;;  %7145 = vmatprep.mubr.msk.bf16.mxu0 %vm889_vm5, %v7298_v24  ;;  %v6644_v57 = vcombine.low %v8191_v20, %v8212_v55  ;;  %v8219_v63 = vsel %vm7661_vm12, %v6628_v59, %v3877_v1  ;;  %v3879_v15 = vrot.slane %v3877_v1, 4  ;;  %v3891_v2 = vrot.slane %v3746_v51, 5  ;;  %v3751_v9 = vld [vmem:[#allocation2 + $0xb4] sm:$0xe] }
 0x108   : > { %v3752_v10 = vld [vmem:[#allocation2 + $0xb8] sm:$0xf]  ;;  %1114 = vst.msk [vmem:[#allocation3 + $0x58] sm:$0xff] %vm889_vm5, %v6952_v21  ;;  %v8224_v19 = vsel %vm7661_vm12, %v6629_v8, %v3884_v33  ;;  %v3886_v25 = vrot.slane %v3884_v33, 4  ;;  %v3894_v45 = vrot.slane %v3747_v7, 5  ;;  %v6631_v24 = vrot.slane %v3748_v48, 9  ;;  %v1011_v28 = vpop.f32.mrf.mxu0 }
 0x109   : > { %v3753_v26 = vld [vmem:[#allocation2 + $0xbc] sm:$0x1]  ;;  %v8228_v29 = vsel %vm7661_vm12, %v3879_v15, %v3880_v6  ;;  %v8232_v11 = vsel %vm7661_vm12, %v6630_v56, %v3891_v2  ;;  %v3893_v36 = vrot.slane %v3891_v2, 4  ;;  %v3898_v38 = vrot.slane %v3749_v49, 5  ;;  %v3754_v39 = vld [vmem:[#allocation2 + $0xc0] sm:$0xe] }
 0x10a   : > { %1112 = vst.msk [vmem:[#allocation3 + $0x48] sm:$0xff] %vm889_vm5, %v1011_v28  ;;  %v4698_v40 = vld [vmem:[#allocation2 + $0x18] sm:$0xf]  ;;  %v6645_v42 = vcombine.low %v8219_v63, %v8228_v29  ;;  %v8239_v43 = vsel %vm7661_vm12, %v3886_v25, %v3887_v52  ;;  %v3901_v50 = vrot.slane %v3750_v62, 5  ;;  %v6632_v18 = vrot.slane %v3751_v9, 9  ;;  %7116 = vmatmul.mubr.msk.bf16.gmra.mxu1 %vm889_vm5, %v6638_v16  ;;  %v7300_v30 = vld [vmem:[#allocation2 + $0x30] sm:$0xff]  }
 0x10b   : > { %v3755_v47 = vld [vmem:[#allocation2 + $0xc4] sm:$0xf]  ;;  %v3756_v51 = vld [vmem:[#allocation2 + $0xc8] sm:$0x1]  ;;  %v6646_v34 = vcombine.low %v8224_v19, %v8239_v43  ;;  %v8249_v59 = vsel %vm7661_vm12, %v3893_v36, %v3894_v45  ;;  %v8253_v7 = vsel %vm7661_vm12, %v6631_v24, %v3898_v38  ;;  %v3900_v48 = vrot.slane %v3898_v38, 4  ;;  %7119 = vmatprep.mubr.msk.bf16.mxu1 %vm889_vm5, %v6639_v31  ;;  %v1836_v63 = vld [vmem:[#allocation3 + $0x20] sm:$0xff] }
 0x10c   : > { %v6647_v54 = vcombine.low %v8232_v11, %v8249_v59  ;;  %v3905_v60 = vrot.slane %v3752_v10, 5  ;;  %v3908_v16 = vrot.slane %v3753_v26, 5  ;;  %v6633_v27 = vrot.slane %v3754_v39, 9  ;;  %v4699_v53 = vld [vmem:[#allocation2 + $0x1c] sm:$0xf] }
 0x10d   : > { %v8263_v1 = vsel %vm7661_vm12, %v3900_v48, %v3901_v50  ;;  %v3912_v6 = vrot.slane %v3755_v47, 5  ;;  %v3915_v8 = vrot.slane %v3756_v51, 5  ;;  %v4700_v49 = vld [vmem:[#allocation2 + $0x20] sm:$0x1]  ;;  %v4747_v33 = vshrl.u32 %v4698_v40, 16  ;;  %v7302_v47 = vld [vmem:[#allocation2 + $0x48] sm:$0xff]  }
 0x10e   : > { %7146 = vmatmul.mubr.msk.bf16.vlgmr.msra.gmra.mxu0 %vm889_vm5, %v7299_v14  ;;  %v6648_v12 = vcombine.low %v8253_v7, %v8263_v1  ;;  %v8270_v22 = vsel %vm7661_vm12, %v6632_v18, %v3905_v60  ;;  %v3907_v31 = vrot.slane %v3905_v60, 4  ;;  %v4750_v52 = vshll.u32 %v4698_v40, 16  ;;  %v4701_v56 = vld [vmem:[#allocation2 + $0x24] sm:$0xf]  ;;  %v6971_v62 = vpop.f32.mrf.mxu1  ;;  %v4703_v39 = vld [vmem:[#allocation2 + $0x2c] sm:$0x1] }
 0x10f   : > { %7212 = vmatpush3.bf16.msra.mxu0 %v8116_v5  ;;  %7149 = vmatprep.mubr.msk.bf16.mxu0 %vm889_vm5, %v7300_v30  ;;  %v8276_v21 = vsel %vm7661_vm12, %v6633_v27, %v3912_v6  ;;  %v3914_v15 = vrot.slane %v3912_v6, 4  ;;  %v4749_v2 = vrot.slane %v4747_v33, 4  ;;  %v4756_v9 = vshll.u32 %v4699_v53, 16  ;;  %1133 = vst.msk [vmem:[#allocation3 + $0xf0] sm:$0xff] %vm889_vm5, %v6971_v62  ;;  %v4702_v5 = vld [vmem:[#allocation2 + $0x28] sm:$0xf] }
 0x110   : > { %v8280_v10 = vsel %vm7661_vm12, %v3907_v31, %v3908_v16  ;;  %v4752_v14 = vrot.slane %v4750_v52, 5  ;;  %v4760_v25 = vshrl.u32 %v4699_v53, 16  ;;  %v4766_v45 = vshll.u32 %v4700_v49, 16  ;;  %v1088_v28 = vpop.f32.mrf.mxu1  ;;  %v6955_v36 = vpop.f32.mrf.mxu0  ;;  %v5488_v50 = vld [vmem:[#allocation2 + $0x18] sm:$0xe]  ;;  %v7301_v18 = vld [vmem:[#allocation2 + $0x3c] sm:$0xff]  }
 0x111   : > { %v6649_v24 = vcombine.low %v8270_v22, %v8280_v10  ;;  %v8287_v26 = vsel %vm7661_vm12, %v3914_v15, %v3915_v8  ;;  %v4758_v38 = vrot.slane %v4756_v9, 5  ;;  %v4771_v40 = vshrl.u32 %v4701_v56, 16  ;;  %1131 = vst.msk [vmem:[#allocation3 + $0xe0] sm:$0xff] %vm889_vm5, %v1088_v28  ;;  %1117 = vst.msk [vmem:[#allocation3 + $0x70] sm:$0xff] %vm889_vm5, %v6955_v36  ;;  %v5489_v16 = vld [vmem:[#allocation2 + $0x1c] sm:$0xf] }
 0x112   : > { %v6650_v51 = vcombine.low %v8276_v21, %v8287_v26  ;;  %v4753_v30 = vor.u32 %v4752_v14, %v4749_v2  ;;  %v4762_v48 = vrot.slane %v4760_v25, 4  ;;  %v4768_v60 = vrot.slane %v4766_v45, 5  ;;  %7120 = vmatmul.mubr.msk.bf16.gmra.mxu1 %vm889_vm5, %v6640_v44  ;;  %v6972_v27 = vpop.f32.mrf.mxu1  ;;  %v1024_v53 = vpop.f32.mrf.mxu0  ;;  %v5490_v31 = vld [vmem:[#allocation2 + $0x20] sm:$0x1]  ;;  %v5491_v62 = vld [vmem:[#allocation2 + $0x24] sm:$0xe] }
 0x113   : > { %v4773_v6 = vrot.slane %v4771_v40, 4  ;;  %v4774_v8 = vshll.u32 %v4701_v56, 16  ;;  %v4780_v49 = vshll.u32 %v4702_v5, 16  ;;  %v4784_v33 = vshrl.u32 %v4702_v5, 16  ;;  %7123 = vmatprep.mubr.msk.bf16.mxu1 %vm889_vm5, %v6641_v3  ;;  %1134 = vst.msk [vmem:[#allocation3 + $0xf8] sm:$0xff] %vm889_vm5, %v6972_v27  ;;  %1115 = vst.msk [vmem:[#allocation3 + $0x60] sm:$0xff] %vm889_vm5, %v1024_v53 }
 0x114   : > { %v4754_v52 = vrot.slane %v4753_v30, 4  ;;  %v4763_v23 = vor.u32 %v4762_v48, %v4758_v38  ;;  %v4790_v32 = vshll.u32 %v4703_v39, 16  ;;  %v6733_v44 = vrot.slane %v5488_v50, 9  ;;  %v1091_v15 = vpop.f32.mrf.mxu1  ;;  %v6956_v2 = vpop.f32.mrf.mxu0  ;;  %v5492_v45 = vld [vmem:[#allocation2 + $0x28] sm:$0xf] }
 0x115   : > { %v4776_v56 = vrot.slane %v4774_v8, 5  ;;  %v4782_v9 = vrot.slane %v4780_v49, 5  ;;  %v4786_v14 = vrot.slane %v4784_v33, 4  ;;  %v5586_v25 = vrot.slane %v5489_v16, 5  ;;  %1132 = vst.msk [vmem:[#allocation3 + $0xe8] sm:$0xff] %vm889_vm5, %v1091_v15  ;;  %1118 = vst.msk [vmem:[#allocation3 + $0x78] sm:$0xff] %vm889_vm5, %v6956_v2 }
 0x116   : > { %7150 = vmatmul.mubr.msk.bf16.gmra.mxu0 %vm889_vm5, %v7301_v18  ;;  %v4759_v35 = vsel %vm7644_vm11, %v4754_v52, %v4758_v38  ;;  %v4764_v13 = vrot.slane %v4763_v23, 4  ;;  %v4792_v3 = vrot.slane %v4790_v32, 5  ;;  %v5589_v5 = vrot.slane %v5490_v31, 5  ;;  %v6977_v28 = vpop.f32.mrf.mxu1  ;;  %v1834_v36 = vld [vmem:[#allocation3 + $0x10] sm:$0xff]  ;;  %v1027_v50 = vpop.f32.mrf.mxu0  ;;  %v1832_v31 = vld [vmem:[#allocation3] sm:$0xff] }
 0x117   : > { %7153 = vmatprep.mubr.msk.bf16.mxu0 %vm889_vm5, %v7302_v47  ;;  %v4777_v39 = vor.u32 %v4776_v56, %v4773_v6  ;;  %v4787_v40 = vor.u32 %v4786_v14, %v4782_v9  ;;  %v8311_v18 = vsel %vm7661_vm12, %v6733_v44, %v5586_v25  ;;  %v5588_v30 = vrot.slane %v5586_v25, 4  ;;  %1116 = vst.msk [vmem:[#allocation3 + $0x68] sm:$0xff] %vm889_vm5, %v1027_v50  ;;  %v5493_v16 = vld [vmem:[#allocation2 + $0x2c] sm:$0x1]  ;;  %v4704_v47 = vld [vmem:[#allocation2 + $0x30] sm:$0xf] }
 0x118   : > { %v4769_v38 = vsel %vm7644_vm11, %v4764_v13, %v4768_v60  ;;  %v1866_v48 = vadd.f32 %v6977_v28, %v1834_v36  ;;  %v6734_v27 = vrot.slane %v5491_v62, 9  ;;  %v5593_v53 = vrot.slane %v5492_v45, 5  ;;  %v1705_v33 = vpop.f32.mrf.mxu1  ;;  %v7011_v23 = vpop.f32.mrf.mxu0  ;;  %v4705_v32 = vld [vmem:[#allocation2 + $0x34] sm:$0xf]  ;;  %v4706_v56 = vld [vmem:[#allocation2 + $0x38] sm:$0x1] }
 0x119   : > { %v8316_v8 = vcombine.low %v4759_v35, %v4769_v38  ;;  %v4778_v6 = vrot.slane %v4777_v39, 4  ;;  %v4788_v49 = vrot.slane %v4787_v40, 4  ;;  %v8320_v52 = vsel %vm7661_vm12, %v5588_v30, %v5589_v5  ;;  %v7303_v60 = vld [vmem:[#allocation2 + $0x54] sm:$0xff]   ;;  %v7304_v14 = vld [vmem:[#allocation2 + $0x60] sm:$0xff]   ;;  %v4707_v39 = vld [vmem:[#allocation2 + $0x3c] sm:$0xf] }
 0x11a   : > { %1898 = vst.msk [vmem:[#allocation3 + $0x10] sm:$0xff] %vm889_vm5, %v1866_v48  ;;  %v1864_v44 = vadd.f32 %v1832_v31, %v1705_v33  ;;  %v6750_v62 = vcombine.low %v8311_v18, %v8320_v52  ;;  %v8327_v15 = vsel %vm7661_vm12, %v6734_v27, %v5593_v53  ;;  %v5595_v2 = vrot.slane %v5593_v53, 4  ;;  %7124 = vmatmul.mubr.msk.bf16.gmra.mxu1 %vm889_vm5, %v6642_v46  ;;  %v6978_v35 = vpop.f32.mrf.mxu1  ;;  %v1835_v13 = vld [vmem:[#allocation3 + $0x18] sm:$0xff]  ;;  %v2274_v28 = vpop.f32.mrf.mxu0  ;;  %v4708_v40 = vld [vmem:[#allocation2 + $0x40] sm:$0xf] }
 0x11b   : > { %v4783_v25 = vsel %vm7644_vm11, %v4778_v6, %v4782_v9  ;;  %v4793_v45 = vsel %vm7644_vm11, %v4788_v49, %v4792_v3  ;;  %v5596_v5 = vrot.slane %v5493_v16, 5  ;;  %v4795_v36 = vshrl.u32 %v4704_v47, 16  ;;  %7127 = vmatprep.mubr.msk.bf16.mxu1 %vm889_vm5, %v6643_v41  ;;  %v1833_v30 = vld [vmem:[#allocation3 + $0x8] sm:$0xff]  ;;  %v5494_v6 = vld [vmem:[#allocation2 + $0x30] sm:$0xe] }
 0x11c   : > { %v8341_v0 = vcombine.low %v4783_v25, %v4793_v45  ;;  %1896 = vst.msk [vmem:[#allocation3] sm:$0xff] %vm889_vm5, %v1864_v44  ;;  %v1867_v61 = vadd.f32 %v6978_v35, %v1835_v13  ;;  %v4798_v46 = vshll.u32 %v4704_v47, 16  ;;  %v4804_v9 = vshll.u32 %v4705_v32, 16  ;;  %v1708_v50 = vpop.f32.mrf.mxu1  ;;  %v8348_v17 = vpop.f32.mrf.mxu0  ;;  %v4709_v41 = vld [vmem:[#allocation2 + $0x44] sm:$0x1] }
 0x11d   : > { %v8346_v3 = vsel %vm7661_vm12, %v5595_v2, %v5596_v5  ;;  %v4797_v38 = vrot.slane %v4795_v36, 4  ;;  %v4808_v48 = vshrl.u32 %v4705_v32, 16  ;;  %v4814_v4 = vshll.u32 %v4706_v56, 16  ;;  %v5495_v45 = vld [vmem:[#allocation2 + $0x34] sm:$0xf] }
 0x11e   : > { %7154 = vmatmul.mubr.msk.bf16.gmra.mxu0 %vm889_vm5, %v7303_v60  ;;  %1899 = vst.msk [vmem:[#allocation3 + $0x18] sm:$0xff] %vm889_vm5, %v1867_v61  ;;  %v6751_v16 = vcombine.low %v8327_v15, %v8346_v3  ;;  %v1865_v27 = vadd.f32 %v1833_v30, %v1708_v50  ;;  %v4800_v53 = vrot.slane %v4798_v46, 5  ;;  %v4806_v47 = vrot.slane %v4804_v9, 5  ;;  %v8355_v44 = vpop.f32.mrf.mxu0 }
 0x11f   : > { %7157 = vmatprep.mubr.msk.bf16.mxu0 %vm889_vm5, %v7304_v14  ;;  %v4810_v49 = vrot.slane %v4808_v48, 4  ;;  %v4816_v33 = vrot.slane %v4814_v4, 5  ;;  %v4819_v31 = vshrl.u32 %v4707_v39, 16  ;;  %v4822_v32 = vshll.u32 %v4707_v39, 16  ;;  %v7305_v14 = vld [vmem:[#allocation2 + $0x6c] sm:$0xff]  }
 0x120   : > { %1897 = vst.msk [vmem:[#allocation3 + $0x8] sm:$0xff] %vm889_vm5, %v1865_v27  ;;  %v4801_v60 = vor.u32 %v4800_v53, %v4797_v38  ;;  %v4828_v2 = vshll.u32 %v4708_v40, 16  ;;  %v4832_v56 = vshrl.u32 %v4708_v40, 16  ;;  %v4838_v25 = vshll.u32 %v4709_v41, 16  ;;  %v7306_v40 = vld [vmem:[#allocation2 + $0x78] sm:$0xff]   ;;  %v1838_v41 = vld [vmem:[#allocation3 + $0x30] sm:$0xff] }
 0x121   : > { %v2403_v35 = vld [vmem:[#allocation3 + $0x10] sm:$0xff]  ;;  %v4811_v13 = vor.u32 %v4810_v49, %v4806_v47  ;;  %v4821_v5 = vrot.slane %v4819_v31, 4  ;;  %v4824_v36 = vrot.slane %v4822_v32, 5  ;;  %v6735_v61 = vrot.slane %v5494_v6, 9  ;;  %v5496_v31 = vld [vmem:[#allocation2 + $0x38] sm:$0x1] }
 0x122   : > { %v8358_v46 = vpop.f32.mrf.mxu0  ;;  %v2435_v9 = vadd.f32 %v7011_v23, %v2403_v35  ;;  %v4802_v50 = vrot.slane %v4801_v60, 4  ;;  %v4830_v39 = vrot.slane %v4828_v2, 5  ;;  %v4834_v30 = vrot.slane %v4832_v56, 4  ;;  %7128 = vmatmul.mubr.msk.bf16.gmra.mxu1 %vm889_vm5, %v6644_v57  ;;  %v5497_v32 = vld [vmem:[#allocation2 + $0x3c] sm:$0xe] }
 0x123   : > { %v2401_v38 = vld [vmem:[#allocation3] sm:$0xff]  ;;  %v4812_v48 = vrot.slane %v4811_v13, 4  ;;  %v6981_v4 = vpop.f32.mrf.mxu1  ;;  %v4825_v27 = vor.u32 %v4824_v36, %v4821_v5  ;;  %v4840_v53 = vrot.slane %v4838_v25, 5  ;;  %v5600_v6 = vrot.slane %v5495_v45, 5  ;;  %7131 = vmatprep.mubr.msk.bf16.mxu1 %vm889_vm5, %v6645_v42  ;;  %v5498_v60 = vld [vmem:[#allocation2 + $0x40] sm:$0xf] }
 0x124   : > { %v8364_v49 = vpop.f32.mrf.mxu0  ;;  %2467 = vst.msk [vmem:[#allocation3 + $0x10] sm:$0xff] %vm889_vm5, %v2435_v9  ;;  %v2433_v20 = vadd.f32 %v2401_v38, %v2274_v28  ;;  %v4807_v55 = vsel %vm7644_vm11, %v4802_v50, %v4806_v47  ;;  %v1870_v57 = vadd.f32 %v6981_v4, %v1838_v41  ;;  %v4835_v23 = vor.u32 %v4834_v30, %v4830_v39  ;;  %v5499_v28 = vld [vmem:[#allocation2 + $0x44] sm:$0x1]  ;;  %v4710_v5 = vld [vmem:[#allocation2 + $0x48] sm:$0xf] }
 0x125   : > { %v4817_v2 = vsel %vm7644_vm11, %v4812_v48, %v4816_v33  ;;  %v2404_v56 = vld [vmem:[#allocation3 + $0x18] sm:$0xff]  ;;  %v4826_v25 = vrot.slane %v4825_v27, 4  ;;  %v1721_v45 = vpop.f32.mrf.mxu1  ;;  %v8377_v29 = vsel %vm7661_vm12, %v6735_v61, %v5600_v6  ;;  %v5602_v42 = vrot.slane %v5600_v6, 4 }
 0x126   : > { %7158 = vmatmul.mubr.msk.bf16.gmra.mxu0 %vm889_vm5, %v7305_v14  ;;  %2465 = vst.msk [vmem:[#allocation3] sm:$0xff] %vm889_vm5, %v2433_v20  ;;  %v8381_v47 = vcombine.low %v4807_v55, %v4817_v2  ;;  %1902 = vst.msk [vmem:[#allocation3 + $0x30] sm:$0xff] %vm889_vm5, %v1870_v57  ;;  %v2436_v33 = vadd.f32 %v8348_v17, %v2404_v56  ;;  %v4836_v35 = vrot.slane %v4835_v23, 4  ;;  %v5603_v9 = vrot.slane %v5496_v31, 5  ;;  %v1839_v14 = vld [vmem:[#allocation3 + $0x38] sm:$0xff]  ;;  %v8388_v48 = vpop.f32.mrf.mxu0  ;;  %v1837_v23 = vld [vmem:[#allocation3 + $0x28] sm:$0xff] }
 0x127   : > { %v1868_v13 = vadd.f32 %v1836_v63, %v1721_v45  ;;  %7161 = vmatprep.mubr.msk.bf16.mxu0 %vm889_vm5, %v7306_v40  ;;  %v4831_v36 = vsel %vm7644_vm11, %v4826_v25, %v4830_v39  ;;  %v2402_v61 = vld [vmem:[#allocation3 + $0x8] sm:$0xff]  ;;  %v6982_v50 = vpop.f32.mrf.mxu1  ;;  %v6736_v30 = vrot.slane %v5497_v32, 9  ;;  %v5607_v38 = vrot.slane %v5498_v60, 5  ;;  %v4711_v39 = vld [vmem:[#allocation2 + $0x4c] sm:$0xf]  ;;  %v7308_v45 = vld [vmem:[#allocation2 + $0x90] sm:$0xff]  }
 0x128   : > { %2468 = vst.msk [vmem:[#allocation3 + $0x18] sm:$0xff] %vm889_vm5, %v2436_v33  ;;  %v4841_v17 = vsel %vm7644_vm11, %v4836_v35, %v4840_v53  ;;  %v2434_v40 = vadd.f32 %v2402_v61, %v8355_v44  ;;  %v1871_v4 = vadd.f32 %v6982_v50, %v1839_v14  ;;  %v5610_v41 = vrot.slane %v5499_v28, 5  ;;  %v4712_v27 = vld [vmem:[#allocation2 + $0x50] sm:$0x1]  ;;  %v4713_v31 = vld [vmem:[#allocation2 + $0x54] sm:$0xf] }
 0x129   : > { %1900 = vst.msk [vmem:[#allocation3 + $0x20] sm:$0xff] %vm889_vm5, %v1868_v13  ;;  %v8395_v6 = vcombine.low %v4831_v36, %v4841_v17  ;;  %v8399_v20 = vsel %vm7661_vm12, %v5602_v42, %v5603_v9  ;;  %v8403_v55 = vsel %vm7661_vm12, %v6736_v30, %v5607_v38  ;;  %v5609_v57 = vrot.slane %v5607_v38, 4  ;;  %v1724_v53 = vpop.f32.mrf.mxu1  ;;  %v7307_v32 = vld [vmem:[#allocation2 + $0x84] sm:$0xff]   ;;  %v4714_v25 = vld [vmem:[#allocation2 + $0x58] sm:$0xf]  ;;  %v8417_v13 = vpop.f32.mrf.mxu0 }
 0x12a   : > { %2466 = vst.msk [vmem:[#allocation3 + $0x8] sm:$0xff] %vm889_vm5, %v2434_v40  ;;  %v6752_v44 = vcombine.low %v8377_v29, %v8399_v20  ;;  %1903 = vst.msk [vmem:[#allocation3 + $0x38] sm:$0xff] %vm889_vm5, %v1871_v4  ;;  %v1869_v60 = vadd.f32 %v1837_v23, %v1724_v53  ;;  %v4843_v2 = vshrl.u32 %v4710_v5, 16  ;;  %v4846_v56 = vshll.u32 %v4710_v5, 16  ;;  %7132 = vmatmul.mubr.msk.bf16.gmra.mxu1 %vm889_vm5, %v6646_v34  ;;  %v4715_v35 = vld [vmem:[#allocation2 + $0x5c] sm:$0x1] }
 0x12b   : > { %v8415_v63 = vsel %vm7661_vm12, %v5609_v57, %v5610_v41  ;;  %v4852_v42 = vshll.u32 %v4711_v39, 16  ;;  %v4856_v28 = vshrl.u32 %v4711_v39, 16  ;;  %v4862_v33 = vshll.u32 %v4712_v27, 16  ;;  %7135 = vmatprep.mubr.msk.bf16.mxu1 %vm889_vm5, %v6647_v54  ;;  %v5500_v36 = vld [vmem:[#allocation2 + $0x48] sm:$0xe] }
 0x12c   : > { %v6753_v19 = vcombine.low %v8403_v55, %v8415_v63  ;;  %1901 = vst.msk [vmem:[#allocation3 + $0x28] sm:$0xff] %vm889_vm5, %v1869_v60  ;;  %v4845_v43 = vrot.slane %v4843_v2, 4  ;;  %v4848_v34 = vrot.slane %v4846_v56, 5  ;;  %v4867_v5 = vshrl.u32 %v4713_v31, 16  ;;  %v5501_v17 = vld [vmem:[#allocation2 + $0x4c] sm:$0xf] }
 0x12d   : > { %v2407_v61 = vld [vmem:[#allocation3 + $0x30] sm:$0xff]  ;;  %v4854_v9 = vrot.slane %v4852_v42, 5  ;;  %v4858_v50 = vrot.slane %v4856_v28, 4  ;;  %v4864_v14 = vrot.slane %v4862_v33, 5  ;;  %v4870_v30 = vshll.u32 %v4713_v31, 16  ;;  %v7309_v2 = vld [vmem:[#allocation2 + $0x9c] sm:$0xff]  }
 0x12e   : > { %7162 = vmatmul.mubr.msk.bf16.gmra.mxu0 %vm889_vm5, %v7307_v32  ;;  %v2439_v11 = vadd.f32 %v8358_v46, %v2407_v61  ;;  %v4849_v59 = vor.u32 %v4848_v34, %v4845_v43  ;;  %v4869_v54 = vrot.slane %v4867_v5, 4  ;;  %v4876_v38 = vshll.u32 %v4714_v25, 16  ;;  %v5502_v57 = vld [vmem:[#allocation2 + $0x50] sm:$0x1]  ;;  %v8429_v53 = vpop.f32.mrf.mxu0  ;;  %v5503_v60 = vld [vmem:[#allocation2 + $0x54] sm:$0xe] }
 0x12f   : > { %7165 = vmatprep.mubr.msk.bf16.mxu0 %vm889_vm5, %v7308_v45  ;;  %v4859_v4 = vor.u32 %v4858_v50, %v4854_v9  ;;  %v4872_v41 = vrot.slane %v4870_v30, 5  ;;  %v4880_v39 = vshrl.u32 %v4714_v25, 16  ;;  %v4886_v27 = vshll.u32 %v4715_v35, 16  ;;  %v1842_v45 = vld [vmem:[#allocation3 + $0x50] sm:$0xff]  ;;  %v5504_v50 = vld [vmem:[#allocation2 + $0x58] sm:$0xf] }
 0x130   : > { %v2405_v40 = vld [vmem:[#allocation3 + $0x20] sm:$0xff]  ;;  %2471 = vst.msk [vmem:[#allocation3 + $0x30] sm:$0xff] %vm889_vm5, %v2439_v11  ;;  %v4850_v31 = vrot.slane %v4849_v59, 4  ;;  %v4878_v46 = vrot.slane %v4876_v38, 5  ;;  %v6737_v32 = vrot.slane %v5500_v36, 9  ;;  %v6985_v42 = vpop.f32.mrf.mxu1  ;;  %v8433_v35 = vpop.f32.mrf.mxu0  ;;  %v7310_v34 = vld [vmem:[#allocation2 + $0xa8] sm:$0xff]  }
 0x131   : > { %v2437_v23 = vadd.f32 %v2405_v40, %v8364_v49  ;;  %v4860_v56 = vrot.slane %v4859_v4, 4  ;;  %v2408_v28 = vld [vmem:[#allocation3 + $0x38] sm:$0xff]  ;;  %v4873_v33 = vor.u32 %v4872_v41, %v4869_v54  ;;  %v4882_v43 = vrot.slane %v4880_v39, 4  ;;  %v5505_v30 = vld [vmem:[#allocation2 + $0x5c] sm:$0x1] }
 0x132   : > { %v4888_v25 = vrot.slane %v4886_v27, 5  ;;  %v4855_v49 = vsel %vm7644_vm11, %v4850_v31, %v4854_v9  ;;  %v1874_v5 = vadd.f32 %v6985_v42, %v1842_v45  ;;  %v2440_v36 = vadd.f32 %v8388_v48, %v2408_v28  ;;  %7136 = vmatmul.mubr.msk.bf16.gmra.mxu1 %vm889_vm5, %v6648_v12  ;;  %v1737_v38 = vpop.f32.mrf.mxu1  ;;  %v1840_v40 = vld [vmem:[#allocation3 + $0x40] sm:$0xff]  ;;  %v4716_v41 = vld [vmem:[#allocation2 + $0x60] sm:$0xf]  ;;  %v1843_v27 = vld [vmem:[#allocation3 + $0x58] sm:$0xff] }
 0x133   : > { %2469 = vst.msk [vmem:[#allocation3 + $0x20] sm:$0xff] %vm889_vm5, %v2437_v23  ;;  %v5614_v61 = vrot.slane %v5501_v17, 5  ;;  %v4865_v11 = vsel %vm7644_vm11, %v4860_v56, %v4864_v14  ;;  %v4874_v59 = vrot.slane %v4873_v33, 4  ;;  %v4883_v54 = vor.u32 %v4882_v43, %v4878_v46  ;;  %v2406_v4 = vld [vmem:[#allocation3 + $0x28] sm:$0xff]  ;;  %7139 = vmatprep.mubr.msk.bf16.mxu1 %vm889_vm5, %v6649_v24  ;;  %v8458_v17 = vpop.f32.mrf.mxu0  ;;  %v4718_v42 = vld [vmem:[#allocation2 + $0x68] sm:$0x1] }
 0x134   : > { %v5617_v9 = vrot.slane %v5502_v57, 5  ;;  %v8449_v48 = vcombine.low %v4855_v49, %v4865_v11  ;;  %1906 = vst.msk [vmem:[#allocation3 + $0x50] sm:$0xff] %vm889_vm5, %v1874_v5  ;;  %2472 = vst.msk [vmem:[#allocation3 + $0x38] sm:$0xff] %vm889_vm5, %v2440_v36  ;;  %v1872_v7 = vadd.f32 %v1840_v40, %v1737_v38  ;;  %v2438_v1 = vadd.f32 %v2406_v4, %v8417_v13  ;;  %v4717_v14 = vld [vmem:[#allocation2 + $0x64] sm:$0xf]  ;;  %v6986_v39 = vpop.f32.mrf.mxu1  ;;  %v2823_v37 = vld [vmem:[#allocation3] sm:$0xff] }
 0x135   : > { %v8456_v12 = vsel %vm7661_vm12, %v6737_v32, %v5614_v61  ;;  %v4879_v22 = vsel %vm7644_vm11, %v4874_v59, %v4878_v46  ;;  %v4884_v10 = vrot.slane %v4883_v54, 4  ;;  %v5616_v24 = vrot.slane %v5614_v61, 4  ;;  %v4719_v28 = vld [vmem:[#allocation2 + $0x6c] sm:$0xf]  ;;  %v1841_v49 = vld [vmem:[#allocation3 + $0x48] sm:$0xff]  ;;  %v8481_v36 = vpop.f32.mrf.mxu0  ;;  %v7311_v59 = vld [vmem:[#allocation2 + $0xb4] sm:$0xff]  }
 0x136   : > { %v6738_v57 = vrot.slane %v5503_v60, 9  ;;  %7166 = vmatmul.mubr.msk.bf16.gmra.mxu0 %vm889_vm5, %v7309_v2  ;;  %1904 = vst.msk [vmem:[#allocation3 + $0x40] sm:$0xff] %vm889_vm5, %v1872_v7  ;;  %2470 = vst.msk [vmem:[#allocation3 + $0x28] sm:$0xff] %vm889_vm5, %v2438_v1  ;;  %v1875_v13 = vadd.f32 %v6986_v39, %v1843_v27  ;;  %v5621_v23 = vrot.slane %v5504_v50, 5  ;;  %v5624_v31 = vrot.slane %v5505_v30, 5  ;;  %v1740_v60 = vpop.f32.mrf.mxu1 }
 0x137   : > { %v4891_v32 = vshrl.u32 %v4716_v41, 16  ;;  %7169 = vmatprep.mubr.msk.bf16.mxu0 %vm889_vm5, %v7310_v34  ;;  %v4889_v46 = vsel %vm7644_vm11, %v4884_v10, %v4888_v25  ;;  %v8470_v56 = vsel %vm7661_vm12, %v5616_v24, %v5617_v9  ;;  %v4894_v2 = vshll.u32 %v4716_v41, 16  ;;  %v4720_v5 = vld [vmem:[#allocation2 + $0x70] sm:$0xf]  ;;  %v4721_v4 = vld [vmem:[#allocation2 + $0x74] sm:$0x1] }
 0x138   : > { %v4900_v45 = vshll.u32 %v4717_v14, 16  ;;  %v8472_v33 = vcombine.low %v4879_v22, %v4889_v46  ;;  %v6754_v43 = vcombine.low %v8456_v12, %v8470_v56  ;;  %1907 = vst.msk [vmem:[#allocation3 + $0x58] sm:$0xff] %vm889_vm5, %v1875_v13  ;;  %v8479_v34 = vsel %vm7661_vm12, %v6738_v57, %v5621_v23  ;;  %v7312_v41 = vld [vmem:[#allocation2 + $0xc0] sm:$0xff]   ;;  %v5518_v12 = vld [vmem:[#allocation2 + $0x90] sm:$0xe] }
 0x139   : > { %v5623_v25 = vrot.slane %v5621_v23, 4  ;;  %v1873_v61 = vadd.f32 %v1841_v49, %v1740_v60  ;;  %v4893_v50 = vrot.slane %v4891_v32, 4  ;;  %v4896_v30 = vrot.slane %v4894_v2, 5  ;;  %v5506_v39 = vld [vmem:[#allocation2 + $0x60] sm:$0xe] }
 0x13a   : > { %v8483_v11 = vrot.slane %v4900_v45, 5  ;;  %v4904_v38 = vshrl.u32 %v4717_v14, 16  ;;  %v4910_v40 = vshll.u32 %v4718_v42, 16  ;;  %v4915_v9 = vshrl.u32 %v4719_v28, 16  ;;  %7140 = vmatmul.mubr.msk.bf16.gmra.mxu1 %vm889_vm5, %v6650_v51  ;;  %v5507_v51 = vld [vmem:[#allocation2 + $0x64] sm:$0xf] }
 0x13b   : > { %v8487_v54 = vsel %vm7661_vm12, %v5623_v25, %v5624_v31  ;;  %v2411_v7 = vld [vmem:[#allocation3 + $0x50] sm:$0xff]  ;;  %1905 = vst.msk [vmem:[#allocation3 + $0x48] sm:$0xff] %vm889_vm5, %v1873_v61  ;;  %v4897_v22 = vor.u32 %v4896_v30, %v4893_v50  ;;  %v4918_v10 = vshll.u32 %v4719_v28, 16  ;;  %v4924_v24 = vshll.u32 %v4720_v5, 16  ;;  %7179 = vmatprep.mubr.msk.bf16.mxu1 %vm889_vm5, %v8316_v8 }
 0x13c   : > { %v6755_v1 = vcombine.low %v8479_v34, %v8487_v54  ;;  %v2443_v14 = vadd.f32 %v8429_v53, %v2411_v7  ;;  %v4906_v27 = vrot.slane %v4904_v38, 4  ;;  %v4912_v21 = vrot.slane %v4910_v40, 5  ;;  %v8499_v57 = vpop.f32.mrf.mxu0  ;;  %v1846_v42 = vld [vmem:[#allocation3 + $0x70] sm:$0xff] }
 0x13d   : > { %v4917_v26 = vrot.slane %v4915_v9, 4  ;;  %v2409_v13 = vld [vmem:[#allocation3 + $0x40] sm:$0xff]  ;;  %v4898_v23 = vrot.slane %v4897_v22, 4  ;;  %v4920_v31 = vrot.slane %v4918_v10, 5  ;;  %v8501_v32 = vrot.slane %v4924_v24, 5  ;;  %v6989_v60 = vpop.f32.mrf.mxu1 }
 0x13e   : > { %v4928_v46 = vshrl.u32 %v4720_v5, 16  ;;  %7170 = vmatmul.mubr.msk.bf16.gmra.mxu0 %vm889_vm5, %v7311_v59  ;;  %2475 = vst.msk [vmem:[#allocation3 + $0x50] sm:$0xff] %vm889_vm5, %v2443_v14  ;;  %v2441_v8 = vadd.f32 %v2409_v13, %v8433_v35  ;;  %v4907_v53 = vor.u32 %v4906_v27, %v8483_v11  ;;  %v4934_v2 = vshll.u32 %v4721_v4, 16  ;;  %v5508_v45 = vld [vmem:[#allocation2 + $0x68] sm:$0x1]  ;;  %v8507_v25 = vpop.f32.mrf.mxu0  ;;  %v1844_v9 = vld [vmem:[#allocation3 + $0x60] sm:$0xff] }
 0x13f   : > { %v6739_v28 = vrot.slane %v5506_v39, 9  ;;  %7173 = vmatprep.mubr.msk.bf16.mxu0 %vm889_vm5, %v7312_v41  ;;  %v4903_v49 = vsel %vm7644_vm11, %v4898_v23, %v8483_v11  ;;  %v1878_v5 = vadd.f32 %v6989_v60, %v1846_v42  ;;  %v2412_v61 = vld [vmem:[#allocation3 + $0x58] sm:$0xff]  ;;  %v4921_v50 = vor.u32 %v4920_v31, %v4917_v26  ;;  %v5509_v35 = vld [vmem:[#allocation2 + $0x6c] sm:$0xe]  ;;  %v1753_v4 = vpop.f32.mrf.mxu1 }
 0x140   : > { %v4930_v30 = vrot.slane %v4928_v46, 4  ;;  %2473 = vst.msk [vmem:[#allocation3 + $0x40] sm:$0xff] %vm889_vm5, %v2441_v8  ;;  %v4908_v59 = vrot.slane %v4907_v53, 4  ;;  %v2444_v38 = vadd.f32 %v8458_v17, %v2412_v61  ;;  %v4936_v40 = vrot.slane %v4934_v2, 5  ;;  %v8515_v22 = vpop.f32.mrf.mxu0  ;;  %v5510_v39 = vld [vmem:[#allocation2 + $0x70] sm:$0xf] }
 0x141   : > { %v5628_v7 = vrot.slane %v5507_v51, 5  ;;  %1910 = vst.msk [vmem:[#allocation3 + $0x70] sm:$0xff] %vm889_vm5, %v1878_v5  ;;  %v4922_v41 = vrot.slane %v4921_v50, 4  ;;  %v1876_v10 = vadd.f32 %v1844_v9, %v1753_v4  ;;  %v5631_v24 = vrot.slane %v5508_v45, 5  ;;  %v5511_v14 = vld [vmem:[#allocation2 + $0x74] sm:$0x1]  ;;  %v6990_v23 = vpop.f32.mrf.mxu1 }
 0x142   : > { %v4931_v11 = vor.u32 %v4930_v30, %v8501_v32  ;;  %v7313_v27 = vld [vmem:[#allocation2 + $0xcc] sm:$0xff]   ;;  %v4913_v26 = vsel %vm7644_vm11, %v4908_v59, %v4912_v21  ;;  %2476 = vst.msk [vmem:[#allocation3 + $0x58] sm:$0xff] %vm889_vm5, %v2444_v38  ;;  %v2410_v17 = vld [vmem:[#allocation3 + $0x48] sm:$0xff]  ;;  %v6740_v31 = vrot.slane %v5509_v35, 9  ;;  %v4722_v46 = vld [vmem:[#allocation2 + $0x78] sm:$0xf]  ;;  %7180 = vmatmul.mubr.msk.bf16.vlgmr.msra.gmra.mxu1 %vm889_vm5, %v8341_v0  ;;  %v8541_v50 = vpop.f32.mrf.mxu0 }
 0x143   : > { %v8524_v51 = vsel %vm7661_vm12, %v6739_v28, %v5628_v7  ;;  %v5630_v13 = vrot.slane %v5628_v7, 4  ;;  %v8528_v8 = vcombine.low %v4903_v49, %v4913_v26  ;;  %v4927_v21 = vsel %vm7644_vm11, %v4922_v41, %v8501_v32  ;;  %1908 = vst.msk [vmem:[#allocation3 + $0x60] sm:$0xff] %vm889_vm5, %v1876_v10  ;;  %v1847_v42 = vld [vmem:[#allocation3 + $0x78] sm:$0xff]  ;;  %v4723_v2 = vld [vmem:[#allocation2 + $0x7c] sm:$0xf]  ;;  %7183 = vmatprep.mubr.msk.bf16.mxu1 %vm889_vm5, %v8381_v47  ;;  %v1756_v5 = vpop.f32.mrf.mxu1  ;;  %v1845_v61 = vld [vmem:[#allocation3 + $0x68] sm:$0xff] }
 0x144   : > { %v4932_v53 = vrot.slane %v4931_v11, 4  ;;  %v2442_v60 = vadd.f32 %v2410_v17, %v8481_v36  ;;  %v1879_v0 = vadd.f32 %v6990_v23, %v1847_v42  ;;  %v5635_v28 = vrot.slane %v5510_v39, 5  ;;  %v4724_v32 = vld [vmem:[#allocation2 + $0x80] sm:$0x1]  ;;  %v4725_v59 = vld [vmem:[#allocation2 + $0x84] sm:$0xf] }
 0x145   : > { %v8539_v45 = vsel %vm7661_vm12, %v5630_v13, %v5631_v24  ;;  %v5638_v49 = vrot.slane %v5511_v14, 5  ;;  %v1877_v30 = vadd.f32 %v1845_v61, %v1756_v5  ;;  %v4939_v35 = vshrl.u32 %v4722_v46, 16 }
 0x146   : > { %v4937_v36 = vsel %vm7644_vm11, %v4932_v53, %v4936_v40  ;;  %2474 = vst.msk [vmem:[#allocation3 + $0x48] sm:$0xff] %vm889_vm5, %v2442_v60  ;;  %v6756_v47 = vcombine.low %v8524_v51, %v8539_v45  ;;  %7174 = vmatmul.mubr.msk.bf16.gmra.mxu0 %vm889_vm5, %v7313_v27  ;;  %1911 = vst.msk [vmem:[#allocation3 + $0x78] sm:$0xff] %vm889_vm5, %v1879_v0  ;;  %v8554_v4 = vsel %vm7661_vm12, %v6740_v31, %v5635_v28  ;;  %v4726_v27 = vld [vmem:[#allocation2 + $0x88] sm:$0xf]  ;;  %vm6258_vm13 = vcmask 25600  }
 0x147   : > { %v8549_v38 = vcombine.low %v4927_v21, %v4937_v36  ;;  %v5637_v9 = vrot.slane %v5635_v28, 4  ;;  %v4942_v40 = vshll.u32 %v4722_v46, 16  ;;  %7213 = vmatprep.mubr.msk.bf16.mxu0 %vm889_vm5, %v6750_v62  ;;  %1909 = vst.msk [vmem:[#allocation3 + $0x68] sm:$0xff] %vm889_vm5, %v1877_v30  ;;  %v4941_v7 = vrot.slane %v4939_v35, 4  ;;  %v1850_v31 = vld [vmem:[#allocation3 + $0x90] sm:$0xff] }
 0x148   : > { %v4948_v41 = vshll.u32 %v4723_v2, 16  ;;  %v4952_v11 = vshrl.u32 %v4723_v2, 16  ;;  %v4958_v10 = vshll.u32 %v4724_v32, 16  ;;  %v2415_v24 = vld [vmem:[#allocation3 + $0x70] sm:$0xff]  ;;  %v4963_v26 = vshrl.u32 %v4725_v59, 16  ;;  %v8565_v13 = vpop.f32.mrf.mxu0 }
 0x149   : > { %v8563_v39 = vsel %vm7661_vm12, %v5637_v9, %v5638_v49  ;;  %v4944_v14 = vrot.slane %v4942_v40, 5  ;;  %v4966_v17 = vshll.u32 %v4725_v59, 16  ;;  %v2447_v18 = vadd.f32 %v8499_v57, %v2415_v24  ;;  %v4727_v46 = vld [vmem:[#allocation2 + $0x8c] sm:$0x1]  ;;  %v6993_v42 = vpop.f32.mrf.mxu1  ;;  %v5512_v28 = vld [vmem:[#allocation2 + $0x78] sm:$0xe] }
 0x14a   : > { %v6757_v52 = vcombine.low %v8554_v4, %v8563_v39  ;;  %v4950_v62 = vrot.slane %v4948_v41, 5  ;;  %v4954_v23 = vrot.slane %v4952_v11, 4  ;;  %v2413_v21 = vld [vmem:[#allocation3 + $0x60] sm:$0xff]  ;;  %v4960_v60 = vrot.slane %v4958_v10, 5  ;;  %v8570_v49 = vpop.f32.mrf.mxu0  ;;  %7184 = vmatmul.mubr.msk.bf16.gmra.mxu1 %vm889_vm5, %v8395_v6  ;;  %v5514_v24 = vld [vmem:[#allocation2 + $0x80] sm:$0x1] }
 0x14b   : > { %v4945_v53 = vor.u32 %v4944_v14, %v4941_v7  ;;  %v4965_v2 = vrot.slane %v4963_v26, 4  ;;  %v4968_v0 = vrot.slane %v4966_v17, 5  ;;  %2479 = vst.msk [vmem:[#allocation3 + $0x70] sm:$0xff] %vm889_vm5, %v2447_v18  ;;  %v2445_v57 = vadd.f32 %v2413_v21, %v8507_v25  ;;  %7187 = vmatprep.mubr.msk.bf16.mxu1 %vm889_vm5, %v8449_v48  ;;  %v1769_v9 = vpop.f32.mrf.mxu1  ;;  %v1848_v40 = vld [vmem:[#allocation3 + $0x80] sm:$0xff]  ;;  %v5524_v39 = vld [vmem:[#allocation2 + $0xa8] sm:$0xe] }
 0x14c   : > { %v4955_v5 = vor.u32 %v4954_v23, %v4950_v62  ;;  %v1882_v61 = vadd.f32 %v6993_v42, %v1850_v31  ;;  %v4972_v32 = vshll.u32 %v4726_v27, 16  ;;  %v4976_v35 = vshrl.u32 %v4726_v27, 16  ;;  %v5513_v7 = vld [vmem:[#allocation2 + $0x7c] sm:$0xf]  ;;  %v8578_v41 = vpop.f32.mrf.mxu0  ;;  %v5515_v31 = vld [vmem:[#allocation2 + $0x84] sm:$0xe] }
 0x14d   : > { %v4946_v36 = vrot.slane %v4945_v53, 4  ;;  %v4969_v30 = vor.u32 %v4968_v0, %v4965_v2  ;;  %v4982_v59 = vshll.u32 %v4727_v46, 16  ;;  %2477 = vst.msk [vmem:[#allocation3 + $0x60] sm:$0xff] %vm889_vm5, %v2445_v57  ;;  %v2416_v25 = vld [vmem:[#allocation3 + $0x78] sm:$0xff]  ;;  %v1880_v10 = vadd.f32 %v1848_v40, %v1769_v9  ;;  %v6994_v23 = vpop.f32.mrf.mxu1  ;;  %v5517_v46 = vld [vmem:[#allocation2 + $0x8c] sm:$0x1] }
 0x14e   : > { %v4956_v6 = vrot.slane %v4955_v5, 4  ;;  %1914 = vst.msk [vmem:[#allocation3 + $0x90] sm:$0xff] %vm889_vm5, %v1882_v61  ;;  %v4974_v11 = vrot.slane %v4972_v32, 5  ;;  %v6741_v14 = vrot.slane %v5512_v28, 9  ;;  %7214 = vmatmul.mubr.msk.bf16.vlgmr.msra.gmra.mxu0 %vm889_vm5, %v6751_v16  ;;  %v2448_v27 = vadd.f32 %v8515_v22, %v2416_v25  ;;  %v2414_v18 = vld [vmem:[#allocation3 + $0x68] sm:$0xff]  ;;  %v1851_v53 = vld [vmem:[#allocation3 + $0x98] sm:$0xff]  ;;  %v8602_v0 = vpop.f32.mrf.mxu0 }
 0x14f   : > { %v4951_v48 = vsel %vm7644_vm11, %v4946_v36, %v4950_v62  ;;  %v4970_v26 = vrot.slane %v4969_v30, 4  ;;  %v4978_v17 = vrot.slane %v4976_v35, 4  ;;  %7217 = vmatprep.mubr.msk.bf16.mxu0 %vm889_vm5, %v6752_v44  ;;  %v4984_v3 = vrot.slane %v4982_v59, 5  ;;  %1912 = vst.msk [vmem:[#allocation3 + $0x80] sm:$0xff] %vm889_vm5, %v1880_v10  ;;  %v5516_v22 = vld [vmem:[#allocation2 + $0x88] sm:$0xf]  ;;  %v1772_v42 = vpop.f32.mrf.mxu1 }
 0x150   : > { %v4961_v15 = vsel %vm7644_vm11, %v4956_v6, %v4960_v60  ;;  %v2446_v16 = vadd.f32 %v2414_v18, %v8541_v50  ;;  %v5642_v62 = vrot.slane %v5513_v7, 5  ;;  %2480 = vst.msk [vmem:[#allocation3 + $0x78] sm:$0xff] %vm889_vm5, %v2448_v27  ;;  %v5645_v44 = vrot.slane %v5514_v24, 5  ;;  %v4728_v60 = vld [vmem:[#allocation2 + $0x90] sm:$0xf]  ;;  %v1849_v61 = vld [vmem:[#allocation3 + $0x88] sm:$0xff] }
 0x151   : > { %v8597_v21 = vcombine.low %v4951_v48, %v4961_v15  ;;  %v4975_v29 = vsel %vm7644_vm11, %v4970_v26, %v4974_v11  ;;  %v4979_v20 = vor.u32 %v4978_v17, %v4974_v11  ;;  %v4729_v2 = vld [vmem:[#allocation2 + $0x94] sm:$0xf]  ;;  %v1883_v57 = vadd.f32 %v6994_v23, %v1851_v53  ;;  %v4730_v9 = vld [vmem:[#allocation2 + $0x98] sm:$0x1]  ;;  %v4731_v18 = vld [vmem:[#allocation2 + $0x9c] sm:$0xf] }
 0x152   : > { %2478 = vst.msk [vmem:[#allocation3 + $0x68] sm:$0xff] %vm889_vm5, %v2446_v16  ;;  %v8607_v50 = vsel %vm7661_vm12, %v6741_v14, %v5642_v62  ;;  %v5644_v28 = vrot.slane %v5642_v62, 4  ;;  %v6742_v5 = vrot.slane %v5515_v31, 9  ;;  %v5649_v36 = vrot.slane %v5516_v22, 5  ;;  %7188 = vmatmul.mubr.msk.bf16.gmra.mxu1 %vm889_vm5, %v8472_v33  ;;  %v1854_v14 = vld [vmem:[#allocation3 + $0xb0] sm:$0xff]  ;;  %v1856_v4 = vld [vmem:[#allocation3 + $0xc0] sm:$0xff] }
 0x153   : > { %v4980_v32 = vrot.slane %v4979_v20, 4  ;;  %v5652_v30 = vrot.slane %v5517_v46, 5  ;;  %v1881_v35 = vadd.f32 %v1849_v61, %v1772_v42  ;;  %1915 = vst.msk [vmem:[#allocation3 + $0x98] sm:$0xff] %vm889_vm5, %v1883_v57  ;;  %v4987_v40 = vshrl.u32 %v4728_v60, 16  ;;  %7191 = vmatprep.mubr.msk.bf16.mxu1 %vm889_vm5, %v8528_v8  ;;  %v4732_v23 = vld [vmem:[#allocation2 + $0xa0] sm:$0xf] }
 0x154   : > { %v8613_v59 = vsel %vm7661_vm12, %v5644_v28, %v5645_v44  ;;  %v4990_v7 = vshll.u32 %v4728_v60, 16  ;;  %v4996_v6 = vshll.u32 %v4729_v2, 16  ;;  %v8624_v10 = vsel %vm7661_vm12, %v6742_v5, %v5649_v36  ;;  %v8627_v48 = vpop.f32.mrf.mxu0 }
 0x155   : > { %v4985_v25 = vsel %vm7644_vm11, %v4980_v32, %v4984_v3  ;;  %v6758_v11 = vcombine.low %v8607_v50, %v8613_v59  ;;  %v2419_v33 = vld [vmem:[#allocation3 + $0x90] sm:$0xff]  ;;  %v5651_v24 = vrot.slane %v5649_v36, 4  ;;  %1913 = vst.msk [vmem:[#allocation3 + $0x88] sm:$0xff] %vm889_vm5, %v1881_v35  ;;  %v4989_v26 = vrot.slane %v4987_v40, 4  ;;  %v6997_v22 = vpop.f32.mrf.mxu1  ;;  %v5520_v35 = vld [vmem:[#allocation2 + $0x98] sm:$0x1] }
 0x156   : > { %v8629_v27 = vcombine.low %v4975_v29, %v4985_v25  ;;  %v2451_v8 = vadd.f32 %v8565_v13, %v2419_v33  ;;  %v4992_v17 = vrot.slane %v4990_v7, 5  ;;  %7218 = vmatmul.mubr.msk.bf16.gmra.mxu0 %vm889_vm5, %v6753_v19  ;;  %v2417_v15 = vld [vmem:[#allocation3 + $0x80] sm:$0xff]  ;;  %v8640_v3 = vrot.slane %v4996_v6, 5  ;;  %v4733_v13 = vld [vmem:[#allocation2 + $0xa4] sm:$0x1]  ;;  %v8650_v20 = vpop.f32.mrf.mxu0 }
 0x157   : > { %v8638_v31 = vsel %vm7661_vm12, %v5651_v24, %v5652_v30  ;;  %v5000_v16 = vshrl.u32 %v4729_v2, 16  ;;  %v5006_v62 = vshll.u32 %v4730_v9, 16  ;;  %7221 = vmatprep.mubr.msk.bf16.mxu0 %vm889_vm5, %v6754_v43  ;;  %v2449_v63 = vadd.f32 %v2417_v15, %v8570_v49  ;;  %v1852_v29 = vld [vmem:[#allocation3 + $0xa0] sm:$0xff]  ;;  %v1785_v2 = vpop.f32.mrf.mxu1  ;;  %v5519_v49 = vld [vmem:[#allocation2 + $0x94] sm:$0xf] }
 0x158   : > { %2483 = vst.msk [vmem:[#allocation3 + $0x90] sm:$0xff] %vm889_vm5, %v2451_v8  ;;  %v6759_v55 = vcombine.low %v8624_v10, %v8638_v31  ;;  %v4993_v19 = vor.u32 %v4992_v17, %v4989_v26  ;;  %v1886_v46 = vadd.f32 %v6997_v22, %v1854_v14  ;;  %v5011_v42 = vshrl.u32 %v4731_v18, 16  ;;  %v5521_v24 = vld [vmem:[#allocation2 + $0x9c] sm:$0xe]  ;;  %v8661_v14 = vpop.f32.mrf.mxu0 }
 0x159   : > { %v5002_v44 = vrot.slane %v5000_v16, 4  ;;  %v5008_v53 = vrot.slane %v5006_v62, 5  ;;  %v5014_v60 = vshll.u32 %v4731_v18, 16  ;;  %2481 = vst.msk [vmem:[#allocation3 + $0x80] sm:$0xff] %vm889_vm5, %v2449_v63  ;;  %v5020_v43 = vshll.u32 %v4732_v23, 16  ;;  %v6998_v9 = vpop.f32.mrf.mxu1  ;;  %v1855_v16 = vld [vmem:[#allocation3 + $0xb8] sm:$0xff] }
 0x15a   : > { %v4994_v56 = vrot.slane %v4993_v19, 4  ;;  %1918 = vst.msk [vmem:[#allocation3 + $0xb0] sm:$0xff] %vm889_vm5, %v1886_v46  ;;  %v5024_v28 = vshrl.u32 %v4732_v23, 16  ;;  %v5030_v57 = vshll.u32 %v4733_v13, 16  ;;  %v2420_v61 = vld [vmem:[#allocation3 + $0x98] sm:$0xff]  ;;  %v5013_v32 = vrot.slane %v5011_v42, 4  ;;  %7192 = vmatmul.mubr.msk.bf16.gmra.mxu1 %vm889_vm5, %v8549_v38 }
 0x15b   : > { %v5003_v5 = vor.u32 %v5002_v44, %v8640_v3  ;;  %v5016_v36 = vrot.slane %v5014_v60, 5  ;;  %v1884_v30 = vadd.f32 %v1852_v29, %v1785_v2  ;;  %v2452_v7 = vadd.f32 %v8578_v41, %v2420_v61  ;;  %7195 = vmatprep.mubr.msk.bf16.mxu1 %vm889_vm5, %v8597_v21  ;;  %v5522_v18 = vld [vmem:[#allocation2 + $0xa0] sm:$0xf]  ;;  %v5523_v62 = vld [vmem:[#allocation2 + $0xa4] sm:$0x1]  ;;  %v1788_v22 = vpop.f32.mrf.mxu1  ;;  %v8683_v44 = vpop.f32.mrf.mxu0 }
 0x15c   : > { %v4999_v40 = vsel %vm7644_vm11, %v4994_v56, %v8640_v3  ;;  %v5022_v6 = vrot.slane %v5020_v43, 5  ;;  %v5026_v25 = vrot.slane %v5024_v28, 4  ;;  %v2418_v33 = vld [vmem:[#allocation3 + $0x88] sm:$0xff]  ;;  %v5032_v17 = vrot.slane %v5030_v57, 5  ;;  %v4734_v19 = vld [vmem:[#allocation2 + $0xa8] sm:$0xf] }
 0x15d   : > { %v5004_v8 = vrot.slane %v5003_v5, 4  ;;  %v5017_v26 = vor.u32 %v5016_v36, %v5013_v32  ;;  %1916 = vst.msk [vmem:[#allocation3 + $0xa0] sm:$0xff] %vm889_vm5, %v1884_v30  ;;  %v2450_v38 = vadd.f32 %v2418_v33, %v8602_v0  ;;  %2484 = vst.msk [vmem:[#allocation3 + $0x98] sm:$0xff] %vm889_vm5, %v2452_v7  ;;  %v6743_v23 = vrot.slane %v5518_v12, 9  ;;  %v4736_v43 = vld [vmem:[#allocation2 + $0xb0] sm:$0x1] }
 0x15e   : > { %v5027_v41 = vor.u32 %v5026_v25, %v5022_v6  ;;  %v5656_v15 = vrot.slane %v5519_v49, 5  ;;  %v5659_v3 = vrot.slane %v5520_v35, 5  ;;  %7222 = vmatmul.mubr.msk.bf16.gmra.mxu0 %vm889_vm5, %v6755_v1  ;;  %v1887_v0 = vadd.f32 %v6998_v9, %v1855_v16  ;;  %v1853_v1 = vld [vmem:[#allocation3 + $0xa8] sm:$0xff]  ;;  %v4737_v57 = vld [vmem:[#allocation2 + $0xb4] sm:$0xf] }
 0x15f   : > { %v5009_v21 = vsel %vm7644_vm11, %v5004_v8, %v5008_v53  ;;  %v5018_v13 = vrot.slane %v5017_v26, 4  ;;  %2482 = vst.msk [vmem:[#allocation3 + $0x88] sm:$0xff] %vm889_vm5, %v2450_v38  ;;  %v6744_v63 = vrot.slane %v5521_v24, 9  ;;  %7225 = vmatprep.mubr.msk.bf16.mxu0 %vm889_vm5, %v6756_v47  ;;  %v5663_v60 = vrot.slane %v5522_v18, 5  ;;  %v4735_v47 = vld [vmem:[#allocation2 + $0xac] sm:$0xf] }
 0x160   : > { %v6711_v46 = vcombine.low %v4999_v40, %v5009_v21  ;;  %v5028_v29 = vrot.slane %v5027_v41, 4  ;;  %v8681_v34 = vsel %vm7661_vm12, %v6743_v23, %v5656_v15  ;;  %v5658_v54 = vrot.slane %v5656_v15, 4  ;;  %1919 = vst.msk [vmem:[#allocation3 + $0xb8] sm:$0xff] %vm889_vm5, %v1887_v0  ;;  %v4738_v33 = vld [vmem:[#allocation2 + $0xb8] sm:$0xf]  ;;  %v1858_v18 = vld [vmem:[#allocation3 + $0xd0] sm:$0xff] }
 0x161   : > { %v5023_v53 = vsel %vm7644_vm11, %v5018_v13, %v5022_v6  ;;  %v2423_v42 = vld [vmem:[#allocation3 + $0xb0] sm:$0xff]  ;;  %v5666_v51 = vrot.slane %v5523_v62, 5  ;;  %v1885_v45 = vadd.f32 %v1853_v1, %v1788_v22  ;;  %v5035_v28 = vshrl.u32 %v4734_v19, 16  ;;  %v4739_v41 = vld [vmem:[#allocation2 + $0xbc] sm:$0x1] }
 0x162   : > { %v5033_v2 = vsel %vm7644_vm11, %v5028_v29, %v5032_v17  ;;  %v8692_v12 = vsel %vm7661_vm12, %v5658_v54, %v5659_v3  ;;  %v2455_v56 = vadd.f32 %v8627_v48, %v2423_v42  ;;  %v8701_v61 = vsel %vm7661_vm12, %v6744_v63, %v5663_v60  ;;  %7196 = vmatmul.mubr.msk.bf16.gmra.mxu1 %vm889_vm5, %v8629_v27  ;;  %v5525_v54 = vld [vmem:[#allocation2 + $0xac] sm:$0xf]  ;;  %v5526_v1 = vld [vmem:[#allocation2 + $0xb0] sm:$0x1] }
 0x163   : > { %v8695_v49 = vcombine.low %v5023_v53, %v5033_v2  ;;  %v6760_v5 = vcombine.low %v8681_v34, %v8692_v12  ;;  %v5665_v32 = vrot.slane %v5663_v60, 4  ;;  %1917 = vst.msk [vmem:[#allocation3 + $0xa8] sm:$0xff] %vm889_vm5, %v1885_v45  ;;  %v5037_v36 = vrot.slane %v5035_v28, 4  ;;  %v8707_v40 = vpop.f32.mrf.mxu0  ;;  %7199 = vmatprep.mubr.msk.bf16.mxu1 %vm889_vm5, %v6711_v46 }
 0x164   : > { %2487 = vst.msk [vmem:[#allocation3 + $0xb0] sm:$0xff] %vm889_vm5, %v2455_v56  ;;  %v2421_v48 = vld [vmem:[#allocation3 + $0xa0] sm:$0xff]  ;;  %v5038_v30 = vshll.u32 %v4734_v19, 16  ;;  %v5044_v35 = vshll.u32 %v4735_v47, 16  ;;  %v5048_v9 = vshrl.u32 %v4735_v47, 16  ;;  %v5054_v25 = vshll.u32 %v4736_v43, 16  ;;  %v7001_v38 = vpop.f32.mrf.mxu1 }
 0x165   : > { %v8712_v7 = vsel %vm7661_vm12, %v5665_v32, %v5666_v51  ;;  %v2453_v6 = vadd.f32 %v2421_v48, %v8650_v20  ;;  %v5059_v27 = vshrl.u32 %v4737_v57, 16  ;;  %v8717_v23 = vpop.f32.mrf.mxu0  ;;  %v1890_v15 = vadd.f32 %v7001_v38, %v1858_v18  ;;  %v5527_v56 = vld [vmem:[#allocation2 + $0xb4] sm:$0xe]  ;;  %v1857_v38 = vld [vmem:[#allocation3 + $0xc8] sm:$0xff] }
 0x166   : > { %v6761_v24 = vcombine.low %v8701_v61, %v8712_v7  ;;  %v5040_v8 = vrot.slane %v5038_v30, 5  ;;  %v5046_v26 = vrot.slane %v5044_v35, 5  ;;  %v5050_v17 = vrot.slane %v5048_v9, 4  ;;  %7226 = vmatmul.mubr.msk.bf16.gmra.mxu0 %vm889_vm5, %v6757_v52  ;;  %v1801_v63 = vpop.f32.mrf.mxu1  ;;  %v1859_v48 = vld [vmem:[#allocation3 + $0xd8] sm:$0xff]  ;;  %v5529_v30 = vld [vmem:[#allocation2 + $0xbc] sm:$0x1] }
 0x167   : > { %2485 = vst.msk [vmem:[#allocation3 + $0xa0] sm:$0xff] %vm889_vm5, %v2453_v6  ;;  %v5056_v20 = vrot.slane %v5054_v25, 5  ;;  %v5061_v3 = vrot.slane %v5059_v27, 4  ;;  %v5062_v16 = vshll.u32 %v4737_v57, 16  ;;  %7229 = vmatprep.mubr.msk.bf16.mxu0 %vm889_vm5, %v6758_v11  ;;  %v2424_v21 = vld [vmem:[#allocation3 + $0xb8] sm:$0xff]  ;;  %v5068_v13 = vshll.u32 %v4738_v33, 16  ;;  %v8730_v50 = vpop.f32.mrf.mxu0 }
 0x168   : > { %v5041_v62 = vor.u32 %v5040_v8, %v5037_v36  ;;  %v5051_v22 = vor.u32 %v5050_v17, %v5046_v26  ;;  %v5072_v0 = vshrl.u32 %v4738_v33, 16  ;;  %1922 = vst.msk [vmem:[#allocation3 + $0xd0] sm:$0xff] %vm889_vm5, %v1890_v15  ;;  %v2456_v52 = vadd.f32 %v8661_v14, %v2424_v21  ;;  %v7002_v51 = vpop.f32.mrf.mxu1  ;;  %v5528_v36 = vld [vmem:[#allocation2 + $0xb8] sm:$0xf]  ;;  %v4740_v33 = vld [vmem:[#allocation2 + $0xc0] sm:$0xf] }
 0x169   : > { %v5064_v19 = vrot.slane %v5062_v16, 5  ;;  %v5078_v46 = vshll.u32 %v4739_v41, 16  ;;  %v1888_v29 = vadd.f32 %v1856_v4, %v1801_v63  ;;  %v5070_v53 = vrot.slane %v5068_v13, 5  ;;  %v4742_v16 = vld [vmem:[#allocation2 + $0xc8] sm:$0x1] }
 0x16a   : > { %v5042_v59 = vrot.slane %v5041_v62, 4  ;;  %v5052_v11 = vrot.slane %v5051_v22, 4  ;;  %v5074_v42 = vrot.slane %v5072_v0, 4  ;;  %v2422_v60 = vld [vmem:[#allocation3 + $0xa8] sm:$0xff]  ;;  %2488 = vst.msk [vmem:[#allocation3 + $0xb8] sm:$0xff] %vm889_vm5, %v2456_v52  ;;  %v6745_v2 = vrot.slane %v5524_v39, 9  ;;  %7200 = vmatmul.mubr.msk.bf16.gmra.mxu1 %vm889_vm5, %v8695_v49  ;;  %v1804_v35 = vpop.f32.mrf.mxu1  ;;  %v8742_v49 = vpop.f32.mrf.mxu0 }
 0x16b   : > { %v5065_v45 = vor.u32 %v5064_v19, %v5061_v3  ;;  %v5080_v47 = vrot.slane %v5078_v46, 5  ;;  %1920 = vst.msk [vmem:[#allocation3 + $0xc0] sm:$0xff] %vm889_vm5, %v1888_v29  ;;  %v2454_v14 = vadd.f32 %v2422_v60, %v8683_v44  ;;  %v5670_v32 = vrot.slane %v5525_v54, 5  ;;  %v4741_v3 = vld [vmem:[#allocation2 + $0xc4] sm:$0xf] }
 0x16c   : > { %v5047_v43 = vsel %vm7644_vm11, %v5042_v59, %v5046_v26  ;;  %v5057_v28 = vsel %vm7644_vm11, %v5052_v11, %v5056_v20  ;;  %v5075_v57 = vor.u32 %v5074_v42, %v5070_v53  ;;  %v5673_v44 = vrot.slane %v5526_v1, 5  ;;  %v4743_v21 = vld [vmem:[#allocation2 + $0xcc] sm:$0xf]  ;;  %v4744_v59 = vld [vmem:[#allocation2 + $0xd0] sm:$0xf] }
 0x16d   : > { %v6713_v9 = vcombine.low %v5047_v43, %v5057_v28  ;;  %v5066_v6 = vrot.slane %v5065_v45, 4  ;;  %2486 = vst.msk [vmem:[#allocation3 + $0xa8] sm:$0xff] %vm889_vm5, %v2454_v14  ;;  %v1891_v25 = vadd.f32 %v7002_v51, %v1859_v48  ;;  %v8746_v8 = vsel %vm7661_vm12, %v6745_v2, %v5670_v32  ;;  %v1862_v1 = vld [vmem:[#allocation3 + $0xf0] sm:$0xff]  ;;  %v5530_v14 = vld [vmem:[#allocation2 + $0xc0] sm:$0xe] }
 0x16e   : > { %v5076_v27 = vrot.slane %v5075_v57, 4  ;;  %v5672_v26 = vrot.slane %v5670_v32, 4  ;;  %v6746_v17 = vrot.slane %v5527_v56, 9  ;;  %7230 = vmatmul.mubr.msk.bf16.gmra.mxu0 %vm889_vm5, %v6759_v55  ;;  %v5677_v41 = vrot.slane %v5528_v36, 5  ;;  %v5531_v57 = vld [vmem:[#allocation2 + $0xc4] sm:$0xf] }
 0x16f   : > { %7203 = vmatprep.mubr.msk.bf16.mxu1 %vm889_vm5, %v6713_v9  ;;  %v5071_v18 = vsel %vm7644_vm11, %v5066_v6, %v5070_v53  ;;  %1923 = vst.msk [vmem:[#allocation3 + $0xd8] sm:$0xff] %vm889_vm5, %v1891_v25  ;;  %v5680_v20 = vrot.slane %v5529_v30, 5  ;;  %v1889_v15 = vadd.f32 %v1857_v38, %v1804_v35  ;;  %7233 = vmatprep.mubr.msk.bf16.mxu0 %vm889_vm5, %v6760_v5  ;;  %v2427_v55 = vld [vmem:[#allocation3 + $0xd0] sm:$0xff]  ;;  %v5083_v62 = vshrl.u32 %v4740_v33, 16  ;;  %v1860_v6 = vld [vmem:[#allocation3 + $0xe0] sm:$0xff] }
 0x170   : > { %v5081_v10 = vsel %vm7644_vm11, %v5076_v27, %v5080_v47  ;;  %v5674_v31 = vsel %vm7661_vm12, %v5672_v26, %v5673_v44  ;;  %v5086_v22 = vshll.u32 %v4740_v33, 16  ;;  %v2459_v63 = vadd.f32 %v8707_v40, %v2427_v55  ;;  %v8771_v12 = vpop.f32.mrf.mxu0  ;;  %v4745_v47 = vld [vmem:[#allocation2 + $0xd4] sm:$0x1]  ;;  %v5534_v61 = vld [vmem:[#allocation2 + $0xd0] sm:$0xf] }
 0x171   : > { %v6714_v13 = vcombine.low %v5071_v18, %v5081_v10  ;;  %v6762_v0 = vcombine.low %v8746_v8, %v5674_v31  ;;  %v8768_v34 = vsel %vm7661_vm12, %v6746_v17, %v5677_v41  ;;  %1921 = vst.msk [vmem:[#allocation3 + $0xc8] sm:$0xff] %vm889_vm5, %v1889_v15  ;;  %v5679_v5 = vrot.slane %v5677_v41, 4  ;;  %v7005_v40 = vpop.f32.mrf.mxu1  ;;  %v5532_v8 = vld [vmem:[#allocation2 + $0xc8] sm:$0x1]  ;;  %v5533_v17 = vld [vmem:[#allocation2 + $0xcc] sm:$0xe] }
 0x172   : > { %v2425_v4 = vld [vmem:[#allocation3 + $0xc0] sm:$0xff]  ;;  %v5085_v39 = vrot.slane %v5083_v62, 4  ;;  %v5088_v52 = vrot.slane %v5086_v22, 5  ;;  %v5092_v19 = vshll.u32 %v4741_v3, 16  ;;  %2491 = vst.msk [vmem:[#allocation3 + $0xd0] sm:$0xff] %vm889_vm5, %v2459_v63  ;;  %v5096_v29 = vshrl.u32 %v4741_v3, 16  ;;  %v8775_v53 = vpop.f32.mrf.mxu0 }
 0x173   : > { %v2457_v46 = vadd.f32 %v2425_v4, %v8717_v23  ;;  %v5102_v54 = vshll.u32 %v4742_v16, 16  ;;  %v5107_v11 = vshrl.u32 %v4743_v21, 16  ;;  %7204 = vmatmul.mubr.msk.bf16.gmra.mxu1 %vm889_vm5, %v6714_v13  ;;  %v8780_v42 = vsel %vm7661_vm12, %v5679_v5, %v5680_v20  ;;  %v1817_v28 = vpop.f32.mrf.mxu1  ;;  %v5535_v13 = vld [vmem:[#allocation2 + $0xd4] sm:$0x1] }
 0x174   : > { %v5089_v60 = vor.u32 %v5088_v52, %v5085_v39  ;;  %v5094_v51 = vrot.slane %v5092_v19, 5  ;;  %v1894_v45 = vadd.f32 %v7005_v40, %v1862_v1  ;;  %v6763_v23 = vcombine.low %v8768_v34, %v8780_v42  ;;  %v8785_v32 = vpop.f32.mrf.mxu0 }
 0x175   : > { %2489 = vst.msk [vmem:[#allocation3 + $0xc0] sm:$0xff] %vm889_vm5, %v2457_v46  ;;  %v5098_v2 = vrot.slane %v5096_v29, 4  ;;  %v5104_v56 = vrot.slane %v5102_v54, 5  ;;  %v5109_v43 = vrot.slane %v5107_v11, 4  ;;  %v5110_v30 = vshll.u32 %v4743_v21, 16  ;;  %v7006_v26 = vpop.f32.mrf.mxu1  ;;  %v1863_v21 = vld [vmem:[#allocation3 + $0xf8] sm:$0xff] }
 0x176   : > { %v5090_v48 = vrot.slane %v5089_v60, 4  ;;  %1926 = vst.msk [vmem:[#allocation3 + $0xf0] sm:$0xff] %vm889_vm5, %v1894_v45  ;;  %v2428_v36 = vld [vmem:[#allocation3 + $0xd8] sm:$0xff]  ;;  %v5116_v35 = vshll.u32 %v4744_v59, 16  ;;  %v5120_v9 = vshrl.u32 %v4744_v59, 16  ;;  %7234 = vmatmul.mubr.msk.bf16.gmra.mxu0 %vm889_vm5, %v6761_v24  ;;  %v5126_v33 = vshll.u32 %v4745_v47, 16  ;;  %v8796_v7 = vpop.f32.mrf.mxu0 }
 0x177   : > { %v5099_v44 = vor.u32 %v5098_v2, %v5094_v51  ;;  %v2460_v25 = vadd.f32 %v8730_v50, %v2428_v36  ;;  %v1892_v27 = vadd.f32 %v1860_v6, %v1817_v28  ;;  %7237 = vmatprep.mubr.msk.bf16.mxu0 %vm889_vm5, %v6762_v0  ;;  %v5112_v18 = vrot.slane %v5110_v30, 5  ;;  %v1820_v10 = vpop.f32.mrf.mxu1  ;;  %v1861_v11 = vld [vmem:[#allocation3 + $0xe8] sm:$0xff]  ;;  %v2825_v2 = vld [vmem:[#allocation3 + $0x10] sm:$0xff]  ;;  %v2826_v30 = vld [vmem:[#allocation3 + $0x18] sm:$0xff] }
 0x178   : > { %v5095_v38 = vsel %vm7644_vm11, %v5090_v48, %v5094_v51  ;;  %v5118_v41 = vrot.slane %v5116_v35, 5  ;;  %v5122_v20 = vrot.slane %v5120_v9, 4  ;;  %v2426_v15 = vld [vmem:[#allocation3 + $0xc8] sm:$0xff]  ;;  %v5128_v50 = vrot.slane %v5126_v33, 5 }
 0x179   : > { %v5100_v24 = vrot.slane %v5099_v44, 4  ;;  %2492 = vst.msk [vmem:[#allocation3 + $0xd8] sm:$0xff] %vm889_vm5, %v2460_v25  ;;  %1924 = vst.msk [vmem:[#allocation3 + $0xe0] sm:$0xff] %vm889_vm5, %v1892_v27  ;;  %v2458_v3 = vadd.f32 %v2426_v15, %v8742_v49  ;;  %v6747_v16 = vrot.slane %v5530_v14, 9  ;;  %v5113_v31 = vor.u32 %v5112_v18, %v5109_v43  ;;  %v7045_v39 = vpop.f32.mrf.mxu1  ;;  %v2824_v25 = vld [vmem:[#allocation3 + $0x8] sm:$0xff] }
 0x17a   : > { %v5123_v55 = vor.u32 %v5122_v20, %v5118_v41  ;;  %v5684_v62 = vrot.slane %v5531_v57, 5  ;;  %v5687_v22 = vrot.slane %v5532_v8, 5  ;;  %v1895_v63 = vadd.f32 %v7006_v26, %v1863_v21  ;;  %v8804_v46 = vpop.f32.mrf.mxu0  ;;  %v2829_v26 = vld [vmem:[#allocation3 + $0x30] sm:$0xff]  ;;  %v2827_v20 = vld [vmem:[#allocation3 + $0x20] sm:$0xff] }
 0x17b   : > { %v5105_v0 = vsel %vm7644_vm11, %v5100_v24, %v5104_v56  ;;  %2490 = vst.msk [vmem:[#allocation3 + $0xc8] sm:$0xff] %vm889_vm5, %v2458_v3  ;;  %v6748_v5 = vrot.slane %v5533_v17, 9  ;;  %v5691_v4 = vrot.slane %v5534_v61, 5  ;;  %v5114_v19 = vrot.slane %v5113_v31, 4  ;;  %v2696_v60 = vpop.f32.mrf.mxu1  ;;  %v2830_v3 = vld [vmem:[#allocation3 + $0x38] sm:$0xff] }
 0x17c   : > { %v6715_v52 = vcombine.low %v5095_v38, %v5105_v0  ;;  %v5124_v49 = vrot.slane %v5123_v55, 4  ;;  %v5685_v29 = vsel %vm7661_vm12, %v6747_v16, %v5684_v62  ;;  %v5686_v54 = vrot.slane %v5684_v62, 4  ;;  %1927 = vst.msk [vmem:[#allocation3 + $0xf8] sm:$0xff] %vm889_vm5, %v1895_v63  ;;  %v3486_v56 = vpop.f32.mrf.mxu0 }
 0x17d   : > { %v2431_v40 = vld [vmem:[#allocation3 + $0xf0] sm:$0xff]  ;;  %v5693_v1 = vrot.slane %v5691_v4, 4  ;;  %v5694_v59 = vrot.slane %v5535_v13, 5  ;;  %v5119_v51 = vsel %vm7644_vm11, %v5114_v19, %v5118_v41  ;;  %v1893_v14 = vadd.f32 %v1861_v11, %v1820_v10  ;;  %v7046_v36 = vpop.f32.mrf.mxu1  ;;  %v2828_v13 = vld [vmem:[#allocation3 + $0x28] sm:$0xff] }
 0x17e   : > { %7207 = vmatprep.mubr.msk.bf16.mxu1 %vm889_vm5, %v6715_v52  ;;  %v5129_v45 = vsel %vm7644_vm11, %v5124_v49, %v5128_v50  ;;  %v2463_v47 = vadd.f32 %v8771_v12, %v2431_v40  ;;  %7238 = vmatmul.mubr.msk.bf16.gmra.mxu0 %vm889_vm5, %v6763_v23  ;;  %v5688_v28 = vsel %vm7661_vm12, %v5686_v54, %v5687_v22  ;;  %v7080_v9 = vpop.f32.mrf.mxu0  ;;  %v2833_v52 = vld [vmem:[#allocation3 + $0x50] sm:$0xff]  ;;  %v2831_v54 = vld [vmem:[#allocation3 + $0x40] sm:$0xff] }
 0x17f   : > { %v6716_v43 = vcombine.low %v5119_v51, %v5129_v45  ;;  %v5692_v57 = vsel %vm7661_vm12, %v6748_v5, %v5691_v4  ;;  %v2857_v48 = vadd.f32 %v7045_v39, %v2825_v2  ;;  %v6764_v12 = vcombine.low %v5685_v29, %v5688_v28  ;;  %1925 = vst.msk [vmem:[#allocation3 + $0xe8] sm:$0xff] %vm889_vm5, %v1893_v14  ;;  %v2699_v44 = vpop.f32.mrf.mxu1  ;;  %v2834_v51 = vld [vmem:[#allocation3 + $0x58] sm:$0xff] }
 0x180   : > { %2495 = vst.msk [vmem:[#allocation3 + $0xf0] sm:$0xff] %vm889_vm5, %v2463_v47  ;;  %v5695_v35 = vsel %vm7661_vm12, %v5693_v1, %v5694_v59  ;;  %v2429_v34 = vld [vmem:[#allocation3 + $0xe0] sm:$0xff]  ;;  %v2855_v42 = vadd.f32 %v2823_v37, %v2696_v60  ;;  %v2858_v23 = vadd.f32 %v7046_v36, %v2826_v30  ;;  %v2856_v58 = vadd.f32 %v2824_v25, %v2699_v44  ;;  %v3489_v33 = vpop.f32.mrf.mxu0  ;;  %v2837_v30 = vld [vmem:[#allocation3 + $0x70] sm:$0xff] }
 0x181   : > { %7208 = vmatmul.mubr.msk.bf16.gmra.mxu1 %vm889_vm5, %v6716_v43  ;;  %v2461_v6 = vadd.f32 %v2429_v34, %v8775_v53  ;;  %2889 = vst.msk [vmem:[#allocation3 + $0x10] sm:$0xff] %vm889_vm5, %v2857_v48  ;;  %7241 = vmatprep.mubr.msk.bf16.mxu0 %vm889_vm5, %v6764_v12  ;;  %v6765_v27 = vcombine.low %v5692_v57, %v5695_v35  ;;  %v7049_v8 = vpop.f32.mrf.mxu1  ;;  %v2832_v43 = vld [vmem:[#allocation3 + $0x48] sm:$0xff] }
 0x182   : > { %2887 = vst.msk [vmem:[#allocation3] sm:$0xff] %vm889_vm5, %v2855_v42  ;;  %2890 = vst.msk [vmem:[#allocation3 + $0x18] sm:$0xff] %vm889_vm5, %v2858_v23  ;;  %v2861_v53 = vadd.f32 %v7049_v8, %v2829_v26  ;;  %v7083_v38 = vpop.f32.mrf.mxu0 }
 0x183   : > { %2493 = vst.msk [vmem:[#allocation3 + $0xe0] sm:$0xff] %vm889_vm5, %v2461_v6  ;;  %v2432_v17 = vld [vmem:[#allocation3 + $0xf8] sm:$0xff]  ;;  %2888 = vst.msk [vmem:[#allocation3 + $0x8] sm:$0xff] %vm889_vm5, %v2856_v58  ;;  %v2712_v41 = vpop.f32.mrf.mxu1 }
 0x184   : > { %v2464_v18 = vadd.f32 %v8785_v32, %v2432_v17  ;;  %2893 = vst.msk [vmem:[#allocation3 + $0x30] sm:$0xff] %vm889_vm5, %v2861_v53  ;;  %v2859_v15 = vadd.f32 %v2827_v20, %v2712_v41  ;;  %v3502_v61 = vpop.f32.mrf.mxu0 }
 0x185   : > { %v7050_v50 = vpop.f32.mrf.mxu1 }
 0x186   : > { %7242 = vmatmul.mubr.msk.bf16.gmra.mxu0 %vm889_vm5, %v6765_v27  ;;  %2496 = vst.msk [vmem:[#allocation3 + $0xf8] sm:$0xff] %vm889_vm5, %v2464_v18  ;;  %v2430_v24 = vld [vmem:[#allocation3 + $0xe8] sm:$0xff]  ;;  %2891 = vst.msk [vmem:[#allocation3 + $0x20] sm:$0xff] %vm889_vm5, %v2859_v15  ;;  %v2862_v31 = vadd.f32 %v7050_v50, %v2830_v3  ;;  %v7084_v32 = vpop.f32.mrf.mxu0  ;;  %v2838_v27 = vld [vmem:[#allocation3 + $0x78] sm:$0xff] }
 0x187   : > { %v2462_v16 = vadd.f32 %v2430_v24, %v8796_v7  ;;  %v2715_v21 = vpop.f32.mrf.mxu1  ;;  %v2836_v18 = vld [vmem:[#allocation3 + $0x68] sm:$0xff]  ;;  %v2841_v50 = vld [vmem:[#allocation3 + $0x90] sm:$0xff] }
 0x188   : > { %v3615_v10 = vld [vmem:[#allocation3 + $0x10] sm:$0xff]  ;;  %2894 = vst.msk [vmem:[#allocation3 + $0x38] sm:$0xff] %vm889_vm5, %v2862_v31  ;;  %v2860_v5 = vadd.f32 %v2828_v13, %v2715_v21  ;;  %v3505_v4 = vpop.f32.mrf.mxu0 }
 0x189   : > { %v3647_v55 = vadd.f32 %v8804_v46, %v3615_v10  ;;  %v3613_v62 = vld [vmem:[#allocation3] sm:$0xff]  ;;  %v3616_v22 = vld [vmem:[#allocation3 + $0x18] sm:$0xff]  ;;  %2494 = vst.msk [vmem:[#allocation3 + $0xe8] sm:$0xff] %vm889_vm5, %v2462_v16  ;;  %v7053_v39 = vpop.f32.mrf.mxu1 }
 0x18a   : > { %v3645_v0 = vadd.f32 %v3613_v62, %v3486_v56  ;;  %v3648_v63 = vadd.f32 %v7080_v9, %v3616_v22  ;;  %v3614_v7 = vld [vmem:[#allocation3 + $0x8] sm:$0xff]  ;;  %2892 = vst.msk [vmem:[#allocation3 + $0x28] sm:$0xff] %vm889_vm5, %v2860_v5  ;;  %v2865_v49 = vadd.f32 %v7053_v39, %v2833_v52  ;;  %v2835_v9 = vld [vmem:[#allocation3 + $0x60] sm:$0xff] }
 0x18b   : > { %3679 = vst.msk [vmem:[#allocation3 + $0x10] sm:$0xff] %vm889_vm5, %v3647_v55  ;;  %v3646_v19 = vadd.f32 %v3614_v7, %v3489_v33  ;;  %v3619_v46 = vld [vmem:[#allocation3 + $0x30] sm:$0xff]  ;;  %v2728_v29 = vpop.f32.mrf.mxu1  ;;  %v2839_v55 = vld [vmem:[#allocation3 + $0x80] sm:$0xff] }
 0x18c   : > { %3677 = vst.msk [vmem:[#allocation3] sm:$0xff] %vm889_vm5, %v3645_v0  ;;  %3680 = vst.msk [vmem:[#allocation3 + $0x18] sm:$0xff] %vm889_vm5, %v3648_v63  ;;  %v3651_v40 = vadd.f32 %v7083_v38, %v3619_v46  ;;  %v2863_v1 = vadd.f32 %v2831_v54, %v2728_v29  ;;  %v7087_v59 = vpop.f32.mrf.mxu0  ;;  %v2842_v63 = vld [vmem:[#allocation3 + $0x98] sm:$0xff] }
 0x18d   : > { %3678 = vst.msk [vmem:[#allocation3 + $0x8] sm:$0xff] %vm889_vm5, %v3646_v19  ;;  %2897 = vst.msk [vmem:[#allocation3 + $0x50] sm:$0xff] %vm889_vm5, %v2865_v49  ;;  %v3617_v11 = vld [vmem:[#allocation3 + $0x20] sm:$0xff]  ;;  %v7054_v60 = vpop.f32.mrf.mxu1  ;;  %v2840_v19 = vld [vmem:[#allocation3 + $0x88] sm:$0xff] }
 0x18e   : > { %3683 = vst.msk [vmem:[#allocation3 + $0x30] sm:$0xff] %vm889_vm5, %v3651_v40  ;;  %v3649_v45 = vadd.f32 %v3617_v11, %v3502_v61  ;;  %2895 = vst.msk [vmem:[#allocation3 + $0x40] sm:$0xff] %vm889_vm5, %v2863_v1  ;;  %v2866_v47 = vadd.f32 %v7054_v60, %v2834_v51  ;;  %v3518_v14 = vpop.f32.mrf.mxu0  ;;  %v2845_v1 = vld [vmem:[#allocation3 + $0xb0] sm:$0xff] }
 0x18f   : > { %v3620_v2 = vld [vmem:[#allocation3 + $0x38] sm:$0xff]  ;;  %v2731_v56 = vpop.f32.mrf.mxu1 }
 0x190   : > { %3681 = vst.msk [vmem:[#allocation3 + $0x20] sm:$0xff] %vm889_vm5, %v3649_v45  ;;  %v3652_v28 = vadd.f32 %v7084_v32, %v3620_v2  ;;  %2898 = vst.msk [vmem:[#allocation3 + $0x58] sm:$0xff] %vm889_vm5, %v2866_v47  ;;  %v2864_v57 = vadd.f32 %v2832_v43, %v2731_v56  ;;  %v7088_v48 = vpop.f32.mrf.mxu0  ;;  %v2843_v47 = vld [vmem:[#allocation3 + $0xa0] sm:$0xff] }
 0x191   : > { %v3618_v37 = vld [vmem:[#allocation3 + $0x28] sm:$0xff]  ;;  %v7057_v36 = vpop.f32.mrf.mxu1 }
 0x192   : > { %3684 = vst.msk [vmem:[#allocation3 + $0x38] sm:$0xff] %vm889_vm5, %v3652_v28  ;;  %v3650_v12 = vadd.f32 %v3618_v37, %v3505_v4  ;;  %2896 = vst.msk [vmem:[#allocation3 + $0x48] sm:$0xff] %vm889_vm5, %v2864_v57  ;;  %v2869_v35 = vadd.f32 %v7057_v36, %v2837_v30  ;;  %v3521_v34 = vpop.f32.mrf.mxu0  ;;  %v2846_v57 = vld [vmem:[#allocation3 + $0xb8] sm:$0xff] }
 0x193   : > { %v2744_v23 = vpop.f32.mrf.mxu1 }
 0x194   : > { %v3623_v42 = vld [vmem:[#allocation3 + $0x50] sm:$0xff]  ;;  %3682 = vst.msk [vmem:[#allocation3 + $0x28] sm:$0xff] %vm889_vm5, %v3650_v12  ;;  %2901 = vst.msk [vmem:[#allocation3 + $0x70] sm:$0xff] %vm889_vm5, %v2869_v35  ;;  %v2867_v44 = vadd.f32 %v2835_v9, %v2744_v23  ;;  %v7091_v25 = vpop.f32.mrf.mxu0  ;;  %v2844_v35 = vld [vmem:[#allocation3 + $0xa8] sm:$0xff] }
 0x195   : > { %v3655_v6 = vadd.f32 %v7087_v59, %v3623_v42  ;;  %v3621_v58 = vld [vmem:[#allocation3 + $0x40] sm:$0xff]  ;;  %v7058_v33 = vpop.f32.mrf.mxu1 }
 0x196   : > { %v3653_v8 = vadd.f32 %v3621_v58, %v3518_v14  ;;  %2899 = vst.msk [vmem:[#allocation3 + $0x60] sm:$0xff] %vm889_vm5, %v2867_v44  ;;  %v2870_v26 = vadd.f32 %v7058_v33, %v2838_v27  ;;  %v3534_v17 = vpop.f32.mrf.mxu0  ;;  %v2849_v44 = vld [vmem:[#allocation3 + $0xd0] sm:$0xff] }
 0x197   : > { %3687 = vst.msk [vmem:[#allocation3 + $0x50] sm:$0xff] %vm889_vm5, %v3655_v6  ;;  %v3624_v53 = vld [vmem:[#allocation3 + $0x58] sm:$0xff]  ;;  %v2747_v38 = vpop.f32.mrf.mxu1 }
 0x198   : > { %3685 = vst.msk [vmem:[#allocation3 + $0x40] sm:$0xff] %vm889_vm5, %v3653_v8  ;;  %v3656_v41 = vadd.f32 %v7088_v48, %v3624_v53  ;;  %2902 = vst.msk [vmem:[#allocation3 + $0x78] sm:$0xff] %vm889_vm5, %v2870_v26  ;;  %v2868_v20 = vadd.f32 %v2836_v18, %v2747_v38  ;;  %v7092_v15 = vpop.f32.mrf.mxu0  ;;  %v2847_v26 = vld [vmem:[#allocation3 + $0xc0] sm:$0xff] }
 0x199   : > { %v3622_v61 = vld [vmem:[#allocation3 + $0x48] sm:$0xff]  ;;  %v7061_v24 = vpop.f32.mrf.mxu1 }
 0x19a   : > { %3688 = vst.msk [vmem:[#allocation3 + $0x58] sm:$0xff] %vm889_vm5, %v3656_v41  ;;  %v3654_v3 = vadd.f32 %v3622_v61, %v3521_v34  ;;  %2900 = vst.msk [vmem:[#allocation3 + $0x68] sm:$0xff] %vm889_vm5, %v2868_v20  ;;  %v2873_v16 = vadd.f32 %v7061_v24, %v2841_v50  ;;  %v3537_v10 = vpop.f32.mrf.mxu0  ;;  %v2850_v41 = vld [vmem:[#allocation3 + $0xd8] sm:$0xff] }
 0x19b   : > { %v3627_v31 = vld [vmem:[#allocation3 + $0x70] sm:$0xff]  ;;  %v2760_v32 = vpop.f32.mrf.mxu1 }
 0x19c   : > { %3686 = vst.msk [vmem:[#allocation3 + $0x48] sm:$0xff] %vm889_vm5, %v3654_v3  ;;  %v3659_v62 = vadd.f32 %v7091_v25, %v3627_v31  ;;  %2905 = vst.msk [vmem:[#allocation3 + $0x90] sm:$0xff] %vm889_vm5, %v2873_v16  ;;  %v2871_v22 = vadd.f32 %v2839_v55, %v2760_v32  ;;  %v2848_v3 = vld [vmem:[#allocation3 + $0xc8] sm:$0xff] }
 0x19d   : > { %v7095_v21 = vpop.f32.mrf.mxu0  ;;  %v3625_v13 = vld [vmem:[#allocation3 + $0x60] sm:$0xff]  ;;  %v7062_v0 = vpop.f32.mrf.mxu1 }
 0x19e   : > { %3691 = vst.msk [vmem:[#allocation3 + $0x70] sm:$0xff] %vm889_vm5, %v3659_v62  ;;  %v3657_v5 = vadd.f32 %v3625_v13, %v3534_v17  ;;  %2903 = vst.msk [vmem:[#allocation3 + $0x80] sm:$0xff] %vm889_vm5, %v2871_v22  ;;  %v2874_v4 = vadd.f32 %v7062_v0, %v2842_v63 }
 0x19f   : > { %v3550_v7 = vpop.f32.mrf.mxu0  ;;  %v3628_v39 = vld [vmem:[#allocation3 + $0x78] sm:$0xff]  ;;  %v2763_v52 = vpop.f32.mrf.mxu1 }
 0x1a0   : > { %3689 = vst.msk [vmem:[#allocation3 + $0x60] sm:$0xff] %vm889_vm5, %v3657_v5  ;;  %v3660_v49 = vadd.f32 %v7092_v15, %v3628_v39  ;;  %2906 = vst.msk [vmem:[#allocation3 + $0x98] sm:$0xff] %vm889_vm5, %v2874_v4  ;;  %v2872_v46 = vadd.f32 %v2840_v19, %v2763_v52  ;;  %v2853_v52 = vld [vmem:[#allocation3 + $0xf0] sm:$0xff] }
 0x1a1   : > { %v7096_v29 = vpop.f32.mrf.mxu0  ;;  %v3626_v54 = vld [vmem:[#allocation3 + $0x68] sm:$0xff]  ;;  %v7065_v40 = vpop.f32.mrf.mxu1 }
 0x1a2   : > { %3692 = vst.msk [vmem:[#allocation3 + $0x78] sm:$0xff] %vm889_vm5, %v3660_v49  ;;  %v3658_v59 = vadd.f32 %v3626_v54, %v3537_v10  ;;  %2904 = vst.msk [vmem:[#allocation3 + $0x88] sm:$0xff] %vm889_vm5, %v2872_v46  ;;  %v2877_v11 = vadd.f32 %v7065_v40, %v2845_v1  ;;  %v2854_v1 = vld [vmem:[#allocation3 + $0xf8] sm:$0xff] }
 0x1a3   : > { %v3553_v60 = vpop.f32.mrf.mxu0  ;;  %v3631_v51 = vld [vmem:[#allocation3 + $0x90] sm:$0xff]  ;;  %v2776_v45 = vpop.f32.mrf.mxu1 }
 0x1a4   : > { %3690 = vst.msk [vmem:[#allocation3 + $0x68] sm:$0xff] %vm889_vm5, %v3658_v59  ;;  %v3663_v14 = vadd.f32 %v7095_v21, %v3631_v51  ;;  %2909 = vst.msk [vmem:[#allocation3 + $0xb0] sm:$0xff] %vm889_vm5, %v2877_v11  ;;  %v2875_v2 = vadd.f32 %v2843_v47, %v2776_v45  ;;  %v4181_v47 = vld [vmem:[#allocation3 + $0x10] sm:$0xff] }
 0x1a5   : > { %v7099_v56 = vpop.f32.mrf.mxu0  ;;  %v3629_v43 = vld [vmem:[#allocation3 + $0x80] sm:$0xff]  ;;  %v7066_v28 = vpop.f32.mrf.mxu1 }
 0x1a6   : > { %3695 = vst.msk [vmem:[#allocation3 + $0x90] sm:$0xff] %vm889_vm5, %v3663_v14  ;;  %v3661_v48 = vadd.f32 %v3629_v43, %v3550_v7  ;;  %2907 = vst.msk [vmem:[#allocation3 + $0xa0] sm:$0xff] %vm889_vm5, %v2875_v2  ;;  %v2878_v37 = vadd.f32 %v7066_v28, %v2846_v57  ;;  %v4179_v43 = vld [vmem:[#allocation3] sm:$0xff] }
 0x1a7   : > { %v3566_v36 = vpop.f32.mrf.mxu0  ;;  %v3632_v30 = vld [vmem:[#allocation3 + $0x98] sm:$0xff]  ;;  %v2779_v12 = vpop.f32.mrf.mxu1 }
 0x1a8   : > { %3693 = vst.msk [vmem:[#allocation3 + $0x80] sm:$0xff] %vm889_vm5, %v3661_v48  ;;  %v3664_v34 = vadd.f32 %v7096_v29, %v3632_v30  ;;  %2910 = vst.msk [vmem:[#allocation3 + $0xb8] sm:$0xff] %vm889_vm5, %v2878_v37  ;;  %v2876_v42 = vadd.f32 %v2844_v35, %v2779_v12  ;;  %v2851_v29 = vld [vmem:[#allocation3 + $0xe0] sm:$0xff]  ;;  %v4182_v30 = vld [vmem:[#allocation3 + $0x18] sm:$0xff] }
 0x1a9   : > { %v7100_v23 = vpop.f32.mrf.mxu0  ;;  %v3630_v9 = vld [vmem:[#allocation3 + $0x88] sm:$0xff]  ;;  %v7069_v6 = vpop.f32.mrf.mxu1 }
 0x1aa   : > { %3696 = vst.msk [vmem:[#allocation3 + $0x98] sm:$0xff] %vm889_vm5, %v3664_v34  ;;  %v3662_v25 = vadd.f32 %v3630_v9, %v3553_v60  ;;  %2908 = vst.msk [vmem:[#allocation3 + $0xa8] sm:$0xff] %vm889_vm5, %v2876_v42  ;;  %v2881_v58 = vadd.f32 %v7069_v6, %v2849_v44  ;;  %v2852_v60 = vld [vmem:[#allocation3 + $0xe8] sm:$0xff] }
 0x1ab   : > { %v3569_v33 = vpop.f32.mrf.mxu0  ;;  %v3635_v27 = vld [vmem:[#allocation3 + $0xb0] sm:$0xff]  ;;  %v2792_v8 = vpop.f32.mrf.mxu1  ;;  %v4180_v9 = vld [vmem:[#allocation3 + $0x8] sm:$0xff] }
 0x1ac   : > { %3694 = vst.msk [vmem:[#allocation3 + $0x88] sm:$0xff] %vm889_vm5, %v3662_v25  ;;  %v3667_v17 = vadd.f32 %v7099_v56, %v3635_v27  ;;  %2913 = vst.msk [vmem:[#allocation3 + $0xd0] sm:$0xff] %vm889_vm5, %v2881_v58  ;;  %v2879_v53 = vadd.f32 %v2847_v26, %v2792_v8  ;;  %v4185_v27 = vld [vmem:[#allocation3 + $0x30] sm:$0xff] }
 0x1ad   : > { %v3633_v38 = vld [vmem:[#allocation3 + $0xa0] sm:$0xff]  ;;  %v7070_v18 = vpop.f32.mrf.mxu1  ;;  %v7103_v20 = vpop.f32.mrf.mxu0 }
 0x1ae   : > { %3699 = vst.msk [vmem:[#allocation3 + $0xb0] sm:$0xff] %vm889_vm5, %v3667_v17  ;;  %v3665_v15 = vadd.f32 %v3633_v38, %v3566_v36  ;;  %2911 = vst.msk [vmem:[#allocation3 + $0xc0] sm:$0xff] %vm889_vm5, %v2879_v53  ;;  %v2882_v61 = vadd.f32 %v7070_v18, %v2850_v41  ;;  %v4183_v18 = vld [vmem:[#allocation3 + $0x20] sm:$0xff] }
 0x1af   : > { %v3636_v24 = vld [vmem:[#allocation3 + $0xb8] sm:$0xff]  ;;  %v2795_v50 = vpop.f32.mrf.mxu1  ;;  %v3582_v32 = vpop.f32.mrf.mxu0 }
 0x1b0   : > { %3697 = vst.msk [vmem:[#allocation3 + $0xa0] sm:$0xff] %vm889_vm5, %v3665_v15  ;;  %v3668_v16 = vadd.f32 %v7100_v23, %v3636_v24  ;;  %2914 = vst.msk [vmem:[#allocation3 + $0xd8] sm:$0xff] %vm889_vm5, %v2882_v61  ;;  %v2880_v10 = vadd.f32 %v2848_v3, %v2795_v50  ;;  %v4186_v50 = vld [vmem:[#allocation3 + $0x38] sm:$0xff] }
 0x1b1   : > { %v3634_v31 = vld [vmem:[#allocation3 + $0xa8] sm:$0xff]  ;;  %v7104_v13 = vpop.f32.mrf.mxu0 }
 0x1b2   : > { %3700 = vst.msk [vmem:[#allocation3 + $0xb8] sm:$0xff] %vm889_vm5, %v3668_v16  ;;  %v3666_v55 = vadd.f32 %v3634_v31, %v3569_v33  ;;  %2912 = vst.msk [vmem:[#allocation3 + $0xc8] sm:$0xff] %vm889_vm5, %v2880_v10 }
 0x1b3   : > { %v3639_v62 = vld [vmem:[#allocation3 + $0xd0] sm:$0xff]  ;;  %v3585_v4 = vpop.f32.mrf.mxu0 }
 0x1b4   : > { %3698 = vst.msk [vmem:[#allocation3 + $0xa8] sm:$0xff] %vm889_vm5, %v3666_v55  ;;  %v3671_v22 = vadd.f32 %v7103_v20, %v3639_v62  ;;  %v4184_v55 = vld [vmem:[#allocation3 + $0x28] sm:$0xff] }
 0x1b5   : > { %v3637_v21 = vld [vmem:[#allocation3 + $0xc0] sm:$0xff] }
 0x1b6   : > { %3703 = vst.msk [vmem:[#allocation3 + $0xd0] sm:$0xff] %vm889_vm5, %v3671_v22  ;;  %v3669_v0 = vadd.f32 %v3637_v21, %v3582_v32 }
 0x1b7   : > { %v3640_v63 = vld [vmem:[#allocation3 + $0xd8] sm:$0xff] }
 0x1b8   : > { %3701 = vst.msk [vmem:[#allocation3 + $0xc0] sm:$0xff] %vm889_vm5, %v3669_v0  ;;  %v3672_v5 = vadd.f32 %v7104_v13, %v3640_v63  ;;  %v4189_v63 = vld [vmem:[#allocation3 + $0x50] sm:$0xff] }
 0x1b9   : > { %v3638_v7 = vld [vmem:[#allocation3 + $0xc8] sm:$0xff] }
 0x1ba   : > { %v7073_v39 = vpop.f32.mrf.mxu1  ;;  %3704 = vst.msk [vmem:[#allocation3 + $0xd8] sm:$0xff] %vm889_vm5, %v3672_v5  ;;  %v3670_v19 = vadd.f32 %v3638_v7, %v3585_v4 }
 0x1bb   : > { %v2885_v49 = vadd.f32 %v7073_v39, %v2853_v52 }
 0x1bc   : > { %v2808_v46 = vpop.f32.mrf.mxu1  ;;  %3702 = vst.msk [vmem:[#allocation3 + $0xc8] sm:$0xff] %vm889_vm5, %v3670_v19  ;;  %v4187_v19 = vld [vmem:[#allocation3 + $0x40] sm:$0xff] }
 0x1bd   : > { %2917 = vst.msk [vmem:[#allocation3 + $0xf0] sm:$0xff] %vm889_vm5, %v2885_v49  ;;  %v2883_v54 = vadd.f32 %v2851_v29, %v2808_v46 }
 0x1be   : > { %v7074_v40 = vpop.f32.mrf.mxu1 }
 0x1bf   : > { %2915 = vst.msk [vmem:[#allocation3 + $0xe0] sm:$0xff] %vm889_vm5, %v2883_v54  ;;  %v2886_v59 = vadd.f32 %v7074_v40, %v2854_v1  ;;  %v4190_v1 = vld [vmem:[#allocation3 + $0x58] sm:$0xff] }
 0x1c0   : > { %v2811_v11 = vpop.f32.mrf.mxu1 }
 0x1c1   : > { %2918 = vst.msk [vmem:[#allocation3 + $0xf8] sm:$0xff] %vm889_vm5, %v2886_v59  ;;  %v2884_v51 = vadd.f32 %v2852_v60, %v2811_v11 }
 0x1c2   : > { %v7113_v45 = vpop.f32.mrf.mxu1 }
 0x1c3   : > { %2916 = vst.msk [vmem:[#allocation3 + $0xe8] sm:$0xff] %vm889_vm5, %v2884_v51  ;;  %v4213_v14 = vadd.f32 %v7113_v45, %v4181_v47  ;;  %v4188_v47 = vld [vmem:[#allocation3 + $0x48] sm:$0xff] }
 0x1c4   : > { %v3643_v2 = vld [vmem:[#allocation3 + $0xf0] sm:$0xff]  ;;  %v4052_v56 = vpop.f32.mrf.mxu1 }
 0x1c5   : > { %4245 = vst.msk [vmem:[#allocation3 + $0x10] sm:$0xff] %vm889_vm5, %v4213_v14  ;;  %v4211_v57 = vadd.f32 %v4179_v43, %v4052_v56 }
 0x1c6   : > { %v7107_v28 = vpop.f32.mrf.mxu0  ;;  %v3641_v37 = vld [vmem:[#allocation3 + $0xe0] sm:$0xff]  ;;  %v7114_v36 = vpop.f32.mrf.mxu1 }
 0x1c7   : > { %v3675_v48 = vadd.f32 %v7107_v28, %v3643_v2  ;;  %4243 = vst.msk [vmem:[#allocation3] sm:$0xff] %vm889_vm5, %v4211_v57  ;;  %v4214_v35 = vadd.f32 %v7114_v36, %v4182_v30  ;;  %v4193_v57 = vld [vmem:[#allocation3 + $0x70] sm:$0xff] }
 0x1c8   : > { %v3598_v12 = vpop.f32.mrf.mxu0  ;;  %v3644_v42 = vld [vmem:[#allocation3 + $0xf8] sm:$0xff]  ;;  %v4055_v23 = vpop.f32.mrf.mxu1 }
 0x1c9   : > { %3707 = vst.msk [vmem:[#allocation3 + $0xf0] sm:$0xff] %vm889_vm5, %v3675_v48  ;;  %v3673_v34 = vadd.f32 %v3641_v37, %v3598_v12  ;;  %4246 = vst.msk [vmem:[#allocation3 + $0x18] sm:$0xff] %vm889_vm5, %v4214_v35  ;;  %v4212_v44 = vadd.f32 %v4180_v9, %v4055_v23  ;;  %v4191_v35 = vld [vmem:[#allocation3 + $0x60] sm:$0xff] }
 0x1ca   : > { %v7108_v6 = vpop.f32.mrf.mxu0  ;;  %v3642_v58 = vld [vmem:[#allocation3 + $0xe8] sm:$0xff]  ;;  %v7117_v33 = vpop.f32.mrf.mxu1 }
 0x1cb   : > { %3705 = vst.msk [vmem:[#allocation3 + $0xe0] sm:$0xff] %vm889_vm5, %v3673_v34  ;;  %v3676_v25 = vadd.f32 %v7108_v6, %v3644_v42  ;;  %4244 = vst.msk [vmem:[#allocation3 + $0x8] sm:$0xff] %vm889_vm5, %v4212_v44  ;;  %v4217_v26 = vadd.f32 %v7117_v33, %v4185_v27  ;;  %v4194_v44 = vld [vmem:[#allocation3 + $0x78] sm:$0xff] }
 0x1cc   : > { %v3601_v8 = vpop.f32.mrf.mxu0  ;;  %v4604_v53 = vld [vmem:[#allocation3 + $0x10] sm:$0xff]  ;;  %v4068_v38 = vpop.f32.mrf.mxu1 }
 0x1cd   : > { %3708 = vst.msk [vmem:[#allocation3 + $0xf8] sm:$0xff] %vm889_vm5, %v3676_v25  ;;  %v3674_v17 = vadd.f32 %v3642_v58, %v3601_v8  ;;  %4249 = vst.msk [vmem:[#allocation3 + $0x30] sm:$0xff] %vm889_vm5, %v4217_v26  ;;  %v4215_v20 = vadd.f32 %v4183_v18, %v4068_v38  ;;  %v4192_v26 = vld [vmem:[#allocation3 + $0x68] sm:$0xff] }
 0x1ce   : > { %v7147_v41 = vpop.f32.mrf.mxu0  ;;  %v4602_v61 = vld [vmem:[#allocation3] sm:$0xff]  ;;  %v7118_v24 = vpop.f32.mrf.mxu1 }
 0x1cf   : > { %3706 = vst.msk [vmem:[#allocation3 + $0xe8] sm:$0xff] %vm889_vm5, %v3674_v17  ;;  %v4636_v15 = vadd.f32 %v7147_v41, %v4604_v53  ;;  %4247 = vst.msk [vmem:[#allocation3 + $0x20] sm:$0xff] %vm889_vm5, %v4215_v20  ;;  %v4218_v16 = vadd.f32 %v7118_v24, %v4186_v50  ;;  %v4197_v20 = vld [vmem:[#allocation3 + $0x90] sm:$0xff] }
 0x1d0   : > { %v4475_v3 = vpop.f32.mrf.mxu0  ;;  %v4605_v31 = vld [vmem:[#allocation3 + $0x18] sm:$0xff]  ;;  %v4071_v32 = vpop.f32.mrf.mxu1 }
 0x1d1   : > { %4668 = vst.msk [vmem:[#allocation3 + $0x10] sm:$0xff] %vm889_vm5, %v4636_v15  ;;  %v4634_v10 = vadd.f32 %v4602_v61, %v4475_v3  ;;  %4250 = vst.msk [vmem:[#allocation3 + $0x38] sm:$0xff] %vm889_vm5, %v4218_v16  ;;  %v4216_v22 = vadd.f32 %v4184_v55, %v4071_v32  ;;  %v4195_v16 = vld [vmem:[#allocation3 + $0x80] sm:$0xff] }
 0x1d2   : > { %v7148_v62 = vpop.f32.mrf.mxu0  ;;  %v4603_v13 = vld [vmem:[#allocation3 + $0x8] sm:$0xff]  ;;  %v7121_v0 = vpop.f32.mrf.mxu1 }
 0x1d3   : > { %4666 = vst.msk [vmem:[#allocation3] sm:$0xff] %vm889_vm5, %v4634_v10  ;;  %v4637_v21 = vadd.f32 %v7148_v62, %v4605_v31  ;;  %4248 = vst.msk [vmem:[#allocation3 + $0x28] sm:$0xff] %vm889_vm5, %v4216_v22  ;;  %v4221_v4 = vadd.f32 %v7121_v0, %v4189_v63  ;;  %v4198_v22 = vld [vmem:[#allocation3 + $0x98] sm:$0xff] }
 0x1d4   : > { %v4478_v5 = vpop.f32.mrf.mxu0  ;;  %v4608_v39 = vld [vmem:[#allocation3 + $0x30] sm:$0xff]  ;;  %v4084_v52 = vpop.f32.mrf.mxu1 }
 0x1d5   : > { %4669 = vst.msk [vmem:[#allocation3 + $0x18] sm:$0xff] %vm889_vm5, %v4637_v21  ;;  %v4635_v7 = vadd.f32 %v4603_v13, %v4478_v5  ;;  %4253 = vst.msk [vmem:[#allocation3 + $0x50] sm:$0xff] %vm889_vm5, %v4221_v4  ;;  %v4219_v46 = vadd.f32 %v4187_v19, %v4084_v52  ;;  %v4196_v4 = vld [vmem:[#allocation3 + $0x88] sm:$0xff] }
 0x1d6   : > { %v7151_v49 = vpop.f32.mrf.mxu0  ;;  %v4606_v54 = vld [vmem:[#allocation3 + $0x20] sm:$0xff]  ;;  %v7122_v40 = vpop.f32.mrf.mxu1 }
 0x1d7   : > { %4667 = vst.msk [vmem:[#allocation3 + $0x8] sm:$0xff] %vm889_vm5, %v4635_v7  ;;  %v4640_v29 = vadd.f32 %v7151_v49, %v4608_v39  ;;  %4251 = vst.msk [vmem:[#allocation3 + $0x40] sm:$0xff] %vm889_vm5, %v4219_v46  ;;  %v4222_v11 = vadd.f32 %v7122_v40, %v4190_v1  ;;  %v4201_v46 = vld [vmem:[#allocation3 + $0xb0] sm:$0xff] }
 0x1d8   : > { %v4491_v59 = vpop.f32.mrf.mxu0  ;;  %v4609_v51 = vld [vmem:[#allocation3 + $0x38] sm:$0xff]  ;;  %v4087_v45 = vpop.f32.mrf.mxu1 }
 0x1d9   : > { %4672 = vst.msk [vmem:[#allocation3 + $0x30] sm:$0xff] %vm889_vm5, %v4640_v29  ;;  %v4638_v60 = vadd.f32 %v4606_v54, %v4491_v59  ;;  %4254 = vst.msk [vmem:[#allocation3 + $0x58] sm:$0xff] %vm889_vm5, %v4222_v11  ;;  %v4220_v2 = vadd.f32 %v4188_v47, %v4087_v45  ;;  %v4199_v11 = vld [vmem:[#allocation3 + $0xa0] sm:$0xff] }
 0x1da   : > { %v7152_v14 = vpop.f32.mrf.mxu0  ;;  %v4607_v43 = vld [vmem:[#allocation3 + $0x28] sm:$0xff]  ;;  %v7125_v28 = vpop.f32.mrf.mxu1 }
 0x1db   : > { %4670 = vst.msk [vmem:[#allocation3 + $0x20] sm:$0xff] %vm889_vm5, %v4638_v60  ;;  %v4641_v56 = vadd.f32 %v7152_v14, %v4609_v51  ;;  %4252 = vst.msk [vmem:[#allocation3 + $0x48] sm:$0xff] %vm889_vm5, %v4220_v2  ;;  %v4225_v37 = vadd.f32 %v7125_v28, %v4193_v57  ;;  %v4202_v2 = vld [vmem:[#allocation3 + $0xb8] sm:$0xff] }
 0x1dc   : > { %v4494_v48 = vpop.f32.mrf.mxu0  ;;  %v4612_v30 = vld [vmem:[#allocation3 + $0x50] sm:$0xff]  ;;  %v4100_v12 = vpop.f32.mrf.mxu1 }
 0x1dd   : > { %4673 = vst.msk [vmem:[#allocation3 + $0x38] sm:$0xff] %vm889_vm5, %v4641_v56  ;;  %v4639_v36 = vadd.f32 %v4607_v43, %v4494_v48  ;;  %4257 = vst.msk [vmem:[#allocation3 + $0x70] sm:$0xff] %vm889_vm5, %v4225_v37  ;;  %v4223_v42 = vadd.f32 %v4191_v35, %v4100_v12  ;;  %v4200_v37 = vld [vmem:[#allocation3 + $0xa8] sm:$0xff] }
 0x1de   : > { %v7155_v34 = vpop.f32.mrf.mxu0  ;;  %v4610_v9 = vld [vmem:[#allocation3 + $0x40] sm:$0xff]  ;;  %v7126_v6 = vpop.f32.mrf.mxu1 }
 0x1df   : > { %4671 = vst.msk [vmem:[#allocation3 + $0x28] sm:$0xff] %vm889_vm5, %v4639_v36  ;;  %v4644_v23 = vadd.f32 %v7155_v34, %v4612_v30  ;;  %4255 = vst.msk [vmem:[#allocation3 + $0x60] sm:$0xff] %vm889_vm5, %v4223_v42  ;;  %v4226_v58 = vadd.f32 %v7126_v6, %v4194_v44  ;;  %v4205_v42 = vld [vmem:[#allocation3 + $0xd0] sm:$0xff] }
 0x1e0   : > { %v4507_v25 = vpop.f32.mrf.mxu0  ;;  %v4613_v27 = vld [vmem:[#allocation3 + $0x58] sm:$0xff]  ;;  %v4103_v8 = vpop.f32.mrf.mxu1 }
 0x1e1   : > { %4676 = vst.msk [vmem:[#allocation3 + $0x50] sm:$0xff] %vm889_vm5, %v4644_v23  ;;  %v4642_v33 = vadd.f32 %v4610_v9, %v4507_v25  ;;  %4258 = vst.msk [vmem:[#allocation3 + $0x78] sm:$0xff] %vm889_vm5, %v4226_v58  ;;  %v4224_v53 = vadd.f32 %v4192_v26, %v4103_v8  ;;  %v4203_v58 = vld [vmem:[#allocation3 + $0xc0] sm:$0xff] }
 0x1e2   : > { %v7156_v17 = vpop.f32.mrf.mxu0  ;;  %v4611_v18 = vld [vmem:[#allocation3 + $0x48] sm:$0xff]  ;;  %v7129_v41 = vpop.f32.mrf.mxu1 }
 0x1e3   : > { %4674 = vst.msk [vmem:[#allocation3 + $0x40] sm:$0xff] %vm889_vm5, %v4642_v33  ;;  %v4645_v38 = vadd.f32 %v7156_v17, %v4613_v27  ;;  %4256 = vst.msk [vmem:[#allocation3 + $0x68] sm:$0xff] %vm889_vm5, %v4224_v53  ;;  %v4229_v61 = vadd.f32 %v7129_v41, %v4197_v20  ;;  %v4206_v53 = vld [vmem:[#allocation3 + $0xd8] sm:$0xff] }
 0x1e4   : > { %v4510_v15 = vpop.f32.mrf.mxu0  ;;  %v4616_v50 = vld [vmem:[#allocation3 + $0x70] sm:$0xff]  ;;  %v4116_v3 = vpop.f32.mrf.mxu1 }
 0x1e5   : > { %4677 = vst.msk [vmem:[#allocation3 + $0x58] sm:$0xff] %vm889_vm5, %v4645_v38  ;;  %v4643_v24 = vadd.f32 %v4611_v18, %v4510_v15  ;;  %4261 = vst.msk [vmem:[#allocation3 + $0x90] sm:$0xff] %vm889_vm5, %v4229_v61  ;;  %v4227_v31 = vadd.f32 %v4195_v16, %v4116_v3  ;;  %v4204_v61 = vld [vmem:[#allocation3 + $0xc8] sm:$0xff] }
 0x1e6   : > { %v7159_v10 = vpop.f32.mrf.mxu0  ;;  %v4614_v55 = vld [vmem:[#allocation3 + $0x60] sm:$0xff]  ;;  %v7130_v62 = vpop.f32.mrf.mxu1 }
 0x1e7   : > { %4675 = vst.msk [vmem:[#allocation3 + $0x48] sm:$0xff] %vm889_vm5, %v4643_v24  ;;  %v4648_v32 = vadd.f32 %v7159_v10, %v4616_v50  ;;  %4259 = vst.msk [vmem:[#allocation3 + $0x80] sm:$0xff] %vm889_vm5, %v4227_v31  ;;  %v4230_v13 = vadd.f32 %v7130_v62, %v4198_v22  ;;  %v4209_v31 = vld [vmem:[#allocation3 + $0xf0] sm:$0xff] }
 0x1e8   : > { %v4523_v21 = vpop.f32.mrf.mxu0  ;;  %v4617_v63 = vld [vmem:[#allocation3 + $0x78] sm:$0xff]  ;;  %v4119_v5 = vpop.f32.mrf.mxu1 }
 0x1e9   : > { %4680 = vst.msk [vmem:[#allocation3 + $0x70] sm:$0xff] %vm889_vm5, %v4648_v32  ;;  %v4646_v0 = vadd.f32 %v4614_v55, %v4523_v21  ;;  %4262 = vst.msk [vmem:[#allocation3 + $0x98] sm:$0xff] %vm889_vm5, %v4230_v13  ;;  %v4228_v39 = vadd.f32 %v4196_v4, %v4119_v5  ;;  %v4207_v13 = vld [vmem:[#allocation3 + $0xe0] sm:$0xff] }
 0x1ea   : > { %v7160_v7 = vpop.f32.mrf.mxu0  ;;  %v4615_v19 = vld [vmem:[#allocation3 + $0x68] sm:$0xff]  ;;  %v7133_v49 = vpop.f32.mrf.mxu1 }
 0x1eb   : > { %4678 = vst.msk [vmem:[#allocation3 + $0x60] sm:$0xff] %vm889_vm5, %v4646_v0  ;;  %v4649_v52 = vadd.f32 %v7160_v7, %v4617_v63  ;;  %4260 = vst.msk [vmem:[#allocation3 + $0x88] sm:$0xff] %vm889_vm5, %v4228_v39  ;;  %v4233_v54 = vadd.f32 %v7133_v49, %v4201_v46  ;;  %v4210_v39 = vld [vmem:[#allocation3 + $0xf8] sm:$0xff] }
 0x1ec   : > { %v4526_v29 = vpop.f32.mrf.mxu0  ;;  %v4620_v1 = vld [vmem:[#allocation3 + $0x90] sm:$0xff]  ;;  %v4132_v59 = vpop.f32.mrf.mxu1 }
 0x1ed   : > { %4681 = vst.msk [vmem:[#allocation3 + $0x78] sm:$0xff] %vm889_vm5, %v4649_v52  ;;  %v4647_v40 = vadd.f32 %v4615_v19, %v4526_v29  ;;  %4265 = vst.msk [vmem:[#allocation3 + $0xb0] sm:$0xff] %vm889_vm5, %v4233_v54  ;;  %v4231_v51 = vadd.f32 %v4199_v11, %v4132_v59  ;;  %v4208_v54 = vld [vmem:[#allocation3 + $0xe8] sm:$0xff] }
 0x1ee   : > { %v7163_v60 = vpop.f32.mrf.mxu0  ;;  %v4618_v47 = vld [vmem:[#allocation3 + $0x80] sm:$0xff]  ;;  %v7134_v14 = vpop.f32.mrf.mxu1 }
 0x1ef   : > { %4679 = vst.msk [vmem:[#allocation3 + $0x68] sm:$0xff] %vm889_vm5, %v4647_v40  ;;  %v4652_v45 = vadd.f32 %v7163_v60, %v4620_v1  ;;  %4263 = vst.msk [vmem:[#allocation3 + $0xa0] sm:$0xff] %vm889_vm5, %v4231_v51  ;;  %v4234_v43 = vadd.f32 %v7134_v14, %v4202_v2  ;;  %v5394_v51 = vld [vmem:[#allocation3 + $0x10] sm:$0xff] }
 0x1f0   : > { %v4539_v56 = vpop.f32.mrf.mxu0  ;;  %v4621_v57 = vld [vmem:[#allocation3 + $0x98] sm:$0xff]  ;;  %v4135_v48 = vpop.f32.mrf.mxu1 }
 0x1f1   : > { %4684 = vst.msk [vmem:[#allocation3 + $0x90] sm:$0xff] %vm889_vm5, %v4652_v45  ;;  %v4650_v28 = vadd.f32 %v4618_v47, %v4539_v56  ;;  %4266 = vst.msk [vmem:[#allocation3 + $0xb8] sm:$0xff] %vm889_vm5, %v4234_v43  ;;  %v4232_v30 = vadd.f32 %v4200_v37, %v4135_v48  ;;  %v5392_v43 = vld [vmem:[#allocation3] sm:$0xff] }
 0x1f2   : > { %v7164_v36 = vpop.f32.mrf.mxu0  ;;  %v4619_v35 = vld [vmem:[#allocation3 + $0x88] sm:$0xff]  ;;  %v7137_v34 = vpop.f32.mrf.mxu1 }
 0x1f3   : > { %4682 = vst.msk [vmem:[#allocation3 + $0x80] sm:$0xff] %vm889_vm5, %v4650_v28  ;;  %v4653_v12 = vadd.f32 %v7164_v36, %v4621_v57  ;;  %4264 = vst.msk [vmem:[#allocation3 + $0xa8] sm:$0xff] %vm889_vm5, %v4232_v30  ;;  %v4237_v9 = vadd.f32 %v7137_v34, %v4205_v42  ;;  %v5395_v30 = vld [vmem:[#allocation3 + $0x18] sm:$0xff] }
 0x1f4   : > { %v4542_v23 = vpop.f32.mrf.mxu0  ;;  %v4624_v44 = vld [vmem:[#allocation3 + $0xb0] sm:$0xff]  ;;  %v4148_v25 = vpop.f32.mrf.mxu1 }
 0x1f5   : > { %4685 = vst.msk [vmem:[#allocation3 + $0x98] sm:$0xff] %vm889_vm5, %v4653_v12  ;;  %v4651_v6 = vadd.f32 %v4619_v35, %v4542_v23  ;;  %4269 = vst.msk [vmem:[#allocation3 + $0xd0] sm:$0xff] %vm889_vm5, %v4237_v9  ;;  %v4235_v27 = vadd.f32 %v4203_v58, %v4148_v25  ;;  %v5393_v9 = vld [vmem:[#allocation3 + $0x8] sm:$0xff] }
 0x1f6   : > { %v7167_v33 = vpop.f32.mrf.mxu0  ;;  %v4622_v26 = vld [vmem:[#allocation3 + $0xa0] sm:$0xff]  ;;  %v7138_v17 = vpop.f32.mrf.mxu1 }
 0x1f7   : > { %4683 = vst.msk [vmem:[#allocation3 + $0x88] sm:$0xff] %vm889_vm5, %v4651_v6  ;;  %v4656_v8 = vadd.f32 %v7167_v33, %v4624_v44  ;;  %4267 = vst.msk [vmem:[#allocation3 + $0xc0] sm:$0xff] %vm889_vm5, %v4235_v27  ;;  %v4238_v18 = vadd.f32 %v7138_v17, %v4206_v53  ;;  %v5398_v27 = vld [vmem:[#allocation3 + $0x30] sm:$0xff] }
 0x1f8   : > { %v4555_v38 = vpop.f32.mrf.mxu0  ;;  %v4625_v20 = vld [vmem:[#allocation3 + $0xb8] sm:$0xff]  ;;  %v4151_v15 = vpop.f32.mrf.mxu1 }
 0x1f9   : > { %4688 = vst.msk [vmem:[#allocation3 + $0xb0] sm:$0xff] %vm889_vm5, %v4656_v8  ;;  %v4654_v41 = vadd.f32 %v4622_v26, %v4555_v38  ;;  %4270 = vst.msk [vmem:[#allocation3 + $0xd8] sm:$0xff] %vm889_vm5, %v4238_v18  ;;  %v4236_v50 = vadd.f32 %v4204_v61, %v4151_v15  ;;  %v5396_v18 = vld [vmem:[#allocation3 + $0x20] sm:$0xff] }
 0x1fa   : > { %v7168_v24 = vpop.f32.mrf.mxu0  ;;  %v4623_v16 = vld [vmem:[#allocation3 + $0xa8] sm:$0xff]  ;;  %v7141_v10 = vpop.f32.mrf.mxu1 }
 0x1fb   : > { %4686 = vst.msk [vmem:[#allocation3 + $0xa0] sm:$0xff] %vm889_vm5, %v4654_v41  ;;  %v4657_v3 = vadd.f32 %v7168_v24, %v4625_v20  ;;  %4268 = vst.msk [vmem:[#allocation3 + $0xc8] sm:$0xff] %vm889_vm5, %v4236_v50  ;;  %v4241_v55 = vadd.f32 %v7141_v10, %v4209_v31  ;;  %v5399_v50 = vld [vmem:[#allocation3 + $0x38] sm:$0xff] }
 0x1fc   : > { %v4558_v32 = vpop.f32.mrf.mxu0  ;;  %v4628_v22 = vld [vmem:[#allocation3 + $0xd0] sm:$0xff]  ;;  %v4164_v21 = vpop.f32.mrf.mxu1 }
 0x1fd   : > { %4689 = vst.msk [vmem:[#allocation3 + $0xb8] sm:$0xff] %vm889_vm5, %v4657_v3  ;;  %v4655_v62 = vadd.f32 %v4623_v16, %v4558_v32  ;;  %4273 = vst.msk [vmem:[#allocation3 + $0xf0] sm:$0xff] %vm889_vm5, %v4241_v55  ;;  %v4239_v63 = vadd.f32 %v4207_v13, %v4164_v21  ;;  %v5397_v55 = vld [vmem:[#allocation3 + $0x28] sm:$0xff] }
 0x1fe   : > { %v7171_v0 = vpop.f32.mrf.mxu0  ;;  %v4626_v4 = vld [vmem:[#allocation3 + $0xc0] sm:$0xff]  ;;  %v7142_v7 = vpop.f32.mrf.mxu1 }
 0x1ff   : > { %4687 = vst.msk [vmem:[#allocation3 + $0xa8] sm:$0xff] %vm889_vm5, %v4655_v62  ;;  %v4660_v5 = vadd.f32 %v7171_v0, %v4628_v22  ;;  %4271 = vst.msk [vmem:[#allocation3 + $0xe0] sm:$0xff] %vm889_vm5, %v4239_v63  ;;  %v4242_v19 = vadd.f32 %v7142_v7, %v4210_v39  ;;  %v5402_v63 = vld [vmem:[#allocation3 + $0x50] sm:$0xff] }
 0x200   : > { %v4571_v52 = vpop.f32.mrf.mxu0  ;;  %v4629_v46 = vld [vmem:[#allocation3 + $0xd8] sm:$0xff]  ;;  %v4167_v29 = vpop.f32.mrf.mxu1 }
 0x201   : > { %4692 = vst.msk [vmem:[#allocation3 + $0xd0] sm:$0xff] %vm889_vm5, %v4660_v5  ;;  %v4658_v49 = vadd.f32 %v4626_v4, %v4571_v52  ;;  %4274 = vst.msk [vmem:[#allocation3 + $0xf8] sm:$0xff] %vm889_vm5, %v4242_v19  ;;  %v4240_v1 = vadd.f32 %v4208_v54, %v4167_v29  ;;  %v5400_v19 = vld [vmem:[#allocation3 + $0x40] sm:$0xff] }
 0x202   : > { %v7172_v40 = vpop.f32.mrf.mxu0  ;;  %v4627_v11 = vld [vmem:[#allocation3 + $0xc8] sm:$0xff]  ;;  %v7181_v60 = vpop.f32.mrf.mxu1 }
 0x203   : > { %4690 = vst.msk [vmem:[#allocation3 + $0xc0] sm:$0xff] %vm889_vm5, %v4658_v49  ;;  %v4661_v59 = vadd.f32 %v7172_v40, %v4629_v46  ;;  %4272 = vst.msk [vmem:[#allocation3 + $0xe8] sm:$0xff] %vm889_vm5, %v4240_v1  ;;  %v5426_v47 = vadd.f32 %v7181_v60, %v5394_v51  ;;  %v5403_v1 = vld [vmem:[#allocation3 + $0x58] sm:$0xff] }
 0x204   : > { %v4574_v45 = vpop.f32.mrf.mxu0  ;;  %v4632_v2 = vld [vmem:[#allocation3 + $0xf0] sm:$0xff]  ;;  %v5265_v56 = vpop.f32.mrf.mxu1 }
 0x205   : > { %4693 = vst.msk [vmem:[#allocation3 + $0xd8] sm:$0xff] %vm889_vm5, %v4661_v59  ;;  %v4659_v14 = vadd.f32 %v4627_v11, %v4574_v45  ;;  %5458 = vst.msk [vmem:[#allocation3 + $0x10] sm:$0xff] %vm889_vm5, %v5426_v47  ;;  %v5424_v57 = vadd.f32 %v5392_v43, %v5265_v56 }
 0x206   : > { %v7175_v28 = vpop.f32.mrf.mxu0  ;;  %v4630_v37 = vld [vmem:[#allocation3 + $0xe0] sm:$0xff]  ;;  %v7182_v36 = vpop.f32.mrf.mxu1 }
 0x207   : > { %4691 = vst.msk [vmem:[#allocation3 + $0xc8] sm:$0xff] %vm889_vm5, %v4659_v14  ;;  %v4664_v48 = vadd.f32 %v7175_v28, %v4632_v2  ;;  %5456 = vst.msk [vmem:[#allocation3] sm:$0xff] %vm889_vm5, %v5424_v57  ;;  %v5427_v35 = vadd.f32 %v7182_v36, %v5395_v30  ;;  %v5401_v14 = vld [vmem:[#allocation3 + $0x48] sm:$0xff] }
 0x208   : > { %v4587_v12 = vpop.f32.mrf.mxu0  ;;  %v4633_v42 = vld [vmem:[#allocation3 + $0xf8] sm:$0xff]  ;;  %v5268_v23 = vpop.f32.mrf.mxu1 }
 0x209   : > { %4696 = vst.msk [vmem:[#allocation3 + $0xf0] sm:$0xff] %vm889_vm5, %v4664_v48  ;;  %v4662_v34 = vadd.f32 %v4630_v37, %v4587_v12  ;;  %5459 = vst.msk [vmem:[#allocation3 + $0x18] sm:$0xff] %vm889_vm5, %v5427_v35  ;;  %v5425_v44 = vadd.f32 %v5393_v9, %v5268_v23  ;;  %v5406_v37 = vld [vmem:[#allocation3 + $0x70] sm:$0xff]  ;;  %v5404_v9 = vld [vmem:[#allocation3 + $0x60] sm:$0xff] }
 0x20a   : > { %v7176_v6 = vpop.f32.mrf.mxu0  ;;  %v4631_v58 = vld [vmem:[#allocation3 + $0xe8] sm:$0xff]  ;;  %v7185_v33 = vpop.f32.mrf.mxu1 }
 0x20b   : > { %4694 = vst.msk [vmem:[#allocation3 + $0xe0] sm:$0xff] %vm889_vm5, %v4662_v34  ;;  %v4665_v25 = vadd.f32 %v7176_v6, %v4633_v42  ;;  %5457 = vst.msk [vmem:[#allocation3 + $0x8] sm:$0xff] %vm889_vm5, %v5425_v44  ;;  %v5430_v26 = vadd.f32 %v7185_v33, %v5398_v27 }
 0x20c   : > { %v4590_v8 = vpop.f32.mrf.mxu0  ;;  %v5960_v53 = vld [vmem:[#allocation3 + $0x10] sm:$0xff]  ;;  %v5281_v38 = vpop.f32.mrf.mxu1 }
 0x20d   : > { %4697 = vst.msk [vmem:[#allocation3 + $0xf8] sm:$0xff] %vm889_vm5, %v4665_v25  ;;  %v4663_v17 = vadd.f32 %v4631_v58, %v4590_v8  ;;  %5462 = vst.msk [vmem:[#allocation3 + $0x30] sm:$0xff] %vm889_vm5, %v5430_v26  ;;  %v5428_v20 = vadd.f32 %v5396_v18, %v5281_v38  ;;  %v5407_v38 = vld [vmem:[#allocation3 + $0x78] sm:$0xff] }
 0x20e   : > { %v7215_v41 = vpop.f32.mrf.mxu0  ;;  %v5958_v61 = vld [vmem:[#allocation3] sm:$0xff]  ;;  %v7186_v24 = vpop.f32.mrf.mxu1 }
 0x20f   : > { %4695 = vst.msk [vmem:[#allocation3 + $0xe8] sm:$0xff] %vm889_vm5, %v4663_v17  ;;  %v5992_v15 = vadd.f32 %v7215_v41, %v5960_v53  ;;  %5460 = vst.msk [vmem:[#allocation3 + $0x20] sm:$0xff] %vm889_vm5, %v5428_v20  ;;  %v5431_v16 = vadd.f32 %v7186_v24, %v5399_v50 }
 0x210   : > { %v5831_v3 = vpop.f32.mrf.mxu0  ;;  %v5961_v31 = vld [vmem:[#allocation3 + $0x18] sm:$0xff]  ;;  %v5284_v32 = vpop.f32.mrf.mxu1 }
 0x211   : > { %6024 = vst.msk [vmem:[#allocation3 + $0x10] sm:$0xff] %vm889_vm5, %v5992_v15  ;;  %v5990_v10 = vadd.f32 %v5958_v61, %v5831_v3  ;;  %5463 = vst.msk [vmem:[#allocation3 + $0x38] sm:$0xff] %vm889_vm5, %v5431_v16  ;;  %v5429_v22 = vadd.f32 %v5397_v55, %v5284_v32  ;;  %v5405_v32 = vld [vmem:[#allocation3 + $0x68] sm:$0xff] }
 0x212   : > { %v7216_v62 = vpop.f32.mrf.mxu0  ;;  %v5959_v13 = vld [vmem:[#allocation3 + $0x8] sm:$0xff]  ;;  %v7189_v0 = vpop.f32.mrf.mxu1 }
 0x213   : > { %6022 = vst.msk [vmem:[#allocation3] sm:$0xff] %vm889_vm5, %v5990_v10  ;;  %v5993_v21 = vadd.f32 %v7216_v62, %v5961_v31  ;;  %5461 = vst.msk [vmem:[#allocation3 + $0x28] sm:$0xff] %vm889_vm5, %v5429_v22  ;;  %v5434_v4 = vadd.f32 %v7189_v0, %v5402_v63 }
 0x214   : > { %v5834_v5 = vpop.f32.mrf.mxu0  ;;  %v5964_v39 = vld [vmem:[#allocation3 + $0x30] sm:$0xff]  ;;  %v5297_v52 = vpop.f32.mrf.mxu1 }
 0x215   : > { %6025 = vst.msk [vmem:[#allocation3 + $0x18] sm:$0xff] %vm889_vm5, %v5993_v21  ;;  %v5991_v7 = vadd.f32 %v5959_v13, %v5834_v5  ;;  %5466 = vst.msk [vmem:[#allocation3 + $0x50] sm:$0xff] %vm889_vm5, %v5434_v4  ;;  %v5432_v46 = vadd.f32 %v5400_v19, %v5297_v52  ;;  %v5410_v52 = vld [vmem:[#allocation3 + $0x90] sm:$0xff] }
 0x216   : > { %v7219_v49 = vpop.f32.mrf.mxu0  ;;  %v5962_v54 = vld [vmem:[#allocation3 + $0x20] sm:$0xff]  ;;  %v7190_v40 = vpop.f32.mrf.mxu1 }
 0x217   : > { %6023 = vst.msk [vmem:[#allocation3 + $0x8] sm:$0xff] %vm889_vm5, %v5991_v7  ;;  %v5996_v29 = vadd.f32 %v7219_v49, %v5964_v39  ;;  %5464 = vst.msk [vmem:[#allocation3 + $0x40] sm:$0xff] %vm889_vm5, %v5432_v46  ;;  %v5435_v60 = vadd.f32 %v7190_v40, %v5403_v1 }
 0x218   : > { %v6056_v59 = vld [vmem:[#allocation3 + $0x10] sm:$0xff]  ;;  %v5847_v11 = vpop.f32.mrf.mxu0  ;;  %v5965_v45 = vld [vmem:[#allocation3 + $0x38] sm:$0xff]  ;;  %v5300_v47 = vpop.f32.mrf.mxu1 }
 0x219   : > { %6262 = vst.msk [vmem:[%s8981_s30 + $0x10] sm:$0xff] %vm889_vm5, %v6056_v59  ;;  %6028 = vst.msk [vmem:[#allocation3 + $0x30] sm:$0xff] %vm889_vm5, %v5996_v29  ;;  %v5994_v51 = vadd.f32 %v5962_v54, %v5847_v11  ;;  %v5433_v43 = vadd.f32 %v5401_v14, %v5300_v47  ;;  %v6157_v6 = vmul.f32 %v6056_v59, %v6056_v59  ;;  %v6089_v18 = vsel %vm889_vm5, %v6056_v59, 0.0 }
 0x21a   : > { %v6054_v2 = vld [vmem:[#allocation3] sm:$0xff]  ;;  %v7220_v56 = vpop.f32.mrf.mxu0  ;;  %5467 = vst.msk [vmem:[#allocation3 + $0x58] sm:$0xff] %vm889_vm5, %v5435_v60  ;;  %v5963_v57 = vld [vmem:[#allocation3 + $0x28] sm:$0xff]  ;;  %v7193_v48 = vpop.f32.mrf.mxu1 }
 0x21b   : > { %6260 = vst.msk [vmem:[%s8981_s30] sm:$0xff] %vm889_vm5, %v6054_v2  ;;  %6026 = vst.msk [vmem:[#allocation3 + $0x20] sm:$0xff] %vm889_vm5, %v5994_v51  ;;  %v5997_v28 = vadd.f32 %v7220_v56, %v5965_v45  ;;  %v5438_v12 = vadd.f32 %v7193_v48, %v5406_v37  ;;  %v6155_v35 = vmul.f32 %v6054_v2, %v6054_v2  ;;  %v6086_v33 = vsel %vm889_vm5, %v6054_v2, 0.0  ;;  %v5408_v51 = vld [vmem:[#allocation3 + $0x80] sm:$0xff] }
 0x21c   : > { %v6057_v36 = vld [vmem:[#allocation3 + $0x18] sm:$0xff]  ;;  %v5850_v30 = vpop.f32.mrf.mxu0  ;;  %5465 = vst.msk [vmem:[#allocation3 + $0x48] sm:$0xff] %vm889_vm5, %v5433_v43  ;;  %v5968_v42 = vld [vmem:[#allocation3 + $0x50] sm:$0xff]  ;;  %v5313_v23 = vpop.f32.mrf.mxu1  ;;  %v6190_v0 = vsel %vm889_vm5, %v6157_v6, 0.0 }
 0x21d   : > { %6263 = vst.msk [vmem:[%s8981_s30 + $0x18] sm:$0xff] %vm889_vm5, %v6057_v36  ;;  %6029 = vst.msk [vmem:[#allocation3 + $0x38] sm:$0xff] %vm889_vm5, %v5997_v28  ;;  %v5995_v34 = vadd.f32 %v5963_v57, %v5850_v30  ;;  %v5436_v58 = vadd.f32 %v5404_v9, %v5313_v23  ;;  %v6187_v24 = vsel %vm889_vm5, %v6155_v35, 0.0  ;;  %v6158_v50 = vmul.f32 %v6057_v36, %v6057_v36 }
 0x21e   : > { %v6055_v44 = vld [vmem:[#allocation3 + $0x8] sm:$0xff]  ;;  %v7223_v25 = vpop.f32.mrf.mxu0  ;;  %5470 = vst.msk [vmem:[#allocation3 + $0x70] sm:$0xff] %vm889_vm5, %v5438_v12  ;;  %v5966_v17 = vld [vmem:[#allocation3 + $0x40] sm:$0xff]  ;;  %v7194_v53 = vpop.f32.mrf.mxu1  ;;  %v6091_v63 = vsel %vm889_vm5, %v6057_v36, 0.0  ;;  %v5411_v12 = vld [vmem:[#allocation3 + $0x98] sm:$0xff] }
 0x21f   : > { %v6087_v27 = vsel %vm889_vm5, %v6055_v44, 0.0  ;;  %v6156_v8 = vmul.f32 %v6055_v44, %v6055_v44  ;;  %6261 = vst.msk [vmem:[%s8981_s30 + $0x8] sm:$0xff] %vm889_vm5, %v6055_v44  ;;  %6027 = vst.msk [vmem:[#allocation3 + $0x28] sm:$0xff] %vm889_vm5, %v5995_v34  ;;  %v6000_v26 = vadd.f32 %v7223_v25, %v5968_v42  ;;  %v5439_v61 = vadd.f32 %v7194_v53, %v5407_v38 }
 0x220   : > { %v6088_v41 = vadd.f32 %v6087_v27, %v6086_v33  ;;  %v9004_v20 = vld [vmem:[#allocation3 + $0x30] sm:$0xff]  ;;  %v5863_v15 = vpop.f32.mrf.mxu0  ;;  %5468 = vst.msk [vmem:[#allocation3 + $0x60] sm:$0xff] %vm889_vm5, %v5436_v58  ;;  %v5316_v31 = vpop.f32.mrf.mxu1  ;;  %v6192_v40 = vsel %vm889_vm5, %v6158_v50, 0.0 }
 0x221   : > { %v6188_v3 = vsel %vm889_vm5, %v6156_v8, 0.0  ;;  %6266 = vst.msk [vmem:[%s8981_s30 + $0x30] sm:$0xff] %vm889_vm5, %v9004_v20  ;;  %6032 = vst.msk [vmem:[#allocation3 + $0x50] sm:$0xff] %vm889_vm5, %v6000_v26  ;;  %v5998_v16 = vadd.f32 %v5966_v17, %v5863_v15  ;;  %v5969_v10 = vld [vmem:[#allocation3 + $0x58] sm:$0xff]  ;;  %v5437_v13 = vadd.f32 %v5405_v32, %v5316_v31  ;;  %v6161_v45 = vmul.f32 %v9004_v20, %v9004_v20  ;;  %v5409_v8 = vld [vmem:[#allocation3 + $0x88] sm:$0xff] }
 0x222   : > { %v6090_v55 = vadd.f32 %v6089_v18, %v6088_v41  ;;  %v6189_v62 = vadd.f32 %v6188_v3, %v6187_v24  ;;  %v6058_v22 = vld [vmem:[#allocation3 + $0x20] sm:$0xff]  ;;  %v7224_v21 = vpop.f32.mrf.mxu0  ;;  %5471 = vst.msk [vmem:[#allocation3 + $0x78] sm:$0xff] %vm889_vm5, %v5439_v61  ;;  %v7197_v39 = vpop.f32.mrf.mxu1  ;;  %v6097_v6 = vsel %vm889_vm5, %v9004_v20, 0.0  ;;  %v5414_v3 = vld [vmem:[#allocation3 + $0xb0] sm:$0xff] }
 0x223   : > { %v6159_v5 = vmul.f32 %v6058_v22, %v6058_v22  ;;  %6264 = vst.msk [vmem:[%s8981_s30 + $0x20] sm:$0xff] %vm889_vm5, %v6058_v22  ;;  %6030 = vst.msk [vmem:[#allocation3 + $0x40] sm:$0xff] %vm889_vm5, %v5998_v16  ;;  %v6001_v4 = vadd.f32 %v7224_v21, %v5969_v10  ;;  %v5967_v7 = vld [vmem:[#allocation3 + $0x48] sm:$0xff]  ;;  %v5442_v54 = vadd.f32 %v7197_v39, %v5410_v52  ;;  %v6093_v1 = vsel %vm889_vm5, %v6058_v22, 0.0 }
 0x224   : > { %v6191_v19 = vadd.f32 %v6190_v0, %v6189_v62  ;;  %v6092_v49 = vadd.f32 %v6091_v63, %v6090_v55  ;;  %v6061_v46 = vld [vmem:[#allocation3 + $0x38] sm:$0xff]  ;;  %v5866_v29 = vpop.f32.mrf.mxu0  ;;  %5469 = vst.msk [vmem:[#allocation3 + $0x68] sm:$0xff] %vm889_vm5, %v5437_v13  ;;  %v5329_v60 = vpop.f32.mrf.mxu1  ;;  %v6198_v41 = vsel %vm889_vm5, %v6161_v45, 0.0  ;;  %v5412_v63 = vld [vmem:[#allocation3 + $0xa0] sm:$0xff] }
 0x225   : > { %6267 = vst.msk [vmem:[%s8981_s30 + $0x38] sm:$0xff] %vm889_vm5, %v6061_v46  ;;  %6033 = vst.msk [vmem:[#allocation3 + $0x58] sm:$0xff] %vm889_vm5, %v6001_v4  ;;  %v5999_v59 = vadd.f32 %v5967_v7, %v5866_v29  ;;  %v5972_v11 = vld [vmem:[#allocation3 + $0x70] sm:$0xff]  ;;  %v5440_v43 = vadd.f32 %v5408_v51, %v5329_v60  ;;  %v6194_v28 = vsel %vm889_vm5, %v6159_v5, 0.0  ;;  %v6162_v44 = vmul.f32 %v6061_v46, %v6061_v46 }
 0x226   : > { %v6094_v47 = vadd.f32 %v6093_v1, %v6092_v49  ;;  %v6193_v14 = vadd.f32 %v6192_v40, %v6191_v19  ;;  %v6059_v2 = vld [vmem:[#allocation3 + $0x28] sm:$0xff]  ;;  %v7227_v56 = vpop.f32.mrf.mxu0  ;;  %5474 = vst.msk [vmem:[#allocation3 + $0x90] sm:$0xff] %vm889_vm5, %v5442_v54  ;;  %v7198_v30 = vpop.f32.mrf.mxu1  ;;  %v6099_v20 = vsel %vm889_vm5, %v6061_v46, 0.0 }
 0x227   : > { %v6095_v57 = vsel %vm889_vm5, %v6059_v2, 0.0  ;;  %v6160_v48 = vmul.f32 %v6059_v2, %v6059_v2  ;;  %6265 = vst.msk [vmem:[%s8981_s30 + $0x28] sm:$0xff] %vm889_vm5, %v6059_v2  ;;  %6031 = vst.msk [vmem:[#allocation3 + $0x48] sm:$0xff] %vm889_vm5, %v5999_v59  ;;  %v6004_v37 = vadd.f32 %v7227_v56, %v5972_v11  ;;  %v5970_v36 = vld [vmem:[#allocation3 + $0x60] sm:$0xff]  ;;  %v5443_v9 = vadd.f32 %v7198_v30, %v5411_v12  ;;  %v5415_v59 = vld [vmem:[#allocation3 + $0xb8] sm:$0xff] }
 0x228   : > { %v6195_v35 = vadd.f32 %v6194_v28, %v6193_v14  ;;  %v6096_v34 = vadd.f32 %v6095_v57, %v6094_v47  ;;  %v9033_v42 = vld [vmem:[#allocation3 + $0x50] sm:$0xff]  ;;  %v5879_v23 = vpop.f32.mrf.mxu0  ;;  %5472 = vst.msk [vmem:[#allocation3 + $0x80] sm:$0xff] %vm889_vm5, %v5440_v43  ;;  %v5332_v27 = vpop.f32.mrf.mxu1  ;;  %v6200_v62 = vsel %vm889_vm5, %v6162_v44, 0.0 }
 0x229   : > { %v6196_v25 = vsel %vm889_vm5, %v6160_v48, 0.0  ;;  %6270 = vst.msk [vmem:[%s8981_s30 + $0x50] sm:$0xff] %vm889_vm5, %v9033_v42  ;;  %6036 = vst.msk [vmem:[#allocation3 + $0x70] sm:$0xff] %vm889_vm5, %v6004_v37  ;;  %v6002_v58 = vadd.f32 %v5970_v36, %v5879_v23  ;;  %v5973_v33 = vld [vmem:[#allocation3 + $0x78] sm:$0xff]  ;;  %v5441_v18 = vadd.f32 %v5409_v8, %v5332_v27  ;;  %v6165_v5 = vmul.f32 %v9033_v42, %v9033_v42  ;;  %v5413_v48 = vld [vmem:[#allocation3 + $0xa8] sm:$0xff] }
 0x22a   : > { %v6098_v26 = vadd.f32 %v6097_v6, %v6096_v34  ;;  %v6197_v17 = vadd.f32 %v6196_v25, %v6195_v35  ;;  %v6062_v53 = vld [vmem:[#allocation3 + $0x40] sm:$0xff]  ;;  %v7228_v38 = vpop.f32.mrf.mxu0  ;;  %5475 = vst.msk [vmem:[#allocation3 + $0x98] sm:$0xff] %vm889_vm5, %v5443_v9  ;;  %v7201_v50 = vpop.f32.mrf.mxu1  ;;  %v6105_v14 = vsel %vm889_vm5, %v9033_v42, 0.0  ;;  %v5418_v25 = vld [vmem:[#allocation3 + $0xd0] sm:$0xff] }
 0x22b   : > { %v6163_v15 = vmul.f32 %v6062_v53, %v6062_v53  ;;  %6268 = vst.msk [vmem:[%s8981_s30 + $0x40] sm:$0xff] %vm889_vm5, %v6062_v53  ;;  %6034 = vst.msk [vmem:[#allocation3 + $0x60] sm:$0xff] %vm889_vm5, %v6002_v58  ;;  %v6005_v61 = vadd.f32 %v7228_v38, %v5973_v33  ;;  %v5971_v24 = vld [vmem:[#allocation3 + $0x68] sm:$0xff]  ;;  %v5446_v55 = vadd.f32 %v7201_v50, %v5414_v3  ;;  %v6101_v22 = vsel %vm889_vm5, %v6062_v53, 0.0 }
 0x22c   : > { %v6199_v16 = vadd.f32 %v6198_v41, %v6197_v17  ;;  %v6100_v10 = vadd.f32 %v6099_v20, %v6098_v26  ;;  %v6065_v31 = vld [vmem:[#allocation3 + $0x58] sm:$0xff]  ;;  %v5882_v32 = vpop.f32.mrf.mxu0  ;;  %5473 = vst.msk [vmem:[#allocation3 + $0x88] sm:$0xff] %vm889_vm5, %v5441_v18  ;;  %v5345_v0 = vpop.f32.mrf.mxu1  ;;  %v6206_v34 = vsel %vm889_vm5, %v6165_v5, 0.0  ;;  %v5416_v20 = vld [vmem:[#allocation3 + $0xc0] sm:$0xff] }
 0x22d   : > { %6271 = vst.msk [vmem:[%s8981_s30 + $0x58] sm:$0xff] %vm889_vm5, %v6065_v31  ;;  %6037 = vst.msk [vmem:[#allocation3 + $0x78] sm:$0xff] %vm889_vm5, %v6005_v61  ;;  %v6003_v21 = vadd.f32 %v5971_v24, %v5882_v32  ;;  %v5976_v13 = vld [vmem:[#allocation3 + $0x90] sm:$0xff]  ;;  %v5444_v19 = vadd.f32 %v5412_v63, %v5345_v0  ;;  %v6202_v49 = vsel %vm889_vm5, %v6163_v15, 0.0  ;;  %v6166_v2 = vmul.f32 %v6065_v31, %v6065_v31 }
 0x22e   : > { %v6102_v4 = vadd.f32 %v6101_v22, %v6100_v10  ;;  %v6201_v7 = vadd.f32 %v6200_v62, %v6199_v16  ;;  %v6063_v39 = vld [vmem:[#allocation3 + $0x48] sm:$0xff]  ;;  %v7231_v52 = vpop.f32.mrf.mxu0  ;;  %5478 = vst.msk [vmem:[#allocation3 + $0xb0] sm:$0xff] %vm889_vm5, %v5446_v55  ;;  %v7202_v1 = vpop.f32.mrf.mxu1  ;;  %v6107_v42 = vsel %vm889_vm5, %v6065_v31, 0.0 }
 0x22f   : > { %v6103_v46 = vsel %vm889_vm5, %v6063_v39, 0.0  ;;  %v6164_v29 = vmul.f32 %v6063_v39, %v6063_v39  ;;  %6269 = vst.msk [vmem:[%s8981_s30 + $0x48] sm:$0xff] %vm889_vm5, %v6063_v39  ;;  %6035 = vst.msk [vmem:[#allocation3 + $0x68] sm:$0xff] %vm889_vm5, %v6003_v21  ;;  %v6008_v54 = vadd.f32 %v7231_v52, %v5976_v13  ;;  %v5974_v40 = vld [vmem:[#allocation3 + $0x80] sm:$0xff]  ;;  %v5447_v47 = vadd.f32 %v7202_v1, %v5415_v59  ;;  %v5419_v21 = vld [vmem:[#allocation3 + $0xd8] sm:$0xff] }
 0x230   : > { %v6203_v11 = vadd.f32 %v6202_v49, %v6201_v7  ;;  %v6104_v60 = vadd.f32 %v6103_v46, %v6102_v4  ;;  %v9063_v51 = vld [vmem:[#allocation3 + $0x70] sm:$0xff]  ;;  %v5895_v45 = vpop.f32.mrf.mxu0  ;;  %5476 = vst.msk [vmem:[#allocation3 + $0xa0] sm:$0xff] %vm889_vm5, %v5444_v19  ;;  %v5348_v57 = vpop.f32.mrf.mxu1  ;;  %v6208_v17 = vsel %vm889_vm5, %v6166_v2, 0.0 }
 0x231   : > { %v6204_v56 = vsel %vm889_vm5, %v6164_v29, 0.0  ;;  %6274 = vst.msk [vmem:[%s8981_s30 + $0x70] sm:$0xff] %vm889_vm5, %v9063_v51  ;;  %6040 = vst.msk [vmem:[#allocation3 + $0x90] sm:$0xff] %vm889_vm5, %v6008_v54  ;;  %v6006_v43 = vadd.f32 %v5974_v40, %v5895_v45  ;;  %v5977_v28 = vld [vmem:[#allocation3 + $0x98] sm:$0xff]  ;;  %v5445_v35 = vadd.f32 %v5413_v48, %v5348_v57  ;;  %v6169_v15 = vmul.f32 %v9063_v51, %v9063_v51  ;;  %v5417_v29 = vld [vmem:[#allocation3 + $0xc8] sm:$0xff] }
 0x232   : > { %v6106_v37 = vadd.f32 %v6105_v14, %v6104_v60  ;;  %v6205_v36 = vadd.f32 %v6204_v56, %v6203_v11  ;;  %v6066_v30 = vld [vmem:[#allocation3 + $0x60] sm:$0xff]  ;;  %v7232_v12 = vpop.f32.mrf.mxu0  ;;  %5479 = vst.msk [vmem:[#allocation3 + $0xb8] sm:$0xff] %vm889_vm5, %v5447_v47  ;;  %v6113_v7 = vsel %vm889_vm5, %v9063_v51, 0.0 }
 0x233   : > { %v6167_v23 = vmul.f32 %v6066_v30, %v6066_v30  ;;  %6272 = vst.msk [vmem:[%s8981_s30 + $0x60] sm:$0xff] %vm889_vm5, %v6066_v30  ;;  %6038 = vst.msk [vmem:[#allocation3 + $0x80] sm:$0xff] %vm889_vm5, %v6006_v43  ;;  %v6009_v9 = vadd.f32 %v7232_v12, %v5977_v28  ;;  %v5975_v6 = vld [vmem:[#allocation3 + $0x88] sm:$0xff]  ;;  %v7205_v44 = vpop.f32.mrf.mxu1  ;;  %v6109_v53 = vsel %vm889_vm5, %v6066_v30, 0.0  ;;  %v6214_v60 = vsel %vm889_vm5, %v6169_v15, 0.0 }
 0x234   : > { %v6207_v58 = vadd.f32 %v6206_v34, %v6205_v36  ;;  %v6108_v33 = vadd.f32 %v6107_v42, %v6106_v37  ;;  %v6069_v27 = vld [vmem:[#allocation3 + $0x78] sm:$0xff]  ;;  %v5898_v8 = vpop.f32.mrf.mxu0  ;;  %5477 = vst.msk [vmem:[#allocation3 + $0xa8] sm:$0xff] %vm889_vm5, %v5445_v35  ;;  %v5450_v26 = vadd.f32 %v7205_v44, %v5418_v25 }
 0x235   : > { %6275 = vst.msk [vmem:[%s8981_s30 + $0x78] sm:$0xff] %vm889_vm5, %v6069_v27  ;;  %6041 = vst.msk [vmem:[#allocation3 + $0x98] sm:$0xff] %vm889_vm5, %v6009_v9  ;;  %v6007_v38 = vadd.f32 %v5975_v6, %v5898_v8  ;;  %v5980_v18 = vld [vmem:[#allocation3 + $0xb0] sm:$0xff]  ;;  %v5361_v41 = vpop.f32.mrf.mxu1  ;;  %v6210_v10 = vsel %vm889_vm5, %v6167_v23, 0.0  ;;  %v6170_v39 = vmul.f32 %v6069_v27, %v6069_v27  ;;  %v6115_v51 = vsel %vm889_vm5, %v6069_v27, 0.0 }
 0x236   : > { %v6110_v61 = vadd.f32 %v6109_v53, %v6108_v33  ;;  %v6209_v24 = vadd.f32 %v6208_v17, %v6207_v58  ;;  %v6067_v50 = vld [vmem:[#allocation3 + $0x68] sm:$0xff]  ;;  %v7235_v3 = vpop.f32.mrf.mxu0  ;;  %5482 = vst.msk [vmem:[#allocation3 + $0xd0] sm:$0xff] %vm889_vm5, %v5450_v26  ;;  %v5448_v16 = vadd.f32 %v5416_v20, %v5361_v41  ;;  %v5422_v41 = vld [vmem:[#allocation3 + $0xf0] sm:$0xff] }
 0x237   : > { %v6111_v31 = vsel %vm889_vm5, %v6067_v50, 0.0  ;;  %v6168_v32 = vmul.f32 %v6067_v50, %v6067_v50  ;;  %6273 = vst.msk [vmem:[%s8981_s30 + $0x68] sm:$0xff] %vm889_vm5, %v6067_v50  ;;  %6039 = vst.msk [vmem:[#allocation3 + $0x88] sm:$0xff] %vm889_vm5, %v6007_v38  ;;  %v6012_v55 = vadd.f32 %v7235_v3, %v5980_v18  ;;  %v5978_v62 = vld [vmem:[#allocation3 + $0xa0] sm:$0xff]  ;;  %v7206_v22 = vpop.f32.mrf.mxu1  ;;  %v6216_v57 = vsel %vm889_vm5, %v6170_v39, 0.0 }
 0x238   : > { %v6211_v13 = vadd.f32 %v6210_v10, %v6209_v24  ;;  %v6112_v0 = vadd.f32 %v6111_v31, %v6110_v61  ;;  %v6072_v63 = vld [vmem:[#allocation3 + $0x90] sm:$0xff]  ;;  %v5911_v5 = vpop.f32.mrf.mxu0  ;;  %5480 = vst.msk [vmem:[#allocation3 + $0xc0] sm:$0xff] %vm889_vm5, %v5448_v16  ;;  %v5451_v4 = vadd.f32 %v7206_v22, %v5419_v21 }
 0x239   : > { %v6212_v52 = vsel %vm889_vm5, %v6168_v32, 0.0  ;;  %6278 = vst.msk [vmem:[%s8981_s30 + $0x90] sm:$0xff] %vm889_vm5, %v6072_v63  ;;  %6044 = vst.msk [vmem:[#allocation3 + $0xb0] sm:$0xff] %vm889_vm5, %v6012_v55  ;;  %v6010_v19 = vadd.f32 %v5978_v62, %v5911_v5  ;;  %v5981_v49 = vld [vmem:[#allocation3 + $0xb8] sm:$0xff]  ;;  %v5364_v46 = vpop.f32.mrf.mxu1  ;;  %v6173_v30 = vmul.f32 %v6072_v63, %v6072_v63  ;;  %v6121_v17 = vsel %vm889_vm5, %v6072_v63, 0.0  ;;  %v5420_v62 = vld [vmem:[#allocation3 + $0xe0] sm:$0xff] }
 0x23a   : > { %v6114_v54 = vadd.f32 %v6113_v7, %v6112_v0  ;;  %v6213_v40 = vadd.f32 %v6212_v52, %v6211_v13  ;;  %v6070_v1 = vld [vmem:[#allocation3 + $0x80] sm:$0xff]  ;;  %v7236_v59 = vpop.f32.mrf.mxu0  ;;  %5483 = vst.msk [vmem:[#allocation3 + $0xd8] sm:$0xff] %vm889_vm5, %v5451_v4  ;;  %v5449_v11 = vadd.f32 %v5417_v29, %v5364_v46 }
 0x23b   : > { %v6171_v45 = vmul.f32 %v6070_v1, %v6070_v1  ;;  %6276 = vst.msk [vmem:[%s8981_s30 + $0x80] sm:$0xff] %vm889_vm5, %v6070_v1  ;;  %6042 = vst.msk [vmem:[#allocation3 + $0xa0] sm:$0xff] %vm889_vm5, %v6010_v19  ;;  %v6013_v47 = vadd.f32 %v7236_v59, %v5981_v49  ;;  %v5979_v14 = vld [vmem:[#allocation3 + $0xa8] sm:$0xff]  ;;  %v6117_v48 = vsel %vm889_vm5, %v6070_v1, 0.0  ;;  %v6222_v10 = vsel %vm889_vm5, %v6173_v30, 0.0  ;;  %v5423_v19 = vld [vmem:[#allocation3 + $0xf8] sm:$0xff] }
 0x23c   : > { %v6215_v2 = vadd.f32 %v6214_v60, %v6213_v40  ;;  %v6116_v56 = vadd.f32 %v6115_v51, %v6114_v54  ;;  %v6073_v43 = vld [vmem:[#allocation3 + $0x98] sm:$0xff]  ;;  %v5914_v28 = vpop.f32.mrf.mxu0  ;;  %5481 = vst.msk [vmem:[#allocation3 + $0xc8] sm:$0xff] %vm889_vm5, %v5449_v11  ;;  %v5421_v11 = vld [vmem:[#allocation3 + $0xe8] sm:$0xff] }
 0x23d   : > { %6279 = vst.msk [vmem:[%s8981_s30 + $0x98] sm:$0xff] %vm889_vm5, %v6073_v43  ;;  %6045 = vst.msk [vmem:[#allocation3 + $0xb8] sm:$0xff] %vm889_vm5, %v6013_v47  ;;  %v6011_v37 = vadd.f32 %v5979_v14, %v5914_v28  ;;  %v5984_v36 = vld [vmem:[#allocation3 + $0xd0] sm:$0xff]  ;;  %v6218_v23 = vsel %vm889_vm5, %v6171_v45, 0.0  ;;  %v6174_v53 = vmul.f32 %v6073_v43, %v6073_v43  ;;  %v6123_v31 = vsel %vm889_vm5, %v6073_v43, 0.0 }
 0x23e   : > { %v6118_v12 = vadd.f32 %v6117_v48, %v6116_v56  ;;  %v6217_v35 = vadd.f32 %v6216_v57, %v6215_v2  ;;  %v6071_v34 = vld [vmem:[#allocation3 + $0x88] sm:$0xff]  ;;  %v7239_v42 = vpop.f32.mrf.mxu0 }
 0x23f   : > { %v6119_v9 = vsel %vm889_vm5, %v6071_v34, 0.0  ;;  %v6172_v6 = vmul.f32 %v6071_v34, %v6071_v34  ;;  %6277 = vst.msk [vmem:[%s8981_s30 + $0x88] sm:$0xff] %vm889_vm5, %v6071_v34  ;;  %6043 = vst.msk [vmem:[#allocation3 + $0xa8] sm:$0xff] %vm889_vm5, %v6011_v37  ;;  %v6016_v44 = vadd.f32 %v7239_v42, %v5984_v36  ;;  %v5982_v25 = vld [vmem:[#allocation3 + $0xc0] sm:$0xff]  ;;  %v6224_v7 = vsel %vm889_vm5, %v6174_v53, 0.0 }
 0x240   : > { %v6219_v58 = vadd.f32 %v6218_v23, %v6217_v35  ;;  %v6120_v33 = vadd.f32 %v6119_v9, %v6118_v12  ;;  %v6076_v27 = vld [vmem:[#allocation3 + $0xb0] sm:$0xff]  ;;  %v5927_v8 = vpop.f32.mrf.mxu0 }
 0x241   : > { %v7209_v26 = vpop.f32.mrf.mxu1  ;;  %v6220_v38 = vsel %vm889_vm5, %v6172_v6, 0.0  ;;  %6282 = vst.msk [vmem:[%s8981_s30 + $0xb0] sm:$0xff] %vm889_vm5, %v6076_v27  ;;  %6048 = vst.msk [vmem:[#allocation3 + $0xd0] sm:$0xff] %vm889_vm5, %v6016_v44  ;;  %v6014_v18 = vadd.f32 %v5982_v25, %v5927_v8  ;;  %v5985_v20 = vld [vmem:[#allocation3 + $0xd8] sm:$0xff]  ;;  %v6177_v49 = vmul.f32 %v6076_v27, %v6076_v27  ;;  %v6129_v28 = vsel %vm889_vm5, %v6076_v27, 0.0 }
 0x242   : > { %v6122_v15 = vadd.f32 %v6121_v17, %v6120_v33  ;;  %v6221_v61 = vadd.f32 %v6220_v38, %v6219_v58  ;;  %v6074_v24 = vld [vmem:[#allocation3 + $0xa0] sm:$0xff]  ;;  %v5454_v50 = vadd.f32 %v7209_v26, %v5422_v41  ;;  %v7240_v3 = vpop.f32.mrf.mxu0 }
 0x243   : > { %v5377_v16 = vpop.f32.mrf.mxu1  ;;  %v6175_v32 = vmul.f32 %v6074_v24, %v6074_v24  ;;  %6280 = vst.msk [vmem:[%s8981_s30 + $0xa0] sm:$0xff] %vm889_vm5, %v6074_v24  ;;  %6046 = vst.msk [vmem:[#allocation3 + $0xc0] sm:$0xff] %vm889_vm5, %v6014_v18  ;;  %v6017_v55 = vadd.f32 %v7240_v3, %v5985_v20  ;;  %v5983_v22 = vld [vmem:[#allocation3 + $0xc8] sm:$0xff]  ;;  %v6125_v39 = vsel %vm889_vm5, %v6074_v24, 0.0  ;;  %v6230_v12 = vsel %vm889_vm5, %v6177_v49, 0.0 }
 0x244   : > { %v6223_v21 = vadd.f32 %v6222_v10, %v6221_v61  ;;  %v6124_v13 = vadd.f32 %v6123_v31, %v6122_v15  ;;  %v6077_v0 = vld [vmem:[#allocation3 + $0xb8] sm:$0xff]  ;;  %5486 = vst.msk [vmem:[#allocation3 + $0xf0] sm:$0xff] %vm889_vm5, %v5454_v50  ;;  %v5452_v63 = vadd.f32 %v5420_v62, %v5377_v16  ;;  %v5930_v5 = vpop.f32.mrf.mxu0 }
 0x245   : > { %v7210_v4 = vpop.f32.mrf.mxu1  ;;  %6283 = vst.msk [vmem:[%s8981_s30 + $0xb8] sm:$0xff] %vm889_vm5, %v6077_v0  ;;  %6049 = vst.msk [vmem:[#allocation3 + $0xd8] sm:$0xff] %vm889_vm5, %v6017_v55  ;;  %v6015_v52 = vadd.f32 %v5983_v22, %v5930_v5  ;;  %v6226_v60 = vsel %vm889_vm5, %v6175_v32, 0.0  ;;  %v6178_v57 = vmul.f32 %v6077_v0, %v6077_v0  ;;  %v6131_v35 = vsel %vm889_vm5, %v6077_v0, 0.0 }
 0x246   : > { %v6126_v46 = vadd.f32 %v6125_v39, %v6124_v13  ;;  %v6225_v29 = vadd.f32 %v6224_v7, %v6223_v21  ;;  %v6075_v54 = vld [vmem:[#allocation3 + $0xa8] sm:$0xff]  ;;  %5484 = vst.msk [vmem:[#allocation3 + $0xe0] sm:$0xff] %vm889_vm5, %v5452_v63  ;;  %v5455_v40 = vadd.f32 %v7210_v4, %v5423_v19  ;;  %v7243_v1 = vpop.f32.mrf.mxu0 }
 0x247   : > { %v5380_v59 = vpop.f32.mrf.mxu1  ;;  %v6127_v51 = vsel %vm889_vm5, %v6075_v54, 0.0  ;;  %v6176_v45 = vmul.f32 %v6075_v54, %v6075_v54  ;;  %6281 = vst.msk [vmem:[%s8981_s30 + $0xa8] sm:$0xff] %vm889_vm5, %v6075_v54  ;;  %6047 = vst.msk [vmem:[#allocation3 + $0xc8] sm:$0xff] %vm889_vm5, %v6015_v52  ;;  %v6232_v58 = vsel %vm889_vm5, %v6178_v57, 0.0 }
 0x248   : > { %v5453_v47 = vadd.f32 %v5421_v11, %v5380_v59  ;;  %v6227_v14 = vadd.f32 %v6226_v60, %v6225_v29  ;;  %v6128_v2 = vadd.f32 %v6127_v51, %v6126_v46  ;;  %v6080_v56 = vld [vmem:[#allocation3 + $0xd0] sm:$0xff]  ;;  %5487 = vst.msk [vmem:[#allocation3 + $0xf8] sm:$0xff] %vm889_vm5, %v5455_v40  ;;  %v5943_v43 = vpop.f32.mrf.mxu0 }
 0x249   : > { %v6228_v48 = vsel %vm889_vm5, %v6176_v45, 0.0  ;;  %6286 = vst.msk [vmem:[%s8981_s30 + $0xd0] sm:$0xff] %vm889_vm5, %v6080_v56  ;;  %v6181_v38 = vmul.f32 %v6080_v56, %v6080_v56  ;;  %v6137_v10 = vsel %vm889_vm5, %v6080_v56, 0.0 }
 0x24a   : > { %5485 = vst.msk [vmem:[#allocation3 + $0xe8] sm:$0xff] %vm889_vm5, %v5453_v47  ;;  %v6130_v37 = vadd.f32 %v6129_v28, %v6128_v2  ;;  %v6229_v36 = vadd.f32 %v6228_v48, %v6227_v14  ;;  %v6078_v30 = vld [vmem:[#allocation3 + $0xc0] sm:$0xff]  ;;  %v7244_v25 = vpop.f32.mrf.mxu0 }
 0x24b   : > { %v6179_v34 = vmul.f32 %v6078_v30, %v6078_v30  ;;  %6284 = vst.msk [vmem:[%s8981_s30 + $0xc0] sm:$0xff] %vm889_vm5, %v6078_v30  ;;  %v5988_v42 = vld [vmem:[#allocation3 + $0xf0] sm:$0xff]  ;;  %v6133_v33 = vsel %vm889_vm5, %v6078_v30, 0.0  ;;  %v6238_v21 = vsel %vm889_vm5, %v6181_v38, 0.0 }
 0x24c   : > { %v6231_v23 = vadd.f32 %v6230_v12, %v6229_v36  ;;  %v6132_v9 = vadd.f32 %v6131_v35, %v6130_v37  ;;  %v6081_v6 = vld [vmem:[#allocation3 + $0xd8] sm:$0xff]  ;;  %v6020_v44 = vadd.f32 %v7243_v1, %v5988_v42  ;;  %v5946_v3 = vpop.f32.mrf.mxu0 }
 0x24d   : > { %6287 = vst.msk [vmem:[%s8981_s30 + $0xd8] sm:$0xff] %vm889_vm5, %v6081_v6  ;;  %v5986_v27 = vld [vmem:[#allocation3 + $0xe0] sm:$0xff]  ;;  %v6234_v18 = vsel %vm889_vm5, %v6179_v34, 0.0  ;;  %v6182_v55 = vmul.f32 %v6081_v6, %v6081_v6  ;;  %v6139_v13 = vsel %vm889_vm5, %v6081_v6, 0.0 }
 0x24e   : > { %v6134_v8 = vadd.f32 %v6133_v33, %v6132_v9  ;;  %v6233_v26 = vadd.f32 %v6232_v58, %v6231_v23  ;;  %v6079_v17 = vld [vmem:[#allocation3 + $0xc8] sm:$0xff]  ;;  %6052 = vst.msk [vmem:[#allocation3 + $0xf0] sm:$0xff] %vm889_vm5, %v6020_v44  ;;  %v6018_v53 = vadd.f32 %v5986_v27, %v5943_v43 }
 0x24f   : > { %v6135_v41 = vsel %vm889_vm5, %v6079_v17, 0.0  ;;  %v6180_v20 = vmul.f32 %v6079_v17, %v6079_v17  ;;  %6285 = vst.msk [vmem:[%s8981_s30 + $0xc8] sm:$0xff] %vm889_vm5, %v6079_v17  ;;  %v5989_v15 = vld [vmem:[#allocation3 + $0xf8] sm:$0xff]  ;;  %v6240_v4 = vsel %vm889_vm5, %v6182_v55, 0.0 }
 0x250   : > { %v6235_v61 = vadd.f32 %v6234_v18, %v6233_v26  ;;  %v6136_v24 = vadd.f32 %v6135_v41, %v6134_v8  ;;  %6050 = vst.msk [vmem:[#allocation3 + $0xe0] sm:$0xff] %vm889_vm5, %v6018_v53  ;;  %v6021_v50 = vadd.f32 %v7244_v25, %v5989_v15 }
 0x251   : > { %v5987_v16 = vld [vmem:[#allocation3 + $0xe8] sm:$0xff]  ;;  %v6236_v31 = vsel %vm889_vm5, %v6180_v20, 0.0 }
 0x252   : > { %v6019_v32 = vadd.f32 %v5987_v16, %v5946_v3  ;;  %v6138_v62 = vadd.f32 %v6137_v10, %v6136_v24  ;;  %v6237_v22 = vadd.f32 %v6236_v31, %v6235_v61  ;;  %6053 = vst.msk [vmem:[#allocation3 + $0xf8] sm:$0xff] %vm889_vm5, %v6021_v50 }
 0x254   : > { %6051 = vst.msk [vmem:[#allocation3 + $0xe8] sm:$0xff] %vm889_vm5, %v6019_v32  ;;  %v6239_v0 = vadd.f32 %v6238_v21, %v6237_v22  ;;  %v6140_v5 = vadd.f32 %v6139_v13, %v6138_v62 }
 0x255   : > { %v6084_v63 = vld [vmem:[#allocation3 + $0xf0] sm:$0xff] }
 0x256   : > { %6290 = vst.msk [vmem:[%s8981_s30 + $0xf0] sm:$0xff] %vm889_vm5, %v6084_v63  ;;  %v6241_v39 = vadd.f32 %v6240_v4, %v6239_v0  ;;  %v6185_v40 = vmul.f32 %v6084_v63, %v6084_v63  ;;  %v6145_v51 = vsel %vm889_vm5, %v6084_v63, 0.0 }
 0x257   : > { %v6082_v7 = vld [vmem:[#allocation3 + $0xe0] sm:$0xff] }
 0x258   : > { %v6141_v52 = vsel %vm889_vm5, %v6082_v7, 0.0  ;;  %v6183_v19 = vmul.f32 %v6082_v7, %v6082_v7  ;;  %6288 = vst.msk [vmem:[%s8981_s30 + $0xe0] sm:$0xff] %vm889_vm5, %v6082_v7  ;;  %v6246_v56 = vsel %vm889_vm5, %v6185_v40, 0.0 }
 0x259   : > { %v6142_v49 = vadd.f32 %v6141_v52, %v6140_v5  ;;  %v6085_v46 = vld [vmem:[#allocation3 + $0xf8] sm:$0xff] }
 0x25a   : > { %v6242_v29 = vsel %vm889_vm5, %v6183_v19, 0.0  ;;  %6291 = vst.msk [vmem:[%s8981_s30 + $0xf8] sm:$0xff] %vm889_vm5, %v6085_v46  ;;  %v6186_v45 = vmul.f32 %v6085_v46, %v6085_v46  ;;  %v6147_v43 = vsel %vm889_vm5, %v6085_v46, 0.0 }
 0x25b   : > { %v6083_v54 = vld [vmem:[#allocation3 + $0xe8] sm:$0xff]  ;;  %v6243_v1 = vadd.f32 %v6242_v29, %v6241_v39 }
 0x25c   : > { %v6143_v59 = vsel %vm889_vm5, %v6083_v54, 0.0  ;;  %v6184_v11 = vmul.f32 %v6083_v54, %v6083_v54  ;;  %6289 = vst.msk [vmem:[%s8981_s30 + $0xe8] sm:$0xff] %vm889_vm5, %v6083_v54  ;;  %v6248_v48 = vsel %vm889_vm5, %v6186_v45, 0.0 }
 0x25d   : > { %v6144_v60 = vadd.f32 %v6143_v59, %v6142_v49 }
 0x25e   : > { %v6244_v47 = vsel %vm889_vm5, %v6184_v11, 0.0 }
 0x25f   : > { %v6146_v14 = vadd.f32 %v6145_v51, %v6144_v60  ;;  %v6245_v2 = vadd.f32 %v6244_v47, %v6243_v1 }
 0x261   : > { %v6148_v28 = vadd.f32 %v6147_v43, %v6146_v14  ;;  %v6247_v57 = vadd.f32 %v6246_v56, %v6245_v2 }
 0x263   : > { %v6149_v37 = vrot.slane %v6148_v28, 4  ;;  %v6249_v36 = vadd.f32 %v6248_v48, %v6247_v57 }
 0x265   : > { %v6150_v30 = vadd.f32 %v6149_v37, %v6148_v28  ;;  %v6250_v12 = vrot.slane %v6249_v36, 4 }
 0x267   : > { %v6151_v35 = vrot.slane %v6150_v30, 2  ;;  %v6251_v34 = vadd.f32 %v6250_v12, %v6249_v36 }
 0x269   : > { %v6152_v42 = vadd.f32 %v6151_v35, %v6150_v30  ;;  %v6252_v23 = vrot.slane %v6251_v34, 2 }
 0x26b   : > { %v6153_v9 = vrot.slane %v6152_v42, 1  ;;  %v6253_v6 = vadd.f32 %v6252_v23, %v6251_v34 }
 0x26d   : > { %v6254_v44 = vrot.slane %v6253_v6, 1  ;;  %v6154_v25 = vadd.f32 %v6153_v9, %v6152_v42 }
 0x26f   : > { %v6255_v58 = vadd.f32 %v6254_v44, %v6253_v6 }
 0x271   : > { %v6257_v33 = vsel %vm516_vm3, %v6154_v25, %v6255_v58 }
 0x272   : > { %6259 = vst.msk [vmem:[%s235_s8] sm:$0x3] %vm6258_vm13, %v6257_v33 }
 0x273 PF: > { %s16_s18 = sadd.s32 1, %s7322_s18  }
 0x274   : > { %p13_p4 = scmp.ge.s32.totalorder %s16_s18, 4  }
 0x276   :  { %15 = sbr.rel (!%p13_p4) target bundleno = 1 (0x1), region = 89 }

// kernel: sto_basic_block.4
= control target key start
LH: loop header
LB: loop body
LE: loop exit
PB: predicated region body
PF: predicated region fallthrough
CT: control target
= control target key end

     0   :  { %s7387_s18 = smov 0   ;;  %s9177_s0 = inlined_call_operand.vmem [shape: f32[2,16,16,4], index: 0, kind: input, shape index: {}]   ;;  %s9178_s1 = inlined_call_operand.vmem [shape: f32[1,4], index: 1, kind: input, shape index: {}]   ;;  %s9179_s2 = inlined_call_operand.vmem [shape: f32[1,4], index: 2, kind: input, shape index: {}]   ;;  %s9180_s3 = inlined_call_operand.vmem [shape: bf16[9,4,4], index: 3, kind: input, shape index: {}]   ;;  %s9181_s4 = inlined_call_operand.vmem [shape: f32[2,16,16,4], index: 4, kind: output, shape index: {0}]   ;;  %s9182_s5 = inlined_call_operand.vmem [shape: f32[2,2,4], index: 5, kind: output, shape index: {1}]  }
   0x1 LB: > { %s6410_s19 = sadd.s32 4294967295, %s7354_s18   ;;  %p6414_p0 = scmp.ge.s32.totalorder %s7354_s18, 1  ;;  %s7354_s18 = sphi %s7387_s18, %s16_s18  }
   0x2   : > { %p190_p1 = scmp.lt.s32.totalorder %s7354_s18, 3 }
   0x4   : > { %p191_p2 = pnand %p6414_p0, %p190_p1 }
   0x5   : > { %p222_p3 = scmp.lt.s32.totalorder (!%p191_p2), %s6410_s19, 1 }
   0x6   : > { %194 = sbr.rel (%p191_p2) target bundleno = 635 (0x27b), region = 36 }
   0xb   : > { %v840_v0 = vld [vmem:[%s9180_s3] sm:$0x3]  ;;  %vm970_vm0 = vcmask 1041408   ;;  %s9190_s19 = smov (!%p222_p3, %s6410_s19), 1  ;;  %vm395_vm1 = vcmask 27648   ;;  %v7356_v3 = vmov 0  }
   0xc   : > { %7280 = vmatprep.subr.msk.bf16.mxu1 %vm970_vm0, %v840_v0  ;;  %v972_v1 = vsel %vm970_vm0, %v840_v0, 0  ;;  %7279 = vmatprep.subr.msk.bf16.mxu0 %vm970_vm0, %v840_v0  ;;  %v6502_v2 = vld [vmem:[%s9180_s3 + $0x2] sm:$0x3]  ;;  %396 = vst.msk [vmem:[#allocation2] sm:$0xf] %vm395_vm1, %v7356_v3  ;;  %vm398_vm2 = vcmask 24576  }
   0xd   : > { %7278 = vmatpush3.bf16.msra.mxu1 %v972_v1  ;;  %6972 = vmatpush3.bf16.msra.mxu0 %v972_v1  ;;  %397 = vst.msk [vmem:[#allocation2 + $0x4] sm:$0xf] %vm395_vm1, %v7356_v3  ;;  %401 = vst.msk [vmem:[#allocation2 + $0xcc] sm:$0xf] %vm395_vm1, %v7356_v3  ;;  %v6551_v4 = vld [vmem:[%s9180_s3 + $0x4] sm:$0x3] }
   0xe   : > { %7281 = vmatprep.subr.msk.bf16.mxu1 %vm970_vm0, %v6502_v2  ;;  %402 = vst.msk [vmem:[#allocation2 + $0xd0] sm:$0xf] %vm395_vm1, %v7356_v3  ;;  %s6816_s26 = sshll.u32 %s9190_s19, 8  ;;  %v7418_v5 = vld [vmem:[%s9178_s1] ss:$0 sm:$0xff]  ;;  %7282 = vmatprep.subr.msk.bf16.mxu0 %vm970_vm0, %v6551_v4  ;;  %vm921_vm3 = vcmask 31744  }
   0xf   : > { %399 = vst.msk [vmem:[#allocation2 + $0x8] sm:$0x1] %vm398_vm2, %v7356_v3  ;;  %403 = vst.msk [vmem:[#allocation2 + $0xd4] sm:$0x1] %vm398_vm2, %v7356_v3  ;;  %s7428_s6 = scalar_lea.vmem %s9177_s0, %s6816_s26  ;;  %v7433_v6 = vld [vmem:[%s9179_s2] ss:$0 sm:$0xff]  ;;  %s8968_s30 = scalar_lea.vmem %s9181_s4, %s6816_s26 }
  0x10   : > { %v251_v7 = vld [vmem:[%s7428_s6 + $0x70] sm:$0xff]  ;;  %v252_v8 = vld [vmem:[%s7428_s6 + $0x78] sm:$0xff]  ;;  %v253_v9 = vld [vmem:[%s7428_s6 + $0x80] sm:$0xff]  ;;  %vm548_vm4 = vcmask 1040384   ;;  %vm549_vm5 = vsmask.f32 256 }
  0x11   : > { %v290_v10 = vmul.f32 %v7418_v5, %v251_v7  ;;  %v291_v11 = vmul.f32 %v7418_v5, %v252_v8  ;;  %v254_v12 = vld [vmem:[%s7428_s6 + $0x88] sm:$0xff]  ;;  %v292_v13 = vmul.f32 %v7418_v5, %v253_v9  ;;  %v7443_v14 = vsel %vm970_vm0, %v6502_v2, 0  ;;  %v237_v15 = vld [vmem:[%s7428_s6] sm:$0xff]  ;;  %v255_v20 = vld [vmem:[%s7428_s6 + $0x90] sm:$0xff]  ;;  %s6419_s26 = sshll.u32 %s9190_s19, 1 }
  0x12   : > { %v238_v16 = vld [vmem:[%s7428_s6 + $0x8] sm:$0xff]  ;;  %v293_v17 = vmul.f32 %v7418_v5, %v254_v12  ;;  %v276_v18 = vmul.f32 %v7418_v5, %v237_v15  ;;  %v256_v21 = vld [vmem:[%s7428_s6 + $0x98] sm:$0xff]  ;;  %v7453_v22 = vsel %vm970_vm0, %v6551_v4, 0  ;;  %v294_v26 = vmul.f32 %v7418_v5, %v255_v20  ;;  %v257_v27 = vld [vmem:[%s7428_s6 + $0xa0] sm:$0xff]  ;;  %s235_s8 = scalar_lea.vmem %s9182_s5, %s6419_s26 }
  0x13   : > { %v277_v19 = vmul.f32 %v7418_v5, %v238_v16  ;;  %v329_v23 = vadd.f32 %v7433_v6, %v290_v10  ;;  %v330_v24 = vadd.f32 %v7433_v6, %v291_v11  ;;  %v331_v25 = vadd.f32 %v7433_v6, %v292_v13  ;;  %v258_v28 = vld [vmem:[%s7428_s6 + $0xa8] sm:$0xff]  ;;  %v239_v38 = vld [vmem:[%s7428_s6 + $0x10] sm:$0xff]  ;;  %v240_v55 = vld [vmem:[%s7428_s6 + $0x18] sm:$0xff] }
  0x14   : > { %v332_v29 = vadd.f32 %v7433_v6, %v293_v17  ;;  %v7300_v30 = vld [vmem:[#allocation2] sm:$0xff]   ;;  %v315_v31 = vadd.f32 %v7433_v6, %v276_v18  ;;  %v295_v33 = vmul.f32 %v7418_v5, %v256_v21  ;;  %v333_v37 = vadd.f32 %v7433_v6, %v294_v26  ;;  %vm7477_vm6 = vmand %vm548_vm4, %vm549_vm5  ;;  %v242_v26 = vld [vmem:[%s7428_s6 + $0x28] sm:$0xff] }
  0x15   : > { %v316_v32 = vadd.f32 %v7433_v6, %v277_v19  ;;  %v361_v34 = vmax.f32 %v329_v23, 0.0  ;;  %v362_v35 = vmax.f32 %v330_v24, 0.0  ;;  %v363_v36 = vmax.f32 %v331_v25, 0.0  ;;  %6973 = vmatprep.mubr.msk.bf16.mxu0 %vm921_vm3, %v7300_v30  ;;  %v241_v25 = vld [vmem:[%s7428_s6 + $0x20] sm:$0xff] }
  0x16   : > { %v364_v39 = vmax.f32 %v332_v29, 0.0  ;;  %v347_v40 = vmax.f32 %v315_v31, 0.0  ;;  %v334_v42 = vadd.f32 %v7433_v6, %v295_v33  ;;  %v365_v44 = vmax.f32 %v333_v37, 0.0 }
  0x17   : > { %v348_v41 = vmax.f32 %v316_v32, 0.0  ;;  %v386_v43 = vpack.c.bf16 %v362_v35, %v361_v34  ;;  %v296_v45 = vmul.f32 %v7418_v5, %v257_v27  ;;  %v297_v46 = vmul.f32 %v7418_v5, %v258_v28  ;;  %v259_v27 = vld [vmem:[%s7428_s6 + $0xb0] sm:$0xff]  ;;  %v260_v32 = vld [vmem:[%s7428_s6 + $0xb8] sm:$0xff] }
  0x18   : > { %v387_v47 = vpack.c.bf16 %v364_v39, %v363_v36  ;;  %v366_v49 = vmax.f32 %v334_v42, 0.0  ;;  %v278_v50 = vmul.f32 %v7418_v5, %v239_v38  ;;  %v279_v3 = vmul.f32 %v7418_v5, %v240_v55 }
  0x19   : > { %v379_v48 = vpack.c.bf16 %v348_v41, %v347_v40  ;;  %v454_v51 = vshrl.u32 %v386_v43, 16  ;;  %v457_v52 = vshll.u32 %v386_v43, 16  ;;  %v335_v53 = vadd.f32 %v7433_v6, %v296_v45  ;;  %v261_v45 = vld [vmem:[%s7428_s6 + $0xc0] sm:$0xff] }
  0x1a   : > { %v336_v54 = vadd.f32 %v7433_v6, %v297_v46  ;;  %v461_v56 = vshrl.u32 %v387_v47, 16  ;;  %v464_v57 = vshll.u32 %v387_v47, 16  ;;  %v388_v61 = vpack.c.bf16 %v366_v49, %v365_v44  ;;  %v262_v46 = vld [vmem:[%s7428_s6 + $0xc8] sm:$0xff] }
  0x1b   : > { %v405_v58 = vshrl.u32 %v379_v48, 16  ;;  %v408_v59 = vshll.u32 %v379_v48, 16  ;;  %v456_v60 = vrot.slane %v454_v51, 7  ;;  %v367_v62 = vmax.f32 %v335_v53, 0.0 }
  0x1c   : > { %v368_v63 = vmax.f32 %v336_v54, 0.0  ;;  %v7481_v1 = vrot.slane %v461_v56, 7  ;;  %v317_v4 = vadd.f32 %v7433_v6, %v278_v50  ;;  %v468_v9 = vshrl.u32 %v388_v61, 16 }
  0x1d   : > { %v407_v2 = vrot.slane %v405_v58, 7  ;;  %v459_v7 = vor.u32 %v457_v52, %v456_v60  ;;  %v574_v8 = vsel %vm7477_vm6, %v456_v60, 0  ;;  %v471_v10 = vshll.u32 %v388_v61, 16 }
  0x1e   : > { %v6445_v11 = vcombine.low %v574_v8, %v574_v8  ;;  %v466_v12 = vor.u32 %v464_v57, %v7481_v1  ;;  %v7492_v18 = vrot.slane %v468_v9, 7  ;;  %v389_v19 = vpack.c.bf16 %v368_v63, %v367_v62 }
  0x1f   : > { %v410_v13 = vor.u32 %v408_v59, %v407_v2  ;;  %v567_v15 = vsel %vm7477_vm6, %v407_v2, 0  ;;  %v558_v16 = vsel %vm7477_vm6, 0, %v459_v7  ;;  %v318_v36 = vadd.f32 %v7433_v6, %v279_v3  ;;  %v243_v59 = vld [vmem:[%s7428_s6 + $0x30] sm:$0xff]  ;;  %v244_v2 = vld [vmem:[%s7428_s6 + $0x38] sm:$0xff]  ;;  %v245_v3 = vld [vmem:[%s7428_s6 + $0x40] sm:$0xff] }
  0x20   : > { %v6424_v17 = vcombine.low %v567_v15, %v567_v15  ;;  %v6443_v20 = vcombine.low %v558_v16, %v558_v16  ;;  %v6444_v21 = vcombine.high %v558_v16, %v558_v16  ;;  %v559_v23 = vsel %vm7477_vm6, 0, %v466_v12  ;;  %783 = vst.msk [vmem:[#allocation2 + $0x68] sm:$0x1] %vm398_vm2, %v6445_v11  ;;  %v246_v11 = vld [vmem:[%s7428_s6 + $0x48] sm:$0xff]  ;;  %v7540_v12 = vld [vmem:[%s9180_s3 + $0x6] sm:$0x3] }
  0x21   : > { %v551_v24 = vsel %vm7477_vm6, 0, %v410_v13  ;;  %v6446_v28 = vcombine.low %v559_v23, %v559_v23  ;;  %v6447_v29 = vcombine.high %v559_v23, %v559_v23  ;;  %v473_v33 = vor.u32 %v471_v10, %v7492_v18 }
  0x22   : > { %v6422_v30 = vcombine.low %v551_v24, %v551_v24  ;;  %v6423_v31 = vcombine.high %v551_v24, %v551_v24  ;;  %762 = vst.msk [vmem:[#allocation2 + $0x14] sm:$0x1] %vm398_vm2, %v6424_v17  ;;  %v475_v34 = vshrl.u32 %v389_v19, 16  ;;  %v478_v35 = vshll.u32 %v389_v19, 16 }
  0x23   : > { %781 = vst.msk [vmem:[#allocation2 + $0x60] sm:$0xf] %vm395_vm1, %v6443_v20  ;;  %782 = vst.msk [vmem:[#allocation2 + $0x64] sm:$0xf] %vm395_vm1, %v6444_v21  ;;  %v349_v37 = vmax.f32 %v317_v4, 0.0  ;;  %v280_v38 = vmul.f32 %v7418_v5, %v241_v25  ;;  %v281_v39 = vmul.f32 %v7418_v5, %v242_v26  ;;  %v298_v40 = vmul.f32 %v7418_v5, %v259_v27 }
  0x24   : > { %784 = vst.msk [vmem:[#allocation2 + $0x6c] sm:$0xf] %vm395_vm1, %v6446_v28  ;;  %785 = vst.msk [vmem:[#allocation2 + $0x70] sm:$0xf] %vm395_vm1, %v6447_v29  ;;  %v560_v41 = vsel %vm7477_vm6, 0, %v473_v33  ;;  %v7517_v42 = vrot.slane %v475_v34, 7  ;;  %v299_v44 = vmul.f32 %v7418_v5, %v260_v32  ;;  %v300_v57 = vmul.f32 %v7418_v5, %v261_v45 }
  0x25   : > { %760 = vst.msk [vmem:[#allocation2 + $0xc] sm:$0xf] %vm395_vm1, %v6422_v30  ;;  %761 = vst.msk [vmem:[#allocation2 + $0x10] sm:$0xf] %vm395_vm1, %v6423_v31  ;;  %v350_v43 = vmax.f32 %v318_v36, 0.0  ;;  %v6449_v47 = vcombine.low %v560_v41, %v560_v41  ;;  %v6450_v48 = vcombine.high %v560_v41, %v560_v41  ;;  %v319_v49 = vadd.f32 %v7433_v6, %v280_v38 }
  0x26   : > { %v320_v50 = vadd.f32 %v7433_v6, %v281_v39  ;;  %v480_v51 = vor.u32 %v478_v35, %v7517_v42  ;;  %v337_v53 = vadd.f32 %v7433_v6, %v298_v40  ;;  %v338_v54 = vadd.f32 %v7433_v6, %v299_v44  ;;  %v7557_v30 = vld [vmem:[%s9180_s3 + $0x8] sm:$0x3] }
  0x27   : > { %v380_v52 = vpack.c.bf16 %v350_v43, %v349_v37  ;;  %787 = vst.msk [vmem:[#allocation2 + $0x78] sm:$0xf] %vm395_vm1, %v6449_v47  ;;  %788 = vst.msk [vmem:[#allocation2 + $0x7c] sm:$0xf] %vm395_vm1, %v6450_v48  ;;  %v351_v55 = vmax.f32 %v319_v49, 0.0  ;;  %v301_v58 = vmul.f32 %v7418_v5, %v262_v46  ;;  %v339_v16 = vadd.f32 %v7433_v6, %v300_v57  ;;  %v263_v47 = vld [vmem:[%s7428_s6 + $0xd0] sm:$0xff] }
  0x28   : > { %v352_v56 = vmax.f32 %v320_v50, 0.0  ;;  %v561_v60 = vsel %vm7477_vm6, 0, %v480_v51  ;;  %v369_v63 = vmax.f32 %v337_v53, 0.0  ;;  %v370_v10 = vmax.f32 %v338_v54, 0.0 }
  0x29   : > { %v412_v61 = vshrl.u32 %v380_v52, 16  ;;  %v415_v62 = vshll.u32 %v380_v52, 16  ;;  %v6452_v7 = vcombine.low %v561_v60, %v561_v60  ;;  %v6453_v8 = vcombine.high %v561_v60, %v561_v60  ;;  %v264_v52 = vld [vmem:[%s7428_s6 + $0xd8] sm:$0xff] }
  0x2a   : > { %v7298_v4 = vld [vmem:[#allocation2 + $0x60] sm:$0xff]   ;;  %v381_v9 = vpack.c.bf16 %v352_v56, %v351_v55  ;;  %v340_v17 = vadd.f32 %v7433_v6, %v301_v58  ;;  %v282_v19 = vmul.f32 %v7418_v5, %v243_v59  ;;  %v390_v23 = vpack.c.bf16 %v370_v10, %v369_v63  ;;  %v266_v63 = vld [vmem:[%s7428_s6 + $0xe8] sm:$0xff] }
  0x2b   : > { %v7299_v13 = vld [vmem:[#allocation2 + $0x6c] sm:$0xff]   ;;  %v7542_v15 = vrot.slane %v412_v61, 7  ;;  %6989 = vmatprep.mubr.msk.bf16.mxu1 %vm921_vm3, %v7298_v4  ;;  %790 = vst.msk [vmem:[#allocation2 + $0x84] sm:$0xf] %vm395_vm1, %v6452_v7  ;;  %791 = vst.msk [vmem:[#allocation2 + $0x88] sm:$0xf] %vm395_vm1, %v6453_v8  ;;  %v283_v24 = vmul.f32 %v7418_v5, %v244_v2  ;;  %v284_v25 = vmul.f32 %v7418_v5, %v245_v3 }
  0x2c   : > { %v7301_v20 = vld [vmem:[#allocation2 + $0xc] sm:$0xff]   ;;  %v419_v21 = vshrl.u32 %v381_v9, 16  ;;  %6990 = vmatmul.mubr.msk.bf16.vlgmr.msra.gmra.mxu1 %vm921_vm3, %v7299_v13  ;;  %v422_v27 = vshll.u32 %v381_v9, 16  ;;  %v371_v28 = vmax.f32 %v339_v16, 0.0  ;;  %v372_v29 = vmax.f32 %v340_v17, 0.0 }
  0x2d   : > { %v417_v26 = vor.u32 %v415_v62, %v7542_v15  ;;  %7006 = vmatpush3.bf16.msra.mxu1 %v7443_v14  ;;  %6974 = vmatmul.mubr.msk.bf16.vlgmr.msra.gmra.mxu0 %vm921_vm3, %v7301_v20  ;;  %v482_v32 = vshrl.u32 %v390_v23, 16  ;;  %v485_v33 = vshll.u32 %v390_v23, 16  ;;  %v321_v34 = vadd.f32 %v7433_v6, %v282_v19  ;;  %v265_v62 = vld [vmem:[%s7428_s6 + $0xe0] sm:$0xff]  ;;  %v247_v20 = vld [vmem:[%s7428_s6 + $0x50] sm:$0xff] }
  0x2e   : > { %v7561_v31 = vrot.slane %v419_v21, 7  ;;  %v7302_v35 = vld [vmem:[#allocation2 + $0x78] sm:$0xff]   ;;  %7040 = vmatpush3.bf16.msra.mxu0 %v7453_v22  ;;  %v391_v37 = vpack.c.bf16 %v372_v29, %v371_v28  ;;  %v322_v38 = vadd.f32 %v7433_v6, %v283_v24  ;;  %v285_v14 = vmul.f32 %v7418_v5, %v246_v11  ;;  %7283 = vmatprep.subr.msk.bf16.mxu1 %vm970_vm0, %v7540_v12 }
  0x2f   : > { %v552_v36 = vsel %vm7477_vm6, 0, %v417_v26  ;;  %v7572_v43 = vrot.slane %v482_v32, 7  ;;  %7284 = vmatprep.subr.msk.bf16.mxu0 %vm970_vm0, %v7557_v30  ;;  %6993 = vmatprep.mubr.msk.bf16.mxu1 %vm921_vm3, %v7302_v35  ;;  %v353_v45 = vmax.f32 %v321_v34, 0.0  ;;  %v323_v50 = vadd.f32 %v7433_v6, %v284_v25  ;;  %v248_v21 = vld [vmem:[%s7428_s6 + $0x58] sm:$0xff] }
  0x30   : > { %v6425_v39 = vcombine.low %v552_v36, %v552_v36  ;;  %v6426_v40 = vcombine.high %v552_v36, %v552_v36  ;;  %v424_v41 = vor.u32 %v422_v27, %v7561_v31  ;;  %v489_v22 = vshrl.u32 %v391_v37, 16  ;;  %v249_v27 = vld [vmem:[%s7428_s6 + $0x60] sm:$0xff] }
  0x31   : > { %v492_v44 = vshll.u32 %v391_v37, 16  ;;  %v354_v46 = vmax.f32 %v322_v38, 0.0  ;;  %v487_v49 = vor.u32 %v485_v33, %v7572_v43  ;;  %v324_v51 = vadd.f32 %v7433_v6, %v285_v14  ;;  %v250_v14 = vld [vmem:[%s7428_s6 + $0x68] sm:$0xff] }
  0x32   : > { %763 = vst.msk [vmem:[#allocation2 + $0x18] sm:$0xf] %vm395_vm1, %v6425_v39  ;;  %764 = vst.msk [vmem:[#allocation2 + $0x1c] sm:$0xf] %vm395_vm1, %v6426_v40  ;;  %v553_v48 = vsel %vm7477_vm6, 0, %v424_v41  ;;  %v7303_v53 = vld [vmem:[#allocation2 + $0x84] sm:$0xff]   ;;  %v302_v61 = vmul.f32 %v7418_v5, %v263_v47  ;;  %v303_v10 = vmul.f32 %v7418_v5, %v264_v52  ;;  %v304_v17 = vmul.f32 %v7418_v5, %v265_v62 }
  0x33   : > { %v6428_v54 = vcombine.low %v553_v48, %v553_v48  ;;  %v6429_v55 = vcombine.high %v553_v48, %v553_v48  ;;  %v7586_v56 = vrot.slane %v489_v22, 7  ;;  %v382_v57 = vpack.c.bf16 %v354_v46, %v353_v45  ;;  %v1167_v62 = vld [vmem:[#allocation2] sm:$0xf] }
  0x34   : > { %v562_v58 = vsel %vm7477_vm6, 0, %v487_v49  ;;  %v355_v59 = vmax.f32 %v323_v50, 0.0  ;;  %v356_v60 = vmax.f32 %v324_v51, 0.0  ;;  %6994 = vmatmul.mubr.msk.bf16.gmra.mxu1 %vm921_vm3, %v7303_v53  ;;  %v341_v11 = vadd.f32 %v7433_v6, %v302_v61 }
  0x35   : > { %766 = vst.msk [vmem:[#allocation2 + $0x24] sm:$0xf] %vm395_vm1, %v6428_v54  ;;  %767 = vst.msk [vmem:[#allocation2 + $0x28] sm:$0xf] %vm395_vm1, %v6429_v55  ;;  %v6455_v2 = vcombine.low %v562_v58, %v562_v58  ;;  %v6456_v3 = vcombine.high %v562_v58, %v562_v58  ;;  %v494_v4 = vor.u32 %v492_v44, %v7586_v56  ;;  %v426_v7 = vshrl.u32 %v382_v57, 16 }
  0x36   : > { %v429_v8 = vshll.u32 %v382_v57, 16  ;;  %v383_v9 = vpack.c.bf16 %v356_v60, %v355_v59  ;;  %v305_v19 = vmul.f32 %v7418_v5, %v266_v63  ;;  %v342_v32 = vadd.f32 %v7433_v6, %v303_v10 }
  0x37   : > { %793 = vst.msk [vmem:[#allocation2 + $0x90] sm:$0xf] %vm395_vm1, %v6455_v2  ;;  %794 = vst.msk [vmem:[#allocation2 + $0x94] sm:$0xf] %vm395_vm1, %v6456_v3  ;;  %v563_v13 = vsel %vm7477_vm6, 0, %v494_v4  ;;  %v7603_v16 = vrot.slane %v426_v7, 7  ;;  %v343_v34 = vadd.f32 %v7433_v6, %v304_v17  ;;  %v286_v37 = vmul.f32 %v7418_v5, %v247_v20 }
  0x38   : > { %v6458_v23 = vcombine.low %v563_v13, %v563_v13  ;;  %v6459_v24 = vcombine.high %v563_v13, %v563_v13  ;;  %v433_v25 = vshrl.u32 %v383_v9, 16  ;;  %v436_v26 = vshll.u32 %v383_v9, 16  ;;  %v1168_v4 = vld [vmem:[#allocation2 + $0x4] sm:$0xf] }
  0x39   : > { %v7304_v28 = vld [vmem:[#allocation2 + $0x18] sm:$0xff]   ;;  %v431_v29 = vor.u32 %v429_v8, %v7603_v16  ;;  %v373_v33 = vmax.f32 %v341_v11, 0.0  ;;  %v344_v36 = vadd.f32 %v7433_v6, %v305_v19  ;;  %v287_v38 = vmul.f32 %v7418_v5, %v248_v21 }
  0x3a   : > { %796 = vst.msk [vmem:[#allocation2 + $0x9c] sm:$0xf] %vm395_vm1, %v6458_v23  ;;  %797 = vst.msk [vmem:[#allocation2 + $0xa0] sm:$0xf] %vm395_vm1, %v6459_v24  ;;  %v7615_v35 = vrot.slane %v433_v25, 7  ;;  %6977 = vmatprep.mubr.msk.bf16.mxu0 %vm921_vm3, %v7304_v28  ;;  %v374_v40 = vmax.f32 %v342_v32, 0.0  ;;  %v288_v22 = vmul.f32 %v7418_v5, %v249_v27  ;;  %v325_v50 = vadd.f32 %v7433_v6, %v286_v37 }
  0x3b   : > { %v554_v39 = vsel %vm7477_vm6, 0, %v431_v29  ;;  %v375_v41 = vmax.f32 %v343_v34, 0.0  ;;  %v376_v48 = vmax.f32 %v344_v36, 0.0  ;;  %v326_v51 = vadd.f32 %v7433_v6, %v287_v38  ;;  %v1169_v37 = vld [vmem:[#allocation2 + $0x8] sm:$0x1] }
  0x3c   : > { %v7305_v44 = vld [vmem:[#allocation2 + $0x24] sm:$0xff]   ;;  %v6431_v45 = vcombine.low %v554_v39, %v554_v39  ;;  %v6432_v46 = vcombine.high %v554_v39, %v554_v39  ;;  %v438_v47 = vor.u32 %v436_v26, %v7615_v35  ;;  %v392_v49 = vpack.c.bf16 %v374_v40, %v373_v33 }
  0x3d   : > { %v289_v52 = vmul.f32 %v7418_v5, %v250_v14  ;;  %6978 = vmatmul.mubr.msk.bf16.gmra.mxu0 %vm921_vm3, %v7305_v44  ;;  %v393_v55 = vpack.c.bf16 %v376_v48, %v375_v41  ;;  %v327_v57 = vadd.f32 %v7433_v6, %v288_v22  ;;  %v357_v2 = vmax.f32 %v325_v50, 0.0  ;;  %v1170_v41 = vld [vmem:[#allocation2 + $0xc] sm:$0xf] }
  0x3e   : > { %v7306_v53 = vld [vmem:[#allocation2 + $0x90] sm:$0xff]   ;;  %769 = vst.msk [vmem:[#allocation2 + $0x30] sm:$0xf] %vm395_vm1, %v6431_v45  ;;  %770 = vst.msk [vmem:[#allocation2 + $0x34] sm:$0xf] %vm395_vm1, %v6432_v46  ;;  %v555_v54 = vsel %vm7477_vm6, 0, %v438_v47 }
  0x3f   : > { %v6434_v58 = vcombine.low %v555_v54, %v555_v54  ;;  %v6435_v59 = vcombine.high %v555_v54, %v555_v54  ;;  %v496_v60 = vshrl.u32 %v392_v49, 16  ;;  %v499_v61 = vshll.u32 %v392_v49, 16  ;;  %6997 = vmatprep.mubr.msk.bf16.mxu1 %vm921_vm3, %v7306_v53 }
  0x40   : > { %v503_v5 = vshrl.u32 %v393_v55, 16  ;;  %v506_v63 = vshll.u32 %v393_v55, 16  ;;  %v358_v3 = vmax.f32 %v326_v51, 0.0  ;;  %v328_v9 = vadd.f32 %v7433_v6, %v289_v52  ;;  %v1171_v52 = vld [vmem:[#allocation2 + $0x10] sm:$0xf] }
  0x41   : > { %v7307_v7 = vld [vmem:[#allocation2 + $0x9c] sm:$0xff]   ;;  %772 = vst.msk [vmem:[#allocation2 + $0x3c] sm:$0xf] %vm395_vm1, %v6434_v58  ;;  %773 = vst.msk [vmem:[#allocation2 + $0x40] sm:$0xf] %vm395_vm1, %v6435_v59  ;;  %v7638_v8 = vrot.slane %v496_v60, 7 }
  0x42   : > { %vm1215_vm7 = vsmask.f32 3328  ;;  %vm1216_vm8 = vsmask.f32 7440  ;;  %v7641_v10 = vrot.slane %v503_v5, 7  ;;  %v384_v11 = vpack.c.bf16 %v358_v3, %v357_v2  ;;  %6998 = vmatmul.mubr.msk.bf16.gmra.mxu1 %vm921_vm3, %v7307_v7 }
  0x43   : > { %v359_v13 = vmax.f32 %v327_v57, 0.0  ;;  %v1219_v17 = vshrl.u32 %v1167_v62, 16  ;;  %v501_v19 = vor.u32 %v499_v61, %v7638_v8  ;;  %v360_v20 = vmax.f32 %v328_v9, 0.0  ;;  %vm7666_vm11 = vmor %vm1215_vm7, %vm1216_vm8  ;;  %v1960_v9 = vld [vmem:[#allocation2] sm:$0xe] }
  0x44   : > { %v1222_v21 = vshll.u32 %v1167_v62, 16  ;;  %v1228_v23 = vshll.u32 %v1168_v4, 16  ;;  %v508_v24 = vor.u32 %v506_v63, %v7641_v10  ;;  %v440_v25 = vshrl.u32 %v384_v11, 16 }
  0x45   : > { %v443_v26 = vshll.u32 %v384_v11, 16  ;;  %v1221_v27 = vrot.slane %v1219_v17, 4  ;;  %v7308_v6 = vld [vmem:[#allocation2 + $0x30] sm:$0xff]   ;;  %v564_v28 = vsel %vm7477_vm6, 0, %v501_v19  ;;  %v385_v29 = vpack.c.bf16 %v360_v20, %v359_v13  ;;  %v1961_v11 = vld [vmem:[#allocation2 + $0x4] sm:$0xf] }
  0x46   : > { %v6461_v32 = vcombine.low %v564_v28, %v564_v28  ;;  %v6462_v33 = vcombine.high %v564_v28, %v564_v28  ;;  %v565_v34 = vsel %vm7477_vm6, 0, %v508_v24  ;;  %v7650_v36 = vrot.slane %v440_v25, 7  ;;  %6981 = vmatprep.mubr.msk.bf16.mxu0 %vm921_vm3, %v7308_v6  ;;  %v1172_v19 = vld [vmem:[#allocation2 + $0x14] sm:$0x1] }
  0x47   : > { %vm2056_vm9 = vcmask 1042432   ;;  %vm2057_vm10 = vcmask 1046532   ;;  %v6464_v38 = vcombine.low %v565_v34, %v565_v34  ;;  %v6465_v14 = vcombine.high %v565_v34, %v565_v34 }
  0x48   : > { %v447_v39 = vshrl.u32 %v385_v29, 16  ;;  %v450_v40 = vshll.u32 %v385_v29, 16  ;;  %v7309_v22 = vld [vmem:[#allocation2 + $0x3c] sm:$0xff]   ;;  %799 = vst.msk [vmem:[#allocation2 + $0xa8] sm:$0xf] %vm395_vm1, %v6461_v32  ;;  %v445_v44 = vor.u32 %v443_v26, %v7650_v36  ;;  %v1224_v45 = vrot.slane %v1222_v21, 5  ;;  %vm7683_vm12 = vmor %vm2056_vm9, %vm2057_vm10 }
  0x49   : > { %800 = vst.msk [vmem:[#allocation2 + $0xac] sm:$0xf] %vm395_vm1, %v6462_v33  ;;  %802 = vst.msk [vmem:[#allocation2 + $0xb4] sm:$0xf] %vm395_vm1, %v6464_v38  ;;  %v1230_v47 = vrot.slane %v1228_v23, 5  ;;  %v1232_v48 = vshrl.u32 %v1168_v4, 16  ;;  %6982 = vmatmul.mubr.msk.bf16.gmra.mxu0 %vm921_vm3, %v7309_v22 }
  0x4a   : > { %803 = vst.msk [vmem:[#allocation2 + $0xb8] sm:$0xf] %vm395_vm1, %v6465_v14  ;;  %v7658_v46 = vrot.slane %v447_v39, 7  ;;  %v1238_v49 = vshll.u32 %v1169_v37, 16  ;;  %v556_v50 = vsel %vm7477_vm6, 0, %v445_v44  ;;  %v1225_v51 = vor.u32 %v1224_v45, %v1221_v27 }
  0x4b   : > { %v1243_v53 = vshrl.u32 %v1170_v41, 16  ;;  %v1246_v54 = vshll.u32 %v1170_v41, 16  ;;  %v6437_v55 = vcombine.low %v556_v50, %v556_v50  ;;  %v6438_v57 = vcombine.high %v556_v50, %v556_v50  ;;  %v1962_v21 = vld [vmem:[#allocation2 + $0x8] sm:$0x1]  ;;  %v1963_v23 = vld [vmem:[#allocation2 + $0xc] sm:$0xe] }
  0x4c   : > { %v452_v58 = vor.u32 %v450_v40, %v7658_v46  ;;  %v1234_v59 = vrot.slane %v1232_v48, 4  ;;  %v1226_v61 = vrot.slane %v1225_v51, 4  ;;  %v1240_v62 = vrot.slane %v1238_v49, 5  ;;  %v1964_v37 = vld [vmem:[#allocation2 + $0x10] sm:$0xf] }
  0x4d   : > { %v1245_v5 = vrot.slane %v1243_v53, 4  ;;  %v1248_v63 = vrot.slane %v1246_v54, 5  ;;  %775 = vst.msk [vmem:[#allocation2 + $0x48] sm:$0xf] %vm395_vm1, %v6437_v55  ;;  %776 = vst.msk [vmem:[#allocation2 + $0x4c] sm:$0xf] %vm395_vm1, %v6438_v57 }
  0x4e   : > { %v557_v2 = vsel %vm7477_vm6, 0, %v452_v58  ;;  %v1235_v3 = vor.u32 %v1234_v59, %v1230_v47  ;;  %v1252_v4 = vshll.u32 %v1171_v52, 16  ;;  %v1256_v7 = vshrl.u32 %v1171_v52, 16  ;;  %v1965_v41 = vld [vmem:[#allocation2 + $0x14] sm:$0x1] }
  0x4f   : > { %v6440_v13 = vcombine.low %v557_v2, %v557_v2  ;;  %v6441_v17 = vcombine.high %v557_v2, %v557_v2  ;;  %v1249_v20 = vor.u32 %v1248_v63, %v1245_v5  ;;  %v1231_v25 = vsel %vm7666_vm11, %v1226_v61, %v1230_v47  ;;  %v1173_v48 = vld [vmem:[#allocation2 + $0x18] sm:$0xf]  ;;  %v1176_v5 = vld [vmem:[#allocation2 + $0x24] sm:$0xf] }
  0x50   : > { %v7310_v24 = vld [vmem:[#allocation2 + $0xa8] sm:$0xff]   ;;  %v1236_v26 = vrot.slane %v1235_v3, 4  ;;  %v1254_v29 = vrot.slane %v1252_v4, 5  ;;  %v1258_v32 = vrot.slane %v1256_v7, 4  ;;  %v1262_v33 = vshll.u32 %v1172_v19, 16 }
  0x51   : > { %v7311_v27 = vld [vmem:[#allocation2 + $0xb4] sm:$0xff]   ;;  %778 = vst.msk [vmem:[#allocation2 + $0x54] sm:$0xf] %vm395_vm1, %v6440_v13  ;;  %779 = vst.msk [vmem:[#allocation2 + $0x58] sm:$0xf] %vm395_vm1, %v6441_v17  ;;  %v1250_v6 = vrot.slane %v1249_v20, 4  ;;  %7001 = vmatprep.mubr.msk.bf16.mxu1 %vm921_vm3, %v7310_v24 }
  0x52   : > { %v1241_v28 = vsel %vm7666_vm11, %v1236_v26, %v1240_v62  ;;  %7002 = vmatmul.mubr.msk.bf16.gmra.mxu1 %vm921_vm3, %v7311_v27  ;;  %v6535_v14 = vrot.slane %v1960_v9, 9  ;;  %v2061_v39 = vrot.slane %v1961_v11, 5  ;;  %v2064_v40 = vrot.slane %v1962_v21, 5  ;;  %v1177_v19 = vld [vmem:[#allocation2 + $0x28] sm:$0xf] }
  0x53   : > { %v6503_v38 = vcombine.low %v1231_v25, %v1241_v28  ;;  %v1259_v22 = vor.u32 %v1258_v32, %v1254_v29  ;;  %v1264_v44 = vrot.slane %v1262_v33, 5  ;;  %v2692_v45 = vsel %vm970_vm0, %v7540_v12, 0  ;;  %v1174_v12 = vld [vmem:[#allocation2 + $0x1c] sm:$0xf] }
  0x54   : > { %v6536_v47 = vrot.slane %v1963_v23, 9  ;;  %v7312_v49 = vld [vmem:[#allocation2 + $0x48] sm:$0xff]   ;;  %v1255_v50 = vsel %vm7666_vm11, %v1250_v6, %v1254_v29  ;;  %v2062_v51 = vsel %vm7683_vm12, %v6535_v14, %v2061_v39  ;;  %v2063_v52 = vrot.slane %v2061_v39, 4  ;;  %v1967_v25 = vld [vmem:[#allocation2 + $0x1c] sm:$0xf] }
  0x55   : > { %7007 = vmatprep.mubr.msk.bf16.mxu1 %vm921_vm3, %v6503_v38  ;;  %v1260_v53 = vrot.slane %v1259_v22, 4  ;;  %v2068_v54 = vrot.slane %v1964_v37, 5  ;;  %v2071_v55 = vrot.slane %v1965_v41, 5  ;;  %v568_v57 = vsel %vm7477_vm6, %v7542_v15, 0  ;;  %6985 = vmatprep.mubr.msk.bf16.mxu0 %vm921_vm3, %v7312_v49  ;;  %v1966_v15 = vld [vmem:[#allocation2 + $0x18] sm:$0xe] }
  0x56   : > { %v2065_v58 = vsel %vm7683_vm12, %v2063_v52, %v2064_v40  ;;  %v6427_v59 = vcombine.low %v568_v57, %v568_v57  ;;  %v1267_v61 = vshrl.u32 %v1173_v48, 16  ;;  %v1270_v62 = vshll.u32 %v1173_v48, 16  ;;  %v1969_v29 = vld [vmem:[#allocation2 + $0x24] sm:$0xe]  ;;  %v1970_v41 = vld [vmem:[#allocation2 + $0x28] sm:$0xf] }
  0x57   : > { %v1265_v2 = vsel %vm7666_vm11, %v1260_v53, %v1264_v44  ;;  %v6552_v3 = vcombine.low %v2062_v51, %v2065_v58  ;;  %v2069_v4 = vsel %vm7683_vm12, %v6536_v47, %v2068_v54  ;;  %v2070_v7 = vrot.slane %v2068_v54, 4  ;;  %v1179_v52 = vld [vmem:[#allocation2 + $0x30] sm:$0xf] }
  0x58   : > { %v7313_v63 = vld [vmem:[#allocation2 + $0x54] sm:$0xff]   ;;  %v6504_v9 = vcombine.low %v1255_v50, %v1265_v2  ;;  %765 = vst.msk [vmem:[#allocation2 + $0x20] sm:$0x1] %vm398_vm2, %v6427_v59  ;;  %v1269_v11 = vrot.slane %v1267_v61, 4  ;;  %v1272_v13 = vrot.slane %v1270_v62, 5  ;;  %v1276_v17 = vshll.u32 %v1174_v12, 16 }
  0x59   : > { %6986 = vmatmul.mubr.msk.bf16.gmra.mxu0 %vm921_vm3, %v7313_v63  ;;  %v2072_v20 = vsel %vm7683_vm12, %v2070_v7, %v2071_v55  ;;  %v1280_v21 = vshrl.u32 %v1174_v12, 16  ;;  %v569_v23 = vsel %vm7477_vm6, %v7561_v31, 0  ;;  %v1291_v24 = vshrl.u32 %v1176_v5, 16  ;;  %v1180_v63 = vld [vmem:[#allocation2 + $0x34] sm:$0xf] }
  0x5a   : > { %7008 = vmatmul.mubr.msk.bf16.vlgmr.msra.gmra.mxu1 %vm921_vm3, %v6504_v9  ;;  %7041 = vmatprep.mubr.msk.bf16.mxu0 %vm921_vm3, %v6552_v3  ;;  %v6553_v26 = vcombine.low %v2069_v4, %v2072_v20  ;;  %v1273_v27 = vor.u32 %v1272_v13, %v1269_v11  ;;  %v1278_v6 = vrot.slane %v1276_v17, 5  ;;  %v6430_v28 = vcombine.low %v569_v23, %v569_v23  ;;  %v1182_v13 = vld [vmem:[#allocation2 + $0x3c] sm:$0xf] }
  0x5b   : > { %7074 = vmatpush3.bf16.msra.mxu1 %v2692_v45  ;;  %v1282_v32 = vrot.slane %v1280_v21, 4  ;;  %v1293_v33 = vrot.slane %v1291_v24, 4  ;;  %v1294_v37 = vshll.u32 %v1176_v5, 16  ;;  %v1300_v38 = vshll.u32 %v1177_v19, 16  ;;  %v1183_v24 = vld [vmem:[#allocation2 + $0x40] sm:$0xf] }
  0x5c   : > { %v1274_v14 = vrot.slane %v1273_v27, 4  ;;  %768 = vst.msk [vmem:[#allocation2 + $0x2c] sm:$0x1] %vm398_vm2, %v6430_v28  ;;  %v1304_v31 = vshrl.u32 %v1177_v19, 16  ;;  %v6537_v39 = vrot.slane %v1966_v15, 9  ;;  %v2075_v40 = vrot.slane %v1967_v25, 5 }
  0x5d   : > { %v1283_v22 = vor.u32 %v1282_v32, %v1278_v6  ;;  %v1296_v44 = vrot.slane %v1294_v37, 5  ;;  %v7715_v47 = vrot.slane %v1300_v38, 5  ;;  %v6538_v48 = vrot.slane %v1969_v29, 9 }
  0x5e   : > { %v1279_v49 = vsel %vm7666_vm11, %v1274_v14, %v1278_v6  ;;  %v1306_v45 = vrot.slane %v1304_v31, 4  ;;  %v3482_v50 = vsel %vm970_vm0, %v7557_v30, 0  ;;  %v2077_v51 = vrot.slane %v2075_v40, 4 }
  0x5f   : > { %v1175_v53 = vld [vmem:[#allocation2 + $0x20] sm:$0x1]  ;;  %v1284_v54 = vrot.slane %v1283_v22, 4  ;;  %v1297_v55 = vor.u32 %v1296_v44, %v1293_v33  ;;  %v2076_v12 = vsel %vm7683_vm12, %v6537_v39, %v2075_v40  ;;  %v2082_v58 = vrot.slane %v1970_v41, 5  ;;  %v7747_v39 = vld [vmem:[%s9180_s3 + $0xa] sm:$0x3] }
  0x60   : > { %v1968_v57 = vld [vmem:[#allocation2 + $0x20] sm:$0x1]  ;;  %v1286_v59 = vshll.u32 %v1175_v53, 16  ;;  %v1307_v61 = vor.u32 %v1306_v45, %v7715_v47  ;;  %v570_v5 = vsel %vm7477_vm6, %v7603_v16, 0  ;;  %v1315_v11 = vshrl.u32 %v1179_v52, 16  ;;  %7285 = vmatprep.subr.msk.bf16.mxu1 %vm970_vm0, %v7747_v39 }
  0x61   : > { %v2078_v62 = vrot.slane %v1968_v57, 5  ;;  %7042 = vmatmul.mubr.msk.bf16.vlgmr.msra.gmra.mxu0 %vm921_vm3, %v6553_v26  ;;  %v1298_v30 = vrot.slane %v1297_v55, 4  ;;  %v2083_v2 = vsel %vm7683_vm12, %v6538_v48, %v2082_v58  ;;  %v2084_v3 = vrot.slane %v2082_v58, 4  ;;  %v1975_v55 = vld [vmem:[#allocation2 + $0x3c] sm:$0xe] }
  0x62   : > { %v6433_v4 = vcombine.low %v570_v5, %v570_v5  ;;  %v1288_v7 = vrot.slane %v1286_v59, 5  ;;  %v1308_v15 = vrot.slane %v1307_v61, 4  ;;  %7108 = vmatpush3.bf16.msra.mxu0 %v3482_v50  ;;  %v1318_v21 = vshll.u32 %v1179_v52, 16  ;;  %v1973_v50 = vld [vmem:[#allocation2 + $0x34] sm:$0xf] }
  0x63   : > { %v2079_v9 = vsel %vm7683_vm12, %v2077_v51, %v2078_v62  ;;  %v1178_v17 = vld [vmem:[#allocation2 + $0x2c] sm:$0x1]  ;;  %v1303_v16 = vsel %vm7666_vm11, %v1298_v30, %v7715_v47  ;;  %v1324_v23 = vshll.u32 %v1180_v63, 16  ;;  %v1317_v6 = vrot.slane %v1315_v11, 4  ;;  %v1972_v47 = vld [vmem:[#allocation2 + $0x30] sm:$0xe] }
  0x64   : > { %v6554_v19 = vcombine.low %v2076_v12, %v2079_v9  ;;  %v1971_v20 = vld [vmem:[#allocation2 + $0x2c] sm:$0x1]  ;;  %771 = vst.msk [vmem:[#allocation2 + $0x38] sm:$0x1] %vm398_vm2, %v6433_v4  ;;  %v1289_v25 = vsel %vm7666_vm11, %v1284_v54, %v1288_v7  ;;  %v1310_v26 = vshll.u32 %v1178_v17, 16  ;;  %v1320_v29 = vrot.slane %v1318_v21, 5 }
  0x65   : > { %v2085_v27 = vrot.slane %v1971_v20, 5  ;;  %v6505_v28 = vcombine.low %v1279_v49, %v1289_v25  ;;  %v1326_v32 = vrot.slane %v1324_v23, 5  ;;  %v1328_v33 = vshrl.u32 %v1180_v63, 16  ;;  %v1976_v57 = vld [vmem:[#allocation2 + $0x40] sm:$0xf] }
  0x66   : > { %7045 = vmatprep.mubr.msk.bf16.mxu0 %vm921_vm3, %v6554_v19  ;;  %v1312_v37 = vrot.slane %v1310_v26, 5  ;;  %v571_v14 = vsel %vm7477_vm6, %v7615_v35, 0  ;;  %v1339_v31 = vshrl.u32 %v1182_v13, 16  ;;  %v1321_v41 = vor.u32 %v1320_v29, %v1317_v6 }
  0x67   : > { %v2086_v38 = vsel %vm7683_vm12, %v2084_v3, %v2085_v27  ;;  %7011 = vmatprep.mubr.msk.bf16.mxu1 %vm921_vm3, %v6505_v28  ;;  %v1330_v22 = vrot.slane %v1328_v33, 4  ;;  %v6436_v44 = vcombine.low %v571_v14, %v571_v14  ;;  %v1342_v49 = vshll.u32 %v1182_v13, 16 }
  0x68   : > { %v6555_v40 = vcombine.low %v2083_v2, %v2086_v38  ;;  %v1313_v48 = vsel %vm7666_vm11, %v1308_v15, %v1312_v37  ;;  %v1341_v35 = vrot.slane %v1339_v31, 4  ;;  %v1348_v45 = vshll.u32 %v1183_v24, 16  ;;  %v1185_v15 = vld [vmem:[#allocation2 + $0x48] sm:$0xf] }
  0x69   : > { %v6506_v51 = vcombine.low %v1303_v16, %v1313_v48  ;;  %v1322_v52 = vrot.slane %v1321_v41, 4  ;;  %v1331_v53 = vor.u32 %v1330_v22, %v1326_v32  ;;  %774 = vst.msk [vmem:[#allocation2 + $0x44] sm:$0x1] %vm398_vm2, %v6436_v44  ;;  %v1352_v54 = vshrl.u32 %v1183_v24, 16  ;;  %v1186_v16 = vld [vmem:[#allocation2 + $0x4c] sm:$0xf] }
  0x6a   : > { %7046 = vmatmul.mubr.msk.bf16.gmra.mxu0 %vm921_vm3, %v6555_v40  ;;  %v1344_v58 = vrot.slane %v1342_v49, 5  ;;  %v7756_v59 = vrot.slane %v1348_v45, 5  ;;  %v6539_v3 = vrot.slane %v1972_v47, 9  ;;  %v2089_v4 = vrot.slane %v1973_v50, 5  ;;  %v7779_v41 = vld [vmem:[%s9180_s3 + $0xc] sm:$0x3] }
  0x6b   : > { %v1181_v12 = vld [vmem:[#allocation2 + $0x38] sm:$0x1]  ;;  %7012 = vmatmul.mubr.msk.bf16.gmra.mxu1 %vm921_vm3, %v6506_v51  ;;  %v1327_v62 = vsel %vm7666_vm11, %v1322_v52, %v1326_v32  ;;  %v1332_v5 = vrot.slane %v1331_v53, 4  ;;  %v1354_v30 = vrot.slane %v1352_v54, 4  ;;  %v6540_v13 = vrot.slane %v1975_v55, 9  ;;  %7286 = vmatprep.subr.msk.bf16.mxu0 %vm970_vm0, %v7779_v41 }
  0x6c   : > { %v1974_v61 = vld [vmem:[#allocation2 + $0x38] sm:$0x1]  ;;  %v1334_v63 = vshll.u32 %v1181_v12, 16  ;;  %v1345_v2 = vor.u32 %v1344_v58, %v1341_v35  ;;  %v2096_v17 = vrot.slane %v1976_v57, 5  ;;  %v2090_v20 = vsel %vm7683_vm12, %v6539_v3, %v2089_v4  ;;  %v1978_v52 = vld [vmem:[#allocation2 + $0x48] sm:$0xe] }
  0x6d   : > { %v2092_v7 = vrot.slane %v1974_v61, 5  ;;  %v1355_v11 = vor.u32 %v1354_v30, %v7756_v59  ;;  %v2091_v21 = vrot.slane %v2089_v4, 4  ;;  %v572_v23 = vsel %vm7477_vm6, %v7650_v36, 0  ;;  %v1188_v36 = vld [vmem:[#allocation2 + $0x54] sm:$0xf] }
  0x6e   : > { %v1336_v9 = vrot.slane %v1334_v63, 5  ;;  %v1346_v19 = vrot.slane %v1345_v2, 4  ;;  %v2097_v26 = vsel %vm7683_vm12, %v6540_v13, %v2096_v17  ;;  %v2098_v27 = vrot.slane %v2096_v17, 4  ;;  %v1189_v35 = vld [vmem:[#allocation2 + $0x58] sm:$0xf] }
  0x6f   : > { %v1356_v25 = vrot.slane %v1355_v11, 4  ;;  %v2093_v32 = vsel %vm7683_vm12, %v2091_v21, %v2092_v7  ;;  %v6439_v37 = vcombine.low %v572_v23, %v572_v23  ;;  %v1363_v40 = vshrl.u32 %v1185_v15, 16  ;;  %v1979_v12 = vld [vmem:[#allocation2 + $0x4c] sm:$0xf]  ;;  %v1982_v3 = vld [vmem:[#allocation2 + $0x58] sm:$0xf] }
  0x70   : > { %v1337_v24 = vsel %vm7666_vm11, %v1332_v5, %v1336_v9  ;;  %v1184_v28 = vld [vmem:[#allocation2 + $0x44] sm:$0x1]  ;;  %v1351_v29 = vsel %vm7666_vm11, %v1346_v19, %v7756_v59  ;;  %v6556_v14 = vcombine.low %v2090_v20, %v2093_v32  ;;  %v1366_v22 = vshll.u32 %v1185_v15, 16  ;;  %v3752_v0 = vld [vmem:[#allocation2 + $0x38] sm:$0x1] }
  0x71   : > { %v6507_v6 = vcombine.low %v1327_v62, %v1337_v24  ;;  %v1977_v33 = vld [vmem:[#allocation2 + $0x44] sm:$0x1]  ;;  %v1358_v38 = vshll.u32 %v1184_v28, 16  ;;  %777 = vst.msk [vmem:[#allocation2 + $0x50] sm:$0x1] %vm398_vm2, %v6439_v37  ;;  %v1372_v44 = vshll.u32 %v1186_v16, 16 }
  0x72   : > { %v2099_v31 = vrot.slane %v1977_v33, 5  ;;  %v1376_v47 = vshrl.u32 %v1186_v16, 16  ;;  %v573_v48 = vsel %vm7477_vm6, %v7658_v46, 0  ;;  %7049 = vmatprep.mubr.msk.bf16.mxu0 %vm921_vm3, %v6556_v14  ;;  %v1365_v50 = vrot.slane %v1363_v40, 4  ;;  %v1981_v62 = vld [vmem:[#allocation2 + $0x54] sm:$0xe] }
  0x73   : > { %7015 = vmatprep.mubr.msk.bf16.mxu1 %vm921_vm3, %v6507_v6  ;;  %v1360_v49 = vrot.slane %v1358_v38, 5  ;;  %v6442_v51 = vcombine.low %v573_v48, %v573_v48  ;;  %v1368_v54 = vrot.slane %v1366_v22, 5  ;;  %v1374_v55 = vrot.slane %v1372_v44, 5  ;;  %v1192_v33 = vld [vmem:[#allocation2 + $0x64] sm:$0xf] }
  0x74   : > { %v2100_v45 = vsel %vm7683_vm12, %v2098_v27, %v2099_v31  ;;  %v1378_v57 = vrot.slane %v1376_v47, 4  ;;  %v1387_v58 = vshrl.u32 %v1188_v36, 16  ;;  %v1390_v59 = vshll.u32 %v1188_v36, 16  ;;  %v1191_v27 = vld [vmem:[#allocation2 + $0x60] sm:$0xf] }
  0x75   : > { %v6557_v53 = vcombine.low %v2097_v26, %v2100_v45  ;;  %v1361_v46 = vsel %vm7666_vm11, %v1356_v25, %v1360_v49  ;;  %780 = vst.msk [vmem:[#allocation2 + $0x5c] sm:$0x1] %vm398_vm2, %v6442_v51  ;;  %v1396_v61 = vshll.u32 %v1189_v35, 16  ;;  %v1369_v63 = vor.u32 %v1368_v54, %v1365_v50 }
  0x76   : > { %v6508_v5 = vcombine.low %v1351_v29, %v1361_v46  ;;  %v1379_v30 = vor.u32 %v1378_v57, %v1374_v55  ;;  %v1400_v2 = vshrl.u32 %v1189_v35, 16  ;;  %v1389_v4 = vrot.slane %v1387_v58, 4  ;;  %v1193_v35 = vld [vmem:[#allocation2 + $0x68] sm:$0x1]  ;;  %v1984_v46 = vld [vmem:[#allocation2 + $0x60] sm:$0xe] }
  0x77   : > { %7050 = vmatmul.mubr.msk.bf16.gmra.mxu0 %vm921_vm3, %v6557_v53  ;;  %v1392_v7 = vrot.slane %v1390_v59, 5  ;;  %v1398_v15 = vrot.slane %v1396_v61, 5  ;;  %v6541_v9 = vrot.slane %v1978_v52, 9  ;;  %v1370_v11 = vrot.slane %v1369_v63, 4  ;;  %v1194_v52 = vld [vmem:[#allocation2 + $0x6c] sm:$0xf] }
  0x78   : > { %7016 = vmatmul.mubr.msk.bf16.gmra.mxu1 %vm921_vm3, %v6508_v5  ;;  %v1402_v13 = vrot.slane %v1400_v2, 4  ;;  %v2103_v17 = vrot.slane %v1979_v12, 5  ;;  %v1187_v16 = vld [vmem:[#allocation2 + $0x50] sm:$0x1]  ;;  %v6542_v21 = vrot.slane %v1981_v62, 9  ;;  %v2110_v23 = vrot.slane %v1982_v3, 5 }
  0x79   : > { %v1393_v19 = vor.u32 %v1392_v7, %v1389_v4  ;;  %v1980_v20 = vld [vmem:[#allocation2 + $0x50] sm:$0x1]  ;;  %v1380_v24 = vrot.slane %v1379_v30, 4  ;;  %v1382_v25 = vshll.u32 %v1187_v16, 16  ;;  %v1375_v37 = vsel %vm7666_vm11, %v1370_v11, %v1374_v55 }
  0x7a   : > { %v1403_v26 = vor.u32 %v1402_v13, %v1398_v15  ;;  %v2104_v28 = vsel %vm7683_vm12, %v6541_v9, %v2103_v17  ;;  %v2105_v29 = vrot.slane %v2103_v17, 4  ;;  %v2106_v32 = vrot.slane %v1980_v20, 5  ;;  %v1195_v12 = vld [vmem:[#allocation2 + $0x70] sm:$0xf]  ;;  %v1985_v9 = vld [vmem:[#allocation2 + $0x64] sm:$0xf] }
  0x7b   : > { %v1394_v6 = vrot.slane %v1393_v19, 4  ;;  %v1384_v36 = vrot.slane %v1382_v25, 5  ;;  %v2111_v40 = vsel %vm7683_vm12, %v6542_v21, %v2110_v23  ;;  %v2112_v48 = vrot.slane %v2110_v23, 4  ;;  %v1986_v19 = vld [vmem:[#allocation2 + $0x68] sm:$0x1] }
  0x7c   : > { %v1190_v38 = vld [vmem:[#allocation2 + $0x5c] sm:$0x1]  ;;  %v1404_v14 = vrot.slane %v1403_v26, 4  ;;  %v2107_v47 = vsel %vm7683_vm12, %v2105_v29, %v2106_v32  ;;  %v1411_v51 = vshrl.u32 %v1191_v27, 16  ;;  %v1414_v55 = vshll.u32 %v1191_v27, 16 }
  0x7d   : > { %v1983_v31 = vld [vmem:[#allocation2 + $0x5c] sm:$0x1]  ;;  %v1399_v22 = vsel %vm7666_vm11, %v1394_v6, %v1398_v15  ;;  %v1406_v44 = vshll.u32 %v1190_v38, 16  ;;  %v1385_v49 = vsel %vm7666_vm11, %v1380_v24, %v1384_v36  ;;  %v6558_v45 = vcombine.low %v2104_v28, %v2107_v47  ;;  %v1987_v25 = vld [vmem:[#allocation2 + $0x6c] sm:$0xe]  ;;  %v267_v38 = vld [vmem:[%s7428_s6 + $0xf0] sm:$0xff] }
  0x7e   : > { %v2113_v50 = vrot.slane %v1983_v31, 5  ;;  %v6509_v53 = vcombine.low %v1375_v37, %v1385_v49  ;;  %v1420_v57 = vshll.u32 %v1192_v33, 16  ;;  %v1413_v59 = vrot.slane %v1411_v51, 4  ;;  %v1988_v28 = vld [vmem:[#allocation2 + $0x70] sm:$0xf] }
  0x7f   : > { %v1408_v54 = vrot.slane %v1406_v44, 5  ;;  %7053 = vmatprep.mubr.msk.bf16.mxu0 %vm921_vm3, %v6558_v45  ;;  %v1424_v61 = vshrl.u32 %v1192_v33, 16  ;;  %v1430_v62 = vshll.u32 %v1193_v35, 16  ;;  %v1416_v30 = vrot.slane %v1414_v55, 5  ;;  %v1197_v36 = vld [vmem:[#allocation2 + $0x78] sm:$0xf] }
  0x80   : > { %v2114_v58 = vsel %vm7683_vm12, %v2112_v48, %v2113_v50  ;;  %7019 = vmatprep.mubr.msk.bf16.mxu1 %vm921_vm3, %v6509_v53  ;;  %v1422_v2 = vrot.slane %v1420_v57, 5  ;;  %v575_v15 = vsel %vm7477_vm6, %v7481_v1, 0  ;;  %v1435_v17 = vshrl.u32 %v1194_v52, 16  ;;  %v268_v44 = vld [vmem:[%s7428_s6 + $0xf8] sm:$0xff] }
  0x81   : > { %v1409_v5 = vsel %vm7666_vm11, %v1404_v14, %v1408_v54  ;;  %v6559_v63 = vcombine.low %v2111_v40, %v2114_v58  ;;  %v1426_v4 = vrot.slane %v1424_v61, 4  ;;  %v1432_v7 = vrot.slane %v1430_v62, 5  ;;  %v1198_v53 = vld [vmem:[#allocation2 + $0x7c] sm:$0xf] }
  0x82   : > { %v6510_v3 = vcombine.low %v1399_v22, %v1409_v5  ;;  %v1417_v11 = vor.u32 %v1416_v30, %v1413_v59  ;;  %v6448_v13 = vcombine.low %v575_v15, %v575_v15  ;;  %v1438_v16 = vshll.u32 %v1194_v52, 16 }
  0x83   : > { %7054 = vmatmul.mubr.msk.bf16.gmra.mxu0 %vm921_vm3, %v6559_v63  ;;  %v1427_v20 = vor.u32 %v1426_v4, %v1422_v2  ;;  %v1444_v21 = vshll.u32 %v1195_v12, 16  ;;  %v1448_v23 = vshrl.u32 %v1195_v12, 16  ;;  %v6543_v24 = vrot.slane %v1984_v46, 9  ;;  %v1200_v12 = vld [vmem:[#allocation2 + $0x84] sm:$0xf] }
  0x84   : > { %7020 = vmatmul.mubr.msk.bf16.gmra.mxu1 %vm921_vm3, %v6510_v3  ;;  %v1418_v26 = vrot.slane %v1417_v11, 4  ;;  %786 = vst.msk [vmem:[#allocation2 + $0x74] sm:$0x1] %vm398_vm2, %v6448_v13  ;;  %v1437_v1 = vrot.slane %v1435_v17, 4  ;;  %v1440_v27 = vrot.slane %v1438_v16, 5  ;;  %v2117_v6 = vrot.slane %v1985_v9, 5 }
  0x85   : > { %v1428_v29 = vrot.slane %v1427_v20, 4  ;;  %v7820_v32 = vrot.slane %v1444_v21, 5  ;;  %v1450_v33 = vrot.slane %v1448_v23, 4  ;;  %v2120_v37 = vrot.slane %v1986_v19, 5  ;;  %v7346_v46 = vld [vmem:[%s9178_s1] ss:$0 sm:$0xff] }
  0x86   : > { %v1423_v14 = vsel %vm7666_vm11, %v1418_v26, %v1422_v2  ;;  %v1441_v31 = vor.u32 %v1440_v27, %v1437_v1  ;;  %v2118_v40 = vsel %vm7683_vm12, %v6543_v24, %v2117_v6  ;;  %v2119_v22 = vrot.slane %v2117_v6, 4  ;;  %v1201_v13 = vld [vmem:[#allocation2 + $0x88] sm:$0xf]  ;;  %v1990_v26 = vld [vmem:[#allocation2 + $0x78] sm:$0xe] }
  0x87   : > { %v1433_v47 = vsel %vm7666_vm11, %v1428_v29, %v1432_v7  ;;  %v1451_v48 = vor.u32 %v1450_v33, %v7820_v32  ;;  %v6544_v35 = vrot.slane %v1987_v25, 9  ;;  %v2124_v49 = vrot.slane %v1988_v28, 5  ;;  %v1991_v29 = vld [vmem:[#allocation2 + $0x7c] sm:$0xf] }
  0x88   : > { %v6511_v45 = vcombine.low %v1423_v14, %v1433_v47  ;;  %v1442_v50 = vrot.slane %v1441_v31, 4  ;;  %v2121_v51 = vsel %vm7683_vm12, %v2119_v22, %v2120_v37  ;;  %v576_v52 = vsel %vm7477_vm6, %v7492_v18, 0  ;;  %v1203_v22 = vld [vmem:[#allocation2 + $0x90] sm:$0xf] }
  0x89   : > { %v1452_v54 = vrot.slane %v1451_v48, 4  ;;  %v6560_v55 = vcombine.low %v2118_v40, %v2121_v51  ;;  %v2126_v57 = vrot.slane %v2124_v49, 4  ;;  %v306_v58 = vmul.f32 %v7346_v46, %v267_v38  ;;  %v1994_v38 = vld [vmem:[#allocation2 + $0x88] sm:$0xf] }
  0x8a   : > { %7023 = vmatprep.mubr.msk.bf16.mxu1 %vm921_vm3, %v6511_v45  ;;  %v6451_v59 = vcombine.low %v576_v52, %v576_v52  ;;  %v1459_v61 = vshrl.u32 %v1197_v36, 16  ;;  %v1462_v62 = vshll.u32 %v1197_v36, 16  ;;  %v7840_v5 = vmul.f32 %v7346_v46, %v268_v44  ;;  %v7864_v44 = vld [vmem:[%s9179_s2] ss:$0 sm:$0xff] }
  0x8b   : > { %v1196_v63 = vld [vmem:[#allocation2 + $0x74] sm:$0x1]  ;;  %v1447_v18 = vsel %vm7666_vm11, %v1442_v50, %v7820_v32  ;;  %7057 = vmatprep.mubr.msk.bf16.mxu0 %vm921_vm3, %v6560_v55  ;;  %v2125_v2 = vsel %vm7683_vm12, %v6544_v35, %v2124_v49  ;;  %v1468_v3 = vshll.u32 %v1198_v53, 16  ;;  %v1472_v4 = vshrl.u32 %v1198_v53, 16  ;;  %v1993_v32 = vld [vmem:[#allocation2 + $0x84] sm:$0xe] }
  0x8c   : > { %v1989_v30 = vld [vmem:[#allocation2 + $0x74] sm:$0x1]  ;;  %v1454_v7 = vshll.u32 %v1196_v63, 16  ;;  %789 = vst.msk [vmem:[#allocation2 + $0x80] sm:$0x1] %vm398_vm2, %v6451_v59  ;;  %v1461_v9 = vrot.slane %v1459_v61, 4  ;;  %v7867_v47 = vadd.f32 %v7864_v44, %v306_v58 }
  0x8d   : > { %v2127_v15 = vrot.slane %v1989_v30, 5  ;;  %v1464_v11 = vrot.slane %v1462_v62, 5  ;;  %v7849_v17 = vrot.slane %v1468_v3, 5  ;;  %v1474_v16 = vrot.slane %v1472_v4, 4  ;;  %v1204_v3 = vld [vmem:[#allocation2 + $0x94] sm:$0xf] }
  0x8e   : > { %v577_v19 = vsel %vm7477_vm6, %v7517_v42, 0  ;;  %v1483_v20 = vshrl.u32 %v1200_v12, 16  ;;  %v1456_v21 = vrot.slane %v1454_v7, 5  ;;  %v1486_v28 = vshll.u32 %v1200_v12, 16 }
  0x8f   : > { %v2128_v23 = vsel %vm7683_vm12, %v2126_v57, %v2127_v15  ;;  %v1465_v24 = vor.u32 %v1464_v11, %v1461_v9  ;;  %v6454_v25 = vcombine.low %v577_v19, %v577_v19  ;;  %v1475_v27 = vor.u32 %v1474_v16, %v7849_v17 }
  0x90   : > { %v6561_v1 = vcombine.low %v2125_v2, %v2128_v23  ;;  %v1485_v6 = vrot.slane %v1483_v20, 4  ;;  %v1457_v33 = vsel %vm7666_vm11, %v1452_v54, %v1456_v21  ;;  %v1492_v42 = vshll.u32 %v1201_v13, 16  ;;  %v1206_v23 = vld [vmem:[#allocation2 + $0x9c] sm:$0xf] }
  0x91   : > { %v1466_v37 = vrot.slane %v1465_v24, 4  ;;  %792 = vst.msk [vmem:[#allocation2 + $0x8c] sm:$0x1] %vm398_vm2, %v6454_v25  ;;  %v1496_v36 = vshrl.u32 %v1201_v13, 16  ;;  %v6512_v14 = vcombine.low %v1447_v18, %v1457_v33  ;;  %v1488_v31 = vrot.slane %v1486_v28, 5 }
  0x92   : > { %7058 = vmatmul.mubr.msk.bf16.gmra.mxu0 %vm921_vm3, %v6561_v1  ;;  %v6545_v40 = vrot.slane %v1990_v26, 9  ;;  %v1476_v48 = vrot.slane %v1475_v27, 4  ;;  %v1494_v35 = vrot.slane %v1492_v42, 5  ;;  %v2131_v45 = vrot.slane %v1991_v29, 5  ;;  %v1207_v1 = vld [vmem:[#allocation2 + $0xa0] sm:$0xf] }
  0x93   : > { %v1498_v49 = vrot.slane %v1496_v36, 4  ;;  %7024 = vmatmul.mubr.msk.bf16.gmra.mxu1 %vm921_vm3, %v6512_v14  ;;  %v1199_v50 = vld [vmem:[#allocation2 + $0x80] sm:$0x1]  ;;  %v1471_v51 = vsel %vm7666_vm11, %v1466_v37, %v7849_v17  ;;  %v1489_v52 = vor.u32 %v1488_v31, %v1485_v6  ;;  %v6546_v54 = vrot.slane %v1993_v32, 9  ;;  %v1996_v32 = vld [vmem:[#allocation2 + $0x90] sm:$0xe] }
  0x94   : > { %v1992_v53 = vld [vmem:[#allocation2 + $0x80] sm:$0x1]  ;;  %v2138_v55 = vrot.slane %v1994_v38, 5  ;;  %v1478_v57 = vshll.u32 %v1199_v50, 16  ;;  %v2132_v46 = vsel %vm7683_vm12, %v6545_v40, %v2131_v45  ;;  %v2133_v58 = vrot.slane %v2131_v45, 4 }
  0x95   : > { %v1499_v12 = vor.u32 %v1498_v49, %v1494_v35  ;;  %v1490_v59 = vrot.slane %v1489_v52, 4  ;;  %v2134_v61 = vrot.slane %v1992_v53, 5  ;;  %v578_v2 = vsel %vm7477_vm6, %v7572_v43, 0  ;;  %v1999_v45 = vld [vmem:[#allocation2 + $0x9c] sm:$0xe] }
  0x96   : > { %v2139_v62 = vsel %vm7683_vm12, %v6546_v54, %v2138_v55  ;;  %v2140_v63 = vrot.slane %v2138_v55, 4  ;;  %v1480_v18 = vrot.slane %v1478_v57, 5  ;;  %v1507_v4 = vshrl.u32 %v1203_v22, 16  ;;  %v2000_v54 = vld [vmem:[#allocation2 + $0xa0] sm:$0xf] }
  0x97   : > { %v1500_v30 = vrot.slane %v1499_v12, 4  ;;  %v1495_v15 = vsel %vm7666_vm11, %v1490_v59, %v1494_v35  ;;  %v2135_v9 = vsel %vm7683_vm12, %v2133_v58, %v2134_v61  ;;  %v6457_v13 = vcombine.low %v578_v2, %v578_v2 }
  0x98   : > { %v1202_v7 = vld [vmem:[#allocation2 + $0x8c] sm:$0x1]  ;;  %v1510_v17 = vshll.u32 %v1203_v22, 16  ;;  %v1481_v16 = vsel %vm7666_vm11, %v1476_v48, %v1480_v18  ;;  %v6562_v20 = vcombine.low %v2132_v46, %v2135_v9  ;;  %v1509_v24 = vrot.slane %v1507_v4, 4  ;;  %v1997_v22 = vld [vmem:[#allocation2 + $0x94] sm:$0xf] }
  0x99   : > { %v1995_v11 = vld [vmem:[#allocation2 + $0x8c] sm:$0x1]  ;;  %v1502_v19 = vshll.u32 %v1202_v7, 16  ;;  %v6513_v43 = vcombine.low %v1471_v51, %v1481_v16  ;;  %795 = vst.msk [vmem:[#allocation2 + $0x98] sm:$0x1] %vm398_vm2, %v6457_v13  ;;  %v1516_v26 = vshll.u32 %v1204_v3, 16  ;;  %v7901_v58 = vadd.f32 %v7864_v44, %v7840_v5 }
  0x9a   : > { %v2141_v21 = vrot.slane %v1995_v11, 5  ;;  %v1512_v25 = vrot.slane %v1510_v17, 5  ;;  %7061 = vmatprep.mubr.msk.bf16.mxu0 %vm921_vm3, %v6562_v20  ;;  %v1520_v28 = vshrl.u32 %v1204_v3, 16  ;;  %v579_v29 = vsel %vm7477_vm6, %v7586_v56, 0  ;;  %v1209_v46 = vld [vmem:[#allocation2 + $0xa8] sm:$0xf] }
  0x9b   : > { %v1504_v27 = vrot.slane %v1502_v19, 5  ;;  %7027 = vmatprep.mubr.msk.bf16.mxu1 %vm921_vm3, %v6513_v43  ;;  %v1518_v42 = vrot.slane %v1516_v26, 5  ;;  %v6460_v36 = vcombine.low %v579_v29, %v579_v29  ;;  %v1531_v31 = vshrl.u32 %v1206_v23, 16  ;;  %v1210_v16 = vld [vmem:[#allocation2 + $0xac] sm:$0xf] }
  0x9c   : > { %v2142_v6 = vsel %vm7683_vm12, %v2140_v63, %v2141_v21  ;;  %v1513_v37 = vor.u32 %v1512_v25, %v1509_v24  ;;  %v1522_v14 = vrot.slane %v1520_v28, 4  ;;  %v1534_v40 = vshll.u32 %v1206_v23, 16  ;;  %v1213_v28 = vld [vmem:[#allocation2 + $0xb8] sm:$0xf] }
  0x9d   : > { %v6563_v33 = vcombine.low %v2139_v62, %v2142_v6  ;;  %v1505_v38 = vsel %vm7666_vm11, %v1500_v30, %v1504_v27  ;;  %798 = vst.msk [vmem:[#allocation2 + $0xa4] sm:$0x1] %vm398_vm2, %v6460_v36  ;;  %v1540_v56 = vshll.u32 %v1207_v1, 16  ;;  %v1544_v49 = vshrl.u32 %v1207_v1, 16  ;;  %v1212_v6 = vld [vmem:[#allocation2 + $0xb4] sm:$0xf] }
  0x9e   : > { %v6514_v48 = vcombine.low %v1495_v15, %v1505_v38  ;;  %v1514_v35 = vrot.slane %v1513_v37, 4  ;;  %v1523_v50 = vor.u32 %v1522_v14, %v1518_v42  ;;  %v1533_v51 = vrot.slane %v1531_v31, 4 }
  0x9f   : > { %7062 = vmatmul.mubr.msk.bf16.gmra.mxu0 %vm921_vm3, %v6563_v33  ;;  %v1536_v52 = vrot.slane %v1534_v40, 5  ;;  %v6547_v53 = vrot.slane %v1996_v32, 9  ;;  %v1542_v55 = vrot.slane %v1540_v56, 5  ;;  %v1546_v57 = vrot.slane %v1544_v49, 4  ;;  %v2003_v40 = vld [vmem:[#allocation2 + $0xac] sm:$0xf] }
  0xa0   : > { %7028 = vmatmul.mubr.msk.bf16.gmra.mxu1 %vm921_vm3, %v6514_v48  ;;  %v2145_v12 = vrot.slane %v1997_v22, 5  ;;  %v1205_v59 = vld [vmem:[#allocation2 + $0x98] sm:$0x1]  ;;  %v1519_v61 = vsel %vm7666_vm11, %v1514_v35, %v1518_v42  ;;  %v1524_v62 = vrot.slane %v1523_v50, 4  ;;  %v6548_v30 = vrot.slane %v1999_v45, 9 }
  0xa1   : > { %v1537_v63 = vor.u32 %v1536_v52, %v1533_v51  ;;  %v1998_v18 = vld [vmem:[#allocation2 + $0x98] sm:$0x1]  ;;  %v1526_v2 = vshll.u32 %v1205_v59, 16  ;;  %v1547_v3 = vor.u32 %v1546_v57, %v1542_v55  ;;  %v2152_v11 = vrot.slane %v2000_v54, 5  ;;  %v2002_v42 = vld [vmem:[#allocation2 + $0xa8] sm:$0xe] }
  0xa2   : > { %v2146_v4 = vsel %vm7683_vm12, %v6547_v53, %v2145_v12  ;;  %v2147_v7 = vrot.slane %v2145_v12, 4  ;;  %v2148_v9 = vrot.slane %v1998_v18, 5  ;;  %v580_v5 = vsel %vm7477_vm6, %v7638_v8, 0  ;;  %v2006_v57 = vld [vmem:[#allocation2 + $0xb8] sm:$0xf] }
  0xa3   : > { %v1538_v15 = vrot.slane %v1537_v63, 4  ;;  %v1528_v44 = vrot.slane %v1526_v2, 5  ;;  %v1548_v13 = vrot.slane %v1547_v3, 4  ;;  %v6463_v17 = vcombine.low %v580_v5, %v580_v5 }
  0xa4   : > { %v1555_v19 = vshrl.u32 %v1209_v46, 16  ;;  %v1208_v20 = vld [vmem:[#allocation2 + $0xa4] sm:$0x1]  ;;  %v2149_v23 = vsel %vm7683_vm12, %v2147_v7, %v2148_v9  ;;  %v2153_v24 = vsel %vm7683_vm12, %v6548_v30, %v2152_v11  ;;  %v2154_v25 = vrot.slane %v2152_v11, 4 }
  0xa5   : > { %v1543_v21 = vsel %vm7666_vm11, %v1538_v15, %v1542_v55  ;;  %v2001_v43 = vld [vmem:[#allocation2 + $0xa4] sm:$0x1]  ;;  %v1529_v8 = vsel %vm7666_vm11, %v1524_v62, %v1528_v44  ;;  %v1550_v26 = vshll.u32 %v1208_v20, 16  ;;  %v6564_v1 = vcombine.low %v2146_v4, %v2149_v23  ;;  %801 = vst.msk [vmem:[#allocation2 + $0xb0] sm:$0x1] %vm398_vm2, %v6463_v17 }
  0xa6   : > { %v2155_v27 = vrot.slane %v2001_v43, 5  ;;  %v6515_v29 = vcombine.low %v1519_v61, %v1529_v8  ;;  %v1557_v32 = vrot.slane %v1555_v19, 4  ;;  %v1558_v33 = vshll.u32 %v1209_v46, 16  ;;  %v2005_v55 = vld [vmem:[#allocation2 + $0xb4] sm:$0xe] }
  0xa7   : > { %v1564_v37 = vshll.u32 %v1210_v16, 16  ;;  %v1552_v36 = vrot.slane %v1550_v26, 5  ;;  %7065 = vmatprep.mubr.msk.bf16.mxu0 %vm921_vm3, %v6564_v1  ;;  %v1568_v14 = vshrl.u32 %v1210_v16, 16  ;;  %v581_v31 = vsel %vm7477_vm6, %v7641_v10, 0  ;;  %v2951_v62 = vld [vmem:[#allocation2 + $0xc] sm:$0xf] }
  0xa8   : > { %v2156_v38 = vsel %vm7683_vm12, %v2154_v25, %v2155_v27  ;;  %7031 = vmatprep.mubr.msk.bf16.mxu1 %vm921_vm3, %v6515_v29  ;;  %v1560_v48 = vrot.slane %v1558_v33, 5  ;;  %v6466_v56 = vcombine.low %v581_v31, %v581_v31  ;;  %v1579_v50 = vshrl.u32 %v1212_v6, 16  ;;  %v2952_v23 = vld [vmem:[#allocation2 + $0x10] sm:$0xf]  ;;  %v2953_v25 = vld [vmem:[#allocation2 + $0x14] sm:$0x1] }
  0xa9   : > { %v6565_v22 = vcombine.low %v2153_v24, %v2156_v38  ;;  %v1566_v35 = vrot.slane %v1564_v37, 5  ;;  %v1553_v49 = vsel %vm7666_vm11, %v1548_v13, %v1552_v36  ;;  %v1570_v45 = vrot.slane %v1568_v14, 4  ;;  %v2954_v33 = vld [vmem:[#allocation2 + $0x18] sm:$0xf] }
  0xaa   : > { %v1582_v51 = vshll.u32 %v1212_v6, 16  ;;  %v6516_v52 = vcombine.low %v1543_v21, %v1553_v49  ;;  %v1561_v53 = vor.u32 %v1560_v48, %v1557_v32  ;;  %804 = vst.msk [vmem:[#allocation2 + $0xbc] sm:$0x1] %vm398_vm2, %v6466_v56  ;;  %v1588_v10 = vshll.u32 %v1213_v28, 16 }
  0xab   : > { %7066 = vmatmul.mubr.msk.bf16.gmra.mxu0 %vm921_vm3, %v6565_v22  ;;  %v1592_v54 = vshrl.u32 %v1213_v28, 16  ;;  %v1571_v12 = vor.u32 %v1570_v45, %v1566_v35  ;;  %v1581_v46 = vrot.slane %v1579_v50, 4  ;;  %v6549_v61 = vrot.slane %v2002_v42, 9  ;;  %v2955_v22 = vld [vmem:[#allocation2 + $0x1c] sm:$0xf] }
  0xac   : > { %v1584_v59 = vrot.slane %v1582_v51, 5  ;;  %7032 = vmatmul.mubr.msk.bf16.gmra.mxu1 %vm921_vm3, %v6516_v52  ;;  %v1211_v63 = vld [vmem:[#allocation2 + $0xb0] sm:$0x1]  ;;  %v1562_v18 = vrot.slane %v1561_v53, 4  ;;  %v1590_v30 = vrot.slane %v1588_v10, 5  ;;  %v2159_v3 = vrot.slane %v2003_v40, 5 }
  0xad   : > { %v1594_v2 = vrot.slane %v1592_v54, 4  ;;  %v1572_v4 = vrot.slane %v1571_v12, 4  ;;  %v1574_v7 = vshll.u32 %v1211_v63, 16  ;;  %v2004_v9 = vld [vmem:[#allocation2 + $0xb0] sm:$0x1]  ;;  %v6550_v11 = vrot.slane %v2005_v55, 9 }
  0xae   : > { %v1585_v15 = vor.u32 %v1584_v59, %v1581_v46  ;;  %v1567_v5 = vsel %vm7666_vm11, %v1562_v18, %v1566_v35  ;;  %v2160_v13 = vsel %vm7683_vm12, %v6549_v61, %v2159_v3  ;;  %v2161_v17 = vrot.slane %v2159_v3, 4  ;;  %v2956_v52 = vld [vmem:[#allocation2 + $0x20] sm:$0x1]  ;;  %v7314_v55 = vld [vmem:[#allocation2 + $0xc] sm:$0xff]   ;;  %v2957_v46 = vld [vmem:[#allocation2 + $0x24] sm:$0xf] }
  0xaf   : > { %v1595_v44 = vor.u32 %v1594_v2, %v1590_v30  ;;  %v1576_v16 = vrot.slane %v1574_v7, 5  ;;  %v2162_v20 = vrot.slane %v2004_v9, 5  ;;  %v2166_v21 = vrot.slane %v2006_v57, 5  ;;  %v2958_v18 = vld [vmem:[#allocation2 + $0x28] sm:$0xf] }
  0xb0   : > { %v1586_v19 = vrot.slane %v1585_v15, 4  ;;  %v7937_v24 = vsel %vm970_vm0, %v7747_v39, 0  ;;  %v3000_v8 = vshrl.u32 %v2951_v62, 16  ;;  %v3003_v26 = vshll.u32 %v2951_v62, 16  ;;  %v2959_v7 = vld [vmem:[#allocation2 + $0x2c] sm:$0x1] }
  0xb1   : > { %v1596_v43 = vrot.slane %v1595_v44, 4  ;;  %v1577_v1 = vsel %vm7666_vm11, %v1572_v4, %v1576_v16  ;;  %v1214_v27 = vld [vmem:[#allocation2 + $0xbc] sm:$0x1]  ;;  %v2163_v28 = vsel %vm7683_vm12, %v2161_v17, %v2162_v20  ;;  %v2167_v32 = vsel %vm7683_vm12, %v6550_v11, %v2166_v21  ;;  %v2960_v44 = vld [vmem:[#allocation2 + $0x30] sm:$0xf] }
  0xb2   : > { %v1591_v6 = vsel %vm7666_vm11, %v1586_v19, %v1590_v30  ;;  %v2007_v29 = vld [vmem:[#allocation2 + $0xbc] sm:$0x1]  ;;  %v6517_v39 = vcombine.low %v1567_v5, %v1577_v1  ;;  %v1598_v37 = vshll.u32 %v1214_v27, 16  ;;  %v6566_v42 = vcombine.low %v2160_v13, %v2163_v28  ;;  %v7316_v1 = vld [vmem:[#allocation2 + $0x24] sm:$0xff]  }
  0xb3   : > { %v2168_v36 = vrot.slane %v2166_v21, 4  ;;  %v2169_v38 = vrot.slane %v2007_v29, 5  ;;  %v3002_v14 = vrot.slane %v3000_v8, 4  ;;  %v3005_v31 = vrot.slane %v3003_v26, 5  ;;  %v7315_v20 = vld [vmem:[#allocation2 + $0x18] sm:$0xff]  }
  0xb4   : > { %v3009_v40 = vshll.u32 %v2952_v23, 16  ;;  %7035 = vmatprep.mubr.msk.bf16.mxu1 %vm921_vm3, %v6517_v39  ;;  %v1600_v48 = vrot.slane %v1598_v37, 5  ;;  %7069 = vmatprep.mubr.msk.bf16.mxu0 %vm921_vm3, %v6566_v42  ;;  %v3013_v35 = vshrl.u32 %v2952_v23, 16  ;;  %v3019_v56 = vshll.u32 %v2953_v25, 16  ;;  %v2962_v39 = vld [vmem:[#allocation2 + $0x38] sm:$0x1] }
  0xb5   : > { %v3024_v49 = vshrl.u32 %v2954_v33, 16  ;;  %v2170_v45 = vsel %vm7683_vm12, %v2168_v36, %v2169_v38  ;;  %v3006_v50 = vor.u32 %v3005_v31, %v3002_v14  ;;  %v3027_v53 = vshll.u32 %v2954_v33, 16  ;;  %v2963_v37 = vld [vmem:[#allocation2 + $0x3c] sm:$0xf]  ;;  %v2964_v31 = vld [vmem:[#allocation2 + $0x40] sm:$0xf] }
  0xb6   : > { %v3011_v51 = vrot.slane %v3009_v40, 5  ;;  %v1601_v10 = vsel %vm7666_vm11, %v1596_v43, %v1600_v48  ;;  %v6567_v54 = vcombine.low %v2167_v32, %v2170_v45  ;;  %v3015_v57 = vrot.slane %v3013_v35, 4 }
  0xb7   : > { %v3021_v12 = vrot.slane %v3019_v56, 5  ;;  %v6518_v59 = vcombine.low %v1591_v6, %v1601_v10  ;;  %v3007_v61 = vrot.slane %v3006_v50, 4  ;;  %v3026_v62 = vrot.slane %v3024_v49, 4  ;;  %v2961_v6 = vld [vmem:[#allocation2 + $0x34] sm:$0xf] }
  0xb8   : > { %v3029_v63 = vrot.slane %v3027_v53, 5  ;;  %7070 = vmatmul.mubr.msk.bf16.gmra.mxu0 %vm921_vm3, %v6567_v54  ;;  %v3016_v30 = vor.u32 %v3015_v57, %v3011_v51  ;;  %v3033_v2 = vshll.u32 %v2955_v22, 16  ;;  %v3037_v3 = vshrl.u32 %v2955_v22, 16  ;;  %v7968_v56 = vld [vmem:[%s9180_s3 + $0xe] sm:$0x3] }
  0xb9   : > { %v3043_v4 = vshll.u32 %v2956_v52, 16  ;;  %7036 = vmatmul.mubr.msk.bf16.gmra.mxu1 %vm921_vm3, %v6518_v59  ;;  %v3012_v15 = vsel %vm7666_vm11, %v3007_v61, %v3011_v51  ;;  %v4471_v11 = vsel %vm970_vm0, %v7779_v41, 0  ;;  %v3048_v5 = vshrl.u32 %v2957_v46, 16  ;;  %v7975_v52 = vld [vmem:[%s9180_s3 + $0x10] sm:$0x3] }
  0xba   : > { %v3030_v9 = vor.u32 %v3029_v63, %v3026_v62  ;;  %7075 = vmatprep.mubr.msk.bf16.mxu1 %vm921_vm3, %v7314_v55  ;;  %v3017_v13 = vrot.slane %v3016_v30, 4  ;;  %v3035_v17 = vrot.slane %v3033_v2, 5  ;;  %v3039_v16 = vrot.slane %v3037_v3, 4  ;;  %v2965_v57 = vld [vmem:[#allocation2 + $0x44] sm:$0x1]  ;;  %v7317_v3 = vld [vmem:[#allocation2 + $0x30] sm:$0xff]  }
  0xbb   : > { %v3045_v19 = vrot.slane %v3043_v4, 5  ;;  %v3050_v23 = vrot.slane %v3048_v5, 4  ;;  %v3051_v43 = vshll.u32 %v2957_v46, 16  ;;  %v3057_v25 = vshll.u32 %v2958_v18, 16  ;;  %v2966_v2 = vld [vmem:[#allocation2 + $0x48] sm:$0xf] }
  0xbc   : > { %v3031_v21 = vrot.slane %v3030_v9, 4  ;;  %v3022_v8 = vsel %vm7666_vm11, %v3017_v13, %v3021_v12  ;;  %v3040_v26 = vor.u32 %v3039_v16, %v3035_v17  ;;  %v3061_v27 = vshrl.u32 %v2958_v18, 16  ;;  %v2967_v9 = vld [vmem:[#allocation2 + $0x4c] sm:$0xf]  ;;  %v7318_v13 = vld [vmem:[#allocation2 + $0x3c] sm:$0xff]  }
  0xbd   : > { %v3067_v41 = vshll.u32 %v2959_v7, 16  ;;  %v6618_v28 = vcombine.low %v3012_v15, %v3022_v8  ;;  %v3053_v32 = vrot.slane %v3051_v43, 5  ;;  %v3059_v33 = vrot.slane %v3057_v25, 5  ;;  %v2969_v43 = vld [vmem:[#allocation2 + $0x54] sm:$0xf] }
  0xbe   : > { %v3036_v29 = vsel %vm7666_vm11, %v3031_v21, %v3035_v17  ;;  %v3041_v42 = vrot.slane %v3040_v26, 4  ;;  %v3063_v36 = vrot.slane %v3061_v27, 4  ;;  %v3072_v14 = vshrl.u32 %v2960_v44, 16  ;;  %v2970_v27 = vld [vmem:[#allocation2 + $0x58] sm:$0xf] }
  0xbf   : > { %v3069_v38 = vrot.slane %v3067_v41, 5  ;;  %7109 = vmatprep.mubr.msk.bf16.mxu0 %vm921_vm3, %v6618_v28  ;;  %v3054_v40 = vor.u32 %v3053_v32, %v3050_v23  ;;  %v3075_v22 = vshll.u32 %v2960_v44, 16  ;;  %v3081_v48 = vshll.u32 %v2961_v6, 16 }
  0xc0   : > { %v3085_v35 = vshrl.u32 %v2961_v6, 16  ;;  %v3046_v49 = vsel %vm7666_vm11, %v3041_v42, %v3045_v19  ;;  %v3064_v45 = vor.u32 %v3063_v36, %v3059_v33  ;;  %v3074_v50 = vrot.slane %v3072_v14, 4  ;;  %v2968_v19 = vld [vmem:[#allocation2 + $0x50] sm:$0x1] }
  0xc1   : > { %v3091_v51 = vshll.u32 %v2962_v39, 16  ;;  %7076 = vmatmul.mubr.msk.bf16.vlgmr.msra.gmra.mxu1 %vm921_vm3, %v7315_v20  ;;  %v6619_v53 = vcombine.low %v3036_v29, %v3046_v49  ;;  %v3055_v10 = vrot.slane %v3054_v40, 4  ;;  %v3077_v54 = vrot.slane %v3075_v22, 5  ;;  %v2971_v22 = vld [vmem:[#allocation2 + $0x5c] sm:$0x1] }
  0xc2   : > { %v3083_v55 = vrot.slane %v3081_v48, 5  ;;  %7142 = vmatpush3.bf16.msra.mxu1 %v7937_v24  ;;  %7079 = vmatprep.mubr.msk.bf16.mxu1 %vm921_vm3, %v7316_v1  ;;  %v3065_v12 = vrot.slane %v3064_v45, 4  ;;  %v3087_v46 = vrot.slane %v3085_v35, 4  ;;  %v3096_v61 = vshrl.u32 %v2963_v37, 16  ;;  %v2972_v49 = vld [vmem:[#allocation2 + $0x60] sm:$0xf] }
  0xc3   : > { %v3093_v59 = vrot.slane %v3091_v51, 5  ;;  %7110 = vmatmul.mubr.msk.bf16.vlgmr.msra.gmra.mxu0 %vm921_vm3, %v6619_v53  ;;  %v3060_v62 = vsel %vm7666_vm11, %v3055_v10, %v3059_v33  ;;  %v3078_v63 = vor.u32 %v3077_v54, %v3074_v50  ;;  %v3099_v18 = vshll.u32 %v2963_v37, 16  ;;  %7287 = vmatprep.subr.msk.bf16.mxu1 %vm970_vm0, %v7968_v56  ;;  %v2973_v10 = vld [vmem:[#allocation2 + $0x64] sm:$0xf]  ;;  %v7319_v54 = vld [vmem:[#allocation2 + $0x48] sm:$0xff]  }
  0xc4   : > { %v3105_v30 = vshll.u32 %v2964_v31, 16  ;;  %7176 = vmatpush3.bf16.msra.mxu0 %v4471_v11  ;;  %v3070_v24 = vsel %vm7666_vm11, %v3065_v12, %v3069_v38  ;;  %v3088_v4 = vor.u32 %v3087_v46, %v3083_v55  ;;  %v3098_v7 = vrot.slane %v3096_v61, 4 }
  0xc5   : > { %v3109_v15 = vshrl.u32 %v2964_v31, 16  ;;  %v6620_v5 = vcombine.low %v3060_v62, %v3070_v24  ;;  %v3079_v44 = vrot.slane %v3078_v63, 4  ;;  %v3101_v17 = vrot.slane %v3099_v18, 5  ;;  %7288 = vmatprep.subr.msk.bf16.mxu0 %vm970_vm0, %v7975_v52  ;;  %v7320_v62 = vld [vmem:[#allocation2 + $0x54] sm:$0xff]  }
  0xc6   : > { %v3107_v16 = vrot.slane %v3105_v30, 5  ;;  %v3089_v20 = vrot.slane %v3088_v4, 4  ;;  %v3115_v23 = vshll.u32 %v2965_v57, 16  ;;  %v3120_v11 = vshrl.u32 %v2966_v2, 16 }
  0xc7   : > { %v3111_v21 = vrot.slane %v3109_v15, 4  ;;  %7113 = vmatprep.mubr.msk.bf16.mxu0 %vm921_vm3, %v6620_v5  ;;  %v3084_v25 = vsel %vm7666_vm11, %v3079_v44, %v3083_v55  ;;  %v3102_v8 = vor.u32 %v3101_v17, %v3098_v7  ;;  %v3123_v26 = vshll.u32 %v2966_v2, 16  ;;  %v2975_v2 = vld [vmem:[#allocation2 + $0x6c] sm:$0xf] }
  0xc8   : > { %v3129_v1 = vshll.u32 %v2967_v9, 16  ;;  %v3094_v41 = vsel %vm7666_vm11, %v3089_v20, %v3093_v59  ;;  %v3117_v28 = vrot.slane %v3115_v23, 5  ;;  %v3122_v29 = vrot.slane %v3120_v11, 4  ;;  %v2974_v59 = vld [vmem:[#allocation2 + $0x68] sm:$0x1] }
  0xc9   : > { %v3112_v6 = vor.u32 %v3111_v21, %v3107_v16  ;;  %7080 = vmatmul.mubr.msk.bf16.gmra.mxu1 %vm921_vm3, %v7317_v3  ;;  %v6621_v32 = vcombine.low %v3084_v25, %v3094_v41  ;;  %v3103_v33 = vrot.slane %v3102_v8, 4  ;;  %v3125_v39 = vrot.slane %v3123_v26, 5  ;;  %v2976_v11 = vld [vmem:[#allocation2 + $0x70] sm:$0xf]  ;;  %v2978_v41 = vld [vmem:[#allocation2 + $0x78] sm:$0xf] }
  0xca   : > { %v3131_v37 = vrot.slane %v3129_v1, 5  ;;  %7083 = vmatprep.mubr.msk.bf16.mxu1 %vm921_vm3, %v7318_v13  ;;  %v3133_v36 = vshrl.u32 %v2967_v9, 16  ;;  %v3139_v38 = vshll.u32 %v2968_v19, 16  ;;  %v3144_v14 = vshrl.u32 %v2969_v43, 16 }
  0xcb   : > { %v3113_v42 = vrot.slane %v3112_v6, 4  ;;  %7114 = vmatmul.mubr.msk.bf16.gmra.mxu0 %vm921_vm3, %v6621_v32  ;;  %v3108_v31 = vsel %vm7666_vm11, %v3103_v33, %v3107_v16  ;;  %v3126_v40 = vor.u32 %v3125_v39, %v3122_v29  ;;  %v3147_v48 = vshll.u32 %v2969_v43, 16  ;;  %v2979_v33 = vld [vmem:[#allocation2 + $0x7c] sm:$0xf]  ;;  %v7321_v39 = vld [vmem:[#allocation2 + $0x60] sm:$0xff]  }
  0xcc   : > { %v3153_v35 = vshll.u32 %v2970_v27, 16  ;;  %v3135_v50 = vrot.slane %v3133_v36, 4  ;;  %v3141_v51 = vrot.slane %v3139_v38, 5  ;;  %v3146_v53 = vrot.slane %v3144_v14, 4  ;;  %v2980_v14 = vld [vmem:[#allocation2 + $0x80] sm:$0x1] }
  0xcd   : > { %v3118_v45 = vsel %vm7666_vm11, %v3113_v42, %v3117_v28  ;;  %v3127_v57 = vrot.slane %v3126_v40, 4  ;;  %v3149_v12 = vrot.slane %v3147_v48, 5  ;;  %v3157_v63 = vshrl.u32 %v2970_v27, 16  ;;  %v2977_v27 = vld [vmem:[#allocation2 + $0x74] sm:$0x1]  ;;  %v7322_v40 = vld [vmem:[#allocation2 + $0x6c] sm:$0xff]  }
  0xce   : > { %v6622_v55 = vcombine.low %v3108_v31, %v3118_v45  ;;  %v3155_v46 = vrot.slane %v3153_v35, 5  ;;  %v3136_v61 = vor.u32 %v3135_v50, %v3131_v37  ;;  %v3163_v18 = vshll.u32 %v2971_v22, 16 }
  0xcf   : > { %v3168_v30 = vshrl.u32 %v2972_v49, 16  ;;  %v3132_v3 = vsel %vm7666_vm11, %v3127_v57, %v3131_v37  ;;  %v3150_v24 = vor.u32 %v3149_v12, %v3146_v53  ;;  %v3171_v4 = vshll.u32 %v2972_v49, 16  ;;  %v2981_v49 = vld [vmem:[#allocation2 + $0x84] sm:$0xf] }
  0xd0   : > { %7117 = vmatprep.mubr.msk.bf16.mxu0 %vm921_vm3, %v6622_v55  ;;  %v3177_v7 = vshll.u32 %v2973_v10, 16  ;;  %v3137_v15 = vrot.slane %v3136_v61, 4  ;;  %v3159_v9 = vrot.slane %v3157_v63, 4  ;;  %v3165_v5 = vrot.slane %v3163_v18, 5 }
  0xd1   : > { %v3170_v44 = vrot.slane %v3168_v30, 4  ;;  %7084 = vmatmul.mubr.msk.bf16.gmra.mxu1 %vm921_vm3, %v7319_v54  ;;  %v3151_v13 = vrot.slane %v3150_v24, 4  ;;  %v3173_v17 = vrot.slane %v3171_v4, 5  ;;  %v3181_v19 = vshrl.u32 %v2973_v10, 16 }
  0xd2   : > { %v3179_v16 = vrot.slane %v3177_v7, 5  ;;  %v3142_v20 = vsel %vm7666_vm11, %v3137_v15, %v3141_v51  ;;  %7087 = vmatprep.mubr.msk.bf16.mxu1 %vm921_vm3, %v7320_v62  ;;  %v3160_v21 = vor.u32 %v3159_v9, %v3155_v46  ;;  %v3187_v23 = vshll.u32 %v2974_v59, 16  ;;  %v2983_v7 = vld [vmem:[#allocation2 + $0x8c] sm:$0x1] }
  0xd3   : > { %v3192_v43 = vshrl.u32 %v2975_v2, 16  ;;  %v6623_v25 = vcombine.low %v3132_v3, %v3142_v20  ;;  %v3156_v8 = vsel %vm7666_vm11, %v3151_v13, %v3155_v46  ;;  %v3174_v26 = vor.u32 %v3173_v17, %v3170_v44  ;;  %v7323_v17 = vld [vmem:[#allocation2 + $0x78] sm:$0xff]  }
  0xd4   : > { %v3183_v1 = vrot.slane %v3181_v19, 4  ;;  %v3161_v6 = vrot.slane %v3160_v21, 4  ;;  %v3189_v28 = vrot.slane %v3187_v23, 5  ;;  %v3195_v32 = vshll.u32 %v2975_v2, 16  ;;  %v2982_v2 = vld [vmem:[#allocation2 + $0x88] sm:$0xf] }
  0xd5   : > { %v3194_v29 = vrot.slane %v3192_v43, 4  ;;  %7118 = vmatmul.mubr.msk.bf16.gmra.mxu0 %vm921_vm3, %v6623_v25  ;;  %v3175_v37 = vrot.slane %v3174_v26, 4  ;;  %v3201_v36 = vshll.u32 %v2976_v11, 16  ;;  %v3205_v38 = vshrl.u32 %v2976_v11, 16  ;;  %v2984_v23 = vld [vmem:[#allocation2 + $0x90] sm:$0xf] }
  0xd6   : > { %v3184_v42 = vor.u32 %v3183_v1, %v3179_v16  ;;  %v3166_v31 = vsel %vm7666_vm11, %v3161_v6, %v3165_v5  ;;  %v3197_v22 = vrot.slane %v3195_v32, 5  ;;  %v3211_v48 = vshll.u32 %v2977_v27, 16  ;;  %v7324_v43 = vld [vmem:[#allocation2 + $0x84] sm:$0xff]   ;;  %v2985_v1 = vld [vmem:[#allocation2 + $0x94] sm:$0xf] }
  0xd7   : > { %v3216_v35 = vshrl.u32 %v2978_v41, 16  ;;  %v6624_v45 = vcombine.low %v3156_v8, %v3166_v31  ;;  %v3180_v50 = vsel %vm7666_vm11, %v3175_v37, %v3179_v16  ;;  %v3203_v53 = vrot.slane %v3201_v36, 5  ;;  %v2987_v31 = vld [vmem:[#allocation2 + $0x9c] sm:$0xf] }
  0xd8   : > { %v3185_v51 = vrot.slane %v3184_v42, 4  ;;  %v3198_v10 = vor.u32 %v3197_v22, %v3194_v29  ;;  %v3207_v54 = vrot.slane %v3205_v38, 4  ;;  %v3213_v55 = vrot.slane %v3211_v48, 5 }
  0xd9   : > { %v3218_v57 = vrot.slane %v3216_v35, 4  ;;  %7088 = vmatmul.mubr.msk.bf16.gmra.mxu1 %vm921_vm3, %v7321_v39  ;;  %7121 = vmatprep.mubr.msk.bf16.mxu0 %vm921_vm3, %v6624_v45  ;;  %v3219_v46 = vshll.u32 %v2978_v41, 16  ;;  %v3225_v59 = vshll.u32 %v2979_v33, 16  ;;  %v3229_v61 = vshrl.u32 %v2979_v33, 16  ;;  %v2986_v39 = vld [vmem:[#allocation2 + $0x98] sm:$0x1] }
  0xda   : > { %v3190_v12 = vsel %vm7666_vm11, %v3185_v51, %v3189_v28  ;;  %7091 = vmatprep.mubr.msk.bf16.mxu1 %vm921_vm3, %v7322_v40  ;;  %v3199_v63 = vrot.slane %v3198_v10, 4  ;;  %v3208_v18 = vor.u32 %v3207_v54, %v3203_v53  ;;  %v3235_v30 = vshll.u32 %v2980_v14, 16 }
  0xdb   : > { %v6625_v62 = vcombine.low %v3180_v50, %v3190_v12  ;;  %v3221_v3 = vrot.slane %v3219_v46, 5  ;;  %v3227_v24 = vrot.slane %v3225_v59, 5  ;;  %v3231_v4 = vrot.slane %v3229_v61, 4  ;;  %v2990_v12 = vld [vmem:[#allocation2 + $0xa8] sm:$0xf]  ;;  %v7325_v46 = vld [vmem:[#allocation2 + $0x90] sm:$0xff]  }
  0xdc   : > { %v3240_v15 = vshrl.u32 %v2981_v49, 16  ;;  %v3204_v9 = vsel %vm7666_vm11, %v3199_v63, %v3203_v53  ;;  %v3209_v5 = vrot.slane %v3208_v18, 4  ;;  %v3237_v44 = vrot.slane %v3235_v30, 5  ;;  %v2989_v63 = vld [vmem:[#allocation2 + $0xa4] sm:$0x1] }
  0xdd   : > { %v3243_v13 = vshll.u32 %v2981_v49, 16  ;;  %7122 = vmatmul.mubr.msk.bf16.gmra.mxu0 %vm921_vm3, %v6625_v62  ;;  %v3222_v16 = vor.u32 %v3221_v3, %v3218_v57  ;;  %v3232_v19 = vor.u32 %v3231_v4, %v3227_v24  ;;  %v3249_v21 = vshll.u32 %v2982_v2, 16  ;;  %v2988_v49 = vld [vmem:[#allocation2 + $0xa0] sm:$0xf] }
  0xde   : > { %v3242_v20 = vrot.slane %v3240_v15, 4  ;;  %v3214_v11 = vsel %vm7666_vm11, %v3209_v5, %v3213_v55  ;;  %v3253_v8 = vshrl.u32 %v2982_v2, 16  ;;  %v3259_v26 = vshll.u32 %v2983_v7, 16  ;;  %v7326_v2 = vld [vmem:[#allocation2 + $0x9c] sm:$0xff]   ;;  %v2991_v7 = vld [vmem:[#allocation2 + $0xac] sm:$0xf] }
  0xdf   : > { %v3245_v25 = vrot.slane %v3243_v13, 5  ;;  %v6626_v27 = vcombine.low %v3204_v9, %v3214_v11  ;;  %v3223_v41 = vrot.slane %v3222_v16, 4  ;;  %v3233_v6 = vrot.slane %v3232_v19, 4 }
  0xe0   : > { %v3251_v28 = vrot.slane %v3249_v21, 5  ;;  %v3255_v32 = vrot.slane %v3253_v8, 4  ;;  %v3261_v33 = vrot.slane %v3259_v26, 5  ;;  %v3264_v37 = vshrl.u32 %v2984_v23, 16 }
  0xe1   : > { %v3246_v29 = vor.u32 %v3245_v25, %v3242_v20  ;;  %7092 = vmatmul.mubr.msk.bf16.gmra.mxu1 %vm921_vm3, %v7323_v17  ;;  %7125 = vmatprep.mubr.msk.bf16.mxu0 %vm921_vm3, %v6626_v27  ;;  %v3228_v42 = vsel %vm7666_vm11, %v3223_v41, %v3227_v24  ;;  %v3238_v36 = vsel %vm7666_vm11, %v3233_v6, %v3237_v44  ;;  %v3267_v38 = vshll.u32 %v2984_v23, 16  ;;  %v2992_v23 = vld [vmem:[#allocation2 + $0xb0] sm:$0x1] }
  0xe2   : > { %v3273_v14 = vshll.u32 %v2985_v1, 16  ;;  %v6627_v40 = vcombine.low %v3228_v42, %v3238_v36  ;;  %7095 = vmatprep.mubr.msk.bf16.mxu1 %vm921_vm3, %v7324_v43  ;;  %v3256_v48 = vor.u32 %v3255_v32, %v3251_v28  ;;  %v3266_v35 = vrot.slane %v3264_v37, 4  ;;  %v7327_v36 = vld [vmem:[#allocation2 + $0xa8] sm:$0xff]  }
  0xe3   : > { %v3247_v22 = vrot.slane %v3246_v29, 4  ;;  %v3269_v45 = vrot.slane %v3267_v38, 5  ;;  %v3277_v51 = vshrl.u32 %v2985_v1, 16  ;;  %v3283_v53 = vshll.u32 %v2986_v39, 16  ;;  %v2993_v29 = vld [vmem:[#allocation2 + $0xb4] sm:$0xf] }
  0xe4   : > { %v3275_v50 = vrot.slane %v3273_v14, 5  ;;  %v3257_v54 = vrot.slane %v3256_v48, 4  ;;  %v3288_v55 = vshrl.u32 %v2987_v31, 16  ;;  %v3291_v57 = vshll.u32 %v2987_v31, 16 }
  0xe5   : > { %v3252_v10 = vsel %vm7666_vm11, %v3247_v22, %v3251_v28  ;;  %7126 = vmatmul.mubr.msk.bf16.gmra.mxu0 %vm921_vm3, %v6627_v40  ;;  %v3270_v59 = vor.u32 %v3269_v45, %v3266_v35  ;;  %v3279_v61 = vrot.slane %v3277_v51, 4  ;;  %v3285_v62 = vrot.slane %v3283_v53, 5  ;;  %v2994_v22 = vld [vmem:[#allocation2 + $0xb8] sm:$0xf] }
  0xe6   : > { %v3297_v18 = vshll.u32 %v2988_v49, 16  ;;  %v3262_v30 = vsel %vm7666_vm11, %v3257_v54, %v3261_v33  ;;  %v3290_v3 = vrot.slane %v3288_v55, 4  ;;  %v3293_v24 = vrot.slane %v3291_v57, 5  ;;  %v7328_v45 = vld [vmem:[#allocation2 + $0xb4] sm:$0xff]   ;;  %v2995_v55 = vld [vmem:[#allocation2 + $0xbc] sm:$0x1] }
  0xe7   : > { %v3301_v4 = vshrl.u32 %v2988_v49, 16  ;;  %v6628_v15 = vcombine.low %v3252_v10, %v3262_v30  ;;  %v3271_v9 = vrot.slane %v3270_v59, 4  ;;  %v3280_v5 = vor.u32 %v3279_v61, %v3275_v50  ;;  %v3741_v57 = vld [vmem:[#allocation2 + $0xc] sm:$0xe] }
  0xe8   : > { %v3299_v44 = vrot.slane %v3297_v18, 5  ;;  %v3294_v13 = vor.u32 %v3293_v24, %v3290_v3  ;;  %v3307_v16 = vshll.u32 %v2989_v63, 16  ;;  %v3312_v19 = vshrl.u32 %v2990_v12, 16  ;;  %v3742_v63 = vld [vmem:[#allocation2 + $0x10] sm:$0xf] }
  0xe9   : > { %v3303_v17 = vrot.slane %v3301_v4, 4  ;;  %7096 = vmatmul.mubr.msk.bf16.gmra.mxu1 %vm921_vm3, %v7325_v46  ;;  %7129 = vmatprep.mubr.msk.bf16.mxu0 %vm921_vm3, %v6628_v15  ;;  %v3276_v20 = vsel %vm7666_vm11, %v3271_v9, %v3275_v50  ;;  %v3281_v21 = vrot.slane %v3280_v5, 4  ;;  %v3315_v11 = vshll.u32 %v2990_v12, 16 }
  0xea   : > { %v3321_v43 = vshll.u32 %v2991_v7, 16  ;;  %7099 = vmatprep.mubr.msk.bf16.mxu1 %vm921_vm3, %v7326_v2  ;;  %v3295_v25 = vrot.slane %v3294_v13, 4  ;;  %v3309_v26 = vrot.slane %v3307_v16, 5  ;;  %v3314_v1 = vrot.slane %v3312_v19, 4 }
  0xeb   : > { %v3304_v8 = vor.u32 %v3303_v17, %v3299_v44  ;;  %v3286_v27 = vsel %vm7666_vm11, %v3281_v21, %v3285_v62  ;;  %v3317_v41 = vrot.slane %v3315_v11, 5  ;;  %v3325_v28 = vshrl.u32 %v2991_v7, 16  ;;  %v3744_v21 = vld [vmem:[#allocation2 + $0x18] sm:$0xe] }
  0xec   : > { %v8044_v6 = vrot.slane %v3321_v43, 5  ;;  %v6629_v32 = vcombine.low %v3276_v20, %v3286_v27  ;;  %v3300_v33 = vsel %vm7666_vm11, %v3295_v25, %v3299_v44  ;;  %v3331_v37 = vshll.u32 %v2992_v23, 16  ;;  %v6991_v42 = vpop.f32.mrf.mxu1  ;;  %v3743_v44 = vld [vmem:[#allocation2 + $0x14] sm:$0x1] }
  0xed   : > { %v3305_v39 = vrot.slane %v3304_v8, 4  ;;  %v3318_v38 = vor.u32 %v3317_v41, %v3314_v1  ;;  %v3327_v14 = vrot.slane %v3325_v28, 4  ;;  %v377_v31 = vmax.f32 %v7867_v47, 0.0  ;;  %1153 = vst.msk [vmem:[#allocation3 + $0x90] sm:$0xff] %vm921_vm3, %v6991_v42  ;;  %v6975_v48 = vpop.f32.mrf.mxu0  ;;  %v3746_v1 = vld [vmem:[#allocation2 + $0x20] sm:$0x1] }
  0xee   : > { %v378_v40 = vmax.f32 %v7901_v58, 0.0  ;;  %7130 = vmatmul.mubr.msk.bf16.gmra.mxu0 %vm921_vm3, %v6629_v32  ;;  %v3333_v49 = vrot.slane %v3331_v37, 5  ;;  %v3336_v50 = vshrl.u32 %v2993_v29, 16  ;;  %v3339_v51 = vshll.u32 %v2993_v29, 16  ;;  %v1072_v53 = vpop.f32.mrf.mxu1  ;;  %1137 = vst.msk [vmem:[#allocation3 + $0x10] sm:$0xff] %vm921_vm3, %v6975_v48 }
  0xef   : > { %v3310_v35 = vsel %vm7666_vm11, %v3305_v39, %v3309_v26  ;;  %v3319_v47 = vrot.slane %v3318_v38, 4  ;;  %v3328_v58 = vor.u32 %v3327_v14, %v8044_v6  ;;  %1151 = vst.msk [vmem:[#allocation3 + $0x80] sm:$0xff] %vm921_vm3, %v1072_v53  ;;  %v1008_v12 = vpop.f32.mrf.mxu0  ;;  %v3345_v61 = vshll.u32 %v2994_v22, 16  ;;  %v3745_v26 = vld [vmem:[#allocation2 + $0x1c] sm:$0xf] }
  0xf0   : > { %v6630_v10 = vcombine.low %v3300_v33, %v3310_v35  ;;  %v394_v54 = vpack.c.bf16 %v378_v40, %v377_v31  ;;  %v3338_v46 = vrot.slane %v3336_v50, 4  ;;  %v3341_v59 = vrot.slane %v3339_v51, 5  ;;  %v6992_v18 = vpop.f32.mrf.mxu1  ;;  %1135 = vst.msk [vmem:[#allocation3] sm:$0xff] %vm921_vm3, %v1008_v12  ;;  %v3747_v32 = vld [vmem:[#allocation2 + $0x24] sm:$0xe] }
  0xf1   : > { %v3349_v62 = vshrl.u32 %v2994_v22, 16  ;;  %7100 = vmatmul.mubr.msk.bf16.gmra.mxu1 %vm921_vm3, %v7327_v36  ;;  %v3324_v30 = vsel %vm7666_vm11, %v3319_v47, %v8044_v6  ;;  %v3329_v2 = vrot.slane %v3328_v58, 4  ;;  %1154 = vst.msk [vmem:[#allocation3 + $0x98] sm:$0xff] %vm921_vm3, %v6992_v18  ;;  %v6976_v4 = vpop.f32.mrf.mxu0  ;;  %v3347_v15 = vrot.slane %v3345_v61, 5  ;;  %v3748_v36 = vld [vmem:[#allocation2 + $0x28] sm:$0xf] }
  0xf2   : > { %7133 = vmatprep.mubr.msk.bf16.mxu0 %vm921_vm3, %v6630_v10  ;;  %v510_v3 = vshrl.u32 %v394_v54, 16  ;;  %v513_v24 = vshll.u32 %v394_v54, 16  ;;  %7103 = vmatprep.mubr.msk.bf16.mxu1 %vm921_vm3, %v7328_v45  ;;  %v3342_v7 = vor.u32 %v3341_v59, %v3338_v46  ;;  %v3355_v5 = vshll.u32 %v2995_v55, 16  ;;  %v1075_v13 = vpop.f32.mrf.mxu1  ;;  %1138 = vst.msk [vmem:[#allocation3 + $0x18] sm:$0xff] %vm921_vm3, %v6976_v4  ;;  %v3749_v38 = vld [vmem:[#allocation2 + $0x2c] sm:$0x1] }
  0xf3   : > { %v3351_v9 = vrot.slane %v3349_v62, 4  ;;  %v3334_v17 = vsel %vm7666_vm11, %v3329_v2, %v3333_v49  ;;  %v6650_v19 = vrot.slane %v3741_v57, 9  ;;  %v3839_v20 = vrot.slane %v3742_v63, 5  ;;  %1152 = vst.msk [vmem:[#allocation3 + $0x88] sm:$0xff] %vm921_vm3, %v1075_v13  ;;  %v1011_v23 = vpop.f32.mrf.mxu0  ;;  %v3750_v35 = vld [vmem:[#allocation2 + $0x30] sm:$0xe] }
  0xf4   : > { %v512_v16 = vrot.slane %v510_v3, 7  ;;  %v6631_v11 = vcombine.low %v3324_v30, %v3334_v17  ;;  %v3343_v43 = vrot.slane %v3342_v7, 4  ;;  %v3357_v8 = vrot.slane %v3355_v5, 5  ;;  %v6995_v27 = vpop.f32.mrf.mxu1  ;;  %1136 = vst.msk [vmem:[#allocation3 + $0x8] sm:$0xff] %vm921_vm3, %v1011_v23  ;;  %v3751_v53 = vld [vmem:[#allocation2 + $0x34] sm:$0xf] }
  0xf5   : > { %v3352_v25 = vor.u32 %v3351_v9, %v3347_v15  ;;  %v8074_v28 = vsel %vm7683_vm12, %v6650_v19, %v3839_v20  ;;  %v3841_v29 = vrot.slane %v3839_v20, 4  ;;  %1157 = vst.msk [vmem:[#allocation3 + $0xb0] sm:$0xff] %vm921_vm3, %v6995_v27  ;;  %v3842_v42 = vrot.slane %v3743_v44, 5  ;;  %v3753_v10 = vld [vmem:[#allocation2 + $0x3c] sm:$0xe] }
  0xf6   : > { %v515_v41 = vor.u32 %v513_v24, %v512_v16  ;;  %v582_v6 = vsel %vm7477_vm6, %v512_v16, 0  ;;  %7134 = vmatmul.mubr.msk.bf16.gmra.mxu0 %vm921_vm3, %v6631_v11  ;;  %v3348_v33 = vsel %vm7666_vm11, %v3343_v43, %v3347_v15  ;;  %v1088_v14 = vpop.f32.mrf.mxu1  ;;  %v6651_v40 = vrot.slane %v3744_v21, 9  ;;  %v3754_v55 = vld [vmem:[#allocation2 + $0x40] sm:$0xf]  ;;  %v3755_v57 = vld [vmem:[#allocation2 + $0x44] sm:$0x1] }
  0xf7   : > { %v3353_v39 = vrot.slane %v3352_v25, 4  ;;  %v6469_v37 = vcombine.low %v582_v6, %v582_v6  ;;  %v3846_v22 = vrot.slane %v3745_v26, 5  ;;  %v3849_v48 = vrot.slane %v3746_v1, 5  ;;  %1155 = vst.msk [vmem:[#allocation3 + $0xa0] sm:$0xff] %vm921_vm3, %v1088_v14  ;;  %v3756_v61 = vld [vmem:[#allocation2 + $0x48] sm:$0xe] }
  0xf8   : > { %v566_v31 = vsel %vm7477_vm6, 0, %v515_v41  ;;  %v8088_v51 = vsel %vm7683_vm12, %v3841_v29, %v3842_v42  ;;  %v6996_v47 = vpop.f32.mrf.mxu1  ;;  %v6652_v12 = vrot.slane %v3747_v32, 9  ;;  %v3853_v46 = vrot.slane %v3748_v36, 5  ;;  %v3757_v3 = vld [vmem:[#allocation2 + $0x4c] sm:$0xf] }
  0xf9   : > { %v6467_v49 = vcombine.low %v566_v31, %v566_v31  ;;  %v6468_v45 = vcombine.high %v566_v31, %v566_v31  ;;  %v3358_v50 = vsel %vm7666_vm11, %v3353_v39, %v3357_v8  ;;  %807 = vst.msk [vmem:[#allocation2 + $0xc8] sm:$0x1] %vm398_vm2, %v6469_v37  ;;  %v3848_v54 = vrot.slane %v3846_v22, 4  ;;  %v3758_v17 = vld [vmem:[#allocation2 + $0x50] sm:$0x1] }
  0xfa   : > { %v6632_v58 = vcombine.low %v3348_v33, %v3358_v50  ;;  %1158 = vst.msk [vmem:[#allocation3 + $0xb8] sm:$0xff] %vm921_vm3, %v6996_v47  ;;  %v3856_v59 = vrot.slane %v3749_v38, 5  ;;  %v1091_v62 = vpop.f32.mrf.mxu1  ;;  %v6667_v63 = vcombine.low %v8074_v28, %v8088_v51  ;;  %v6653_v18 = vrot.slane %v3750_v35, 9  ;;  %v3759_v11 = vld [vmem:[#allocation2 + $0x54] sm:$0xe] }
  0xfb   : > { %805 = vst.msk [vmem:[#allocation2 + $0xc0] sm:$0xf] %vm395_vm1, %v6467_v49  ;;  %806 = vst.msk [vmem:[#allocation2 + $0xc4] sm:$0xf] %vm395_vm1, %v6468_v45  ;;  %v3860_v30 = vrot.slane %v3751_v53, 5  ;;  %v3863_v2 = vrot.slane %v3752_v0, 5  ;;  %v8099_v24 = vsel %vm7683_vm12, %v6651_v40, %v3846_v22  ;;  %v8103_v4 = vsel %vm7683_vm12, %v3848_v54, %v3849_v48 }
  0xfc   : > { %7137 = vmatprep.mubr.msk.bf16.mxu0 %vm921_vm3, %v6632_v58  ;;  %1156 = vst.msk [vmem:[#allocation3 + $0xa8] sm:$0xff] %vm921_vm3, %v1091_v62  ;;  %v8107_v7 = vsel %vm7683_vm12, %v6652_v12, %v3853_v46  ;;  %v3855_v15 = vrot.slane %v3853_v46, 4  ;;  %v6654_v44 = vrot.slane %v3753_v10, 9  ;;  %v3867_v13 = vrot.slane %v3754_v55, 5  ;;  %v3760_v27 = vld [vmem:[#allocation2 + $0x58] sm:$0xf] }
  0xfd   : > { %v8111_v9 = vsel %vm7683_vm12, %v6653_v18, %v3860_v30  ;;  %v3862_v5 = vrot.slane %v3860_v30, 4  ;;  %v6979_v16 = vpop.f32.mrf.mxu0  ;;  %v3870_v20 = vrot.slane %v3755_v57, 5  ;;  %v6655_v21 = vrot.slane %v3756_v61, 9  ;;  %v3761_v41 = vld [vmem:[#allocation2 + $0x5c] sm:$0x1] }
  0xfe   : > { %v8115_v19 = vsel %vm7683_vm12, %v3855_v15, %v3856_v59  ;;  %v3874_v23 = vrot.slane %v3757_v3, 5  ;;  %1141 = vst.msk [vmem:[#allocation3 + $0x30] sm:$0xff] %vm921_vm3, %v6979_v16  ;;  %v8120_v25 = vsel %vm970_vm0, %v7968_v56, 0  ;;  %v8128_v26 = vsel %vm7683_vm12, %v6654_v44, %v3867_v13  ;;  %v3762_v33 = vld [vmem:[#allocation2 + $0x60] sm:$0xe] }
  0xff   : > { %v8124_v8 = vsel %vm7683_vm12, %v3862_v5, %v3863_v2  ;;  %v3869_v1 = vrot.slane %v3867_v13, 4  ;;  %v1024_v6 = vpop.f32.mrf.mxu0  ;;  %v6668_v29 = vcombine.low %v8099_v24, %v8103_v4  ;;  %v8134_v56 = vsel %vm970_vm0, %v7975_v52, 0  ;;  %v3763_v14 = vld [vmem:[#allocation2 + $0x64] sm:$0xf]  ;;  %v3764_v45 = vld [vmem:[#allocation2 + $0x68] sm:$0x1] }
 0x100   : > { %v2998_v43 = vld [vmem:[#allocation2 + $0xc8] sm:$0x1]  ;;  %v3876_v32 = vrot.slane %v3874_v23, 4  ;;  %1139 = vst.msk [vmem:[#allocation3 + $0x20] sm:$0xff] %vm921_vm3, %v1024_v6  ;;  %v6669_v37 = vcombine.low %v8107_v7, %v8115_v19  ;;  %v6670_v42 = vcombine.low %v8111_v9, %v8124_v8  ;;  %v3877_v38 = vrot.slane %v3758_v17, 5 }
 0x101   : > { %v3379_v28 = vshll.u32 %v2998_v43, 16  ;;  %v8143_v36 = vsel %vm7683_vm12, %v3869_v1, %v3870_v20  ;;  %v6980_v31 = vpop.f32.mrf.mxu0  ;;  %v8151_v35 = vsel %vm7683_vm12, %v6655_v21, %v3874_v23  ;;  %v6656_v49 = vrot.slane %v3759_v11, 9  ;;  %v3765_v47 = vld [vmem:[#allocation2 + $0x6c] sm:$0xe]  ;;  %v3766_v46 = vld [vmem:[#allocation2 + $0x70] sm:$0xf] }
 0x102   : > { %v7329_v39 = vld [vmem:[#allocation2 + $0xc0] sm:$0xff]   ;;  %v6671_v48 = vcombine.low %v8128_v26, %v8143_v36  ;;  %1142 = vst.msk [vmem:[#allocation3 + $0x38] sm:$0xff] %vm921_vm3, %v6980_v31  ;;  %v6999_v50 = vpop.f32.mrf.mxu1  ;;  %v8159_v54 = vsel %vm7683_vm12, %v3876_v32, %v3877_v38  ;;  %v3881_v55 = vrot.slane %v3760_v27, 5  ;;  %v3884_v57 = vrot.slane %v3761_v41, 5  ;;  %v3767_v5 = vld [vmem:[#allocation2 + $0x74] sm:$0x1] }
 0x103   : > { %v2996_v52 = vld [vmem:[#allocation2 + $0xc0] sm:$0xf]  ;;  %v2997_v40 = vld [vmem:[#allocation2 + $0xc4] sm:$0xf]  ;;  %v8145_v22 = vrot.slane %v3379_v28, 5  ;;  %7104 = vmatmul.mubr.msk.bf16.gmra.mxu1 %vm921_vm3, %v7329_v39  ;;  %1161 = vst.msk [vmem:[#allocation3 + $0xd0] sm:$0xff] %vm921_vm3, %v6999_v50  ;;  %v1027_v58 = vpop.f32.mrf.mxu0 }
 0x104   : > { %v3360_v51 = vshrl.u32 %v2996_v52, 16  ;;  %v3363_v53 = vshll.u32 %v2996_v52, 16  ;;  %v3369_v0 = vshll.u32 %v2997_v40, 16  ;;  %v3373_v10 = vshrl.u32 %v2997_v40, 16  ;;  %7143 = vmatprep.mubr.msk.bf16.mxu1 %vm921_vm3, %v6667_v63  ;;  %1140 = vst.msk [vmem:[#allocation3 + $0x28] sm:$0xff] %vm921_vm3, %v1027_v58  ;;  %v1104_v59 = vpop.f32.mrf.mxu1 }
 0x105   : > { %v6657_v12 = vrot.slane %v3762_v33, 9  ;;  %1159 = vst.msk [vmem:[#allocation3 + $0xc0] sm:$0xff] %vm921_vm3, %v1104_v59  ;;  %v6672_v63 = vcombine.low %v8151_v35, %v8159_v54  ;;  %v8167_v2 = vsel %vm7683_vm12, %v6656_v49, %v3881_v55  ;;  %v3883_v3 = vrot.slane %v3881_v55, 4  ;;  %v3768_v21 = vld [vmem:[#allocation2 + $0x78] sm:$0xe] }
 0x106   : > { %v3362_v61 = vrot.slane %v3360_v51, 4  ;;  %v3365_v62 = vrot.slane %v3363_v53, 5  ;;  %v3371_v18 = vrot.slane %v3369_v0, 5  ;;  %v3375_v30 = vrot.slane %v3373_v10, 4  ;;  %v7000_v44 = vpop.f32.mrf.mxu1  ;;  %v3769_v23 = vld [vmem:[#allocation2 + $0x7c] sm:$0xf] }
 0x107   : > { %v3888_v15 = vrot.slane %v3763_v14, 5  ;;  %v3891_v16 = vrot.slane %v3764_v45, 5  ;;  %v6658_v20 = vrot.slane %v3765_v47, 9  ;;  %1162 = vst.msk [vmem:[#allocation3 + $0xd8] sm:$0xff] %vm921_vm3, %v7000_v44  ;;  %v8172_v11 = vsel %vm7683_vm12, %v3883_v3, %v3884_v57  ;;  %v3770_v41 = vld [vmem:[#allocation2 + $0x80] sm:$0x1] }
 0x108   : > { %v3366_v13 = vor.u32 %v3365_v62, %v3362_v61  ;;  %v3376_v17 = vor.u32 %v3375_v30, %v3371_v18  ;;  %v3895_v27 = vrot.slane %v3766_v46, 5  ;;  %v3771_v6 = vld [vmem:[#allocation2 + $0x84] sm:$0xe]  ;;  %v1107_v28 = vpop.f32.mrf.mxu1  ;;  %v6673_v39 = vcombine.low %v8167_v2, %v8172_v11  ;;  %v3772_v14 = vld [vmem:[#allocation2 + $0x88] sm:$0xf]  ;;  %v7330_v10 = vld [vmem:[#allocation2 + $0x18] sm:$0xff]  }
 0x109   : > { %v8176_v43 = vsel %vm7683_vm12, %v6657_v12, %v3888_v15  ;;  %v3890_v1 = vrot.slane %v3888_v15, 4  ;;  %v3898_v38 = vrot.slane %v3767_v5, 5  ;;  %v6983_v31 = vpop.f32.mrf.mxu0  ;;  %1160 = vst.msk [vmem:[#allocation3 + $0xc8] sm:$0xff] %vm921_vm3, %v1107_v28  ;;  %v6659_v45 = vrot.slane %v3768_v21, 9  ;;  %v3773_v50 = vld [vmem:[#allocation2 + $0x8c] sm:$0x1] }
 0x10a   : > { %v3367_v32 = vrot.slane %v3366_v13, 4  ;;  %v3377_v33 = vrot.slane %v3376_v17, 4  ;;  %v8187_v40 = vsel %vm7683_vm12, %v6658_v20, %v3895_v27  ;;  %v3897_v49 = vrot.slane %v3895_v27, 4  ;;  %v3774_v51 = vld [vmem:[#allocation2 + $0x90] sm:$0xe]  ;;  %1145 = vst.msk [vmem:[#allocation3 + $0x50] sm:$0xff] %vm921_vm3, %v6983_v31 }
 0x10b   : > { %v8183_v52 = vsel %vm7683_vm12, %v3890_v1, %v3891_v16  ;;  %7144 = vmatmul.mubr.msk.bf16.vlgmr.msra.gmra.mxu1 %vm921_vm3, %v6668_v29  ;;  %v3902_v58 = vrot.slane %v3769_v23, 5  ;;  %v3775_v55 = vld [vmem:[#allocation2 + $0x94] sm:$0xf]  ;;  %v3776_v57 = vld [vmem:[#allocation2 + $0x98] sm:$0x1]  ;;  %v1040_v12 = vpop.f32.mrf.mxu0  ;;  %v3905_v4 = vrot.slane %v3770_v41, 5 }
 0x10c   : > { %v3372_v53 = vsel %vm7666_vm11, %v3367_v32, %v3371_v18  ;;  %v3382_v0 = vsel %vm7666_vm11, %v3377_v33, %v8145_v22  ;;  %v6674_v47 = vcombine.low %v8176_v43, %v8183_v52  ;;  %7210 = vmatpush3.bf16.msra.mxu1 %v8120_v25  ;;  %7147 = vmatprep.mubr.msk.bf16.mxu1 %vm921_vm3, %v6669_v37  ;;  %v6660_v29 = vrot.slane %v3771_v6, 9  ;;  %v3777_v22 = vld [vmem:[#allocation2 + $0x9c] sm:$0xe]  ;;  %v3778_v59 = vld [vmem:[#allocation2 + $0xa0] sm:$0xf] }
 0x10d   : > { %v6633_v46 = vcombine.low %v3372_v53, %v3382_v0  ;;  %v8208_v24 = vsel %vm7683_vm12, %v3897_v49, %v3898_v38  ;;  %1143 = vst.msk [vmem:[#allocation3 + $0x40] sm:$0xff] %vm921_vm3, %v1040_v12  ;;  %v8215_v25 = vsel %vm7683_vm12, %v6659_v45, %v3902_v58  ;;  %v3904_v7 = vrot.slane %v3902_v58, 4  ;;  %v3779_v37 = vld [vmem:[#allocation2 + $0xa4] sm:$0x1]  ;;  %v3780_v62 = vld [vmem:[#allocation2 + $0xa8] sm:$0xe]  ;;  %v6984_v18 = vpop.f32.mrf.mxu0 }
 0x10e   : > { %v6675_v61 = vcombine.low %v8187_v40, %v8208_v24  ;;  %v3909_v19 = vrot.slane %v3772_v14, 5  ;;  %v3912_v30 = vrot.slane %v3773_v50, 5  ;;  %v6661_v3 = vrot.slane %v3774_v51, 9  ;;  %v3781_v44 = vld [vmem:[#allocation2 + $0xac] sm:$0xf]  ;;  %1146 = vst.msk [vmem:[#allocation3 + $0x58] sm:$0xff] %vm921_vm3, %v6984_v18 }
 0x10f   : > { %7138 = vmatmul.mubr.msk.bf16.gmra.mxu0 %vm921_vm3, %v6633_v46  ;;  %v3916_v15 = vrot.slane %v3775_v55, 5  ;;  %v3919_v5 = vrot.slane %v3776_v57, 5  ;;  %v8222_v13 = vsel %vm7683_vm12, %v3904_v7, %v3905_v4  ;;  %v6662_v20 = vrot.slane %v3777_v22, 9  ;;  %v3782_v21 = vld [vmem:[#allocation2 + $0xb0] sm:$0x1]  ;;  %v1043_v23 = vpop.f32.mrf.mxu0  ;;  %v7331_v50 = vld [vmem:[#allocation2 + $0x24] sm:$0xff]  }
 0x110   : > { %7177 = vmatprep.mubr.msk.bf16.mxu0 %vm921_vm3, %v7330_v10  ;;  %v8226_v17 = vsel %vm7683_vm12, %v6660_v29, %v3909_v19  ;;  %v3911_v16 = vrot.slane %v3909_v19, 4  ;;  %v6676_v1 = vcombine.low %v8215_v25, %v8222_v13  ;;  %v3923_v6 = vrot.slane %v3778_v59, 5  ;;  %v3783_v28 = vld [vmem:[#allocation2 + $0xb4] sm:$0xe]  ;;  %v3784_v32 = vld [vmem:[#allocation2 + $0xb8] sm:$0xf] }
 0x111   : > { %v8232_v27 = vsel %vm7683_vm12, %v6661_v3, %v3916_v15  ;;  %v3918_v41 = vrot.slane %v3916_v15, 4  ;;  %1144 = vst.msk [vmem:[#allocation3 + $0x48] sm:$0xff] %vm921_vm3, %v1043_v23  ;;  %v3926_v38 = vrot.slane %v3779_v37, 5  ;;  %v6663_v14 = vrot.slane %v3780_v62, 9  ;;  %v3785_v49 = vld [vmem:[#allocation2 + $0xbc] sm:$0x1] }
 0x112   : > { %v8237_v33 = vsel %vm7683_vm12, %v3911_v16, %v3912_v30  ;;  %v3930_v31 = vrot.slane %v3781_v44, 5  ;;  %v7003_v45 = vpop.f32.mrf.mxu1  ;;  %v8247_v0 = vsel %vm7683_vm12, %v6662_v20, %v3923_v6  ;;  %v3925_v10 = vrot.slane %v3923_v6, 4  ;;  %v3786_v58 = vld [vmem:[#allocation2 + $0xc0] sm:$0xe]  ;;  %v3787_v55 = vld [vmem:[#allocation2 + $0xc4] sm:$0xf] }
 0x113   : > { %v6677_v51 = vcombine.low %v8226_v17, %v8237_v33  ;;  %v8243_v53 = vsel %vm7683_vm12, %v3918_v41, %v3919_v5  ;;  %1165 = vst.msk [vmem:[#allocation3 + $0xf0] sm:$0xff] %vm921_vm3, %v7003_v45  ;;  %7148 = vmatmul.mubr.msk.bf16.gmra.mxu1 %vm921_vm3, %v6670_v42  ;;  %v7332_v57 = vld [vmem:[#allocation2 + $0x30] sm:$0xff]   ;;  %v3933_v29 = vrot.slane %v3782_v21, 5  ;;  %v3788_v22 = vld [vmem:[#allocation2 + $0xc8] sm:$0x1]  ;;  %v6664_v8 = vrot.slane %v3783_v28, 9 }
 0x114   : > { %v6678_v12 = vcombine.low %v8232_v27, %v8243_v53  ;;  %v8258_v46 = vsel %vm7683_vm12, %v6663_v14, %v3930_v31  ;;  %v3932_v4 = vrot.slane %v3930_v31, 4  ;;  %v1120_v59 = vpop.f32.mrf.mxu1  ;;  %7151 = vmatprep.mubr.msk.bf16.mxu1 %vm921_vm3, %v6671_v48  ;;  %v8266_v9 = vsel %vm7683_vm12, %v3925_v10, %v3926_v38  ;;  %v4730_v19 = vld [vmem:[#allocation2 + $0x18] sm:$0xf]  ;;  %v4731_v18 = vld [vmem:[#allocation2 + $0x1c] sm:$0xf] }
 0x115   : > { %v3937_v42 = vrot.slane %v3784_v32, 5  ;;  %v3940_v7 = vrot.slane %v3785_v49, 5  ;;  %1163 = vst.msk [vmem:[#allocation3 + $0xe0] sm:$0xff] %vm921_vm3, %v1120_v59  ;;  %v6679_v37 = vcombine.low %v8247_v0, %v8266_v9  ;;  %v6665_v26 = vrot.slane %v3786_v58, 9  ;;  %v4732_v30 = vld [vmem:[#allocation2 + $0x20] sm:$0x1] }
 0x116   : > { %v8273_v62 = vsel %vm7683_vm12, %v3932_v4, %v3933_v29  ;;  %v3944_v36 = vrot.slane %v3787_v55, 5  ;;  %v7004_v48 = vpop.f32.mrf.mxu1  ;;  %v3947_v44 = vrot.slane %v3788_v22, 5  ;;  %v4779_v23 = vshrl.u32 %v4730_v19, 16  ;;  %v4733_v14 = vld [vmem:[#allocation2 + $0x24] sm:$0xf]  ;;  %v7334_v4 = vld [vmem:[#allocation2 + $0x48] sm:$0xff]  }
 0x117   : > { %7178 = vmatmul.mubr.msk.bf16.vlgmr.msra.gmra.mxu0 %vm921_vm3, %v7331_v50  ;;  %v6680_v3 = vcombine.low %v8258_v46, %v8273_v62  ;;  %v8280_v15 = vsel %vm7683_vm12, %v6664_v8, %v3937_v42  ;;  %v3939_v5 = vrot.slane %v3937_v42, 4  ;;  %1166 = vst.msk [vmem:[#allocation3 + $0xf8] sm:$0xff] %vm921_vm3, %v7004_v48  ;;  %v4782_v41 = vshll.u32 %v4730_v19, 16  ;;  %v4734_v58 = vld [vmem:[#allocation2 + $0x28] sm:$0xf]  ;;  %v1868_v25 = vld [vmem:[#allocation3 + $0x20] sm:$0xff] }
 0x118   : > { %7244 = vmatpush3.bf16.msra.mxu0 %v8134_v56  ;;  %7181 = vmatprep.mubr.msk.bf16.mxu0 %vm921_vm3, %v7332_v57  ;;  %v8287_v16 = vsel %vm7683_vm12, %v6665_v26, %v3944_v36  ;;  %v3946_v20 = vrot.slane %v3944_v36, 4  ;;  %v1123_v21 = vpop.f32.mrf.mxu1  ;;  %v4788_v32 = vshll.u32 %v4731_v18, 16  ;;  %v4792_v38 = vshrl.u32 %v4731_v18, 16  ;;  %v4735_v55 = vld [vmem:[#allocation2 + $0x2c] sm:$0x1]  ;;  %v7333_v57 = vld [vmem:[#allocation2 + $0x3c] sm:$0xff]  }
 0x119   : > { %v8291_v6 = vsel %vm7683_vm12, %v3939_v5, %v3940_v7  ;;  %v6987_v28 = vpop.f32.mrf.mxu0  ;;  %1164 = vst.msk [vmem:[#allocation3 + $0xe8] sm:$0xff] %vm921_vm3, %v1123_v21  ;;  %v4798_v56 = vshll.u32 %v4732_v30, 16  ;;  %v4781_v45 = vrot.slane %v4779_v23, 4  ;;  %v4784_v50 = vrot.slane %v4782_v41, 5  ;;  %v1866_v7 = vld [vmem:[#allocation3 + $0x10] sm:$0xff] }
 0x11a   : > { %v6681_v31 = vcombine.low %v8280_v15, %v8291_v6  ;;  %v8298_v49 = vsel %vm7683_vm12, %v3946_v20, %v3947_v44  ;;  %1149 = vst.msk [vmem:[#allocation3 + $0x70] sm:$0xff] %vm921_vm3, %v6987_v28  ;;  %v7009_v10 = vpop.f32.mrf.mxu1  ;;  %v4790_v59 = vrot.slane %v4788_v32, 5  ;;  %v4794_v8 = vrot.slane %v4792_v38, 4  ;;  %v5520_v30 = vld [vmem:[#allocation2 + $0x18] sm:$0xe] }
 0x11b   : > { %v6682_v29 = vcombine.low %v8287_v16, %v8298_v49  ;;  %v1056_v22 = vpop.f32.mrf.mxu0  ;;  %v4800_v42 = vrot.slane %v4798_v56, 5  ;;  %7152 = vmatmul.mubr.msk.bf16.gmra.mxu1 %vm921_vm3, %v6672_v63  ;;  %v4785_v19 = vor.u32 %v4784_v50, %v4781_v45  ;;  %v1898_v26 = vadd.f32 %v7009_v10, %v1866_v7  ;;  %v5521_v5 = vld [vmem:[#allocation2 + $0x1c] sm:$0xf]  ;;  %v5522_v23 = vld [vmem:[#allocation2 + $0x20] sm:$0x1]  ;;  %v1867_v7 = vld [vmem:[#allocation3 + $0x18] sm:$0xff] }
 0x11c   : > { %1147 = vst.msk [vmem:[#allocation3 + $0x60] sm:$0xff] %vm921_vm3, %v1056_v22  ;;  %v4803_v36 = vshrl.u32 %v4733_v14, 16  ;;  %v4806_v48 = vshll.u32 %v4733_v14, 16  ;;  %v1737_v18 = vpop.f32.mrf.mxu1  ;;  %7155 = vmatprep.mubr.msk.bf16.mxu1 %vm921_vm3, %v6673_v39  ;;  %v4795_v44 = vor.u32 %v4794_v8, %v4790_v59  ;;  %v4812_v21 = vshll.u32 %v4734_v58, 16  ;;  %v1864_v63 = vld [vmem:[#allocation3] sm:$0xff] }
 0x11d   : > { %v6988_v20 = vpop.f32.mrf.mxu0  ;;  %v4816_v35 = vshrl.u32 %v4734_v58, 16  ;;  %v4822_v54 = vshll.u32 %v4735_v55, 16  ;;  %v4786_v41 = vrot.slane %v4785_v19, 4  ;;  %1930 = vst.msk [vmem:[#allocation3 + $0x10] sm:$0xff] %vm921_vm3, %v1898_v26  ;;  %v1896_v38 = vadd.f32 %v1864_v63, %v1737_v18  ;;  %v5523_v14 = vld [vmem:[#allocation2 + $0x24] sm:$0xe] }
 0x11e   : > { %1150 = vst.msk [vmem:[#allocation3 + $0x78] sm:$0xff] %vm921_vm3, %v6988_v20  ;;  %v4805_v28 = vrot.slane %v4803_v36, 4  ;;  %v4808_v32 = vrot.slane %v4806_v48, 5  ;;  %v7010_v56 = vpop.f32.mrf.mxu1  ;;  %v4796_v2 = vrot.slane %v4795_v44, 4  ;;  %v4814_v11 = vrot.slane %v4812_v21, 5 }
 0x11f   : > { %7182 = vmatmul.mubr.msk.bf16.gmra.mxu0 %vm921_vm3, %v7333_v57  ;;  %v4818_v39 = vrot.slane %v4816_v35, 4  ;;  %v4824_v45 = vrot.slane %v4822_v54, 5  ;;  %v1059_v50 = vpop.f32.mrf.mxu0  ;;  %v5524_v10 = vld [vmem:[#allocation2 + $0x28] sm:$0xf]  ;;  %v4791_v58 = vsel %vm7666_vm11, %v4786_v41, %v4790_v59  ;;  %1928 = vst.msk [vmem:[#allocation3] sm:$0xff] %vm921_vm3, %v1896_v38  ;;  %v6765_v22 = vrot.slane %v5520_v30, 9 }
 0x120   : > { %7185 = vmatprep.mubr.msk.bf16.mxu0 %vm921_vm3, %v7334_v4  ;;  %v4809_v55 = vor.u32 %v4808_v32, %v4805_v28  ;;  %1148 = vst.msk [vmem:[#allocation3 + $0x68] sm:$0xff] %vm921_vm3, %v1059_v50  ;;  %v5618_v8 = vrot.slane %v5521_v5, 5  ;;  %v5525_v57 = vld [vmem:[#allocation2 + $0x2c] sm:$0x1]  ;;  %v4801_v19 = vsel %vm7666_vm11, %v4796_v2, %v4800_v42  ;;  %v5621_v36 = vrot.slane %v5522_v23, 5  ;;  %v1740_v4 = vpop.f32.mrf.mxu1  ;;  %v7335_v5 = vld [vmem:[#allocation2 + $0x54] sm:$0xff]  }
 0x121   : > { %v4819_v26 = vor.u32 %v4818_v39, %v4814_v11  ;;  %v1899_v48 = vadd.f32 %v7010_v56, %v1867_v7  ;;  %v7043_v18 = vpop.f32.mrf.mxu0  ;;  %v4736_v44 = vld [vmem:[#allocation2 + $0x30] sm:$0xf]  ;;  %v8322_v20 = vcombine.low %v4791_v58, %v4801_v19  ;;  %v6766_v54 = vrot.slane %v5523_v14, 9  ;;  %v1865_v23 = vld [vmem:[#allocation3 + $0x8] sm:$0xff]  ;;  %v4737_v2 = vld [vmem:[#allocation2 + $0x34] sm:$0xf] }
 0x122   : > { %v4810_v59 = vrot.slane %v4809_v55, 4  ;;  %v8326_v21 = vsel %vm7683_vm12, %v6765_v22, %v5618_v8  ;;  %v5620_v30 = vrot.slane %v5618_v8, 4  ;;  %v5625_v42 = vrot.slane %v5524_v10, 5  ;;  %v7336_v28 = vld [vmem:[#allocation2 + $0x60] sm:$0xff]   ;;  %v4738_v14 = vld [vmem:[#allocation2 + $0x38] sm:$0x1] }
 0x123   : > { %v4820_v35 = vrot.slane %v4819_v26, 4  ;;  %1931 = vst.msk [vmem:[#allocation3 + $0x18] sm:$0xff] %vm921_vm3, %v1899_v48  ;;  %v5628_v63 = vrot.slane %v5525_v57, 5  ;;  %v2306_v41 = vpop.f32.mrf.mxu0  ;;  %7156 = vmatmul.mubr.msk.bf16.gmra.mxu1 %vm921_vm3, %v6674_v47  ;;  %v1897_v56 = vadd.f32 %v1865_v23, %v1740_v4  ;;  %v4827_v39 = vshrl.u32 %v4736_v44, 16  ;;  %v4739_v58 = vld [vmem:[#allocation2 + $0x3c] sm:$0xf] }
 0x124   : > { %v4815_v32 = vsel %vm7666_vm11, %v4810_v59, %v4814_v11  ;;  %v8337_v38 = vsel %vm7683_vm12, %v5620_v30, %v5621_v36  ;;  %7159 = vmatprep.mubr.msk.bf16.mxu1 %vm921_vm3, %v6675_v61  ;;  %v2435_v47 = vld [vmem:[#allocation3 + $0x10] sm:$0xff]  ;;  %v8349_v11 = vsel %vm7683_vm12, %v6766_v54, %v5625_v42  ;;  %v5627_v50 = vrot.slane %v5625_v42, 4  ;;  %v4740_v19 = vld [vmem:[#allocation2 + $0x40] sm:$0xf]  ;;  %v4741_v4 = vld [vmem:[#allocation2 + $0x44] sm:$0x1] }
 0x125   : > { %v4825_v43 = vsel %vm7666_vm11, %v4820_v35, %v4824_v45  ;;  %v6782_v52 = vcombine.low %v8326_v21, %v8337_v38  ;;  %v7044_v10 = vpop.f32.mrf.mxu0  ;;  %v2467_v22 = vadd.f32 %v7043_v18, %v2435_v47  ;;  %1929 = vst.msk [vmem:[#allocation3 + $0x8] sm:$0xff] %vm921_vm3, %v1897_v56  ;;  %v4829_v40 = vrot.slane %v4827_v39, 4  ;;  %v5526_v54 = vld [vmem:[#allocation2 + $0x30] sm:$0xe]  ;;  %v5530_v17 = vld [vmem:[#allocation2 + $0x40] sm:$0xf] }
 0x126   : > { %v8351_v55 = vcombine.low %v4815_v32, %v4825_v43  ;;  %v4830_v24 = vshll.u32 %v4736_v44, 16  ;;  %v8357_v61 = vsel %vm7683_vm12, %v5627_v50, %v5628_v63  ;;  %v2433_v45 = vld [vmem:[#allocation3] sm:$0xff]  ;;  %v4836_v8 = vshll.u32 %v4737_v2, 16  ;;  %v1870_v43 = vld [vmem:[#allocation3 + $0x30] sm:$0xff]  ;;  %v5531_v33 = vld [vmem:[#allocation2 + $0x44] sm:$0x1] }
 0x127   : > { %7186 = vmatmul.mubr.msk.bf16.gmra.mxu0 %vm921_vm3, %v7335_v5  ;;  %v4840_v7 = vshrl.u32 %v4737_v2, 16  ;;  %v4846_v57 = vshll.u32 %v4738_v14, 16  ;;  %v2309_v26 = vpop.f32.mrf.mxu0  ;;  %2499 = vst.msk [vmem:[#allocation3 + $0x10] sm:$0xff] %vm921_vm3, %v2467_v22  ;;  %v6783_v36 = vcombine.low %v8349_v11, %v8357_v61  ;;  %v2465_v48 = vadd.f32 %v2433_v45, %v2306_v41  ;;  %v5527_v2 = vld [vmem:[#allocation2 + $0x34] sm:$0xf]  ;;  %v7337_v14 = vld [vmem:[#allocation2 + $0x6c] sm:$0xff]  }
 0x128   : > { %7189 = vmatprep.mubr.msk.bf16.mxu0 %vm921_vm3, %v7336_v28  ;;  %v4832_v18 = vrot.slane %v4830_v24, 5  ;;  %v4851_v44 = vshrl.u32 %v4739_v58, 16  ;;  %v4838_v59 = vrot.slane %v4836_v8, 5  ;;  %v4854_v35 = vshll.u32 %v4739_v58, 16  ;;  %v5528_v24 = vld [vmem:[#allocation2 + $0x38] sm:$0x1] }
 0x129   : > { %v4842_v30 = vrot.slane %v4840_v7, 4  ;;  %v4848_v5 = vrot.slane %v4846_v57, 5  ;;  %2497 = vst.msk [vmem:[#allocation3] sm:$0xff] %vm921_vm3, %v2465_v48  ;;  %v4860_v32 = vshll.u32 %v4740_v19, 16  ;;  %v4864_v56 = vshrl.u32 %v4740_v19, 16 }
 0x12a   : > { %v8363_v42 = vpop.f32.mrf.mxu0  ;;  %v4833_v63 = vor.u32 %v4832_v18, %v4829_v40  ;;  %v2436_v23 = vld [vmem:[#allocation3 + $0x18] sm:$0xff]  ;;  %v4853_v28 = vrot.slane %v4851_v44, 4  ;;  %v4856_v50 = vrot.slane %v4854_v35, 5  ;;  %v4870_v22 = vshll.u32 %v4741_v4, 16  ;;  %v7338_v40 = vld [vmem:[#allocation2 + $0x78] sm:$0xff]  }
 0x12b   : > { %v4843_v41 = vor.u32 %v4842_v30, %v4838_v59  ;;  %v7013_v39 = vpop.f32.mrf.mxu1  ;;  %v2468_v47 = vadd.f32 %v7044_v10, %v2436_v23  ;;  %7160 = vmatmul.mubr.msk.bf16.gmra.mxu1 %vm921_vm3, %v6676_v1  ;;  %v4862_v7 = vrot.slane %v4860_v32, 5  ;;  %v4866_v57 = vrot.slane %v4864_v56, 4  ;;  %v5529_v19 = vld [vmem:[#allocation2 + $0x3c] sm:$0xe] }
 0x12c   : > { %v8366_v58 = vpop.f32.mrf.mxu0  ;;  %v4834_v45 = vrot.slane %v4833_v63, 4  ;;  %v1902_v8 = vadd.f32 %v7013_v39, %v1870_v43  ;;  %7163 = vmatprep.mubr.msk.bf16.mxu1 %vm921_vm3, %v6677_v51  ;;  %v4857_v48 = vor.u32 %v4856_v50, %v4853_v28  ;;  %v4872_v18 = vrot.slane %v4870_v22, 5  ;;  %v2434_v13 = vld [vmem:[#allocation3 + $0x8] sm:$0xff] }
 0x12d   : > { %v4844_v10 = vrot.slane %v4843_v41, 4  ;;  %2500 = vst.msk [vmem:[#allocation3 + $0x18] sm:$0xff] %vm921_vm3, %v2468_v47  ;;  %v1753_v4 = vpop.f32.mrf.mxu1  ;;  %v6767_v1 = vrot.slane %v5526_v54, 9  ;;  %v4867_v30 = vor.u32 %v4866_v57, %v4862_v7  ;;  %v2466_v63 = vadd.f32 %v2434_v13, %v2309_v26  ;;  %v1871_v41 = vld [vmem:[#allocation3 + $0x38] sm:$0xff] }
 0x12e   : > { %v4839_v44 = vsel %vm7666_vm11, %v4834_v45, %v4838_v59  ;;  %1934 = vst.msk [vmem:[#allocation3 + $0x30] sm:$0xff] %vm921_vm3, %v1902_v8  ;;  %v1900_v35 = vadd.f32 %v1868_v25, %v1753_v4  ;;  %v8380_v51 = vpop.f32.mrf.mxu0  ;;  %v4858_v28 = vrot.slane %v4857_v48, 4  ;;  %v5632_v32 = vrot.slane %v5527_v2, 5  ;;  %v4742_v59 = vld [vmem:[#allocation2 + $0x48] sm:$0xf] }
 0x12f   : > { %7190 = vmatmul.mubr.msk.bf16.gmra.mxu0 %vm921_vm3, %v7337_v14  ;;  %v4849_v23 = vsel %vm7666_vm11, %v4844_v10, %v4848_v5  ;;  %v5635_v54 = vrot.slane %v5528_v24, 5  ;;  %v7014_v56 = vpop.f32.mrf.mxu1  ;;  %v4868_v26 = vrot.slane %v4867_v30, 4  ;;  %2498 = vst.msk [vmem:[#allocation3 + $0x8] sm:$0xff] %vm921_vm3, %v2466_v63  ;;  %v6768_v14 = vrot.slane %v5529_v19, 9  ;;  %v1869_v24 = vld [vmem:[#allocation3 + $0x28] sm:$0xff] }
 0x130   : > { %7193 = vmatprep.mubr.msk.bf16.mxu0 %vm921_vm3, %v7338_v40  ;;  %v8386_v39 = vcombine.low %v4839_v44, %v4849_v23  ;;  %1932 = vst.msk [vmem:[#allocation3 + $0x20] sm:$0xff] %vm921_vm3, %v1900_v35  ;;  %v1903_v43 = vadd.f32 %v7014_v56, %v1871_v41  ;;  %v4863_v5 = vsel %vm7666_vm11, %v4858_v28, %v4862_v7  ;;  %v5634_v47 = vrot.slane %v5632_v32, 4  ;;  %v4743_v40 = vld [vmem:[#allocation2 + $0x4c] sm:$0xf]  ;;  %v4744_v19 = vld [vmem:[#allocation2 + $0x50] sm:$0x1]  ;;  %v8399_v7 = vpop.f32.mrf.mxu0 }
 0x131   : > { %v8394_v2 = vsel %vm7683_vm12, %v6767_v1, %v5632_v32  ;;  %v5639_v50 = vrot.slane %v5530_v17, 5  ;;  %v1756_v22 = vpop.f32.mrf.mxu1  ;;  %v4873_v45 = vsel %vm7666_vm11, %v4868_v26, %v4872_v18  ;;  %v5642_v8 = vrot.slane %v5531_v33, 5  ;;  %v4745_v48 = vld [vmem:[#allocation2 + $0x54] sm:$0xf]  ;;  %v7339_v4 = vld [vmem:[#allocation2 + $0x84] sm:$0xff]  }
 0x132   : > { %1935 = vst.msk [vmem:[#allocation3 + $0x38] sm:$0xff] %vm921_vm3, %v1903_v43  ;;  %v1901_v57 = vadd.f32 %v1869_v24, %v1756_v22  ;;  %v4875_v10 = vshrl.u32 %v4742_v59, 16  ;;  %v8401_v25 = vcombine.low %v4863_v5, %v4873_v45  ;;  %v8405_v13 = vsel %vm7683_vm12, %v5634_v47, %v5635_v54  ;;  %v7340_v44 = vld [vmem:[#allocation2 + $0x90] sm:$0xff]   ;;  %v4746_v23 = vld [vmem:[#allocation2 + $0x58] sm:$0xf] }
 0x133   : > { %v8409_v1 = vsel %vm7683_vm12, %v6768_v14, %v5639_v50  ;;  %v5641_v18 = vrot.slane %v5639_v50, 4  ;;  %7164 = vmatmul.mubr.msk.bf16.gmra.mxu1 %vm921_vm3, %v6678_v12  ;;  %v6784_v30 = vcombine.low %v8394_v2, %v8405_v13  ;;  %v4878_v63 = vshll.u32 %v4742_v59, 16  ;;  %v4747_v59 = vld [vmem:[#allocation2 + $0x5c] sm:$0x1]  ;;  %v1874_v50 = vld [vmem:[#allocation3 + $0x50] sm:$0xff] }
 0x134   : > { %1933 = vst.msk [vmem:[#allocation3 + $0x28] sm:$0xff] %vm921_vm3, %v1901_v57  ;;  %v4877_v35 = vrot.slane %v4875_v10, 4  ;;  %v4884_v17 = vshll.u32 %v4743_v40, 16  ;;  %7167 = vmatprep.mubr.msk.bf16.mxu1 %vm921_vm3, %v6679_v37  ;;  %v4888_v53 = vshrl.u32 %v4743_v40, 16  ;;  %v4894_v12 = vshll.u32 %v4744_v19, 16 }
 0x135   : > { %v2439_v33 = vld [vmem:[#allocation3 + $0x30] sm:$0xff]  ;;  %v8424_v27 = vsel %vm7683_vm12, %v5641_v18, %v5642_v8  ;;  %v4899_v28 = vshrl.u32 %v4745_v48, 16  ;;  %v4880_v56 = vrot.slane %v4878_v63, 5  ;;  %v4902_v14 = vshll.u32 %v4745_v48, 16 }
 0x136   : > { %v2471_v32 = vadd.f32 %v8363_v42, %v2439_v33  ;;  %v6785_v54 = vcombine.low %v8409_v1, %v8424_v27  ;;  %v4886_v41 = vrot.slane %v4884_v17, 5  ;;  %v4890_v37 = vrot.slane %v4888_v53, 4  ;;  %v5532_v40 = vld [vmem:[#allocation2 + $0x48] sm:$0xe]  ;;  %v5533_v48 = vld [vmem:[#allocation2 + $0x4c] sm:$0xf] }
 0x137   : > { %v8429_v0 = vpop.f32.mrf.mxu0  ;;  %7194 = vmatmul.mubr.msk.bf16.gmra.mxu0 %vm921_vm3, %v7339_v4  ;;  %v2437_v9 = vld [vmem:[#allocation3 + $0x20] sm:$0xff]  ;;  %v4896_v26 = vrot.slane %v4894_v12, 5  ;;  %v4901_v43 = vrot.slane %v4899_v28, 4  ;;  %v4881_v5 = vor.u32 %v4880_v56, %v4877_v35  ;;  %v4908_v22 = vshll.u32 %v4746_v23, 16  ;;  %v5534_v33 = vld [vmem:[#allocation2 + $0x50] sm:$0x1] }
 0x138   : > { %7197 = vmatprep.mubr.msk.bf16.mxu0 %vm921_vm3, %v7340_v44  ;;  %2503 = vst.msk [vmem:[#allocation3 + $0x30] sm:$0xff] %vm921_vm3, %v2471_v32  ;;  %v2469_v42 = vadd.f32 %v2437_v9, %v8366_v58  ;;  %v7017_v47 = vpop.f32.mrf.mxu1  ;;  %v4912_v24 = vshrl.u32 %v4746_v23, 16  ;;  %v4891_v8 = vor.u32 %v4890_v37, %v4886_v41  ;;  %v4904_v10 = vrot.slane %v4902_v14, 5  ;;  %v1872_v17 = vld [vmem:[#allocation3 + $0x40] sm:$0xff]  ;;  %v5549_v13 = vld [vmem:[#allocation2 + $0x8c] sm:$0x1] }
 0x139   : > { %v8435_v45 = vpop.f32.mrf.mxu0  ;;  %v1906_v57 = vadd.f32 %v7017_v47, %v1874_v50  ;;  %v2440_v19 = vld [vmem:[#allocation3 + $0x38] sm:$0xff]  ;;  %v4918_v4 = vshll.u32 %v4747_v59, 16  ;;  %v4882_v18 = vrot.slane %v4881_v5, 4  ;;  %v4910_v58 = vrot.slane %v4908_v22, 5  ;;  %v7341_v53 = vld [vmem:[#allocation2 + $0x9c] sm:$0xff]  }
 0x13a   : > { %2501 = vst.msk [vmem:[#allocation3 + $0x20] sm:$0xff] %vm921_vm3, %v2469_v42  ;;  %v2472_v44 = vadd.f32 %v8380_v51, %v2440_v19  ;;  %v4914_v35 = vrot.slane %v4912_v24, 4  ;;  %v1769_v63 = vpop.f32.mrf.mxu1  ;;  %v4892_v12 = vrot.slane %v4891_v8, 4  ;;  %v4905_v23 = vor.u32 %v4904_v10, %v4901_v43  ;;  %v5535_v59 = vld [vmem:[#allocation2 + $0x54] sm:$0xe]  ;;  %v7342_v51 = vld [vmem:[#allocation2 + $0xa8] sm:$0xff]  }
 0x13b   : > { %1938 = vst.msk [vmem:[#allocation3 + $0x50] sm:$0xff] %vm921_vm3, %v1906_v57  ;;  %v4920_v28 = vrot.slane %v4918_v4, 5  ;;  %v1904_v32 = vadd.f32 %v1872_v17, %v1769_v63  ;;  %v2438_v56 = vld [vmem:[#allocation3 + $0x28] sm:$0xff]  ;;  %v8440_v9 = vpop.f32.mrf.mxu0  ;;  %7168 = vmatmul.mubr.msk.bf16.gmra.mxu1 %vm921_vm3, %v6680_v3  ;;  %v4887_v37 = vsel %vm7666_vm11, %v4882_v18, %v4886_v41  ;;  %v6769_v42 = vrot.slane %v5532_v40, 9  ;;  %v5536_v47 = vld [vmem:[#allocation2 + $0x58] sm:$0xf] }
 0x13c   : > { %2504 = vst.msk [vmem:[#allocation3 + $0x38] sm:$0xff] %vm921_vm3, %v2472_v44  ;;  %v4915_v14 = vor.u32 %v4914_v35, %v4910_v58  ;;  %v2470_v43 = vadd.f32 %v2438_v56, %v8399_v7  ;;  %v7018_v5 = vpop.f32.mrf.mxu1  ;;  %v5537_v50 = vld [vmem:[#allocation2 + $0x5c] sm:$0x1]  ;;  %7171 = vmatprep.mubr.msk.bf16.mxu1 %vm921_vm3, %v6681_v31  ;;  %v4897_v46 = vsel %vm7666_vm11, %v4892_v12, %v4896_v26  ;;  %v4906_v62 = vrot.slane %v4905_v23, 4  ;;  %v1875_v22 = vld [vmem:[#allocation3 + $0x58] sm:$0xff]  ;;  %v1873_v10 = vld [vmem:[#allocation3 + $0x48] sm:$0xff] }
 0x13d   : > { %1936 = vst.msk [vmem:[#allocation3 + $0x40] sm:$0xff] %vm921_vm3, %v1904_v32  ;;  %v5646_v3 = vrot.slane %v5533_v48, 5  ;;  %v5649_v41 = vrot.slane %v5534_v33, 5  ;;  %v4748_v24 = vld [vmem:[#allocation2 + $0x60] sm:$0xf]  ;;  %v8457_v7 = vcombine.low %v4887_v37, %v4897_v46  ;;  %v1907_v8 = vadd.f32 %v7018_v5, %v1875_v22  ;;  %v8467_v48 = vpop.f32.mrf.mxu0  ;;  %v7343_v32 = vld [vmem:[#allocation2 + $0xb4] sm:$0xff]  }
 0x13e   : > { %v4916_v40 = vrot.slane %v4915_v14, 4  ;;  %2502 = vst.msk [vmem:[#allocation3 + $0x28] sm:$0xff] %vm921_vm3, %v2470_v43  ;;  %v6770_v57 = vrot.slane %v5535_v59, 9  ;;  %v1772_v15 = vpop.f32.mrf.mxu1  ;;  %v4911_v6 = vsel %vm7666_vm11, %v4906_v62, %v4910_v58  ;;  %v5653_v19 = vrot.slane %v5536_v47, 5  ;;  %v4749_v4 = vld [vmem:[#allocation2 + $0x64] sm:$0xf] }
 0x13f   : > { %7198 = vmatmul.mubr.msk.bf16.gmra.mxu0 %vm921_vm3, %v7341_v53  ;;  %v8465_v31 = vsel %vm7683_vm12, %v6769_v42, %v5646_v3  ;;  %v5648_v26 = vrot.slane %v5646_v3, 4  ;;  %1939 = vst.msk [vmem:[#allocation3 + $0x58] sm:$0xff] %vm921_vm3, %v1907_v8  ;;  %v5656_v44 = vrot.slane %v5537_v50, 5  ;;  %v1905_v35 = vadd.f32 %v1873_v10, %v1772_v15  ;;  %v4750_v58 = vld [vmem:[#allocation2 + $0x68] sm:$0x1]  ;;  %v7344_v62 = vld [vmem:[#allocation2 + $0xc0] sm:$0xff]  }
 0x140   : > { %7201 = vmatprep.mubr.msk.bf16.mxu0 %vm921_vm3, %v7342_v51  ;;  %v4921_v18 = vsel %vm7666_vm11, %v4916_v40, %v4920_v28  ;;  %v4923_v63 = vshrl.u32 %v4748_v24, 16  ;;  %v8481_v53 = vsel %vm7683_vm12, %v6770_v57, %v5653_v19  ;;  %v5655_v12 = vrot.slane %v5653_v19, 4  ;;  %v4751_v23 = vld [vmem:[#allocation2 + $0x6c] sm:$0xf]  ;;  %v4752_v47 = vld [vmem:[#allocation2 + $0x70] sm:$0xf] }
 0x141   : > { %v8473_v17 = vcombine.low %v4911_v6, %v4921_v18  ;;  %v8477_v33 = vsel %vm7683_vm12, %v5648_v26, %v5649_v41  ;;  %1937 = vst.msk [vmem:[#allocation3 + $0x48] sm:$0xff] %vm921_vm3, %v1905_v35  ;;  %v4926_v51 = vshll.u32 %v4748_v24, 16  ;;  %v4932_v37 = vshll.u32 %v4749_v4, 16  ;;  %v4753_v50 = vld [vmem:[#allocation2 + $0x74] sm:$0x1]  ;;  %v1878_v40 = vld [vmem:[#allocation3 + $0x70] sm:$0xff] }
 0x142   : > { %v6786_v28 = vcombine.low %v8465_v31, %v8477_v33  ;;  %v2443_v56 = vld [vmem:[#allocation3 + $0x50] sm:$0xff]  ;;  %v4925_v59 = vrot.slane %v4923_v63, 4  ;;  %v8489_v43 = vsel %vm7683_vm12, %v5655_v12, %v5656_v44  ;;  %v4936_v42 = vshrl.u32 %v4749_v4, 16  ;;  %v5538_v15 = vld [vmem:[#allocation2 + $0x60] sm:$0xe]  ;;  %v1876_v18 = vld [vmem:[#allocation3 + $0x60] sm:$0xff] }
 0x143   : > { %v2475_v14 = vadd.f32 %v8429_v0, %v2443_v56  ;;  %v4942_v5 = vshll.u32 %v4750_v58, 16  ;;  %v8491_v46 = vpop.f32.mrf.mxu0  ;;  %7172 = vmatmul.mubr.msk.bf16.gmra.mxu1 %vm921_vm3, %v6682_v29  ;;  %v6787_v3 = vcombine.low %v8481_v53, %v8489_v43  ;;  %v4928_v41 = vrot.slane %v4926_v51, 5  ;;  %v5539_v44 = vld [vmem:[#allocation2 + $0x64] sm:$0xf]  ;;  %v5540_v56 = vld [vmem:[#allocation2 + $0x68] sm:$0x1] }
 0x144   : > { %v2441_v0 = vld [vmem:[#allocation3 + $0x40] sm:$0xff]  ;;  %v4934_v22 = vrot.slane %v4932_v37, 5  ;;  %v7021_v24 = vpop.f32.mrf.mxu1  ;;  %v4947_v8 = vshrl.u32 %v4751_v23, 16  ;;  %7211 = vmatprep.mubr.msk.bf16.mxu1 %vm921_vm3, %v8322_v20  ;;  %v4938_v16 = vrot.slane %v4936_v42, 4  ;;  %v4950_v19 = vshll.u32 %v4751_v23, 16 }
 0x145   : > { %2507 = vst.msk [vmem:[#allocation3 + $0x50] sm:$0xff] %vm921_vm3, %v2475_v14  ;;  %v2473_v57 = vadd.f32 %v2441_v0, %v8435_v45  ;;  %v4944_v49 = vrot.slane %v4942_v5, 5  ;;  %v1910_v29 = vadd.f32 %v7021_v24, %v1878_v40  ;;  %v4929_v6 = vor.u32 %v4928_v41, %v4925_v59  ;;  %v8503_v35 = vpop.f32.mrf.mxu0  ;;  %v5541_v42 = vld [vmem:[#allocation2 + $0x6c] sm:$0xe]  ;;  %v1879_v40 = vld [vmem:[#allocation3 + $0x78] sm:$0xff] }
 0x146   : > { %v4949_v26 = vrot.slane %v4947_v8, 4  ;;  %v4956_v10 = vshll.u32 %v4752_v47, 16  ;;  %v1785_v4 = vpop.f32.mrf.mxu1  ;;  %v4939_v20 = vor.u32 %v4938_v16, %v4934_v22  ;;  %v2444_v45 = vld [vmem:[#allocation3 + $0x58] sm:$0xff]  ;;  %v4960_v58 = vshrl.u32 %v4752_v47, 16 }
 0x147   : > { %7202 = vmatmul.mubr.msk.bf16.gmra.mxu0 %vm921_vm3, %v7343_v32  ;;  %2505 = vst.msk [vmem:[#allocation3 + $0x40] sm:$0xff] %vm921_vm3, %v2473_v57  ;;  %1942 = vst.msk [vmem:[#allocation3 + $0x70] sm:$0xff] %vm921_vm3, %v1910_v29  ;;  %v4966_v63 = vshll.u32 %v4753_v50, 16  ;;  %v1908_v12 = vadd.f32 %v1876_v18, %v1785_v4  ;;  %v4930_v23 = vrot.slane %v4929_v6, 4  ;;  %v2476_v59 = vadd.f32 %v8440_v9, %v2444_v45  ;;  %v5542_v8 = vld [vmem:[#allocation2 + $0x70] sm:$0xf]  ;;  %v8515_v16 = vpop.f32.mrf.mxu0 }
 0x148   : > { %7205 = vmatprep.mubr.msk.bf16.mxu0 %vm921_vm3, %v7344_v62  ;;  %v4952_v51 = vrot.slane %v4950_v19, 5  ;;  %v4958_v37 = vrot.slane %v4956_v10, 5  ;;  %v7022_v14 = vpop.f32.mrf.mxu1  ;;  %v4940_v32 = vrot.slane %v4939_v20, 4  ;;  %v4962_v5 = vrot.slane %v4960_v58, 4  ;;  %v2442_v41 = vld [vmem:[#allocation3 + $0x48] sm:$0xff]  ;;  %v7345_v29 = vld [vmem:[#allocation2 + $0xcc] sm:$0xff]  }
 0x149   : > { %v4968_v0 = vrot.slane %v4966_v63, 5  ;;  %1940 = vst.msk [vmem:[#allocation3 + $0x60] sm:$0xff] %vm921_vm3, %v1908_v12  ;;  %v6771_v24 = vrot.slane %v5538_v15, 9  ;;  %v4935_v47 = vsel %vm7666_vm11, %v4930_v23, %v4934_v22  ;;  %2508 = vst.msk [vmem:[#allocation3 + $0x58] sm:$0xff] %vm921_vm3, %v2476_v59  ;;  %v2474_v62 = vadd.f32 %v2442_v41, %v8467_v48  ;;  %v5543_v57 = vld [vmem:[#allocation2 + $0x74] sm:$0x1] }
 0x14a   : > { %v4953_v50 = vor.u32 %v4952_v51, %v4949_v26  ;;  %v5660_v9 = vrot.slane %v5539_v44, 5  ;;  %v4945_v6 = vsel %vm7666_vm11, %v4940_v32, %v4944_v49  ;;  %v4963_v19 = vor.u32 %v4962_v5, %v4958_v37  ;;  %v1788_v4 = vpop.f32.mrf.mxu1  ;;  %v4754_v22 = vld [vmem:[#allocation2 + $0x78] sm:$0xf]  ;;  %v4755_v59 = vld [vmem:[#allocation2 + $0x7c] sm:$0xf] }
 0x14b   : > { %v5663_v15 = vrot.slane %v5540_v56, 5  ;;  %v1911_v10 = vadd.f32 %v7022_v14, %v1879_v40  ;;  %7212 = vmatmul.mubr.msk.bf16.vlgmr.msra.gmra.mxu1 %vm921_vm3, %v8351_v55  ;;  %v8521_v26 = vcombine.low %v4935_v47, %v4945_v6  ;;  %2506 = vst.msk [vmem:[#allocation3 + $0x48] sm:$0xff] %vm921_vm3, %v2474_v62  ;;  %v6772_v20 = vrot.slane %v5541_v42, 9  ;;  %v1877_v55 = vld [vmem:[#allocation3 + $0x68] sm:$0xff] }
 0x14c   : > { %v4954_v48 = vrot.slane %v4953_v50, 4  ;;  %v8526_v18 = vsel %vm7683_vm12, %v6771_v24, %v5660_v9  ;;  %v5662_v44 = vrot.slane %v5660_v9, 4  ;;  %7215 = vmatprep.mubr.msk.bf16.mxu1 %vm921_vm3, %v8386_v39  ;;  %v4964_v49 = vrot.slane %v4963_v19, 4  ;;  %v4756_v51 = vld [vmem:[#allocation2 + $0x80] sm:$0x1]  ;;  %v8537_v39 = vpop.f32.mrf.mxu0 }
 0x14d   : > { %1943 = vst.msk [vmem:[#allocation3 + $0x78] sm:$0xff] %vm921_vm3, %v1911_v10  ;;  %v5667_v45 = vrot.slane %v5542_v8, 5  ;;  %v5670_v58 = vrot.slane %v5543_v57, 5  ;;  %v1909_v23 = vadd.f32 %v1877_v55, %v1788_v4  ;;  %v4971_v14 = vshrl.u32 %v4754_v22, 16  ;;  %v4757_v41 = vld [vmem:[#allocation2 + $0x84] sm:$0xf] }
 0x14e   : > { %v4959_v63 = vsel %vm7666_vm11, %v4954_v48, %v4958_v37  ;;  %v8535_v12 = vsel %vm7683_vm12, %v5662_v44, %v5663_v15  ;;  %v2447_v56 = vld [vmem:[#allocation3 + $0x70] sm:$0xff]  ;;  %v4969_v42 = vsel %vm7666_vm11, %v4964_v49, %v4968_v0  ;;  %v4974_v62 = vshll.u32 %v4754_v22, 16  ;;  %v5544_v55 = vld [vmem:[#allocation2 + $0x78] sm:$0xe] }
 0x14f   : > { %7206 = vmatmul.mubr.msk.bf16.gmra.mxu0 %vm921_vm3, %v7345_v29  ;;  %v6788_v32 = vcombine.low %v8526_v18, %v8535_v12  ;;  %v2479_v37 = vadd.f32 %v8491_v46, %v2447_v56  ;;  %v8547_v5 = vsel %vm7683_vm12, %v6772_v20, %v5667_v45  ;;  %v8553_v24 = vcombine.low %v4959_v63, %v4969_v42  ;;  %v4758_v57 = vld [vmem:[#allocation2 + $0x88] sm:$0xf]  ;;  %v4759_v22 = vld [vmem:[#allocation2 + $0x8c] sm:$0x1] }
 0x150   : > { %7245 = vmatprep.mubr.msk.bf16.mxu0 %vm921_vm3, %v6782_v52  ;;  %v5669_v47 = vrot.slane %v5667_v45, 4  ;;  %1941 = vst.msk [vmem:[#allocation3 + $0x68] sm:$0xff] %vm921_vm3, %v1909_v23  ;;  %v2445_v0 = vld [vmem:[#allocation3 + $0x60] sm:$0xff]  ;;  %v4973_v50 = vrot.slane %v4971_v14, 4  ;;  %v4980_v9 = vshll.u32 %v4755_v59, 16  ;;  %v4984_v40 = vshrl.u32 %v4755_v59, 16 }
 0x151   : > { %2511 = vst.msk [vmem:[#allocation3 + $0x70] sm:$0xff] %vm921_vm3, %v2479_v37  ;;  %v2477_v46 = vadd.f32 %v2445_v0, %v8503_v35  ;;  %v4990_v8 = vshll.u32 %v4756_v51, 16  ;;  %v4976_v38 = vrot.slane %v4974_v62, 5  ;;  %v4995_v52 = vshrl.u32 %v4757_v41, 16  ;;  %v1882_v4 = vld [vmem:[#allocation3 + $0x90] sm:$0xff]  ;;  %v1880_v0 = vld [vmem:[#allocation3 + $0x80] sm:$0xff] }
 0x152   : > { %v8560_v21 = vsel %vm7683_vm12, %v5669_v47, %v5670_v58  ;;  %v4998_v29 = vshll.u32 %v4757_v41, 16  ;;  %v8562_v6 = vpop.f32.mrf.mxu0  ;;  %v4982_v15 = vrot.slane %v4980_v9, 5  ;;  %v4986_v35 = vrot.slane %v4984_v40, 4  ;;  %v5545_v14 = vld [vmem:[#allocation2 + $0x7c] sm:$0xf] }
 0x153   : > { %v6789_v19 = vcombine.low %v8547_v5, %v8560_v21  ;;  %2509 = vst.msk [vmem:[#allocation3 + $0x60] sm:$0xff] %vm921_vm3, %v2477_v46  ;;  %v4992_v10 = vrot.slane %v4990_v8, 5  ;;  %7216 = vmatmul.mubr.msk.bf16.gmra.mxu1 %vm921_vm3, %v8401_v25  ;;  %v4977_v48 = vor.u32 %v4976_v38, %v4973_v50  ;;  %v7025_v44 = vpop.f32.mrf.mxu1  ;;  %v4997_v20 = vrot.slane %v4995_v52, 4  ;;  %v5546_v50 = vld [vmem:[#allocation2 + $0x80] sm:$0x1]  ;;  %v1883_v52 = vld [vmem:[#allocation3 + $0x98] sm:$0xff] }
 0x154   : > { %v2448_v49 = vld [vmem:[#allocation3 + $0x78] sm:$0xff]  ;;  %v5000_v45 = vrot.slane %v4998_v29, 5  ;;  %v5004_v58 = vshll.u32 %v4758_v57, 16  ;;  %v8569_v63 = vpop.f32.mrf.mxu0  ;;  %7219 = vmatprep.mubr.msk.bf16.mxu1 %vm921_vm3, %v8457_v7  ;;  %v4987_v56 = vor.u32 %v4986_v35, %v4982_v15  ;;  %v1914_v23 = vadd.f32 %v7025_v44, %v1882_v4  ;;  %v5547_v8 = vld [vmem:[#allocation2 + $0x84] sm:$0xe] }
 0x155   : > { %v2480_v59 = vadd.f32 %v8515_v16, %v2448_v49  ;;  %v5008_v51 = vshrl.u32 %v4758_v57, 16  ;;  %v4978_v42 = vrot.slane %v4977_v48, 4  ;;  %v5014_v41 = vshll.u32 %v4759_v22, 16  ;;  %v1801_v47 = vpop.f32.mrf.mxu1  ;;  %v5548_v29 = vld [vmem:[#allocation2 + $0x88] sm:$0xf] }
 0x156   : > { %v5001_v25 = vor.u32 %v5000_v45, %v4997_v20  ;;  %v5006_v37 = vrot.slane %v5004_v58, 5  ;;  %v8574_v62 = vpop.f32.mrf.mxu0  ;;  %v4988_v7 = vrot.slane %v4987_v56, 4  ;;  %1946 = vst.msk [vmem:[#allocation3 + $0x90] sm:$0xff] %vm921_vm3, %v1914_v23  ;;  %v1912_v46 = vadd.f32 %v1880_v0, %v1801_v47  ;;  %v1881_v56 = vld [vmem:[#allocation3 + $0x88] sm:$0xff]  ;;  %v4762_v47 = vld [vmem:[#allocation2 + $0x98] sm:$0x1] }
 0x157   : > { %7246 = vmatmul.mubr.msk.bf16.vlgmr.msra.gmra.mxu0 %vm921_vm3, %v6783_v36  ;;  %2512 = vst.msk [vmem:[#allocation3 + $0x78] sm:$0xff] %vm921_vm3, %v2480_v59  ;;  %v5010_v16 = vrot.slane %v5008_v51, 4  ;;  %v2446_v9 = vld [vmem:[#allocation3 + $0x68] sm:$0xff]  ;;  %v6773_v40 = vrot.slane %v5544_v55, 9  ;;  %v4983_v11 = vsel %vm7666_vm11, %v4978_v42, %v4982_v15  ;;  %v5016_v36 = vrot.slane %v5014_v41, 5  ;;  %v7026_v38 = vpop.f32.mrf.mxu1 }
 0x158   : > { %7249 = vmatprep.mubr.msk.bf16.mxu0 %vm921_vm3, %v6784_v30  ;;  %v5002_v61 = vrot.slane %v5001_v25, 4  ;;  %v2478_v57 = vadd.f32 %v2446_v9, %v8537_v39  ;;  %v4993_v35 = vsel %vm7666_vm11, %v4988_v7, %v4992_v10  ;;  %1944 = vst.msk [vmem:[#allocation3 + $0x80] sm:$0xff] %vm921_vm3, %v1912_v46  ;;  %v5674_v22 = vrot.slane %v5545_v14, 5  ;;  %v4760_v30 = vld [vmem:[#allocation2 + $0x90] sm:$0xf]  ;;  %v8597_v20 = vpop.f32.mrf.mxu0 }
 0x159   : > { %v5011_v4 = vor.u32 %v5010_v16, %v5006_v37  ;;  %v5677_v2 = vrot.slane %v5546_v50, 5  ;;  %v8592_v48 = vcombine.low %v4983_v11, %v4993_v35  ;;  %v1915_v39 = vadd.f32 %v7026_v38, %v1883_v52  ;;  %v1804_v49 = vpop.f32.mrf.mxu1  ;;  %v4761_v51 = vld [vmem:[#allocation2 + $0x94] sm:$0xf]  ;;  %v4763_v0 = vld [vmem:[#allocation2 + $0x9c] sm:$0xf] }
 0x15a   : > { %v5007_v15 = vsel %vm7666_vm11, %v5002_v61, %v5006_v37  ;;  %2510 = vst.msk [vmem:[#allocation3 + $0x68] sm:$0xff] %vm921_vm3, %v2478_v57  ;;  %v6774_v44 = vrot.slane %v5547_v8, 9  ;;  %v8601_v45 = vsel %vm7683_vm12, %v6773_v40, %v5674_v22  ;;  %v5676_v58 = vrot.slane %v5674_v22, 4  ;;  %v4765_v52 = vld [vmem:[#allocation2 + $0xa4] sm:$0x1] }
 0x15b   : > { %v5012_v10 = vrot.slane %v5011_v4, 4  ;;  %v5681_v55 = vrot.slane %v5548_v29, 5  ;;  %7220 = vmatmul.mubr.msk.bf16.gmra.mxu1 %vm921_vm3, %v8473_v17  ;;  %1947 = vst.msk [vmem:[#allocation3 + $0x98] sm:$0xff] %vm921_vm3, %v1915_v39  ;;  %v5684_v23 = vrot.slane %v5549_v13, 5  ;;  %v1913_v59 = vadd.f32 %v1881_v56, %v1804_v49 }
 0x15c   : > { %v5019_v14 = vshrl.u32 %v4760_v30, 16  ;;  %v5022_v42 = vshll.u32 %v4760_v30, 16  ;;  %7223 = vmatprep.mubr.msk.bf16.mxu1 %vm921_vm3, %v8521_v26  ;;  %v8612_v37 = vsel %vm7683_vm12, %v5676_v58, %v5677_v2  ;;  %v5028_v11 = vshll.u32 %v4761_v51, 16 }
 0x15d   : > { %v5017_v25 = vsel %vm7666_vm11, %v5012_v10, %v5016_v36  ;;  %v8616_v17 = vsel %vm7683_vm12, %v6774_v44, %v5681_v55  ;;  %v5683_v41 = vrot.slane %v5681_v55, 4  ;;  %v6790_v7 = vcombine.low %v8601_v45, %v8612_v37  ;;  %v2451_v26 = vld [vmem:[#allocation3 + $0x90] sm:$0xff]  ;;  %1945 = vst.msk [vmem:[#allocation3 + $0x88] sm:$0xff] %vm921_vm3, %v1913_v59  ;;  %v4764_v36 = vld [vmem:[#allocation2 + $0xa0] sm:$0xf] }
 0x15e   : > { %v8618_v50 = vcombine.low %v5007_v15, %v5017_v25  ;;  %v5021_v16 = vrot.slane %v5019_v14, 4  ;;  %v5024_v46 = vrot.slane %v5022_v42, 5  ;;  %v2483_v40 = vadd.f32 %v8562_v6, %v2451_v26  ;;  %v1886_v6 = vld [vmem:[#allocation3 + $0xb0] sm:$0xff]  ;;  %v5550_v44 = vld [vmem:[#allocation2 + $0x90] sm:$0xe] }
 0x15f   : > { %v8623_v9 = vpop.f32.mrf.mxu0  ;;  %7250 = vmatmul.mubr.msk.bf16.gmra.mxu0 %vm921_vm3, %v6785_v54  ;;  %v8632_v8 = vsel %vm7683_vm12, %v5683_v41, %v5684_v23  ;;  %v5032_v61 = vshrl.u32 %v4761_v51, 16  ;;  %v2449_v1 = vld [vmem:[#allocation3 + $0x80] sm:$0xff]  ;;  %v5038_v54 = vshll.u32 %v4762_v47, 16  ;;  %v5043_v29 = vshrl.u32 %v4763_v0, 16 }
 0x160   : > { %7253 = vmatprep.mubr.msk.bf16.mxu0 %vm921_vm3, %v6786_v28  ;;  %v6791_v57 = vcombine.low %v8616_v17, %v8632_v8  ;;  %v5025_v27 = vor.u32 %v5024_v46, %v5021_v16  ;;  %v7029_v38 = vpop.f32.mrf.mxu1  ;;  %2515 = vst.msk [vmem:[#allocation3 + $0x90] sm:$0xff] %vm921_vm3, %v2483_v40  ;;  %v2481_v4 = vadd.f32 %v2449_v1, %v8569_v63  ;;  %v5030_v22 = vrot.slane %v5028_v11, 5  ;;  %v1884_v28 = vld [vmem:[#allocation3 + $0xa0] sm:$0xff]  ;;  %v5551_v63 = vld [vmem:[#allocation2 + $0x94] sm:$0xf] }
 0x161   : > { %v8640_v35 = vpop.f32.mrf.mxu0  ;;  %v5034_v31 = vrot.slane %v5032_v61, 4  ;;  %v1918_v33 = vadd.f32 %v7029_v38, %v1886_v6  ;;  %v5040_v13 = vrot.slane %v5038_v54, 5  ;;  %v5045_v30 = vrot.slane %v5043_v29, 4  ;;  %v5552_v25 = vld [vmem:[#allocation2 + $0x98] sm:$0x1]  ;;  %v1887_v11 = vld [vmem:[#allocation3 + $0xb8] sm:$0xff] }
 0x162   : > { %v5026_v2 = vrot.slane %v5025_v27, 4  ;;  %v5046_v15 = vshll.u32 %v4763_v0, 16  ;;  %v1817_v39 = vpop.f32.mrf.mxu1  ;;  %2513 = vst.msk [vmem:[#allocation3 + $0x80] sm:$0xff] %vm921_vm3, %v2481_v4  ;;  %v2452_v10 = vld [vmem:[#allocation3 + $0x98] sm:$0xff]  ;;  %v5052_v58 = vshll.u32 %v4764_v36, 16  ;;  %v5056_v55 = vshrl.u32 %v4764_v36, 16 }
 0x163   : > { %v5035_v49 = vor.u32 %v5034_v31, %v5030_v22  ;;  %1950 = vst.msk [vmem:[#allocation3 + $0xb0] sm:$0xff] %vm921_vm3, %v1918_v33  ;;  %v5062_v56 = vshll.u32 %v4765_v52, 16  ;;  %v8646_v23 = vpop.f32.mrf.mxu0  ;;  %7224 = vmatmul.mubr.msk.bf16.gmra.mxu1 %vm921_vm3, %v8553_v24  ;;  %v2484_v51 = vadd.f32 %v8574_v62, %v2452_v10  ;;  %v1916_v42 = vadd.f32 %v1884_v28, %v1817_v39  ;;  %v5553_v47 = vld [vmem:[#allocation2 + $0x9c] sm:$0xe]  ;;  %v5554_v1 = vld [vmem:[#allocation2 + $0xa0] sm:$0xf] }
 0x164   : > { %v5031_v59 = vsel %vm7666_vm11, %v5026_v2, %v5030_v22  ;;  %v5048_v14 = vrot.slane %v5046_v15, 5  ;;  %v7030_v41 = vpop.f32.mrf.mxu1  ;;  %7227 = vmatprep.mubr.msk.bf16.mxu1 %vm921_vm3, %v8592_v48  ;;  %v5054_v26 = vrot.slane %v5052_v58, 5  ;;  %v5058_v16 = vrot.slane %v5056_v55, 4  ;;  %v2450_v40 = vld [vmem:[#allocation3 + $0x88] sm:$0xff]  ;;  %v4766_v29 = vld [vmem:[#allocation2 + $0xa8] sm:$0xf] }
 0x165   : > { %v5036_v0 = vrot.slane %v5035_v49, 4  ;;  %v5064_v46 = vrot.slane %v5062_v56, 5  ;;  %2516 = vst.msk [vmem:[#allocation3 + $0x98] sm:$0xff] %vm921_vm3, %v2484_v51  ;;  %1948 = vst.msk [vmem:[#allocation3 + $0xa0] sm:$0xff] %vm921_vm3, %v1916_v42  ;;  %v2482_v62 = vadd.f32 %v2450_v40, %v8597_v20  ;;  %v6775_v61 = vrot.slane %v5550_v44, 9  ;;  %v8664_v4 = vpop.f32.mrf.mxu0 }
 0x166   : > { %v5049_v24 = vor.u32 %v5048_v14, %v5045_v30  ;;  %v5688_v36 = vrot.slane %v5551_v63, 5  ;;  %v5555_v27 = vld [vmem:[#allocation2 + $0xa4] sm:$0x1]  ;;  %v5059_v54 = vor.u32 %v5058_v16, %v5054_v26  ;;  %v5691_v38 = vrot.slane %v5552_v25, 5  ;;  %v1820_v52 = vpop.f32.mrf.mxu1  ;;  %v4768_v15 = vld [vmem:[#allocation2 + $0xb0] sm:$0x1] }
 0x167   : > { %7254 = vmatmul.mubr.msk.bf16.gmra.mxu0 %vm921_vm3, %v6787_v3  ;;  %v5041_v48 = vsel %vm7666_vm11, %v5036_v0, %v5040_v13  ;;  %v1919_v6 = vadd.f32 %v7030_v41, %v1887_v11  ;;  %2514 = vst.msk [vmem:[#allocation3 + $0x88] sm:$0xff] %vm921_vm3, %v2482_v62  ;;  %v1885_v3 = vld [vmem:[#allocation3 + $0xa8] sm:$0xff]  ;;  %v6776_v33 = vrot.slane %v5553_v47, 9  ;;  %v5695_v28 = vrot.slane %v5554_v1, 5  ;;  %v4767_v13 = vld [vmem:[#allocation2 + $0xac] sm:$0xf] }
 0x168   : > { %7257 = vmatprep.mubr.msk.bf16.mxu0 %vm921_vm3, %v6788_v32  ;;  %v6743_v20 = vcombine.low %v5031_v59, %v5041_v48  ;;  %v5050_v22 = vrot.slane %v5049_v24, 4  ;;  %v8673_v53 = vsel %vm7683_vm12, %v6775_v61, %v5688_v36  ;;  %v5690_v43 = vrot.slane %v5688_v36, 4  ;;  %v4769_v44 = vld [vmem:[#allocation2 + $0xb4] sm:$0xf]  ;;  %v4770_v42 = vld [vmem:[#allocation2 + $0xb8] sm:$0xf] }
 0x169   : > { %v5060_v31 = vrot.slane %v5059_v54, 4  ;;  %1951 = vst.msk [vmem:[#allocation3 + $0xb8] sm:$0xff] %vm921_vm3, %v1919_v6  ;;  %v5698_v2 = vrot.slane %v5555_v27, 5  ;;  %v1917_v30 = vadd.f32 %v1885_v3, %v1820_v52  ;;  %v5067_v39 = vshrl.u32 %v4766_v29, 16  ;;  %v4771_v62 = vld [vmem:[#allocation2 + $0xbc] sm:$0x1] }
 0x16a   : > { %v5055_v18 = vsel %vm7666_vm11, %v5050_v22, %v5054_v26  ;;  %v8680_v12 = vsel %vm7683_vm12, %v5690_v43, %v5691_v38  ;;  %v2455_v32 = vld [vmem:[#allocation3 + $0xb0] sm:$0xff]  ;;  %v8689_v55 = vsel %vm7683_vm12, %v6776_v33, %v5695_v28  ;;  %v5697_v59 = vrot.slane %v5695_v28, 4  ;;  %v1888_v54 = vld [vmem:[#allocation3 + $0xc0] sm:$0xff]  ;;  %v5558_v3 = vld [vmem:[#allocation2 + $0xb0] sm:$0x1] }
 0x16b   : > { %v5065_v49 = vsel %vm7666_vm11, %v5060_v31, %v5064_v46  ;;  %v6792_v10 = vcombine.low %v8673_v53, %v8680_v12  ;;  %v2487_v58 = vadd.f32 %v8623_v9, %v2455_v32  ;;  %v8691_v56 = vpop.f32.mrf.mxu0  ;;  %7228 = vmatmul.mubr.msk.bf16.gmra.mxu1 %vm921_vm3, %v8618_v50  ;;  %1949 = vst.msk [vmem:[#allocation3 + $0xa8] sm:$0xff] %vm921_vm3, %v1917_v30  ;;  %v5069_v51 = vrot.slane %v5067_v39, 4  ;;  %v1890_v26 = vld [vmem:[#allocation3 + $0xd0] sm:$0xff] }
 0x16c   : > { %v6744_v63 = vcombine.low %v5055_v18, %v5065_v49  ;;  %v5070_v14 = vshll.u32 %v4766_v29, 16  ;;  %7231 = vmatprep.mubr.msk.bf16.mxu1 %vm921_vm3, %v6743_v20  ;;  %v2453_v9 = vld [vmem:[#allocation3 + $0xa0] sm:$0xff]  ;;  %v5076_v25 = vshll.u32 %v4767_v13, 16  ;;  %v5080_v41 = vshrl.u32 %v4767_v13, 16  ;;  %v7033_v0 = vpop.f32.mrf.mxu1  ;;  %v5556_v6 = vld [vmem:[#allocation2 + $0xa8] sm:$0xe] }
 0x16d   : > { %2519 = vst.msk [vmem:[#allocation3 + $0xb0] sm:$0xff] %vm921_vm3, %v2487_v58  ;;  %v5086_v47 = vshll.u32 %v4768_v15, 16  ;;  %v5091_v16 = vshrl.u32 %v4769_v44, 16  ;;  %v8698_v46 = vpop.f32.mrf.mxu0  ;;  %v8702_v50 = vsel %vm7683_vm12, %v5697_v59, %v5698_v2  ;;  %v2485_v40 = vadd.f32 %v2453_v9, %v8640_v35  ;;  %v5557_v43 = vld [vmem:[#allocation2 + $0xac] sm:$0xf]  ;;  %v1891_v58 = vld [vmem:[#allocation3 + $0xd8] sm:$0xff] }
 0x16e   : > { %v5072_v11 = vrot.slane %v5070_v14, 5  ;;  %v1922_v24 = vadd.f32 %v7033_v0, %v1890_v26  ;;  %v6793_v61 = vcombine.low %v8689_v55, %v8702_v50  ;;  %v5078_v36 = vrot.slane %v5076_v25, 5  ;;  %v1833_v48 = vpop.f32.mrf.mxu1  ;;  %v5559_v2 = vld [vmem:[#allocation2 + $0xb4] sm:$0xe]  ;;  %v5560_v59 = vld [vmem:[#allocation2 + $0xb8] sm:$0xf] }
 0x16f   : > { %7258 = vmatmul.mubr.msk.bf16.gmra.mxu0 %vm921_vm3, %v6789_v19  ;;  %v5082_v1 = vrot.slane %v5080_v41, 4  ;;  %v5088_v27 = vrot.slane %v5086_v47, 5  ;;  %2517 = vst.msk [vmem:[#allocation3 + $0xa0] sm:$0xff] %vm921_vm3, %v2485_v40  ;;  %v5093_v21 = vrot.slane %v5091_v16, 4  ;;  %v5094_v19 = vshll.u32 %v4769_v44, 16  ;;  %v8718_v45 = vpop.f32.mrf.mxu0 }
 0x170   : > { %7261 = vmatprep.mubr.msk.bf16.mxu0 %vm921_vm3, %v6790_v7  ;;  %v5073_v35 = vor.u32 %v5072_v11, %v5069_v51  ;;  %1954 = vst.msk [vmem:[#allocation3 + $0xd0] sm:$0xff] %vm921_vm3, %v1922_v24  ;;  %v2456_v5 = vld [vmem:[#allocation3 + $0xb8] sm:$0xff]  ;;  %v5100_v38 = vshll.u32 %v4770_v42, 16  ;;  %v5104_v20 = vshrl.u32 %v4770_v42, 16  ;;  %v5110_v22 = vshll.u32 %v4771_v62, 16  ;;  %v7034_v28 = vpop.f32.mrf.mxu1 }
 0x171   : > { %v5083_v52 = vor.u32 %v5082_v1, %v5078_v36  ;;  %v2488_v29 = vadd.f32 %v8646_v23, %v2456_v5  ;;  %v5096_v7 = vrot.slane %v5094_v19, 5  ;;  %v1920_v33 = vadd.f32 %v1888_v54, %v1833_v48  ;;  %v5561_v51 = vld [vmem:[#allocation2 + $0xbc] sm:$0x1]  ;;  %v4772_v41 = vld [vmem:[#allocation2 + $0xc0] sm:$0xf] }
 0x172   : > { %v5074_v37 = vrot.slane %v5073_v35, 4  ;;  %v5102_v31 = vrot.slane %v5100_v38, 5  ;;  %v5106_v18 = vrot.slane %v5104_v20, 4  ;;  %v5112_v32 = vrot.slane %v5110_v22, 5  ;;  %v2454_v30 = vld [vmem:[#allocation3 + $0xa8] sm:$0xff]  ;;  %v1836_v16 = vpop.f32.mrf.mxu1 }
 0x173   : > { %v5084_v13 = vrot.slane %v5083_v52, 4  ;;  %2520 = vst.msk [vmem:[#allocation3 + $0xb8] sm:$0xff] %vm921_vm3, %v2488_v29  ;;  %v6777_v15 = vrot.slane %v5556_v6, 9  ;;  %7232 = vmatmul.mubr.msk.bf16.gmra.mxu1 %vm921_vm3, %v6744_v63  ;;  %v5097_v39 = vor.u32 %v5096_v7, %v5093_v21  ;;  %1952 = vst.msk [vmem:[#allocation3 + $0xc0] sm:$0xff] %vm921_vm3, %v1920_v33  ;;  %v2486_v44 = vadd.f32 %v2454_v30, %v8664_v4  ;;  %v8728_v63 = vpop.f32.mrf.mxu0  ;;  %v1889_v35 = vld [vmem:[#allocation3 + $0xc8] sm:$0xff]  ;;  %v1894_v52 = vld [vmem:[#allocation3 + $0xf0] sm:$0xff] }
 0x174   : > { %v5079_v23 = vsel %vm7666_vm11, %v5074_v37, %v5078_v36  ;;  %v5702_v49 = vrot.slane %v5557_v43, 5  ;;  %v5107_v42 = vor.u32 %v5106_v18, %v5102_v31  ;;  %v5705_v9 = vrot.slane %v5558_v3, 5  ;;  %v4775_v29 = vld [vmem:[#allocation2 + $0xcc] sm:$0xf]  ;;  %v4776_v7 = vld [vmem:[#allocation2 + $0xd0] sm:$0xf] }
 0x175   : > { %v5089_v14 = vsel %vm7666_vm11, %v5084_v13, %v5088_v27  ;;  %v1923_v25 = vadd.f32 %v7034_v28, %v1891_v58  ;;  %v5098_v0 = vrot.slane %v5097_v39, 4  ;;  %2518 = vst.msk [vmem:[#allocation3 + $0xa8] sm:$0xff] %vm921_vm3, %v2486_v44  ;;  %v6778_v24 = vrot.slane %v5559_v2, 9  ;;  %v4774_v27 = vld [vmem:[#allocation2 + $0xc8] sm:$0x1] }
 0x176   : > { %v6745_v47 = vcombine.low %v5079_v23, %v5089_v14  ;;  %v8733_v4 = vsel %vm7683_vm12, %v6777_v15, %v5702_v49  ;;  %v5704_v26 = vrot.slane %v5702_v49, 4  ;;  %v5108_v40 = vrot.slane %v5107_v42, 4  ;;  %v4777_v18 = vld [vmem:[#allocation2 + $0xd4] sm:$0x1]  ;;  %v5562_v42 = vld [vmem:[#allocation2 + $0xc0] sm:$0xe] }
 0x177   : > { %7262 = vmatmul.mubr.msk.bf16.gmra.mxu0 %vm921_vm3, %v6791_v57  ;;  %1955 = vst.msk [vmem:[#allocation3 + $0xd8] sm:$0xff] %vm921_vm3, %v1923_v25  ;;  %v2459_v11 = vld [vmem:[#allocation3 + $0xd0] sm:$0xff]  ;;  %v5709_v62 = vrot.slane %v5560_v59, 5  ;;  %v5712_v36 = vrot.slane %v5561_v51, 5  ;;  %v5103_v1 = vsel %vm7666_vm11, %v5098_v0, %v5102_v31  ;;  %v4773_v57 = vld [vmem:[#allocation2 + $0xc4] sm:$0xf] }
 0x178   : > { %7265 = vmatprep.mubr.msk.bf16.mxu0 %vm921_vm3, %v6792_v10  ;;  %7235 = vmatprep.mubr.msk.bf16.mxu1 %vm921_vm3, %v6745_v47  ;;  %v5706_v17 = vsel %vm7683_vm12, %v5704_v26, %v5705_v9  ;;  %v2491_v8 = vadd.f32 %v8691_v56, %v2459_v11  ;;  %v5115_v48 = vshrl.u32 %v4772_v41, 16  ;;  %v5113_v54 = vsel %vm7666_vm11, %v5108_v40, %v5112_v32  ;;  %v8757_v5 = vpop.f32.mrf.mxu0  ;;  %v5564_v26 = vld [vmem:[#allocation2 + $0xc8] sm:$0x1] }
 0x179   : > { %v6794_v53 = vcombine.low %v8733_v4, %v5706_v17  ;;  %v8755_v12 = vsel %vm7683_vm12, %v6778_v24, %v5709_v62  ;;  %v5711_v10 = vrot.slane %v5709_v62, 4  ;;  %v6746_v21 = vcombine.low %v5103_v1, %v5113_v54  ;;  %v7037_v6 = vpop.f32.mrf.mxu1  ;;  %v5563_v4 = vld [vmem:[#allocation2 + $0xc4] sm:$0xf]  ;;  %v5565_v62 = vld [vmem:[#allocation2 + $0xcc] sm:$0xe] }
 0x17a   : > { %2523 = vst.msk [vmem:[#allocation3 + $0xd0] sm:$0xff] %vm921_vm3, %v2491_v8  ;;  %v1921_v56 = vadd.f32 %v1889_v35, %v1836_v16  ;;  %v5117_v19 = vrot.slane %v5115_v48, 4  ;;  %v5118_v38 = vshll.u32 %v4772_v41, 16  ;;  %v2457_v22 = vld [vmem:[#allocation3 + $0xc0] sm:$0xff]  ;;  %v5124_v43 = vshll.u32 %v4773_v57, 16  ;;  %v8764_v31 = vpop.f32.mrf.mxu0  ;;  %v1895_v48 = vld [vmem:[#allocation3 + $0xf8] sm:$0xff] }
 0x17b   : > { %v8762_v20 = vsel %vm7683_vm12, %v5711_v10, %v5712_v36  ;;  %v5128_v3 = vshrl.u32 %v4773_v57, 16  ;;  %v5134_v37 = vshll.u32 %v4774_v27, 16  ;;  %7236 = vmatmul.mubr.msk.bf16.gmra.mxu1 %vm921_vm3, %v6746_v21  ;;  %v2489_v28 = vadd.f32 %v2457_v22, %v8698_v46  ;;  %v1849_v32 = vpop.f32.mrf.mxu1  ;;  %v1892_v46 = vld [vmem:[#allocation3 + $0xe0] sm:$0xff]  ;;  %v5566_v54 = vld [vmem:[#allocation2 + $0xd0] sm:$0xf] }
 0x17c   : > { %v6795_v33 = vcombine.low %v8755_v12, %v8762_v20  ;;  %1953 = vst.msk [vmem:[#allocation3 + $0xc8] sm:$0xff] %vm921_vm3, %v1921_v56  ;;  %v5120_v2 = vrot.slane %v5118_v38, 5  ;;  %v1926_v13 = vadd.f32 %v7037_v6, %v1894_v52  ;;  %v5126_v30 = vrot.slane %v5124_v43, 5  ;;  %v8771_v44 = vpop.f32.mrf.mxu0 }
 0x17d   : > { %v5130_v15 = vrot.slane %v5128_v3, 4  ;;  %v5136_v23 = vrot.slane %v5134_v37, 5  ;;  %v5139_v39 = vshrl.u32 %v4775_v29, 16  ;;  %2521 = vst.msk [vmem:[#allocation3 + $0xc0] sm:$0xff] %vm921_vm3, %v2489_v28  ;;  %v5142_v59 = vshll.u32 %v4775_v29, 16  ;;  %v7038_v9 = vpop.f32.mrf.mxu1 }
 0x17e   : > { %v5121_v49 = vor.u32 %v5120_v2, %v5117_v19  ;;  %1958 = vst.msk [vmem:[#allocation3 + $0xf0] sm:$0xff] %vm921_vm3, %v1926_v13  ;;  %v2460_v58 = vld [vmem:[#allocation3 + $0xd8] sm:$0xff]  ;;  %v5148_v51 = vshll.u32 %v4776_v7, 16  ;;  %v5152_v14 = vshrl.u32 %v4776_v7, 16  ;;  %v5158_v0 = vshll.u32 %v4777_v18, 16  ;;  %v8781_v1 = vpop.f32.mrf.mxu0  ;;  %v1893_v18 = vld [vmem:[#allocation3 + $0xe8] sm:$0xff] }
 0x17f   : > { %7266 = vmatmul.mubr.msk.bf16.gmra.mxu0 %vm921_vm3, %v6793_v61  ;;  %v5131_v25 = vor.u32 %v5130_v15, %v5126_v30  ;;  %v2492_v41 = vadd.f32 %v8718_v45, %v2460_v58  ;;  %v5141_v47 = vrot.slane %v5139_v39, 4  ;;  %v5144_v40 = vrot.slane %v5142_v59, 5  ;;  %v1852_v36 = vpop.f32.mrf.mxu1 }
 0x180   : > { %7269 = vmatprep.mubr.msk.bf16.mxu0 %vm921_vm3, %v6794_v53  ;;  %v5122_v16 = vrot.slane %v5121_v49, 4  ;;  %v5150_v11 = vrot.slane %v5148_v51, 5  ;;  %v5154_v24 = vrot.slane %v5152_v14, 4  ;;  %v5160_v50 = vrot.slane %v5158_v0, 5  ;;  %v5567_v53 = vld [vmem:[#allocation2 + $0xd4] sm:$0x1] }
 0x181   : > { %v5132_v55 = vrot.slane %v5131_v25, 4  ;;  %2524 = vst.msk [vmem:[#allocation3 + $0xd8] sm:$0xff] %vm921_vm3, %v2492_v41  ;;  %v1924_v61 = vadd.f32 %v1892_v46, %v1849_v32  ;;  %v6779_v45 = vrot.slane %v5562_v42, 9  ;;  %v5145_v8 = vor.u32 %v5144_v40, %v5141_v47  ;;  %v7077_v10 = vpop.f32.mrf.mxu1  ;;  %v2857_v51 = vld [vmem:[#allocation3 + $0x10] sm:$0xff]  ;;  %v2855_v14 = vld [vmem:[#allocation3] sm:$0xff]  ;;  %v2858_v46 = vld [vmem:[#allocation3 + $0x18] sm:$0xff] }
 0x182   : > { %v5127_v17 = vsel %vm7666_vm11, %v5122_v16, %v5126_v30  ;;  %v5155_v57 = vor.u32 %v5154_v24, %v5150_v11  ;;  %v5716_v27 = vrot.slane %v5563_v4, 5  ;;  %v5719_v56 = vrot.slane %v5564_v26, 5  ;;  %v2861_v26 = vld [vmem:[#allocation3 + $0x30] sm:$0xff] }
 0x183   : > { %v5137_v35 = vsel %vm7666_vm11, %v5132_v55, %v5136_v23  ;;  %1956 = vst.msk [vmem:[#allocation3 + $0xe0] sm:$0xff] %vm921_vm3, %v1924_v61  ;;  %v2458_v21 = vld [vmem:[#allocation3 + $0xc8] sm:$0xff]  ;;  %v1927_v19 = vadd.f32 %v7038_v9, %v1895_v48  ;;  %v6780_v38 = vrot.slane %v5565_v62, 9  ;;  %v5146_v52 = vrot.slane %v5145_v8, 4  ;;  %v2728_v43 = vpop.f32.mrf.mxu1  ;;  %v8790_v3 = vpop.f32.mrf.mxu0 }
 0x184   : > { %v6747_v6 = vcombine.low %v5127_v17, %v5137_v35  ;;  %v5156_v29 = vrot.slane %v5155_v57, 4  ;;  %v2490_v22 = vadd.f32 %v2458_v21, %v8728_v63  ;;  %v5717_v37 = vsel %vm7683_vm12, %v6779_v45, %v5716_v27  ;;  %v2856_v9 = vld [vmem:[#allocation3 + $0x8] sm:$0xff]  ;;  %v2862_v17 = vld [vmem:[#allocation3 + $0x38] sm:$0xff] }
 0x185   : > { %v5718_v7 = vrot.slane %v5716_v27, 4  ;;  %1959 = vst.msk [vmem:[#allocation3 + $0xf8] sm:$0xff] %vm921_vm3, %v1927_v19  ;;  %v2463_v28 = vld [vmem:[#allocation3 + $0xf0] sm:$0xff]  ;;  %v5723_v2 = vrot.slane %v5566_v54, 5  ;;  %v5726_v13 = vrot.slane %v5567_v53, 5  ;;  %v5151_v32 = vsel %vm7666_vm11, %v5146_v52, %v5150_v11  ;;  %v7078_v23 = vpop.f32.mrf.mxu1  ;;  %v3518_v39 = vpop.f32.mrf.mxu0  ;;  %v2860_v54 = vld [vmem:[#allocation3 + $0x28] sm:$0xff] }
 0x186   : > { %7239 = vmatprep.mubr.msk.bf16.mxu1 %vm921_vm3, %v6747_v6  ;;  %v5161_v63 = vsel %vm7666_vm11, %v5156_v29, %v5160_v50  ;;  %2522 = vst.msk [vmem:[#allocation3 + $0xc8] sm:$0xff] %vm921_vm3, %v2490_v22  ;;  %v2495_v30 = vadd.f32 %v8757_v5, %v2463_v28  ;;  %v1925_v15 = vadd.f32 %v1893_v18, %v1852_v36  ;;  %v2859_v36 = vld [vmem:[#allocation3 + $0x20] sm:$0xff]  ;;  %v2865_v29 = vld [vmem:[#allocation3 + $0x50] sm:$0xff]  ;;  %vm6290_vm13 = vcmask 25600  }
 0x187   : > { %7270 = vmatmul.mubr.msk.bf16.gmra.mxu0 %vm921_vm3, %v6795_v33  ;;  %v6748_v49 = vcombine.low %v5151_v32, %v5161_v63  ;;  %v5720_v58 = vsel %vm7683_vm12, %v5718_v7, %v5719_v56  ;;  %v5724_v60 = vsel %vm7683_vm12, %v6780_v38, %v5723_v2  ;;  %v5725_v59 = vrot.slane %v5723_v2, 4  ;;  %v2731_v33 = vpop.f32.mrf.mxu1  ;;  %v7112_v25 = vpop.f32.mrf.mxu0  ;;  %v2863_v28 = vld [vmem:[#allocation3 + $0x40] sm:$0xff]  ;;  %v2866_v32 = vld [vmem:[#allocation3 + $0x58] sm:$0xff] }
 0x188   : > { %v6796_v5 = vcombine.low %v5717_v37, %v5720_v58  ;;  %2527 = vst.msk [vmem:[#allocation3 + $0xf0] sm:$0xff] %vm921_vm3, %v2495_v30  ;;  %1957 = vst.msk [vmem:[#allocation3 + $0xe8] sm:$0xff] %vm921_vm3, %v1925_v15  ;;  %v2889_v42 = vadd.f32 %v7077_v10, %v2857_v51  ;;  %v2887_v12 = vadd.f32 %v2855_v14, %v2728_v43 }
 0x189   : > { %v2890_v20 = vadd.f32 %v7078_v23, %v2858_v46  ;;  %7240 = vmatmul.mubr.msk.bf16.gmra.mxu1 %vm921_vm3, %v6748_v49  ;;  %v5727_v41 = vsel %vm7683_vm12, %v5725_v59, %v5726_v13  ;;  %v2888_v47 = vadd.f32 %v2856_v9, %v2731_v33  ;;  %v7081_v4 = vpop.f32.mrf.mxu1  ;;  %v3521_v16 = vpop.f32.mrf.mxu0  ;;  %v2864_v49 = vld [vmem:[#allocation3 + $0x48] sm:$0xff]  ;;  %v2869_v46 = vld [vmem:[#allocation3 + $0x70] sm:$0xff]  ;;  %v2867_v9 = vld [vmem:[#allocation3 + $0x60] sm:$0xff] }
 0x18a   : > { %7273 = vmatprep.mubr.msk.bf16.mxu0 %vm921_vm3, %v6796_v5  ;;  %v2461_v0 = vld [vmem:[#allocation3 + $0xe0] sm:$0xff]  ;;  %2921 = vst.msk [vmem:[#allocation3 + $0x10] sm:$0xff] %vm921_vm3, %v2889_v42  ;;  %2919 = vst.msk [vmem:[#allocation3] sm:$0xff] %vm921_vm3, %v2887_v12  ;;  %v6797_v40 = vcombine.low %v5724_v60, %v5727_v41  ;;  %v2893_v34 = vadd.f32 %v7081_v4, %v2861_v26  ;;  %v2870_v26 = vld [vmem:[#allocation3 + $0x78] sm:$0xff] }
 0x18b   : > { %2922 = vst.msk [vmem:[#allocation3 + $0x18] sm:$0xff] %vm921_vm3, %v2890_v20  ;;  %v2493_v11 = vadd.f32 %v2461_v0, %v8764_v31  ;;  %2920 = vst.msk [vmem:[#allocation3 + $0x8] sm:$0xff] %vm921_vm3, %v2888_v47  ;;  %v2744_v62 = vpop.f32.mrf.mxu1  ;;  %v7115_v55 = vpop.f32.mrf.mxu0 }
 0x18c   : > { %v2464_v24 = vld [vmem:[#allocation3 + $0xf8] sm:$0xff]  ;;  %2925 = vst.msk [vmem:[#allocation3 + $0x30] sm:$0xff] %vm921_vm3, %v2893_v34  ;;  %v2891_v61 = vadd.f32 %v2859_v36, %v2744_v62  ;;  %v2868_v62 = vld [vmem:[#allocation3 + $0x68] sm:$0xff] }
 0x18d   : > { %2525 = vst.msk [vmem:[#allocation3 + $0xe0] sm:$0xff] %vm921_vm3, %v2493_v11  ;;  %v2496_v50 = vadd.f32 %v8771_v44, %v2464_v24  ;;  %v7082_v45 = vpop.f32.mrf.mxu1  ;;  %v3534_v8 = vpop.f32.mrf.mxu0 }
 0x18e   : > { %2923 = vst.msk [vmem:[#allocation3 + $0x20] sm:$0xff] %vm921_vm3, %v2891_v61  ;;  %v2894_v57 = vadd.f32 %v7082_v45, %v2862_v17  ;;  %v2873_v17 = vld [vmem:[#allocation3 + $0x90] sm:$0xff] }
 0x18f   : > { %7274 = vmatmul.mubr.msk.bf16.gmra.mxu0 %vm921_vm3, %v6797_v40  ;;  %2528 = vst.msk [vmem:[#allocation3 + $0xf8] sm:$0xff] %vm921_vm3, %v2496_v50  ;;  %v2462_v31 = vld [vmem:[#allocation3 + $0xe8] sm:$0xff]  ;;  %v2747_v48 = vpop.f32.mrf.mxu1  ;;  %v7116_v53 = vpop.f32.mrf.mxu0 }
 0x190   : > { %v2494_v27 = vadd.f32 %v2462_v31, %v8781_v1  ;;  %2926 = vst.msk [vmem:[#allocation3 + $0x38] sm:$0xff] %vm921_vm3, %v2894_v57  ;;  %v2892_v21 = vadd.f32 %v2860_v54, %v2747_v48  ;;  %v2871_v54 = vld [vmem:[#allocation3 + $0x80] sm:$0xff] }
 0x191   : > { %v3647_v44 = vld [vmem:[#allocation3 + $0x10] sm:$0xff]  ;;  %v3645_v10 = vld [vmem:[#allocation3] sm:$0xff]  ;;  %v7085_v52 = vpop.f32.mrf.mxu1  ;;  %v3537_v22 = vpop.f32.mrf.mxu0 }
 0x192   : > { %v3648_v35 = vld [vmem:[#allocation3 + $0x18] sm:$0xff]  ;;  %2526 = vst.msk [vmem:[#allocation3 + $0xe8] sm:$0xff] %vm921_vm3, %v2494_v27  ;;  %v3679_v56 = vadd.f32 %v8790_v3, %v3647_v44  ;;  %v3677_v19 = vadd.f32 %v3645_v10, %v3518_v39  ;;  %v3646_v6 = vld [vmem:[#allocation3 + $0x8] sm:$0xff]  ;;  %2924 = vst.msk [vmem:[#allocation3 + $0x28] sm:$0xff] %vm921_vm3, %v2892_v21  ;;  %v2897_v43 = vadd.f32 %v7085_v52, %v2865_v29 }
 0x193   : > { %v3680_v38 = vadd.f32 %v7112_v25, %v3648_v35  ;;  %v3678_v1 = vadd.f32 %v3646_v6, %v3521_v16  ;;  %v3651_v37 = vld [vmem:[#allocation3 + $0x30] sm:$0xff]  ;;  %v2760_v7 = vpop.f32.mrf.mxu1 }
 0x194   : > { %3711 = vst.msk [vmem:[#allocation3 + $0x10] sm:$0xff] %vm921_vm3, %v3679_v56  ;;  %3709 = vst.msk [vmem:[#allocation3] sm:$0xff] %vm921_vm3, %v3677_v19  ;;  %v3683_v3 = vadd.f32 %v7115_v55, %v3651_v37  ;;  %v2895_v2 = vadd.f32 %v2863_v28, %v2760_v7  ;;  %v2874_v56 = vld [vmem:[#allocation3 + $0x98] sm:$0xff] }
 0x195   : > { %3712 = vst.msk [vmem:[#allocation3 + $0x18] sm:$0xff] %vm921_vm3, %v3680_v38  ;;  %3710 = vst.msk [vmem:[#allocation3 + $0x8] sm:$0xff] %vm921_vm3, %v3678_v1  ;;  %v3649_v13 = vld [vmem:[#allocation3 + $0x20] sm:$0xff]  ;;  %v7086_v18 = vpop.f32.mrf.mxu1  ;;  %v7119_v63 = vpop.f32.mrf.mxu0 }
 0x196   : > { %2929 = vst.msk [vmem:[#allocation3 + $0x50] sm:$0xff] %vm921_vm3, %v2897_v43  ;;  %3715 = vst.msk [vmem:[#allocation3 + $0x30] sm:$0xff] %vm921_vm3, %v3683_v3  ;;  %v3681_v30 = vadd.f32 %v3649_v13, %v3534_v8  ;;  %v2898_v15 = vadd.f32 %v7086_v18, %v2866_v32  ;;  %v2877_v3 = vld [vmem:[#allocation3 + $0xb0] sm:$0xff] }
 0x197   : > { %2927 = vst.msk [vmem:[#allocation3 + $0x40] sm:$0xff] %vm921_vm3, %v2895_v2  ;;  %v3652_v23 = vld [vmem:[#allocation3 + $0x38] sm:$0xff]  ;;  %v2763_v39 = vpop.f32.mrf.mxu1  ;;  %v3550_v58 = vpop.f32.mrf.mxu0 }
 0x198   : > { %3713 = vst.msk [vmem:[#allocation3 + $0x20] sm:$0xff] %vm921_vm3, %v3681_v30  ;;  %v3684_v60 = vadd.f32 %v7116_v53, %v3652_v23  ;;  %2930 = vst.msk [vmem:[#allocation3 + $0x58] sm:$0xff] %vm921_vm3, %v2898_v15  ;;  %v2896_v59 = vadd.f32 %v2864_v49, %v2763_v39  ;;  %v2875_v30 = vld [vmem:[#allocation3 + $0xa0] sm:$0xff] }
 0x199   : > { %v3650_v51 = vld [vmem:[#allocation3 + $0x28] sm:$0xff]  ;;  %v7089_v14 = vpop.f32.mrf.mxu1  ;;  %v7120_v5 = vpop.f32.mrf.mxu0 }
 0x19a   : > { %3716 = vst.msk [vmem:[#allocation3 + $0x38] sm:$0xff] %vm921_vm3, %v3684_v60  ;;  %v3682_v42 = vadd.f32 %v3650_v51, %v3537_v22  ;;  %2928 = vst.msk [vmem:[#allocation3 + $0x48] sm:$0xff] %vm921_vm3, %v2896_v59  ;;  %v2901_v12 = vadd.f32 %v7089_v14, %v2869_v46  ;;  %v2872_v22 = vld [vmem:[#allocation3 + $0x88] sm:$0xff]  ;;  %v2878_v60 = vld [vmem:[#allocation3 + $0xb8] sm:$0xff] }
 0x19b   : > { %v2776_v33 = vpop.f32.mrf.mxu1  ;;  %v3553_v25 = vpop.f32.mrf.mxu0 }
 0x19c   : > { %3714 = vst.msk [vmem:[#allocation3 + $0x28] sm:$0xff] %vm921_vm3, %v3682_v42  ;;  %2933 = vst.msk [vmem:[#allocation3 + $0x70] sm:$0xff] %vm921_vm3, %v2901_v12  ;;  %v2899_v47 = vadd.f32 %v2867_v9, %v2776_v33  ;;  %v2876_v42 = vld [vmem:[#allocation3 + $0xa8] sm:$0xff] }
 0x19d   : > { %v3655_v20 = vld [vmem:[#allocation3 + $0x50] sm:$0xff]  ;;  %v7090_v4 = vpop.f32.mrf.mxu1  ;;  %v7123_v16 = vpop.f32.mrf.mxu0 }
 0x19e   : > { %v3687_v41 = vadd.f32 %v7119_v63, %v3655_v20  ;;  %v3653_v0 = vld [vmem:[#allocation3 + $0x40] sm:$0xff]  ;;  %2931 = vst.msk [vmem:[#allocation3 + $0x60] sm:$0xff] %vm921_vm3, %v2899_v47  ;;  %v2902_v11 = vadd.f32 %v7090_v4, %v2870_v26 }
 0x19f   : > { %v3685_v40 = vadd.f32 %v3653_v0, %v3550_v58  ;;  %v3656_v34 = vld [vmem:[#allocation3 + $0x58] sm:$0xff]  ;;  %v2779_v24 = vpop.f32.mrf.mxu1  ;;  %v3566_v36 = vpop.f32.mrf.mxu0 }
 0x1a0   : > { %3719 = vst.msk [vmem:[#allocation3 + $0x50] sm:$0xff] %vm921_vm3, %v3687_v41  ;;  %v3688_v55 = vadd.f32 %v7120_v5, %v3656_v34  ;;  %2934 = vst.msk [vmem:[#allocation3 + $0x78] sm:$0xff] %vm921_vm3, %v2902_v11  ;;  %v2900_v50 = vadd.f32 %v2868_v62, %v2779_v24  ;;  %v2881_v41 = vld [vmem:[#allocation3 + $0xd0] sm:$0xff] }
 0x1a1   : > { %3717 = vst.msk [vmem:[#allocation3 + $0x40] sm:$0xff] %vm921_vm3, %v3685_v40  ;;  %v3654_v61 = vld [vmem:[#allocation3 + $0x48] sm:$0xff]  ;;  %v7093_v45 = vpop.f32.mrf.mxu1  ;;  %v7124_v8 = vpop.f32.mrf.mxu0  ;;  %v2879_v40 = vld [vmem:[#allocation3 + $0xc0] sm:$0xff] }
 0x1a2   : > { %3720 = vst.msk [vmem:[#allocation3 + $0x58] sm:$0xff] %vm921_vm3, %v3688_v55  ;;  %v3686_v31 = vadd.f32 %v3654_v61, %v3553_v25  ;;  %2932 = vst.msk [vmem:[#allocation3 + $0x68] sm:$0xff] %vm921_vm3, %v2900_v50  ;;  %v2905_v57 = vadd.f32 %v7093_v45, %v2873_v17  ;;  %v2882_v55 = vld [vmem:[#allocation3 + $0xd8] sm:$0xff] }
 0x1a3   : > { %v3659_v27 = vld [vmem:[#allocation3 + $0x70] sm:$0xff]  ;;  %v2792_v48 = vpop.f32.mrf.mxu1  ;;  %v3569_v53 = vpop.f32.mrf.mxu0 }
 0x1a4   : > { %3718 = vst.msk [vmem:[#allocation3 + $0x48] sm:$0xff] %vm921_vm3, %v3686_v31  ;;  %v3691_v44 = vadd.f32 %v7123_v16, %v3659_v27  ;;  %2937 = vst.msk [vmem:[#allocation3 + $0x90] sm:$0xff] %vm921_vm3, %v2905_v57  ;;  %v2903_v10 = vadd.f32 %v2871_v54, %v2792_v48  ;;  %v2880_v31 = vld [vmem:[#allocation3 + $0xc8] sm:$0xff] }
 0x1a5   : > { %v3657_v35 = vld [vmem:[#allocation3 + $0x60] sm:$0xff]  ;;  %v7094_v21 = vpop.f32.mrf.mxu1  ;;  %v7127_v19 = vpop.f32.mrf.mxu0 }
 0x1a6   : > { %3723 = vst.msk [vmem:[#allocation3 + $0x70] sm:$0xff] %vm921_vm3, %v3691_v44  ;;  %v3689_v38 = vadd.f32 %v3657_v35, %v3566_v36  ;;  %2935 = vst.msk [vmem:[#allocation3 + $0x80] sm:$0xff] %vm921_vm3, %v2903_v10  ;;  %v2906_v6 = vadd.f32 %v7094_v21, %v2874_v56 }
 0x1a7   : > { %v3660_v52 = vld [vmem:[#allocation3 + $0x78] sm:$0xff]  ;;  %v2795_v29 = vpop.f32.mrf.mxu1  ;;  %v3582_v1 = vpop.f32.mrf.mxu0 }
 0x1a8   : > { %3721 = vst.msk [vmem:[#allocation3 + $0x60] sm:$0xff] %vm921_vm3, %v3689_v38  ;;  %v3692_v43 = vadd.f32 %v7124_v8, %v3660_v52  ;;  %2938 = vst.msk [vmem:[#allocation3 + $0x98] sm:$0xff] %vm921_vm3, %v2906_v6  ;;  %v2904_v37 = vadd.f32 %v2872_v22, %v2795_v29 }
 0x1a9   : > { %v3658_v7 = vld [vmem:[#allocation3 + $0x68] sm:$0xff]  ;;  %v7097_v28 = vpop.f32.mrf.mxu1  ;;  %v7128_v2 = vpop.f32.mrf.mxu0 }
 0x1aa   : > { %3724 = vst.msk [vmem:[#allocation3 + $0x78] sm:$0xff] %vm921_vm3, %v3692_v43  ;;  %v3690_v13 = vadd.f32 %v3658_v7, %v3569_v53  ;;  %2936 = vst.msk [vmem:[#allocation3 + $0x88] sm:$0xff] %vm921_vm3, %v2904_v37  ;;  %v2909_v18 = vadd.f32 %v7097_v28, %v2877_v3  ;;  %v2883_v7 = vld [vmem:[#allocation3 + $0xe0] sm:$0xff] }
 0x1ab   : > { %v3663_v32 = vld [vmem:[#allocation3 + $0x90] sm:$0xff]  ;;  %v2808_v63 = vpop.f32.mrf.mxu1  ;;  %v3585_v15 = vpop.f32.mrf.mxu0 }
 0x1ac   : > { %3722 = vst.msk [vmem:[#allocation3 + $0x68] sm:$0xff] %vm921_vm3, %v3690_v13  ;;  %v3695_v23 = vadd.f32 %v7127_v19, %v3663_v32  ;;  %2941 = vst.msk [vmem:[#allocation3 + $0xb0] sm:$0xff] %vm921_vm3, %v2909_v18  ;;  %v2907_v39 = vadd.f32 %v2875_v30, %v2808_v63  ;;  %v2884_v32 = vld [vmem:[#allocation3 + $0xe8] sm:$0xff] }
 0x1ad   : > { %v3661_v49 = vld [vmem:[#allocation3 + $0x80] sm:$0xff]  ;;  %v7098_v58 = vpop.f32.mrf.mxu1 }
 0x1ae   : > { %3727 = vst.msk [vmem:[#allocation3 + $0x90] sm:$0xff] %vm921_vm3, %v3695_v23  ;;  %v3693_v59 = vadd.f32 %v3661_v49, %v3582_v1  ;;  %2939 = vst.msk [vmem:[#allocation3 + $0xa0] sm:$0xff] %vm921_vm3, %v2907_v39  ;;  %v2910_v51 = vadd.f32 %v7098_v58, %v2878_v60  ;;  %v7131_v14 = vpop.f32.mrf.mxu0  ;;  %v2885_v1 = vld [vmem:[#allocation3 + $0xf0] sm:$0xff]  ;;  %v4211_v58 = vld [vmem:[#allocation3] sm:$0xff] }
 0x1af   : > { %v3664_v46 = vld [vmem:[#allocation3 + $0x98] sm:$0xff]  ;;  %v2811_v5 = vpop.f32.mrf.mxu1 }
 0x1b0   : > { %3725 = vst.msk [vmem:[#allocation3 + $0x80] sm:$0xff] %vm921_vm3, %v3693_v59  ;;  %v3696_v12 = vadd.f32 %v7128_v2, %v3664_v46  ;;  %2942 = vst.msk [vmem:[#allocation3 + $0xb8] sm:$0xff] %vm921_vm3, %v2910_v51  ;;  %v2908_v20 = vadd.f32 %v2876_v42, %v2811_v5  ;;  %v3598_v33 = vpop.f32.mrf.mxu0  ;;  %v2886_v2 = vld [vmem:[#allocation3 + $0xf8] sm:$0xff] }
 0x1b1   : > { %v3662_v9 = vld [vmem:[#allocation3 + $0x88] sm:$0xff]  ;;  %v7101_v25 = vpop.f32.mrf.mxu1  ;;  %v4214_v5 = vld [vmem:[#allocation3 + $0x18] sm:$0xff] }
 0x1b2   : > { %3728 = vst.msk [vmem:[#allocation3 + $0x98] sm:$0xff] %vm921_vm3, %v3696_v12  ;;  %v3694_v47 = vadd.f32 %v3662_v9, %v3585_v15  ;;  %2940 = vst.msk [vmem:[#allocation3 + $0xa8] sm:$0xff] %vm921_vm3, %v2908_v20  ;;  %v2913_v0 = vadd.f32 %v7101_v25, %v2881_v41  ;;  %v7132_v4 = vpop.f32.mrf.mxu0  ;;  %v4213_v15 = vld [vmem:[#allocation3 + $0x10] sm:$0xff]  ;;  %v4212_v25 = vld [vmem:[#allocation3 + $0x8] sm:$0xff] }
 0x1b3   : > { %v3667_v26 = vld [vmem:[#allocation3 + $0xb0] sm:$0xff]  ;;  %v2824_v16 = vpop.f32.mrf.mxu1 }
 0x1b4   : > { %3726 = vst.msk [vmem:[#allocation3 + $0x88] sm:$0xff] %vm921_vm3, %v3694_v47  ;;  %v3699_v11 = vadd.f32 %v7131_v14, %v3667_v26  ;;  %2945 = vst.msk [vmem:[#allocation3 + $0xd0] sm:$0xff] %vm921_vm3, %v2913_v0  ;;  %v2911_v34 = vadd.f32 %v2879_v40, %v2824_v16  ;;  %v3601_v24 = vpop.f32.mrf.mxu0  ;;  %v4217_v16 = vld [vmem:[#allocation3 + $0x30] sm:$0xff] }
 0x1b5   : > { %v3665_v62 = vld [vmem:[#allocation3 + $0xa0] sm:$0xff]  ;;  %v7102_v36 = vpop.f32.mrf.mxu1 }
 0x1b6   : > { %3731 = vst.msk [vmem:[#allocation3 + $0xb0] sm:$0xff] %vm921_vm3, %v3699_v11  ;;  %v3697_v50 = vadd.f32 %v3665_v62, %v3598_v33  ;;  %2943 = vst.msk [vmem:[#allocation3 + $0xc0] sm:$0xff] %vm921_vm3, %v2911_v34  ;;  %v2914_v61 = vadd.f32 %v7102_v36, %v2882_v55  ;;  %v7135_v45 = vpop.f32.mrf.mxu0  ;;  %v4215_v36 = vld [vmem:[#allocation3 + $0x20] sm:$0xff] }
 0x1b7   : > { %v3668_v17 = vld [vmem:[#allocation3 + $0xb8] sm:$0xff]  ;;  %v2827_v8 = vpop.f32.mrf.mxu1 }
 0x1b8   : > { %3729 = vst.msk [vmem:[#allocation3 + $0xa0] sm:$0xff] %vm921_vm3, %v3697_v50  ;;  %v3700_v57 = vadd.f32 %v7132_v4, %v3668_v17  ;;  %2946 = vst.msk [vmem:[#allocation3 + $0xd8] sm:$0xff] %vm921_vm3, %v2914_v61  ;;  %v2912_v27 = vadd.f32 %v2880_v31, %v2827_v8  ;;  %v3614_v54 = vpop.f32.mrf.mxu0  ;;  %v4218_v8 = vld [vmem:[#allocation3 + $0x38] sm:$0xff] }
 0x1b9   : > { %v3666_v48 = vld [vmem:[#allocation3 + $0xa8] sm:$0xff] }
 0x1ba   : > { %3732 = vst.msk [vmem:[#allocation3 + $0xb8] sm:$0xff] %vm921_vm3, %v3700_v57  ;;  %v3698_v53 = vadd.f32 %v3666_v48, %v3601_v24  ;;  %2944 = vst.msk [vmem:[#allocation3 + $0xc8] sm:$0xff] %vm921_vm3, %v2912_v27  ;;  %v7136_v21 = vpop.f32.mrf.mxu0 }
 0x1bb   : > { %v3671_v44 = vld [vmem:[#allocation3 + $0xd0] sm:$0xff] }
 0x1bc   : > { %3730 = vst.msk [vmem:[#allocation3 + $0xa8] sm:$0xff] %vm921_vm3, %v3698_v53  ;;  %v3703_v10 = vadd.f32 %v7135_v45, %v3671_v44  ;;  %v3617_v6 = vpop.f32.mrf.mxu0  ;;  %v4216_v53 = vld [vmem:[#allocation3 + $0x28] sm:$0xff] }
 0x1bd   : > { %v3669_v35 = vld [vmem:[#allocation3 + $0xc0] sm:$0xff] }
 0x1be   : > { %3735 = vst.msk [vmem:[#allocation3 + $0xd0] sm:$0xff] %vm921_vm3, %v3703_v10  ;;  %v3701_v56 = vadd.f32 %v3669_v35, %v3614_v54 }
 0x1bf   : > { %v3672_v19 = vld [vmem:[#allocation3 + $0xd8] sm:$0xff] }
 0x1c0   : > { %3733 = vst.msk [vmem:[#allocation3 + $0xc0] sm:$0xff] %vm921_vm3, %v3701_v56  ;;  %v3704_v38 = vadd.f32 %v7136_v21, %v3672_v19  ;;  %v4221_v19 = vld [vmem:[#allocation3 + $0x50] sm:$0xff] }
 0x1c1   : > { %v3670_v52 = vld [vmem:[#allocation3 + $0xc8] sm:$0xff] }
 0x1c2   : > { %3736 = vst.msk [vmem:[#allocation3 + $0xd8] sm:$0xff] %vm921_vm3, %v3704_v38  ;;  %v3702_v29 = vadd.f32 %v3670_v52, %v3617_v6 }
 0x1c3   : > { %v7105_v22 = vpop.f32.mrf.mxu1 }
 0x1c4   : > { %v2917_v43 = vadd.f32 %v7105_v22, %v2885_v1  ;;  %3734 = vst.msk [vmem:[#allocation3 + $0xc8] sm:$0xff] %vm921_vm3, %v3702_v29  ;;  %v4219_v1 = vld [vmem:[#allocation3 + $0x40] sm:$0xff] }
 0x1c5   : > { %v2840_v37 = vpop.f32.mrf.mxu1 }
 0x1c6   : > { %2949 = vst.msk [vmem:[#allocation3 + $0xf0] sm:$0xff] %vm921_vm3, %v2917_v43  ;;  %v2915_v28 = vadd.f32 %v2883_v7, %v2840_v37 }
 0x1c7   : > { %v7106_v3 = vpop.f32.mrf.mxu1 }
 0x1c8   : > { %2947 = vst.msk [vmem:[#allocation3 + $0xe0] sm:$0xff] %vm921_vm3, %v2915_v28  ;;  %v2918_v13 = vadd.f32 %v7106_v3, %v2886_v2  ;;  %v4222_v2 = vld [vmem:[#allocation3 + $0x58] sm:$0xff] }
 0x1c9   : > { %v2843_v18 = vpop.f32.mrf.mxu1 }
 0x1ca   : > { %2950 = vst.msk [vmem:[#allocation3 + $0xf8] sm:$0xff] %vm921_vm3, %v2918_v13  ;;  %v2916_v63 = vadd.f32 %v2884_v32, %v2843_v18 }
 0x1cb   : > { %v7145_v30 = vpop.f32.mrf.mxu1 }
 0x1cc   : > { %2948 = vst.msk [vmem:[#allocation3 + $0xe8] sm:$0xff] %vm921_vm3, %v2916_v63  ;;  %v4245_v23 = vadd.f32 %v7145_v30, %v4213_v15  ;;  %v4220_v15 = vld [vmem:[#allocation3 + $0x48] sm:$0xff] }
 0x1cd   : > { %v3675_v39 = vld [vmem:[#allocation3 + $0xf0] sm:$0xff]  ;;  %v4084_v49 = vpop.f32.mrf.mxu1 }
 0x1ce   : > { %4277 = vst.msk [vmem:[#allocation3 + $0x10] sm:$0xff] %vm921_vm3, %v4245_v23  ;;  %v4243_v59 = vadd.f32 %v4211_v58, %v4084_v49 }
 0x1cf   : > { %v7139_v60 = vpop.f32.mrf.mxu0  ;;  %v3673_v14 = vld [vmem:[#allocation3 + $0xe0] sm:$0xff]  ;;  %v7146_v46 = vpop.f32.mrf.mxu1 }
 0x1d0   : > { %v3707_v51 = vadd.f32 %v7139_v60, %v3675_v39  ;;  %4275 = vst.msk [vmem:[#allocation3] sm:$0xff] %vm921_vm3, %v4243_v59  ;;  %v4246_v12 = vadd.f32 %v7146_v46, %v4214_v5  ;;  %v4225_v59 = vld [vmem:[#allocation3 + $0x70] sm:$0xff] }
 0x1d1   : > { %v3630_v42 = vpop.f32.mrf.mxu0  ;;  %v3676_v33 = vld [vmem:[#allocation3 + $0xf8] sm:$0xff]  ;;  %v4087_v9 = vpop.f32.mrf.mxu1 }
 0x1d2   : > { %3739 = vst.msk [vmem:[#allocation3 + $0xf0] sm:$0xff] %vm921_vm3, %v3707_v51  ;;  %v3705_v20 = vadd.f32 %v3673_v14, %v3630_v42  ;;  %4278 = vst.msk [vmem:[#allocation3 + $0x18] sm:$0xff] %vm921_vm3, %v4246_v12  ;;  %v4244_v47 = vadd.f32 %v4212_v25, %v4087_v9  ;;  %v4223_v12 = vld [vmem:[#allocation3 + $0x60] sm:$0xff] }
 0x1d3   : > { %v7140_v41 = vpop.f32.mrf.mxu0  ;;  %v3674_v4 = vld [vmem:[#allocation3 + $0xe8] sm:$0xff]  ;;  %v7149_v26 = vpop.f32.mrf.mxu1 }
 0x1d4   : > { %3737 = vst.msk [vmem:[#allocation3 + $0xe0] sm:$0xff] %vm921_vm3, %v3705_v20  ;;  %v3708_v0 = vadd.f32 %v7140_v41, %v3676_v33  ;;  %4276 = vst.msk [vmem:[#allocation3 + $0x8] sm:$0xff] %vm921_vm3, %v4244_v47  ;;  %v4249_v11 = vadd.f32 %v7149_v26, %v4217_v16  ;;  %v4226_v47 = vld [vmem:[#allocation3 + $0x78] sm:$0xff] }
 0x1d5   : > { %v3633_v40 = vpop.f32.mrf.mxu0  ;;  %v4636_v24 = vld [vmem:[#allocation3 + $0x10] sm:$0xff]  ;;  %v4100_v62 = vpop.f32.mrf.mxu1 }
 0x1d6   : > { %3740 = vst.msk [vmem:[#allocation3 + $0xf8] sm:$0xff] %vm921_vm3, %v3708_v0  ;;  %v3706_v34 = vadd.f32 %v3674_v4, %v3633_v40  ;;  %4281 = vst.msk [vmem:[#allocation3 + $0x30] sm:$0xff] %vm921_vm3, %v4249_v11  ;;  %v4247_v50 = vadd.f32 %v4215_v36, %v4100_v62  ;;  %v4224_v11 = vld [vmem:[#allocation3 + $0x68] sm:$0xff] }
 0x1d7   : > { %v7179_v55 = vpop.f32.mrf.mxu0  ;;  %v4634_v45 = vld [vmem:[#allocation3] sm:$0xff]  ;;  %v7150_v17 = vpop.f32.mrf.mxu1 }
 0x1d8   : > { %3738 = vst.msk [vmem:[#allocation3 + $0xe8] sm:$0xff] %vm921_vm3, %v3706_v34  ;;  %v4668_v61 = vadd.f32 %v7179_v55, %v4636_v24  ;;  %4279 = vst.msk [vmem:[#allocation3 + $0x20] sm:$0xff] %vm921_vm3, %v4247_v50  ;;  %v4250_v57 = vadd.f32 %v7150_v17, %v4218_v8  ;;  %v4229_v50 = vld [vmem:[#allocation3 + $0x90] sm:$0xff] }
 0x1d9   : > { %v4507_v31 = vpop.f32.mrf.mxu0  ;;  %v4637_v48 = vld [vmem:[#allocation3 + $0x18] sm:$0xff]  ;;  %v4103_v54 = vpop.f32.mrf.mxu1 }
 0x1da   : > { %4700 = vst.msk [vmem:[#allocation3 + $0x10] sm:$0xff] %vm921_vm3, %v4668_v61  ;;  %v4666_v27 = vadd.f32 %v4634_v45, %v4507_v31  ;;  %4282 = vst.msk [vmem:[#allocation3 + $0x38] sm:$0xff] %vm921_vm3, %v4250_v57  ;;  %v4248_v10 = vadd.f32 %v4216_v53, %v4103_v54  ;;  %v4227_v57 = vld [vmem:[#allocation3 + $0x80] sm:$0xff] }
 0x1db   : > { %v7180_v44 = vpop.f32.mrf.mxu0  ;;  %v4635_v21 = vld [vmem:[#allocation3 + $0x8] sm:$0xff]  ;;  %v7153_v56 = vpop.f32.mrf.mxu1 }
 0x1dc   : > { %4698 = vst.msk [vmem:[#allocation3] sm:$0xff] %vm921_vm3, %v4666_v27  ;;  %v4669_v35 = vadd.f32 %v7180_v44, %v4637_v48  ;;  %4280 = vst.msk [vmem:[#allocation3 + $0x28] sm:$0xff] %vm921_vm3, %v4248_v10  ;;  %v4253_v6 = vadd.f32 %v7153_v56, %v4221_v19  ;;  %v4230_v10 = vld [vmem:[#allocation3 + $0x98] sm:$0xff] }
 0x1dd   : > { %v4510_v38 = vpop.f32.mrf.mxu0  ;;  %v4640_v29 = vld [vmem:[#allocation3 + $0x30] sm:$0xff]  ;;  %v4116_v22 = vpop.f32.mrf.mxu1 }
 0x1de   : > { %4701 = vst.msk [vmem:[#allocation3 + $0x18] sm:$0xff] %vm921_vm3, %v4669_v35  ;;  %v4667_v52 = vadd.f32 %v4635_v21, %v4510_v38  ;;  %4285 = vst.msk [vmem:[#allocation3 + $0x50] sm:$0xff] %vm921_vm3, %v4253_v6  ;;  %v4251_v37 = vadd.f32 %v4219_v1, %v4116_v22  ;;  %v4228_v6 = vld [vmem:[#allocation3 + $0x88] sm:$0xff] }
 0x1df   : > { %v7183_v43 = vpop.f32.mrf.mxu0  ;;  %v4638_v28 = vld [vmem:[#allocation3 + $0x20] sm:$0xff]  ;;  %v7154_v3 = vpop.f32.mrf.mxu1 }
 0x1e0   : > { %4699 = vst.msk [vmem:[#allocation3 + $0x8] sm:$0xff] %vm921_vm3, %v4667_v52  ;;  %v4672_v7 = vadd.f32 %v7183_v43, %v4640_v29  ;;  %4283 = vst.msk [vmem:[#allocation3 + $0x40] sm:$0xff] %vm921_vm3, %v4251_v37  ;;  %v4254_v18 = vadd.f32 %v7154_v3, %v4222_v2  ;;  %v4233_v37 = vld [vmem:[#allocation3 + $0xb0] sm:$0xff] }
 0x1e1   : > { %v4523_v13 = vpop.f32.mrf.mxu0  ;;  %v4641_v63 = vld [vmem:[#allocation3 + $0x38] sm:$0xff]  ;;  %v4119_v30 = vpop.f32.mrf.mxu1 }
 0x1e2   : > { %4704 = vst.msk [vmem:[#allocation3 + $0x30] sm:$0xff] %vm921_vm3, %v4672_v7  ;;  %v4670_v32 = vadd.f32 %v4638_v28, %v4523_v13  ;;  %4286 = vst.msk [vmem:[#allocation3 + $0x58] sm:$0xff] %vm921_vm3, %v4254_v18  ;;  %v4252_v39 = vadd.f32 %v4220_v15, %v4119_v30  ;;  %v4231_v18 = vld [vmem:[#allocation3 + $0xa0] sm:$0xff] }
 0x1e3   : > { %v7184_v23 = vpop.f32.mrf.mxu0  ;;  %v4639_v58 = vld [vmem:[#allocation3 + $0x28] sm:$0xff]  ;;  %v7157_v60 = vpop.f32.mrf.mxu1 }
 0x1e4   : > { %4702 = vst.msk [vmem:[#allocation3 + $0x20] sm:$0xff] %vm921_vm3, %v4670_v32  ;;  %v4673_v49 = vadd.f32 %v7184_v23, %v4641_v63  ;;  %4284 = vst.msk [vmem:[#allocation3 + $0x48] sm:$0xff] %vm921_vm3, %v4252_v39  ;;  %v4257_v14 = vadd.f32 %v7157_v60, %v4225_v59  ;;  %v4234_v39 = vld [vmem:[#allocation3 + $0xb8] sm:$0xff] }
 0x1e5   : > { %v4526_v51 = vpop.f32.mrf.mxu0  ;;  %v4644_v5 = vld [vmem:[#allocation3 + $0x50] sm:$0xff]  ;;  %v4132_v42 = vpop.f32.mrf.mxu1 }
 0x1e6   : > { %4705 = vst.msk [vmem:[#allocation3 + $0x38] sm:$0xff] %vm921_vm3, %v4673_v49  ;;  %v4671_v46 = vadd.f32 %v4639_v58, %v4526_v51  ;;  %4289 = vst.msk [vmem:[#allocation3 + $0x70] sm:$0xff] %vm921_vm3, %v4257_v14  ;;  %v4255_v33 = vadd.f32 %v4223_v12, %v4132_v42  ;;  %v4232_v14 = vld [vmem:[#allocation3 + $0xa8] sm:$0xff] }
 0x1e7   : > { %v7187_v20 = vpop.f32.mrf.mxu0  ;;  %v4642_v25 = vld [vmem:[#allocation3 + $0x40] sm:$0xff]  ;;  %v7158_v41 = vpop.f32.mrf.mxu1 }
 0x1e8   : > { %4703 = vst.msk [vmem:[#allocation3 + $0x28] sm:$0xff] %vm921_vm3, %v4671_v46  ;;  %v4676_v9 = vadd.f32 %v7187_v20, %v4644_v5  ;;  %4287 = vst.msk [vmem:[#allocation3 + $0x60] sm:$0xff] %vm921_vm3, %v4255_v33  ;;  %v4258_v4 = vadd.f32 %v7158_v41, %v4226_v47  ;;  %v4237_v33 = vld [vmem:[#allocation3 + $0xd0] sm:$0xff] }
 0x1e9   : > { %v4539_v0 = vpop.f32.mrf.mxu0  ;;  %v4645_v16 = vld [vmem:[#allocation3 + $0x58] sm:$0xff]  ;;  %v4135_v40 = vpop.f32.mrf.mxu1 }
 0x1ea   : > { %4708 = vst.msk [vmem:[#allocation3 + $0x50] sm:$0xff] %vm921_vm3, %v4676_v9  ;;  %v4674_v26 = vadd.f32 %v4642_v25, %v4539_v0  ;;  %4290 = vst.msk [vmem:[#allocation3 + $0x78] sm:$0xff] %vm921_vm3, %v4258_v4  ;;  %v4256_v24 = vadd.f32 %v4224_v11, %v4135_v40  ;;  %v4235_v4 = vld [vmem:[#allocation3 + $0xc0] sm:$0xff] }
 0x1eb   : > { %v7188_v34 = vpop.f32.mrf.mxu0  ;;  %v4643_v36 = vld [vmem:[#allocation3 + $0x48] sm:$0xff]  ;;  %v7161_v55 = vpop.f32.mrf.mxu1 }
 0x1ec   : > { %4706 = vst.msk [vmem:[#allocation3 + $0x40] sm:$0xff] %vm921_vm3, %v4674_v26  ;;  %v4677_v62 = vadd.f32 %v7188_v34, %v4645_v16  ;;  %4288 = vst.msk [vmem:[#allocation3 + $0x68] sm:$0xff] %vm921_vm3, %v4256_v24  ;;  %v4261_v45 = vadd.f32 %v7161_v55, %v4229_v50  ;;  %v4238_v24 = vld [vmem:[#allocation3 + $0xd8] sm:$0xff] }
 0x1ed   : > { %v4542_v61 = vpop.f32.mrf.mxu0  ;;  %v4648_v8 = vld [vmem:[#allocation3 + $0x70] sm:$0xff]  ;;  %v4148_v31 = vpop.f32.mrf.mxu1 }
 0x1ee   : > { %4709 = vst.msk [vmem:[#allocation3 + $0x58] sm:$0xff] %vm921_vm3, %v4677_v62  ;;  %v4675_v17 = vadd.f32 %v4643_v36, %v4542_v61  ;;  %4293 = vst.msk [vmem:[#allocation3 + $0x90] sm:$0xff] %vm921_vm3, %v4261_v45  ;;  %v4259_v48 = vadd.f32 %v4227_v57, %v4148_v31  ;;  %v4236_v45 = vld [vmem:[#allocation3 + $0xc8] sm:$0xff] }
 0x1ef   : > { %v7191_v27 = vpop.f32.mrf.mxu0  ;;  %v4646_v53 = vld [vmem:[#allocation3 + $0x60] sm:$0xff]  ;;  %v7162_v44 = vpop.f32.mrf.mxu1 }
 0x1f0   : > { %4707 = vst.msk [vmem:[#allocation3 + $0x48] sm:$0xff] %vm921_vm3, %v4675_v17  ;;  %v4680_v54 = vadd.f32 %v7191_v27, %v4648_v8  ;;  %4291 = vst.msk [vmem:[#allocation3 + $0x80] sm:$0xff] %vm921_vm3, %v4259_v48  ;;  %v4262_v21 = vadd.f32 %v7162_v44, %v4230_v10  ;;  %v4241_v48 = vld [vmem:[#allocation3 + $0xf0] sm:$0xff] }
 0x1f1   : > { %v4555_v35 = vpop.f32.mrf.mxu0  ;;  %v4649_v19 = vld [vmem:[#allocation3 + $0x78] sm:$0xff]  ;;  %v4151_v38 = vpop.f32.mrf.mxu1 }
 0x1f2   : > { %4712 = vst.msk [vmem:[#allocation3 + $0x70] sm:$0xff] %vm921_vm3, %v4680_v54  ;;  %v4678_v56 = vadd.f32 %v4646_v53, %v4555_v35  ;;  %4294 = vst.msk [vmem:[#allocation3 + $0x98] sm:$0xff] %vm921_vm3, %v4262_v21  ;;  %v4260_v29 = vadd.f32 %v4228_v6, %v4151_v38  ;;  %v4239_v21 = vld [vmem:[#allocation3 + $0xe0] sm:$0xff] }
 0x1f3   : > { %v7192_v52 = vpop.f32.mrf.mxu0  ;;  %v4647_v1 = vld [vmem:[#allocation3 + $0x68] sm:$0xff]  ;;  %v7165_v43 = vpop.f32.mrf.mxu1 }
 0x1f4   : > { %4710 = vst.msk [vmem:[#allocation3 + $0x60] sm:$0xff] %vm921_vm3, %v4678_v56  ;;  %v4681_v22 = vadd.f32 %v7192_v52, %v4649_v19  ;;  %4292 = vst.msk [vmem:[#allocation3 + $0x88] sm:$0xff] %vm921_vm3, %v4260_v29  ;;  %v4265_v28 = vadd.f32 %v7165_v43, %v4233_v37  ;;  %v4242_v29 = vld [vmem:[#allocation3 + $0xf8] sm:$0xff] }
 0x1f5   : > { %v4558_v7 = vpop.f32.mrf.mxu0  ;;  %v4652_v2 = vld [vmem:[#allocation3 + $0x90] sm:$0xff]  ;;  %v4164_v13 = vpop.f32.mrf.mxu1 }
 0x1f6   : > { %4713 = vst.msk [vmem:[#allocation3 + $0x78] sm:$0xff] %vm921_vm3, %v4681_v22  ;;  %v4679_v3 = vadd.f32 %v4647_v1, %v4558_v7  ;;  %4297 = vst.msk [vmem:[#allocation3 + $0xb0] sm:$0xff] %vm921_vm3, %v4265_v28  ;;  %v4263_v63 = vadd.f32 %v4231_v18, %v4164_v13  ;;  %v4240_v28 = vld [vmem:[#allocation3 + $0xe8] sm:$0xff] }
 0x1f7   : > { %v7195_v32 = vpop.f32.mrf.mxu0  ;;  %v4650_v15 = vld [vmem:[#allocation3 + $0x80] sm:$0xff]  ;;  %v7166_v23 = vpop.f32.mrf.mxu1 }
 0x1f8   : > { %4711 = vst.msk [vmem:[#allocation3 + $0x68] sm:$0xff] %vm921_vm3, %v4679_v3  ;;  %v4684_v30 = vadd.f32 %v7195_v32, %v4652_v2  ;;  %4295 = vst.msk [vmem:[#allocation3 + $0xa0] sm:$0xff] %vm921_vm3, %v4263_v63  ;;  %v4266_v58 = vadd.f32 %v7166_v23, %v4234_v39  ;;  %v5426_v63 = vld [vmem:[#allocation3 + $0x10] sm:$0xff] }
 0x1f9   : > { %v4571_v49 = vpop.f32.mrf.mxu0  ;;  %v4653_v59 = vld [vmem:[#allocation3 + $0x98] sm:$0xff]  ;;  %v4167_v51 = vpop.f32.mrf.mxu1 }
 0x1fa   : > { %4716 = vst.msk [vmem:[#allocation3 + $0x90] sm:$0xff] %vm921_vm3, %v4684_v30  ;;  %v4682_v60 = vadd.f32 %v4650_v15, %v4571_v49  ;;  %4298 = vst.msk [vmem:[#allocation3 + $0xb8] sm:$0xff] %vm921_vm3, %v4266_v58  ;;  %v4264_v5 = vadd.f32 %v4232_v14, %v4167_v51  ;;  %v5424_v58 = vld [vmem:[#allocation3] sm:$0xff] }
 0x1fb   : > { %v7196_v46 = vpop.f32.mrf.mxu0  ;;  %v4651_v12 = vld [vmem:[#allocation3 + $0x88] sm:$0xff]  ;;  %v7169_v20 = vpop.f32.mrf.mxu1 }
 0x1fc   : > { %4714 = vst.msk [vmem:[#allocation3 + $0x80] sm:$0xff] %vm921_vm3, %v4682_v60  ;;  %v4685_v42 = vadd.f32 %v7196_v46, %v4653_v59  ;;  %4296 = vst.msk [vmem:[#allocation3 + $0xa8] sm:$0xff] %vm921_vm3, %v4264_v5  ;;  %v4269_v25 = vadd.f32 %v7169_v20, %v4237_v33  ;;  %v5427_v5 = vld [vmem:[#allocation3 + $0x18] sm:$0xff] }
 0x1fd   : > { %v4574_v9 = vpop.f32.mrf.mxu0  ;;  %v4656_v47 = vld [vmem:[#allocation3 + $0xb0] sm:$0xff]  ;;  %v4180_v0 = vpop.f32.mrf.mxu1 }
 0x1fe   : > { %4717 = vst.msk [vmem:[#allocation3 + $0x98] sm:$0xff] %vm921_vm3, %v4685_v42  ;;  %v4683_v41 = vadd.f32 %v4651_v12, %v4574_v9  ;;  %4301 = vst.msk [vmem:[#allocation3 + $0xd0] sm:$0xff] %vm921_vm3, %v4269_v25  ;;  %v4267_v16 = vadd.f32 %v4235_v4, %v4180_v0  ;;  %v5425_v25 = vld [vmem:[#allocation3 + $0x8] sm:$0xff] }
 0x1ff   : > { %v7199_v26 = vpop.f32.mrf.mxu0  ;;  %v4654_v11 = vld [vmem:[#allocation3 + $0xa0] sm:$0xff]  ;;  %v7170_v34 = vpop.f32.mrf.mxu1 }
 0x200   : > { %4715 = vst.msk [vmem:[#allocation3 + $0x88] sm:$0xff] %vm921_vm3, %v4683_v41  ;;  %v4688_v40 = vadd.f32 %v7199_v26, %v4656_v47  ;;  %4299 = vst.msk [vmem:[#allocation3 + $0xc0] sm:$0xff] %vm921_vm3, %v4267_v16  ;;  %v4270_v36 = vadd.f32 %v7170_v34, %v4238_v24  ;;  %v5430_v16 = vld [vmem:[#allocation3 + $0x30] sm:$0xff] }
 0x201   : > { %v4587_v62 = vpop.f32.mrf.mxu0  ;;  %v4657_v50 = vld [vmem:[#allocation3 + $0xb8] sm:$0xff]  ;;  %v4183_v61 = vpop.f32.mrf.mxu1 }
 0x202   : > { %4720 = vst.msk [vmem:[#allocation3 + $0xb0] sm:$0xff] %vm921_vm3, %v4688_v40  ;;  %v4686_v55 = vadd.f32 %v4654_v11, %v4587_v62  ;;  %4302 = vst.msk [vmem:[#allocation3 + $0xd8] sm:$0xff] %vm921_vm3, %v4270_v36  ;;  %v4268_v8 = vadd.f32 %v4236_v45, %v4183_v61  ;;  %v5428_v36 = vld [vmem:[#allocation3 + $0x20] sm:$0xff] }
 0x203   : > { %v7200_v17 = vpop.f32.mrf.mxu0  ;;  %v4655_v57 = vld [vmem:[#allocation3 + $0xa8] sm:$0xff]  ;;  %v7173_v27 = vpop.f32.mrf.mxu1 }
 0x204   : > { %4718 = vst.msk [vmem:[#allocation3 + $0xa0] sm:$0xff] %vm921_vm3, %v4686_v55  ;;  %v4689_v31 = vadd.f32 %v7200_v17, %v4657_v50  ;;  %4300 = vst.msk [vmem:[#allocation3 + $0xc8] sm:$0xff] %vm921_vm3, %v4268_v8  ;;  %v4273_v53 = vadd.f32 %v7173_v27, %v4241_v48  ;;  %v5431_v8 = vld [vmem:[#allocation3 + $0x38] sm:$0xff] }
 0x205   : > { %v4590_v54 = vpop.f32.mrf.mxu0  ;;  %v4660_v10 = vld [vmem:[#allocation3 + $0xd0] sm:$0xff]  ;;  %v4196_v35 = vpop.f32.mrf.mxu1 }
 0x206   : > { %4721 = vst.msk [vmem:[#allocation3 + $0xb8] sm:$0xff] %vm921_vm3, %v4689_v31  ;;  %v4687_v44 = vadd.f32 %v4655_v57, %v4590_v54  ;;  %4305 = vst.msk [vmem:[#allocation3 + $0xf0] sm:$0xff] %vm921_vm3, %v4273_v53  ;;  %v4271_v19 = vadd.f32 %v4239_v21, %v4196_v35  ;;  %v5429_v53 = vld [vmem:[#allocation3 + $0x28] sm:$0xff] }
 0x207   : > { %v7203_v56 = vpop.f32.mrf.mxu0  ;;  %v4658_v6 = vld [vmem:[#allocation3 + $0xc0] sm:$0xff]  ;;  %v7174_v52 = vpop.f32.mrf.mxu1 }
 0x208   : > { %4719 = vst.msk [vmem:[#allocation3 + $0xa8] sm:$0xff] %vm921_vm3, %v4687_v44  ;;  %v4692_v38 = vadd.f32 %v7203_v56, %v4660_v10  ;;  %4303 = vst.msk [vmem:[#allocation3 + $0xe0] sm:$0xff] %vm921_vm3, %v4271_v19  ;;  %v4274_v1 = vadd.f32 %v7174_v52, %v4242_v29  ;;  %v5434_v19 = vld [vmem:[#allocation3 + $0x50] sm:$0xff] }
 0x209   : > { %v4603_v22 = vpop.f32.mrf.mxu0  ;;  %v4661_v37 = vld [vmem:[#allocation3 + $0xd8] sm:$0xff]  ;;  %v4199_v7 = vpop.f32.mrf.mxu1 }
 0x20a   : > { %4724 = vst.msk [vmem:[#allocation3 + $0xd0] sm:$0xff] %vm921_vm3, %v4692_v38  ;;  %v4690_v43 = vadd.f32 %v4658_v6, %v4603_v22  ;;  %4306 = vst.msk [vmem:[#allocation3 + $0xf8] sm:$0xff] %vm921_vm3, %v4274_v1  ;;  %v4272_v2 = vadd.f32 %v4240_v28, %v4199_v7  ;;  %v5432_v1 = vld [vmem:[#allocation3 + $0x40] sm:$0xff] }
 0x20b   : > { %v7204_v3 = vpop.f32.mrf.mxu0  ;;  %v4659_v18 = vld [vmem:[#allocation3 + $0xc8] sm:$0xff]  ;;  %v7213_v32 = vpop.f32.mrf.mxu1 }
 0x20c   : > { %4722 = vst.msk [vmem:[#allocation3 + $0xc0] sm:$0xff] %vm921_vm3, %v4690_v43  ;;  %v4693_v13 = vadd.f32 %v7204_v3, %v4661_v37  ;;  %4304 = vst.msk [vmem:[#allocation3 + $0xe8] sm:$0xff] %vm921_vm3, %v4272_v2  ;;  %v5458_v15 = vadd.f32 %v7213_v32, %v5426_v63  ;;  %v5435_v2 = vld [vmem:[#allocation3 + $0x58] sm:$0xff] }
 0x20d   : > { %v4606_v30 = vpop.f32.mrf.mxu0  ;;  %v4664_v39 = vld [vmem:[#allocation3 + $0xf0] sm:$0xff]  ;;  %v5297_v49 = vpop.f32.mrf.mxu1 }
 0x20e   : > { %4725 = vst.msk [vmem:[#allocation3 + $0xd8] sm:$0xff] %vm921_vm3, %v4693_v13  ;;  %v4691_v23 = vadd.f32 %v4659_v18, %v4606_v30  ;;  %5490 = vst.msk [vmem:[#allocation3 + $0x10] sm:$0xff] %vm921_vm3, %v5458_v15  ;;  %v5456_v59 = vadd.f32 %v5424_v58, %v5297_v49 }
 0x20f   : > { %v7207_v60 = vpop.f32.mrf.mxu0  ;;  %v4662_v14 = vld [vmem:[#allocation3 + $0xe0] sm:$0xff]  ;;  %v7214_v46 = vpop.f32.mrf.mxu1 }
 0x210   : > { %4723 = vst.msk [vmem:[#allocation3 + $0xc8] sm:$0xff] %vm921_vm3, %v4691_v23  ;;  %v4696_v51 = vadd.f32 %v7207_v60, %v4664_v39  ;;  %5488 = vst.msk [vmem:[#allocation3] sm:$0xff] %vm921_vm3, %v5456_v59  ;;  %v5459_v12 = vadd.f32 %v7214_v46, %v5427_v5  ;;  %v5433_v23 = vld [vmem:[#allocation3 + $0x48] sm:$0xff] }
 0x211   : > { %v4619_v42 = vpop.f32.mrf.mxu0  ;;  %v4665_v33 = vld [vmem:[#allocation3 + $0xf8] sm:$0xff]  ;;  %v5300_v9 = vpop.f32.mrf.mxu1 }
 0x212   : > { %4728 = vst.msk [vmem:[#allocation3 + $0xf0] sm:$0xff] %vm921_vm3, %v4696_v51  ;;  %v4694_v20 = vadd.f32 %v4662_v14, %v4619_v42  ;;  %5491 = vst.msk [vmem:[#allocation3 + $0x18] sm:$0xff] %vm921_vm3, %v5459_v12  ;;  %v5457_v47 = vadd.f32 %v5425_v25, %v5300_v9  ;;  %v5438_v14 = vld [vmem:[#allocation3 + $0x70] sm:$0xff]  ;;  %v5436_v25 = vld [vmem:[#allocation3 + $0x60] sm:$0xff] }
 0x213   : > { %v7208_v41 = vpop.f32.mrf.mxu0  ;;  %v4663_v4 = vld [vmem:[#allocation3 + $0xe8] sm:$0xff]  ;;  %v7217_v26 = vpop.f32.mrf.mxu1 }
 0x214   : > { %4726 = vst.msk [vmem:[#allocation3 + $0xe0] sm:$0xff] %vm921_vm3, %v4694_v20  ;;  %v4697_v0 = vadd.f32 %v7208_v41, %v4665_v33  ;;  %5489 = vst.msk [vmem:[#allocation3 + $0x8] sm:$0xff] %vm921_vm3, %v5457_v47  ;;  %v5462_v11 = vadd.f32 %v7217_v26, %v5430_v16 }
 0x215   : > { %v4622_v40 = vpop.f32.mrf.mxu0  ;;  %v5992_v24 = vld [vmem:[#allocation3 + $0x10] sm:$0xff]  ;;  %v5313_v62 = vpop.f32.mrf.mxu1 }
 0x216   : > { %4729 = vst.msk [vmem:[#allocation3 + $0xf8] sm:$0xff] %vm921_vm3, %v4697_v0  ;;  %v4695_v34 = vadd.f32 %v4663_v4, %v4622_v40  ;;  %5494 = vst.msk [vmem:[#allocation3 + $0x30] sm:$0xff] %vm921_vm3, %v5462_v11  ;;  %v5460_v50 = vadd.f32 %v5428_v36, %v5313_v62  ;;  %v5439_v62 = vld [vmem:[#allocation3 + $0x78] sm:$0xff] }
 0x217   : > { %v7247_v55 = vpop.f32.mrf.mxu0  ;;  %v5990_v45 = vld [vmem:[#allocation3] sm:$0xff]  ;;  %v7218_v17 = vpop.f32.mrf.mxu1 }
 0x218   : > { %4727 = vst.msk [vmem:[#allocation3 + $0xe8] sm:$0xff] %vm921_vm3, %v4695_v34  ;;  %v6024_v61 = vadd.f32 %v7247_v55, %v5992_v24  ;;  %5492 = vst.msk [vmem:[#allocation3 + $0x20] sm:$0xff] %vm921_vm3, %v5460_v50  ;;  %v5463_v57 = vadd.f32 %v7218_v17, %v5431_v8 }
 0x219   : > { %v5863_v31 = vpop.f32.mrf.mxu0  ;;  %v5993_v48 = vld [vmem:[#allocation3 + $0x18] sm:$0xff]  ;;  %v5316_v54 = vpop.f32.mrf.mxu1 }
 0x21a   : > { %6056 = vst.msk [vmem:[#allocation3 + $0x10] sm:$0xff] %vm921_vm3, %v6024_v61  ;;  %v6022_v27 = vadd.f32 %v5990_v45, %v5863_v31  ;;  %5495 = vst.msk [vmem:[#allocation3 + $0x38] sm:$0xff] %vm921_vm3, %v5463_v57  ;;  %v5461_v10 = vadd.f32 %v5429_v53, %v5316_v54  ;;  %v5437_v54 = vld [vmem:[#allocation3 + $0x68] sm:$0xff] }
 0x21b   : > { %v7248_v44 = vpop.f32.mrf.mxu0  ;;  %v5991_v21 = vld [vmem:[#allocation3 + $0x8] sm:$0xff]  ;;  %v7221_v56 = vpop.f32.mrf.mxu1 }
 0x21c   : > { %6054 = vst.msk [vmem:[#allocation3] sm:$0xff] %vm921_vm3, %v6022_v27  ;;  %v6025_v35 = vadd.f32 %v7248_v44, %v5993_v48  ;;  %5493 = vst.msk [vmem:[#allocation3 + $0x28] sm:$0xff] %vm921_vm3, %v5461_v10  ;;  %v5466_v6 = vadd.f32 %v7221_v56, %v5434_v19 }
 0x21d   : > { %v5866_v38 = vpop.f32.mrf.mxu0  ;;  %v5996_v29 = vld [vmem:[#allocation3 + $0x30] sm:$0xff]  ;;  %v5329_v22 = vpop.f32.mrf.mxu1 }
 0x21e   : > { %6057 = vst.msk [vmem:[#allocation3 + $0x18] sm:$0xff] %vm921_vm3, %v6025_v35  ;;  %v6023_v52 = vadd.f32 %v5991_v21, %v5866_v38  ;;  %5498 = vst.msk [vmem:[#allocation3 + $0x50] sm:$0xff] %vm921_vm3, %v5466_v6  ;;  %v5464_v37 = vadd.f32 %v5432_v1, %v5329_v22  ;;  %v5442_v22 = vld [vmem:[#allocation3 + $0x90] sm:$0xff] }
 0x21f   : > { %v7251_v43 = vpop.f32.mrf.mxu0  ;;  %v5994_v28 = vld [vmem:[#allocation3 + $0x20] sm:$0xff]  ;;  %v7222_v3 = vpop.f32.mrf.mxu1 }
 0x220   : > { %6055 = vst.msk [vmem:[#allocation3 + $0x8] sm:$0xff] %vm921_vm3, %v6023_v52  ;;  %v6028_v7 = vadd.f32 %v7251_v43, %v5996_v29  ;;  %5496 = vst.msk [vmem:[#allocation3 + $0x40] sm:$0xff] %vm921_vm3, %v5464_v37  ;;  %v5467_v32 = vadd.f32 %v7222_v3, %v5435_v2 }
 0x221   : > { %v6088_v13 = vld [vmem:[#allocation3 + $0x10] sm:$0xff]  ;;  %v5879_v18 = vpop.f32.mrf.mxu0  ;;  %v5997_v30 = vld [vmem:[#allocation3 + $0x38] sm:$0xff]  ;;  %v5332_v15 = vpop.f32.mrf.mxu1 }
 0x222   : > { %6294 = vst.msk [vmem:[%s8968_s30 + $0x10] sm:$0xff] %vm921_vm3, %v6088_v13  ;;  %6060 = vst.msk [vmem:[#allocation3 + $0x30] sm:$0xff] %vm921_vm3, %v6028_v7  ;;  %v6026_v63 = vadd.f32 %v5994_v28, %v5879_v18  ;;  %v5465_v58 = vadd.f32 %v5433_v23, %v5332_v15  ;;  %v6189_v41 = vmul.f32 %v6088_v13, %v6088_v13  ;;  %v6121_v36 = vsel %vm921_vm3, %v6088_v13, 0.0 }
 0x223   : > { %v6086_v39 = vld [vmem:[#allocation3] sm:$0xff]  ;;  %v7252_v49 = vpop.f32.mrf.mxu0  ;;  %5499 = vst.msk [vmem:[#allocation3 + $0x58] sm:$0xff] %vm921_vm3, %v5467_v32  ;;  %v5995_v59 = vld [vmem:[#allocation3 + $0x28] sm:$0xff]  ;;  %v7225_v51 = vpop.f32.mrf.mxu1 }
 0x224   : > { %6292 = vst.msk [vmem:[%s8968_s30] sm:$0xff] %vm921_vm3, %v6086_v39  ;;  %6058 = vst.msk [vmem:[#allocation3 + $0x20] sm:$0xff] %vm921_vm3, %v6026_v63  ;;  %v6029_v60 = vadd.f32 %v7252_v49, %v5997_v30  ;;  %v5470_v42 = vadd.f32 %v7225_v51, %v5438_v14  ;;  %v6187_v12 = vmul.f32 %v6086_v39, %v6086_v39  ;;  %v6118_v26 = vsel %vm921_vm3, %v6086_v39, 0.0  ;;  %v5440_v63 = vld [vmem:[#allocation3 + $0x80] sm:$0xff] }
 0x225   : > { %v6089_v46 = vld [vmem:[#allocation3 + $0x18] sm:$0xff]  ;;  %v5882_v5 = vpop.f32.mrf.mxu0  ;;  %5497 = vst.msk [vmem:[#allocation3 + $0x48] sm:$0xff] %vm921_vm3, %v5465_v58  ;;  %v6000_v33 = vld [vmem:[#allocation3 + $0x50] sm:$0xff]  ;;  %v5345_v9 = vpop.f32.mrf.mxu1  ;;  %v6222_v56 = vsel %vm921_vm3, %v6189_v41, 0.0 }
 0x226   : > { %6295 = vst.msk [vmem:[%s8968_s30 + $0x18] sm:$0xff] %vm921_vm3, %v6089_v46  ;;  %6061 = vst.msk [vmem:[#allocation3 + $0x38] sm:$0xff] %vm921_vm3, %v6029_v60  ;;  %v6027_v20 = vadd.f32 %v5995_v59, %v5882_v5  ;;  %v5468_v4 = vadd.f32 %v5436_v25, %v5345_v9  ;;  %v6219_v17 = vsel %vm921_vm3, %v6187_v12, 0.0  ;;  %v6190_v8 = vmul.f32 %v6089_v46, %v6089_v46 }
 0x227   : > { %v6087_v47 = vld [vmem:[#allocation3 + $0x8] sm:$0xff]  ;;  %v7255_v0 = vpop.f32.mrf.mxu0  ;;  %5502 = vst.msk [vmem:[#allocation3 + $0x70] sm:$0xff] %vm921_vm3, %v5470_v42  ;;  %v5998_v34 = vld [vmem:[#allocation3 + $0x40] sm:$0xff]  ;;  %v7226_v24 = vpop.f32.mrf.mxu1  ;;  %v6123_v19 = vsel %vm921_vm3, %v6089_v46, 0.0  ;;  %v5443_v42 = vld [vmem:[#allocation3 + $0x98] sm:$0xff] }
 0x228   : > { %v6119_v16 = vsel %vm921_vm3, %v6087_v47, 0.0  ;;  %v6188_v40 = vmul.f32 %v6087_v47, %v6087_v47  ;;  %6293 = vst.msk [vmem:[%s8968_s30 + $0x8] sm:$0xff] %vm921_vm3, %v6087_v47  ;;  %6059 = vst.msk [vmem:[#allocation3 + $0x28] sm:$0xff] %vm921_vm3, %v6027_v20  ;;  %v6032_v11 = vadd.f32 %v7255_v0, %v6000_v33  ;;  %v5471_v45 = vadd.f32 %v7226_v24, %v5439_v62 }
 0x229   : > { %v6120_v55 = vadd.f32 %v6119_v16, %v6118_v26  ;;  %v8991_v50 = vld [vmem:[#allocation3 + $0x30] sm:$0xff]  ;;  %v5895_v61 = vpop.f32.mrf.mxu0  ;;  %5500 = vst.msk [vmem:[#allocation3 + $0x60] sm:$0xff] %vm921_vm3, %v5468_v4  ;;  %v5348_v48 = vpop.f32.mrf.mxu1  ;;  %v6224_v3 = vsel %vm921_vm3, %v6190_v8, 0.0 }
 0x22a   : > { %v6220_v31 = vsel %vm921_vm3, %v6188_v40, 0.0  ;;  %6298 = vst.msk [vmem:[%s8968_s30 + $0x30] sm:$0xff] %vm921_vm3, %v8991_v50  ;;  %6064 = vst.msk [vmem:[#allocation3 + $0x50] sm:$0xff] %vm921_vm3, %v6032_v11  ;;  %v6030_v57 = vadd.f32 %v5998_v34, %v5895_v61  ;;  %v6001_v27 = vld [vmem:[#allocation3 + $0x58] sm:$0xff]  ;;  %v5469_v21 = vadd.f32 %v5437_v54, %v5348_v48  ;;  %v6193_v30 = vmul.f32 %v8991_v50, %v8991_v50  ;;  %v5441_v40 = vld [vmem:[#allocation3 + $0x88] sm:$0xff] }
 0x22b   : > { %v6122_v53 = vadd.f32 %v6121_v36, %v6120_v55  ;;  %v6221_v44 = vadd.f32 %v6220_v31, %v6219_v17  ;;  %v6090_v10 = vld [vmem:[#allocation3 + $0x20] sm:$0xff]  ;;  %v7256_v35 = vpop.f32.mrf.mxu0  ;;  %5503 = vst.msk [vmem:[#allocation3 + $0x78] sm:$0xff] %vm921_vm3, %v5471_v45  ;;  %v7229_v29 = vpop.f32.mrf.mxu1  ;;  %v6129_v41 = vsel %vm921_vm3, %v8991_v50, 0.0  ;;  %v5446_v31 = vld [vmem:[#allocation3 + $0xb0] sm:$0xff] }
 0x22c   : > { %v6191_v38 = vmul.f32 %v6090_v10, %v6090_v10  ;;  %6296 = vst.msk [vmem:[%s8968_s30 + $0x20] sm:$0xff] %vm921_vm3, %v6090_v10  ;;  %6062 = vst.msk [vmem:[#allocation3 + $0x40] sm:$0xff] %vm921_vm3, %v6030_v57  ;;  %v6033_v6 = vadd.f32 %v7256_v35, %v6001_v27  ;;  %v5999_v52 = vld [vmem:[#allocation3 + $0x48] sm:$0xff]  ;;  %v5474_v28 = vadd.f32 %v7229_v29, %v5442_v22  ;;  %v6125_v2 = vsel %vm921_vm3, %v6090_v10, 0.0 }
 0x22d   : > { %v6223_v1 = vadd.f32 %v6222_v56, %v6221_v44  ;;  %v6124_v43 = vadd.f32 %v6123_v19, %v6122_v53  ;;  %v6093_v37 = vld [vmem:[#allocation3 + $0x38] sm:$0xff]  ;;  %v5898_v7 = vpop.f32.mrf.mxu0  ;;  %5501 = vst.msk [vmem:[#allocation3 + $0x68] sm:$0xff] %vm921_vm3, %v5469_v21  ;;  %v5361_v32 = vpop.f32.mrf.mxu1  ;;  %v6230_v55 = vsel %vm921_vm3, %v6193_v30, 0.0  ;;  %v5444_v19 = vld [vmem:[#allocation3 + $0xa0] sm:$0xff] }
 0x22e   : > { %6299 = vst.msk [vmem:[%s8968_s30 + $0x38] sm:$0xff] %vm921_vm3, %v6093_v37  ;;  %6065 = vst.msk [vmem:[#allocation3 + $0x58] sm:$0xff] %vm921_vm3, %v6033_v6  ;;  %v6031_v13 = vadd.f32 %v5999_v52, %v5898_v7  ;;  %v6004_v18 = vld [vmem:[#allocation3 + $0x70] sm:$0xff]  ;;  %v5472_v58 = vadd.f32 %v5440_v63, %v5361_v32  ;;  %v6226_v60 = vsel %vm921_vm3, %v6191_v38, 0.0  ;;  %v6194_v47 = vmul.f32 %v6093_v37, %v6093_v37 }
 0x22f   : > { %v6126_v15 = vadd.f32 %v6125_v2, %v6124_v43  ;;  %v6225_v23 = vadd.f32 %v6224_v3, %v6223_v1  ;;  %v6091_v39 = vld [vmem:[#allocation3 + $0x28] sm:$0xff]  ;;  %v7259_v49 = vpop.f32.mrf.mxu0  ;;  %5506 = vst.msk [vmem:[#allocation3 + $0x90] sm:$0xff] %vm921_vm3, %v5474_v28  ;;  %v7230_v5 = vpop.f32.mrf.mxu1  ;;  %v6131_v50 = vsel %vm921_vm3, %v6093_v37, 0.0 }
 0x230   : > { %v6127_v59 = vsel %vm921_vm3, %v6091_v39, 0.0  ;;  %v6192_v51 = vmul.f32 %v6091_v39, %v6091_v39  ;;  %6297 = vst.msk [vmem:[%s8968_s30 + $0x28] sm:$0xff] %vm921_vm3, %v6091_v39  ;;  %6063 = vst.msk [vmem:[#allocation3 + $0x48] sm:$0xff] %vm921_vm3, %v6031_v13  ;;  %v6036_v14 = vadd.f32 %v7259_v49, %v6004_v18  ;;  %v6002_v46 = vld [vmem:[#allocation3 + $0x60] sm:$0xff]  ;;  %v5475_v25 = vadd.f32 %v7230_v5, %v5443_v42  ;;  %v5447_v13 = vld [vmem:[#allocation3 + $0xb8] sm:$0xff] }
 0x231   : > { %v6227_v12 = vadd.f32 %v6226_v60, %v6225_v23  ;;  %v6128_v20 = vadd.f32 %v6127_v59, %v6126_v15  ;;  %v9020_v33 = vld [vmem:[#allocation3 + $0x50] sm:$0xff]  ;;  %v5911_v9 = vpop.f32.mrf.mxu0  ;;  %5504 = vst.msk [vmem:[#allocation3 + $0x80] sm:$0xff] %vm921_vm3, %v5472_v58  ;;  %v5364_v16 = vpop.f32.mrf.mxu1  ;;  %v6232_v44 = vsel %vm921_vm3, %v6194_v47, 0.0 }
 0x232   : > { %v6228_v0 = vsel %vm921_vm3, %v6192_v51, 0.0  ;;  %6302 = vst.msk [vmem:[%s8968_s30 + $0x50] sm:$0xff] %vm921_vm3, %v9020_v33  ;;  %6068 = vst.msk [vmem:[#allocation3 + $0x70] sm:$0xff] %vm921_vm3, %v6036_v14  ;;  %v6034_v4 = vadd.f32 %v6002_v46, %v5911_v9  ;;  %v6005_v26 = vld [vmem:[#allocation3 + $0x78] sm:$0xff]  ;;  %v5473_v36 = vadd.f32 %v5441_v40, %v5364_v16  ;;  %v6197_v38 = vmul.f32 %v9020_v33, %v9020_v33  ;;  %v5445_v51 = vld [vmem:[#allocation3 + $0xa8] sm:$0xff] }
 0x233   : > { %v6130_v11 = vadd.f32 %v6129_v41, %v6128_v20  ;;  %v6229_v34 = vadd.f32 %v6228_v0, %v6227_v12  ;;  %v6094_v24 = vld [vmem:[#allocation3 + $0x40] sm:$0xff]  ;;  %v7260_v62 = vpop.f32.mrf.mxu0  ;;  %5507 = vst.msk [vmem:[#allocation3 + $0x98] sm:$0xff] %vm921_vm3, %v5475_v25  ;;  %v7233_v8 = vpop.f32.mrf.mxu1  ;;  %v6137_v23 = vsel %vm921_vm3, %v9020_v33, 0.0  ;;  %v5450_v0 = vld [vmem:[#allocation3 + $0xd0] sm:$0xff] }
 0x234   : > { %v6195_v61 = vmul.f32 %v6094_v24, %v6094_v24  ;;  %6300 = vst.msk [vmem:[%s8968_s30 + $0x40] sm:$0xff] %vm921_vm3, %v6094_v24  ;;  %6066 = vst.msk [vmem:[#allocation3 + $0x60] sm:$0xff] %vm921_vm3, %v6034_v4  ;;  %v6037_v45 = vadd.f32 %v7260_v62, %v6005_v26  ;;  %v6003_v17 = vld [vmem:[#allocation3 + $0x68] sm:$0xff]  ;;  %v5478_v53 = vadd.f32 %v7233_v8, %v5446_v31  ;;  %v6133_v10 = vsel %vm921_vm3, %v6094_v24, 0.0 }
 0x235   : > { %v6231_v57 = vadd.f32 %v6230_v55, %v6229_v34  ;;  %v6132_v27 = vadd.f32 %v6131_v50, %v6130_v11  ;;  %v6097_v48 = vld [vmem:[#allocation3 + $0x58] sm:$0xff]  ;;  %v5914_v54 = vpop.f32.mrf.mxu0  ;;  %5505 = vst.msk [vmem:[#allocation3 + $0x88] sm:$0xff] %vm921_vm3, %v5473_v36  ;;  %v5377_v56 = vpop.f32.mrf.mxu1  ;;  %v6238_v20 = vsel %vm921_vm3, %v6197_v38, 0.0  ;;  %v5448_v50 = vld [vmem:[#allocation3 + $0xc0] sm:$0xff] }
 0x236   : > { %6303 = vst.msk [vmem:[%s8968_s30 + $0x58] sm:$0xff] %vm921_vm3, %v6097_v48  ;;  %6069 = vst.msk [vmem:[#allocation3 + $0x78] sm:$0xff] %vm921_vm3, %v6037_v45  ;;  %v6035_v35 = vadd.f32 %v6003_v17, %v5914_v54  ;;  %v6008_v21 = vld [vmem:[#allocation3 + $0x90] sm:$0xff]  ;;  %v5476_v1 = vadd.f32 %v5444_v19, %v5377_v56  ;;  %v6234_v43 = vsel %vm921_vm3, %v6195_v61, 0.0  ;;  %v6198_v39 = vmul.f32 %v6097_v48, %v6097_v48 }
 0x237   : > { %v6134_v6 = vadd.f32 %v6133_v10, %v6132_v27  ;;  %v6233_v52 = vadd.f32 %v6232_v44, %v6231_v57  ;;  %v6095_v29 = vld [vmem:[#allocation3 + $0x48] sm:$0xff]  ;;  %v7263_v22 = vpop.f32.mrf.mxu0  ;;  %5510 = vst.msk [vmem:[#allocation3 + $0xb0] sm:$0xff] %vm921_vm3, %v5478_v53  ;;  %v7234_v2 = vpop.f32.mrf.mxu1  ;;  %v6139_v33 = vsel %vm921_vm3, %v6097_v48, 0.0 }
 0x238   : > { %v6135_v37 = vsel %vm921_vm3, %v6095_v29, 0.0  ;;  %v6196_v7 = vmul.f32 %v6095_v29, %v6095_v29  ;;  %6301 = vst.msk [vmem:[%s8968_s30 + $0x48] sm:$0xff] %vm921_vm3, %v6095_v29  ;;  %6067 = vst.msk [vmem:[#allocation3 + $0x68] sm:$0xff] %vm921_vm3, %v6035_v35  ;;  %v6040_v28 = vadd.f32 %v7263_v22, %v6008_v21  ;;  %v6006_v3 = vld [vmem:[#allocation3 + $0x80] sm:$0xff]  ;;  %v5479_v15 = vadd.f32 %v7234_v2, %v5447_v13  ;;  %v5451_v35 = vld [vmem:[#allocation3 + $0xd8] sm:$0xff] }
 0x239   : > { %v6235_v18 = vadd.f32 %v6234_v43, %v6233_v52  ;;  %v6136_v32 = vadd.f32 %v6135_v37, %v6134_v6  ;;  %v9050_v63 = vld [vmem:[#allocation3 + $0x70] sm:$0xff]  ;;  %v5927_v30 = vpop.f32.mrf.mxu0  ;;  %5508 = vst.msk [vmem:[#allocation3 + $0xa0] sm:$0xff] %vm921_vm3, %v5476_v1  ;;  %v5380_v59 = vpop.f32.mrf.mxu1  ;;  %v6240_v34 = vsel %vm921_vm3, %v6198_v39, 0.0 }
 0x23a   : > { %v6236_v49 = vsel %vm921_vm3, %v6196_v7, 0.0  ;;  %6306 = vst.msk [vmem:[%s8968_s30 + $0x70] sm:$0xff] %vm921_vm3, %v9050_v63  ;;  %6072 = vst.msk [vmem:[#allocation3 + $0x90] sm:$0xff] %vm921_vm3, %v6040_v28  ;;  %v6038_v58 = vadd.f32 %v6006_v3, %v5927_v30  ;;  %v6009_v60 = vld [vmem:[#allocation3 + $0x98] sm:$0xff]  ;;  %v5477_v12 = vadd.f32 %v5445_v51, %v5380_v59  ;;  %v6201_v61 = vmul.f32 %v9050_v63, %v9050_v63  ;;  %v5449_v7 = vld [vmem:[#allocation3 + $0xc8] sm:$0xff] }
 0x23b   : > { %v6138_v14 = vadd.f32 %v6137_v23, %v6136_v32  ;;  %v6237_v46 = vadd.f32 %v6236_v49, %v6235_v18  ;;  %v6098_v5 = vld [vmem:[#allocation3 + $0x60] sm:$0xff]  ;;  %v7264_v42 = vpop.f32.mrf.mxu0  ;;  %5511 = vst.msk [vmem:[#allocation3 + $0xb8] sm:$0xff] %vm921_vm3, %v5479_v15  ;;  %v7237_v47 = vpop.f32.mrf.mxu1  ;;  %v6145_v52 = vsel %vm921_vm3, %v9050_v63, 0.0 }
 0x23c   : > { %v6199_v9 = vmul.f32 %v6098_v5, %v6098_v5  ;;  %6304 = vst.msk [vmem:[%s8968_s30 + $0x60] sm:$0xff] %vm921_vm3, %v6098_v5  ;;  %6070 = vst.msk [vmem:[#allocation3 + $0x80] sm:$0xff] %vm921_vm3, %v6038_v58  ;;  %v6041_v25 = vadd.f32 %v7264_v42, %v6009_v60  ;;  %v6007_v41 = vld [vmem:[#allocation3 + $0x88] sm:$0xff]  ;;  %v5482_v11 = vadd.f32 %v7237_v47, %v5450_v0  ;;  %v6141_v24 = vsel %vm921_vm3, %v6098_v5, 0.0 }
 0x23d   : > { %v6239_v4 = vadd.f32 %v6238_v20, %v6237_v46  ;;  %v6140_v26 = vadd.f32 %v6139_v33, %v6138_v14  ;;  %v6101_v16 = vld [vmem:[#allocation3 + $0x78] sm:$0xff]  ;;  %v5930_v40 = vpop.f32.mrf.mxu0  ;;  %5509 = vst.msk [vmem:[#allocation3 + $0xa8] sm:$0xff] %vm921_vm3, %v5477_v12  ;;  %v5393_v55 = vpop.f32.mrf.mxu1  ;;  %v6246_v32 = vsel %vm921_vm3, %v6201_v61, 0.0 }
 0x23e   : > { %6307 = vst.msk [vmem:[%s8968_s30 + $0x78] sm:$0xff] %vm921_vm3, %v6101_v16  ;;  %6073 = vst.msk [vmem:[#allocation3 + $0x98] sm:$0xff] %vm921_vm3, %v6041_v25  ;;  %v6039_v62 = vadd.f32 %v6007_v41, %v5930_v40  ;;  %v6012_v36 = vld [vmem:[#allocation3 + $0xb0] sm:$0xff]  ;;  %v5480_v57 = vadd.f32 %v5448_v50, %v5393_v55  ;;  %v6242_v27 = vsel %vm921_vm3, %v6199_v9, 0.0  ;;  %v6202_v29 = vmul.f32 %v6101_v16, %v6101_v16 }
 0x23f   : > { %v6142_v45 = vadd.f32 %v6141_v24, %v6140_v26  ;;  %v6241_v17 = vadd.f32 %v6240_v34, %v6239_v4  ;;  %v6099_v8 = vld [vmem:[#allocation3 + $0x68] sm:$0xff]  ;;  %v7267_v31 = vpop.f32.mrf.mxu0  ;;  %5514 = vst.msk [vmem:[#allocation3 + $0xd0] sm:$0xff] %vm921_vm3, %v5482_v11  ;;  %v7238_v10 = vpop.f32.mrf.mxu1  ;;  %v6147_v63 = vsel %vm921_vm3, %v6101_v16, 0.0  ;;  %v5454_v55 = vld [vmem:[#allocation3 + $0xf0] sm:$0xff] }
 0x240   : > { %v6143_v48 = vsel %vm921_vm3, %v6099_v8, 0.0  ;;  %v6200_v54 = vmul.f32 %v6099_v8, %v6099_v8  ;;  %6305 = vst.msk [vmem:[%s8968_s30 + $0x68] sm:$0xff] %vm921_vm3, %v6099_v8  ;;  %6071 = vst.msk [vmem:[#allocation3 + $0x88] sm:$0xff] %vm921_vm3, %v6039_v62  ;;  %v6044_v53 = vadd.f32 %v7267_v31, %v6012_v36  ;;  %v6010_v44 = vld [vmem:[#allocation3 + $0xa0] sm:$0xff]  ;;  %v5483_v6 = vadd.f32 %v7238_v10, %v5451_v35 }
 0x241   : > { %v6243_v21 = vadd.f32 %v6242_v27, %v6241_v17  ;;  %v6144_v56 = vadd.f32 %v6143_v48, %v6142_v45  ;;  %v6104_v19 = vld [vmem:[#allocation3 + $0x90] sm:$0xff]  ;;  %v5943_v38 = vpop.f32.mrf.mxu0  ;;  %5512 = vst.msk [vmem:[#allocation3 + $0xc0] sm:$0xff] %vm921_vm3, %v5480_v57  ;;  %v5396_v37 = vpop.f32.mrf.mxu1  ;;  %v6248_v59 = vsel %vm921_vm3, %v6202_v29, 0.0 }
 0x242   : > { %v6244_v22 = vsel %vm921_vm3, %v6200_v54, 0.0  ;;  %6310 = vst.msk [vmem:[%s8968_s30 + $0x90] sm:$0xff] %vm921_vm3, %v6104_v19  ;;  %6076 = vst.msk [vmem:[#allocation3 + $0xb0] sm:$0xff] %vm921_vm3, %v6044_v53  ;;  %v6042_v1 = vadd.f32 %v6010_v44, %v5943_v38  ;;  %v6013_v43 = vld [vmem:[#allocation3 + $0xb8] sm:$0xff]  ;;  %v5481_v18 = vadd.f32 %v5449_v7, %v5396_v37  ;;  %v6205_v5 = vmul.f32 %v6104_v19, %v6104_v19  ;;  %v5452_v44 = vld [vmem:[#allocation3 + $0xe0] sm:$0xff] }
 0x243   : > { %v6146_v28 = vadd.f32 %v6145_v52, %v6144_v56  ;;  %v6245_v3 = vadd.f32 %v6244_v22, %v6243_v21  ;;  %v6102_v2 = vld [vmem:[#allocation3 + $0x80] sm:$0xff]  ;;  %v7268_v13 = vpop.f32.mrf.mxu0  ;;  %5515 = vst.msk [vmem:[#allocation3 + $0xd8] sm:$0xff] %vm921_vm3, %v5483_v6  ;;  %v6153_v34 = vsel %vm921_vm3, %v6104_v19, 0.0 }
 0x244   : > { %v6203_v30 = vmul.f32 %v6102_v2, %v6102_v2  ;;  %6308 = vst.msk [vmem:[%s8968_s30 + $0x80] sm:$0xff] %vm921_vm3, %v6102_v2  ;;  %6074 = vst.msk [vmem:[#allocation3 + $0xa0] sm:$0xff] %vm921_vm3, %v6042_v1  ;;  %v6045_v15 = vadd.f32 %v7268_v13, %v6013_v43  ;;  %v6011_v23 = vld [vmem:[#allocation3 + $0xa8] sm:$0xff]  ;;  %v6149_v51 = vsel %vm921_vm3, %v6102_v2, 0.0  ;;  %v6254_v27 = vsel %vm921_vm3, %v6205_v5, 0.0  ;;  %v5455_v1 = vld [vmem:[#allocation3 + $0xf8] sm:$0xff] }
 0x245   : > { %v6247_v39 = vadd.f32 %v6246_v32, %v6245_v3  ;;  %v6148_v49 = vadd.f32 %v6147_v63, %v6146_v28  ;;  %v6105_v58 = vld [vmem:[#allocation3 + $0x98] sm:$0xff]  ;;  %v5946_v60 = vpop.f32.mrf.mxu0  ;;  %5513 = vst.msk [vmem:[#allocation3 + $0xc8] sm:$0xff] %vm921_vm3, %v5481_v18  ;;  %v5453_v18 = vld [vmem:[#allocation3 + $0xe8] sm:$0xff] }
 0x246   : > { %6311 = vst.msk [vmem:[%s8968_s30 + $0x98] sm:$0xff] %vm921_vm3, %v6105_v58  ;;  %6077 = vst.msk [vmem:[#allocation3 + $0xb8] sm:$0xff] %vm921_vm3, %v6045_v15  ;;  %v6043_v14 = vadd.f32 %v6011_v23, %v5946_v60  ;;  %v6016_v46 = vld [vmem:[#allocation3 + $0xd0] sm:$0xff]  ;;  %v6250_v9 = vsel %vm921_vm3, %v6203_v30, 0.0  ;;  %v6206_v24 = vmul.f32 %v6105_v58, %v6105_v58  ;;  %v6155_v48 = vsel %vm921_vm3, %v6105_v58, 0.0 }
 0x247   : > { %v6150_v42 = vadd.f32 %v6149_v51, %v6148_v49  ;;  %v6249_v12 = vadd.f32 %v6248_v59, %v6247_v39  ;;  %v6103_v20 = vld [vmem:[#allocation3 + $0x88] sm:$0xff]  ;;  %v7271_v33 = vpop.f32.mrf.mxu0 }
 0x248   : > { %v6151_v25 = vsel %vm921_vm3, %v6103_v20, 0.0  ;;  %v6204_v41 = vmul.f32 %v6103_v20, %v6103_v20  ;;  %6309 = vst.msk [vmem:[%s8968_s30 + $0x88] sm:$0xff] %vm921_vm3, %v6103_v20  ;;  %6075 = vst.msk [vmem:[#allocation3 + $0xa8] sm:$0xff] %vm921_vm3, %v6043_v14  ;;  %v6048_v47 = vadd.f32 %v7271_v33, %v6016_v46  ;;  %v6014_v0 = vld [vmem:[#allocation3 + $0xc0] sm:$0xff]  ;;  %v6256_v52 = vsel %vm921_vm3, %v6206_v24, 0.0 }
 0x249   : > { %v6251_v4 = vadd.f32 %v6250_v9, %v6249_v12  ;;  %v6152_v26 = vadd.f32 %v6151_v25, %v6150_v42  ;;  %v6108_v16 = vld [vmem:[#allocation3 + $0xb0] sm:$0xff]  ;;  %v5959_v40 = vpop.f32.mrf.mxu0  ;;  %v7241_v11 = vpop.f32.mrf.mxu1 }
 0x24a   : > { %v6252_v62 = vsel %vm921_vm3, %v6204_v41, 0.0  ;;  %6314 = vst.msk [vmem:[%s8968_s30 + $0xb0] sm:$0xff] %vm921_vm3, %v6108_v16  ;;  %6080 = vst.msk [vmem:[#allocation3 + $0xd0] sm:$0xff] %vm921_vm3, %v6048_v47  ;;  %v6046_v36 = vadd.f32 %v6014_v0, %v5959_v40  ;;  %v6017_v50 = vld [vmem:[#allocation3 + $0xd8] sm:$0xff]  ;;  %v5486_v8 = vadd.f32 %v7241_v11, %v5454_v55  ;;  %v6209_v43 = vmul.f32 %v6108_v16, %v6108_v16 }
 0x24b   : > { %v6154_v61 = vadd.f32 %v6153_v34, %v6152_v26  ;;  %v6253_v45 = vadd.f32 %v6252_v62, %v6251_v4  ;;  %v6106_v17 = vld [vmem:[#allocation3 + $0xa0] sm:$0xff]  ;;  %v7272_v31 = vpop.f32.mrf.mxu0  ;;  %v5409_v57 = vpop.f32.mrf.mxu1  ;;  %v6161_v60 = vsel %vm921_vm3, %v6108_v16, 0.0 }
 0x24c   : > { %v6207_v54 = vmul.f32 %v6106_v17, %v6106_v17  ;;  %6312 = vst.msk [vmem:[%s8968_s30 + $0xa0] sm:$0xff] %vm921_vm3, %v6106_v17  ;;  %6078 = vst.msk [vmem:[#allocation3 + $0xc0] sm:$0xff] %vm921_vm3, %v6046_v36  ;;  %v6049_v53 = vadd.f32 %v7272_v31, %v6017_v50  ;;  %v6015_v10 = vld [vmem:[#allocation3 + $0xc8] sm:$0xff]  ;;  %v5484_v19 = vadd.f32 %v5452_v44, %v5409_v57  ;;  %v6157_v29 = vsel %vm921_vm3, %v6106_v17, 0.0 }
 0x24d   : > { %v6255_v35 = vadd.f32 %v6254_v27, %v6253_v45  ;;  %v6156_v21 = vadd.f32 %v6155_v48, %v6154_v61  ;;  %v6109_v56 = vld [vmem:[#allocation3 + $0xb8] sm:$0xff]  ;;  %5518 = vst.msk [vmem:[#allocation3 + $0xf0] sm:$0xff] %vm921_vm3, %v5486_v8  ;;  %v5962_v38 = vpop.f32.mrf.mxu0  ;;  %v7242_v6 = vpop.f32.mrf.mxu1  ;;  %v6262_v42 = vsel %vm921_vm3, %v6209_v43, 0.0 }
 0x24e   : > { %6315 = vst.msk [vmem:[%s8968_s30 + $0xb8] sm:$0xff] %vm921_vm3, %v6109_v56  ;;  %6081 = vst.msk [vmem:[#allocation3 + $0xd8] sm:$0xff] %vm921_vm3, %v6049_v53  ;;  %v6047_v22 = vadd.f32 %v6015_v10, %v5962_v38  ;;  %v5487_v3 = vadd.f32 %v7242_v6, %v5455_v1  ;;  %v6258_v32 = vsel %vm921_vm3, %v6207_v54, 0.0  ;;  %v6210_v59 = vmul.f32 %v6109_v56, %v6109_v56 }
 0x24f   : > { %v6158_v37 = vadd.f32 %v6157_v29, %v6156_v21  ;;  %v6257_v7 = vadd.f32 %v6256_v52, %v6255_v35  ;;  %v6107_v28 = vld [vmem:[#allocation3 + $0xa8] sm:$0xff]  ;;  %5516 = vst.msk [vmem:[#allocation3 + $0xe0] sm:$0xff] %vm921_vm3, %v5484_v19  ;;  %v7275_v2 = vpop.f32.mrf.mxu0  ;;  %v5412_v13 = vpop.f32.mrf.mxu1  ;;  %v6163_v12 = vsel %vm921_vm3, %v6109_v56, 0.0 }
 0x250   : > { %v6159_v63 = vsel %vm921_vm3, %v6107_v28, 0.0  ;;  %v6208_v30 = vmul.f32 %v6107_v28, %v6107_v28  ;;  %6313 = vst.msk [vmem:[%s8968_s30 + $0xa8] sm:$0xff] %vm921_vm3, %v6107_v28  ;;  %6079 = vst.msk [vmem:[#allocation3 + $0xc8] sm:$0xff] %vm921_vm3, %v6047_v22  ;;  %v5485_v15 = vadd.f32 %v5453_v18, %v5412_v13  ;;  %v6264_v4 = vsel %vm921_vm3, %v6210_v59, 0.0 }
 0x251   : > { %v6259_v23 = vadd.f32 %v6258_v32, %v6257_v7  ;;  %v6160_v39 = vadd.f32 %v6159_v63, %v6158_v37  ;;  %v6112_v49 = vld [vmem:[#allocation3 + $0xd0] sm:$0xff]  ;;  %5519 = vst.msk [vmem:[#allocation3 + $0xf8] sm:$0xff] %vm921_vm3, %v5487_v3  ;;  %v5975_v58 = vpop.f32.mrf.mxu0 }
 0x252   : > { %v6260_v51 = vsel %vm921_vm3, %v6208_v30, 0.0  ;;  %6318 = vst.msk [vmem:[%s8968_s30 + $0xd0] sm:$0xff] %vm921_vm3, %v6112_v49  ;;  %5517 = vst.msk [vmem:[#allocation3 + $0xe8] sm:$0xff] %vm921_vm3, %v5485_v15  ;;  %v6213_v62 = vmul.f32 %v6112_v49, %v6112_v49  ;;  %v6169_v27 = vsel %vm921_vm3, %v6112_v49, 0.0 }
 0x253   : > { %v6162_v14 = vadd.f32 %v6161_v60, %v6160_v39  ;;  %v6261_v46 = vadd.f32 %v6260_v51, %v6259_v23  ;;  %v6110_v5 = vld [vmem:[#allocation3 + $0xc0] sm:$0xff]  ;;  %v7276_v0 = vpop.f32.mrf.mxu0 }
 0x254   : > { %v6211_v20 = vmul.f32 %v6110_v5, %v6110_v5  ;;  %6316 = vst.msk [vmem:[%s8968_s30 + $0xc0] sm:$0xff] %vm921_vm3, %v6110_v5  ;;  %v6020_v33 = vld [vmem:[#allocation3 + $0xf0] sm:$0xff]  ;;  %v6165_v26 = vsel %vm921_vm3, %v6110_v5, 0.0  ;;  %v6270_v35 = vsel %vm921_vm3, %v6213_v62, 0.0 }
 0x255   : > { %v6263_v9 = vadd.f32 %v6262_v42, %v6261_v46  ;;  %v6164_v25 = vadd.f32 %v6163_v12, %v6162_v14  ;;  %v6113_v41 = vld [vmem:[#allocation3 + $0xd8] sm:$0xff]  ;;  %v6052_v47 = vadd.f32 %v7275_v2, %v6020_v33  ;;  %v5978_v31 = vpop.f32.mrf.mxu0 }
 0x256   : > { %6319 = vst.msk [vmem:[%s8968_s30 + $0xd8] sm:$0xff] %vm921_vm3, %v6113_v41  ;;  %v6018_v16 = vld [vmem:[#allocation3 + $0xe0] sm:$0xff]  ;;  %v6266_v36 = vsel %vm921_vm3, %v6211_v20, 0.0  ;;  %v6214_v53 = vmul.f32 %v6113_v41, %v6113_v41  ;;  %v6171_v21 = vsel %vm921_vm3, %v6113_v41, 0.0 }
 0x257   : > { %v6166_v40 = vadd.f32 %v6165_v26, %v6164_v25  ;;  %v6265_v11 = vadd.f32 %v6264_v4, %v6263_v9  ;;  %v6111_v34 = vld [vmem:[#allocation3 + $0xc8] sm:$0xff]  ;;  %6084 = vst.msk [vmem:[#allocation3 + $0xf0] sm:$0xff] %vm921_vm3, %v6052_v47  ;;  %v6050_v24 = vadd.f32 %v6018_v16, %v5975_v58 }
 0x258   : > { %v6167_v55 = vsel %vm921_vm3, %v6111_v34, 0.0  ;;  %v6212_v50 = vmul.f32 %v6111_v34, %v6111_v34  ;;  %6317 = vst.msk [vmem:[%s8968_s30 + $0xc8] sm:$0xff] %vm921_vm3, %v6111_v34  ;;  %v6021_v61 = vld [vmem:[#allocation3 + $0xf8] sm:$0xff]  ;;  %v6272_v6 = vsel %vm921_vm3, %v6214_v53, 0.0 }
 0x259   : > { %v6267_v45 = vadd.f32 %v6266_v36, %v6265_v11  ;;  %v6168_v17 = vadd.f32 %v6167_v55, %v6166_v40  ;;  %6082 = vst.msk [vmem:[#allocation3 + $0xe0] sm:$0xff] %vm921_vm3, %v6050_v24  ;;  %v6053_v8 = vadd.f32 %v7276_v0, %v6021_v61  ;;  %v6019_v57 = vld [vmem:[#allocation3 + $0xe8] sm:$0xff] }
 0x25a   : > { %v6268_v48 = vsel %vm921_vm3, %v6212_v50, 0.0  ;;  %v6051_v54 = vadd.f32 %v6019_v57, %v5978_v31 }
 0x25b   : > { %v6170_v44 = vadd.f32 %v6169_v27, %v6168_v17  ;;  %v6269_v10 = vadd.f32 %v6268_v48, %v6267_v45  ;;  %6085 = vst.msk [vmem:[#allocation3 + $0xf8] sm:$0xff] %vm921_vm3, %v6053_v8 }
 0x25c   : > { %6083 = vst.msk [vmem:[#allocation3 + $0xe8] sm:$0xff] %vm921_vm3, %v6051_v54 }
 0x25d   : > { %v6271_v56 = vadd.f32 %v6270_v35, %v6269_v10  ;;  %v6172_v38 = vadd.f32 %v6171_v21, %v6170_v44 }
 0x25e   : > { %v6116_v19 = vld [vmem:[#allocation3 + $0xf0] sm:$0xff] }
 0x25f   : > { %6322 = vst.msk [vmem:[%s8968_s30 + $0xf0] sm:$0xff] %vm921_vm3, %v6116_v19  ;;  %v6273_v29 = vadd.f32 %v6272_v6, %v6271_v56  ;;  %v6217_v3 = vmul.f32 %v6116_v19, %v6116_v19  ;;  %v6177_v63 = vsel %vm921_vm3, %v6116_v19, 0.0 }
 0x260   : > { %v6114_v52 = vld [vmem:[#allocation3 + $0xe0] sm:$0xff] }
 0x261   : > { %v6173_v22 = vsel %vm921_vm3, %v6114_v52, 0.0  ;;  %v6215_v1 = vmul.f32 %v6114_v52, %v6114_v52  ;;  %6320 = vst.msk [vmem:[%s8968_s30 + $0xe0] sm:$0xff] %vm921_vm3, %v6114_v52  ;;  %v6278_v49 = vsel %vm921_vm3, %v6217_v3, 0.0 }
 0x262   : > { %v6174_v43 = vadd.f32 %v6173_v22, %v6172_v38  ;;  %v6117_v37 = vld [vmem:[#allocation3 + $0xf8] sm:$0xff] }
 0x263   : > { %v6274_v7 = vsel %vm921_vm3, %v6215_v1, 0.0  ;;  %6323 = vst.msk [vmem:[%s8968_s30 + $0xf8] sm:$0xff] %vm921_vm3, %v6117_v37  ;;  %v6115_v28 = vld [vmem:[#allocation3 + $0xe8] sm:$0xff]  ;;  %v6218_v30 = vmul.f32 %v6117_v37, %v6117_v37  ;;  %v6179_v58 = vsel %vm921_vm3, %v6117_v37, 0.0 }
 0x264   : > { %v6275_v2 = vadd.f32 %v6274_v7, %v6273_v29  ;;  %v6175_v13 = vsel %vm921_vm3, %v6115_v28, 0.0  ;;  %v6216_v18 = vmul.f32 %v6115_v28, %v6115_v28  ;;  %6321 = vst.msk [vmem:[%s8968_s30 + $0xe8] sm:$0xff] %vm921_vm3, %v6115_v28 }
 0x265   : > { %v6176_v32 = vadd.f32 %v6175_v13, %v6174_v43  ;;  %v6280_v51 = vsel %vm921_vm3, %v6218_v30, 0.0 }
 0x266   : > { %v6276_v15 = vsel %vm921_vm3, %v6216_v18, 0.0 }
 0x267   : > { %v6178_v23 = vadd.f32 %v6177_v63, %v6176_v32  ;;  %v6277_v39 = vadd.f32 %v6276_v15, %v6275_v2 }
 0x269   : > { %v6180_v60 = vadd.f32 %v6179_v58, %v6178_v23  ;;  %v6279_v59 = vadd.f32 %v6278_v49, %v6277_v39 }
 0x26b   : > { %v6181_v14 = vrot.slane %v6180_v60, 4  ;;  %v6281_v46 = vadd.f32 %v6280_v51, %v6279_v59 }
 0x26d   : > { %v6182_v5 = vadd.f32 %v6181_v14, %v6180_v60  ;;  %v6282_v42 = vrot.slane %v6281_v46, 4 }
 0x26f   : > { %v6183_v12 = vrot.slane %v6182_v5, 2  ;;  %v6283_v20 = vadd.f32 %v6282_v42, %v6281_v46 }
 0x271   : > { %v6184_v33 = vadd.f32 %v6183_v12, %v6182_v5  ;;  %v6284_v9 = vrot.slane %v6283_v20, 2 }
 0x273   : > { %v6185_v25 = vrot.slane %v6184_v33, 1  ;;  %v6285_v41 = vadd.f32 %v6284_v9, %v6283_v20 }
 0x275   : > { %v6286_v47 = vrot.slane %v6285_v41, 1  ;;  %v6186_v0 = vadd.f32 %v6185_v25, %v6184_v33 }
 0x277   : > { %v6287_v4 = vadd.f32 %v6286_v47, %v6285_v41 }
 0x279   : > { %v6289_v26 = vsel %vm548_vm4, %v6186_v0, %v6287_v4 }
 0x27a   : > { %6291 = vst.msk [vmem:[%s235_s8] sm:$0x3] %vm6290_vm13, %v6289_v26 }
 0x27b PF: > { %s16_s18 = sadd.s32 1, %s7354_s18  }
 0x27c   : > { %p13_p4 = scmp.ge.s32.totalorder %s16_s18, 4  }
 0x27e   :  { %15 = sbr.rel (!%p13_p4) target bundleno = 1 (0x1), region = 89 }

</bundles_post_ra>
